<compile_context>
chip_gen: v7x
topology: tpu7x:2x2x1
jax: 0.10.0
libtpu: 0.0.40
codegen_flags: <defaults>
</compile_context>

<pallas_src>
import functools

import jax
import jax.numpy as jnp
from jax import lax
from jax.experimental import pallas as pl
from jax.experimental.pallas import tpu as pltpu

_LANE = 128


def _relu6(x):
    return jnp.clip(x, 0.0, 6.0)


def _fold_bn(gamma, beta, mean, var, eps=1e-5):
    scale = gamma / jnp.sqrt(var + eps)
    shift = beta - mean * scale
    return scale, shift


def _vmem_limit_bytes(per_step_bytes):
    """Scoped-VMEM request from the actual per-step footprint + headroom (review item)."""
    default_cap = 64 * 1024 * 1024
    try:
        cap = int(getattr(pltpu.get_tpu_info(), "vmem_capacity_bytes", default_cap))
    except Exception:
        cap = default_cap
    want = max(4 * int(per_step_bytes) + (8 << 20), 48 << 20)
    return int(min(want, max(cap - (16 << 20), 32 << 20)))


def _build_groups(channels, kernel_sizes, lane=_LANE):
    """Group branches by kernel size; each group gets a 128-aligned channel segment."""
    order, by_k = [], {}
    for b, k in enumerate(kernel_sizes):
        if k not in by_k:
            by_k[k] = []
            order.append(k)
        by_k[k].append(b)
    groups, g0 = [], 0
    for k in order:
        used = sum(channels[b] for b in by_k[k])
        csz = max(lane, ((used + lane - 1) // lane) * lane)
        groups.append(dict(k=k, branches=tuple(by_k[k]), g0=g0, csz=csz, used=used))
        g0 += csz
    return groups, g0  # g0 == padded concatenated hidden dim (Csum)


def _pick_strip_rows(Ho, stride, Kmax, Wp, csum, budget_bytes=4 << 20, max_rows=32):
    """Largest divisor of Ho (<= max_rows) whose f32 strip working set fits the budget;
    prefer >=2 strips so the grid has enough steps to pipeline / balance megacore."""
    def strip_bytes(th):
        hps = (th - 1) * stride + Kmax
        return 2 * hps * Wp * csum * 4  # f32 scratch + f32 expand output
    divs = [d for d in range(1, Ho + 1) if Ho % d == 0]
    fit = [d for d in divs if d <= max_rows and strip_bytes(d) <= budget_bytes]
    if not fit:
        return 1
    multi = [d for d in fit if Ho // d >= 2]
    return max(multi) if multi else max(fit)


# ---------------------------------------------------------------------------
# Fused kernel: expand (1 MXU matmul, all branches) -> depthwise per kernel-size
# group (f32 taps via ref slices of a zero-bordered VMEM scratch) -> stacked 1x1
# projection -> + pw_bn shift (+ residual), one H-strip per grid step.
# ---------------------------------------------------------------------------
def _make_fused_kernel(*, groups, Kmax, csum, stride, H, W, TH, Wo, HpS, Wp,
                       inp, oup, pad_max, expand, use_res):
    pad_r = Wp - pad_max - W  # right column border width

    def kernel(*refs):
        it = iter(refs)
        x_ref = next(it)
        if expand:
            w_exp_ref, b1_ref = next(it), next(it)
        w_dw_ref, b2_ref, w_proj_ref, pw_shift_ref = next(it), next(it), next(it), next(it)
        o_ref = next(it)
        pad_ref = next(it)  # VMEM scratch (HpS, Wp, csum), f32

        s = pl.program_id(1)
        row0 = pl.multiple_of(s * (TH * stride), TH * stride)  # row in pre-padded x

        # ---- 1x1 expand conv for ALL branches (one MXU matmul) + BN + ReLU6 ---
        xs = x_ref[0, pl.ds(row0, HpS), :, :]                       # (HpS, W, inp) f32
        if expand:
            h = jnp.dot(xs.reshape(HpS * W, inp).astype(jnp.bfloat16),
                        w_exp_ref[...],
                        preferred_element_type=jnp.float32)
            h = _relu6(h + b1_ref[...]).reshape(HpS, W, csum)
        else:
            # expand=False path (hid == inp per branch): replicate x into each slot.
            cols = []
            for g in groups:
                used = 0
                for _ in g["branches"]:
                    cols.append(xs)
                    used += inp
                if g["csz"] > used:
                    cols.append(jnp.zeros((HpS, W, g["csz"] - used), jnp.float32))
            h = jnp.concatenate(cols, axis=-1)

        # Rows belonging to the conv's zero padding (top/bottom halo) must be zero
        # even though relu6(bn1_shift) != 0 there -> mask by global padded-row index.
        if pad_max > 0:
            gi = row0 + lax.broadcasted_iota(jnp.int32, (HpS, 1, 1), 0)
            h = jnp.where((gi >= pad_max) & (gi < pad_max + H), h, 0.0)

        # ---- stage the strip in a zero-BORDERED f32 scratch (no full zeroing) --
        if pad_max > 0:
            pad_ref[:, pl.ds(0, pad_max), :] = jnp.zeros((HpS, pad_max, csum), jnp.float32)
        if pad_r > 0:
            pad_ref[:, pl.ds(pad_max + W, pad_r), :] = jnp.zeros((HpS, pad_r, csum), jnp.float32)
        pad_ref[:, pl.ds(pad_max, W), :] = h

        # ---- depthwise kxk per group + BN + ReLU6 -> stacked 1x1 projection ----
        part = jnp.zeros((TH * Wo, oup), jnp.float32)
        for g in groups:
            g0, csz, k = g["g0"], g["csz"], g["k"]
            ctr = (Kmax - k) // 2
            wdw = w_dw_ref[:, pl.ds(g0, csz)]                       # hoisted (Kmax^2, csz)
            acc = jnp.zeros((TH, Wo, csz), jnp.float32)
            for ky in range(k):
                for kx in range(k):
                    ry, cx = ctr + ky, ctr + kx
                    if stride == 1:
                        patch = pad_ref[pl.ds(ry, TH), pl.ds(cx, Wo), pl.ds(g0, csz)]
                    else:
                        # TODO(synk): stride=2 strided ref slicing is not exercised by
                        # the demo config below.
                        patch = pad_ref[pl.ds(ry, TH, stride=stride),
                                        pl.ds(cx, Wo, stride=stride),
                                        pl.ds(g0, csz)]
                    acc = acc + patch * wdw[ry * Kmax + cx]
            d = _relu6(acc + b2_ref[:, pl.ds(g0, csz)])
            part = part + jnp.dot(d.reshape(TH * Wo, csz).astype(jnp.bfloat16),
                                  w_proj_ref[pl.ds(g0, csz), :],
                                  preferred_element_type=jnp.float32)

        out = part.reshape(TH, Wo, oup) + pw_shift_ref[...]         # pw_bn shift (scale folded)
        if use_res:
            out = out + x_ref[0, pl.ds(row0 + pad_max, TH), :, :]   # stride==1, inp==oup
        # TODO(synk): emit bf16 output here if the downstream consumer accepts it
        # (halves output HBM traffic); kept f32 to match the PyTorch module.
        o_ref[0] = out.astype(o_ref.dtype)

    return kernel


# ---------------------------------------------------------------------------
# Parameter init (deterministic, synthetic), BN folding / weight concatenation
# ---------------------------------------------------------------------------
def init_params(key, inp, oup, channels, kernel_sizes, expand):
    def bn_params(k, c):
        k1, k2, k3, k4 = jax.random.split(k, 4)
        gamma = jax.random.uniform(k1, (c,), jnp.float32, 0.5, 1.5)
        beta = 0.1 * jax.random.normal(k2, (c,), jnp.float32)
        mean = 0.1 * jax.random.normal(k3, (c,), jnp.float32)
        var = jax.random.uniform(k4, (c,), jnp.float32, 0.5, 1.5)
        return _fold_bn(gamma, beta, mean, var)

    branches = []
    for i, (hid, k) in enumerate(zip(channels, kernel_sizes)):
        kb = jax.random.fold_in(key, i)
        ks = jax.random.split(kb, 5)
        p = {}
        if expand:
            p["w_exp"] = 0.2 * jax.random.normal(ks[0], (inp, hid), jnp.float32)
            p["bn1_scale"], p["bn1_shift"] = bn_params(ks[1], hid)
        p["w_dw"] = 0.2 * jax.random.normal(ks[2], (k * k, hid), jnp.float32)
        p["bn2_scale"], p["bn2_shift"] = bn_params(ks[3], hid)
        p["w_proj"] = 0.2 * jax.random.normal(ks[4], (hid, oup), jnp.float32)
        branches.append(p)

    kpw = jax.random.fold_in(key, 10_000)
    pw_scale, pw_shift = bn_params(kpw, oup)
    return {"branches": branches, "pw_bn_scale": pw_scale, "pw_bn_shift": pw_shift}


def fold_params(params, cfg):
    """One-time fold: BN scales into conv weights, branches concatenated/grouped by
    kernel size into lane-aligned channel segments, bf16 MXU weights."""
    inp, oup, stride, channels, kernel_sizes, expand = cfg
    assert all(k % 2 == 1 for k in kernel_sizes), "odd kernel sizes expected"
    groups, csum = _build_groups(channels, kernel_sizes)
    Kmax = max(kernel_sizes)
    pw_scale = params["pw_bn_scale"]

    w_exp = jnp.zeros((inp, csum), jnp.float32)
    b1 = jnp.zeros((1, csum), jnp.float32)
    w_dw3 = jnp.zeros((Kmax, Kmax, csum), jnp.float32)
    b2 = jnp.zeros((1, csum), jnp.float32)
    w_proj = jnp.zeros((csum, oup), jnp.float32)

    for g in groups:
        off = g["g0"]
        k = g["k"]
        ctr = (Kmax - k) // 2
        for b in g["branches"]:
            hid = channels[b]
            p = params["branches"][b]
            if expand:
                w_exp = w_exp.at[:, off:off + hid].set(p["w_exp"] * p["bn1_scale"][None, :])
                b1 = b1.at[:, off:off + hid].set(p["bn1_shift"][None, :])
            dwk = (p["w_dw"] * p["bn2_scale"][None, :]).reshape(k, k, hid)
            w_dw3 = w_dw3.at[ctr:ctr + k, ctr:ctr + k, off:off + hid].set(dwk)
            b2 = b2.at[:, off:off + hid].set(p["bn2_shift"][None, :])
            w_proj = w_proj.at[off:off + hid, :].set(p["w_proj"] * pw_scale[None, :])
            off += hid

    folded = {
        "w_dw": w_dw3.reshape(Kmax * Kmax, csum),
        "b2": b2,
        "w_proj": w_proj.astype(jnp.bfloat16),
        "pw_shift": params["pw_bn_shift"].reshape(1, oup).astype(jnp.float32),
    }
    if expand:
        folded["w_exp"] = w_exp.astype(jnp.bfloat16)
        folded["b1"] = b1
    return folded


# ---------------------------------------------------------------------------
# Forward pass (single fused Pallas call) and pure-JAX reference
# ---------------------------------------------------------------------------
def forward(x_nchw, fparams, cfg):
    inp, oup, stride, channels, kernel_sizes, expand = cfg
    assert stride in (1, 2)
    if len(channels) == 0:
        return x_nchw
    if not expand:
        for hid in channels:
            if hid != inp:
                raise RuntimeError("expand=False requires hidden_dim == input_dim")

    x = jnp.transpose(x_nchw, (0, 2, 3, 1)).astype(jnp.float32)  # NHWC
    N, H, W, _ = x.shape
    use_res = (stride == 1) and (inp == oup)

    groups, csum = _build_groups(channels, kernel_sizes)
    Kmax = max(kernel_sizes)
    pad_max = (Kmax - 1) // 2
    Ho = (H - 1) // stride + 1
    Wo = (W - 1) // stride + 1
    Wp = W + 2 * pad_max

    TH = _pick_strip_rows(Ho, stride, Kmax, Wp, csum)
    S = Ho // TH
    HpS = (TH - 1) * stride + Kmax

    # Vertical-only pre-pad of the (small) input so every strip reads a uniform
    # halo'd window; horizontal + expand-output padding is handled in VMEM.
    need_rows = (Ho - 1) * stride + Kmax
    pad_bot = max(0, need_rows - pad_max - H)
    x_pad = jnp.pad(x, ((0, 0), (pad_max, pad_bot), (0, 0), (0, 0)))
    Hx = H + pad_max + pad_bot

    kern = _make_fused_kernel(groups=groups, Kmax=Kmax, csum=csum, stride=stride,
                              H=H, W=W, TH=TH, Wo=Wo, HpS=HpS, Wp=Wp, inp=inp,
                              oup=oup, pad_max=pad_max, expand=expand, use_res=use_res)

    args = [x_pad]
    in_specs = [pl.BlockSpec((1, Hx, W, inp), lambda n, s: (n, 0, 0, 0))]
    if expand:
        args += [fparams["w_exp"], fparams["b1"]]
        in_specs += [pl.BlockSpec((inp, csum), lambda n, s: (0, 0)),
                     pl.BlockSpec((1, csum), lambda n, s: (0, 0))]
    args += [fparams["w_dw"], fparams["b2"], fparams["w_proj"], fparams["pw_shift"]]
    in_specs += [pl.BlockSpec((Kmax * Kmax, csum), lambda n, s: (0, 0)),
                 pl.BlockSpec((1, csum), lambda n, s: (0, 0)),
                 pl.BlockSpec((csum, oup), lambda n, s: (0, 0)),
                 pl.BlockSpec((1, oup), lambda n, s: (0, 0))]

    weight_bytes = sum(int(a.size) * a.dtype.itemsize for a in args[1:])
    est = (2 * (Hx * W * inp * 4 + TH * Wo * oup * 4 + weight_bytes)
           + HpS * Wp * csum * 4                                   # f32 scratch
           + HpS * W * csum * 4                                    # expand output strip
           + 3 * TH * Wo * max(g["csz"] for g in groups) * 4)      # acc / patch / d

    # TODO(synk): very wide feature maps would additionally want a W-strip axis;
    # only the H axis is strip-tiled here.
    out = pl.pallas_call(
        kern,
        grid=(N, S),
        in_specs=in_specs,
        out_specs=pl.BlockSpec((1, TH, Wo, oup), lambda n, s: (n, s, 0, 0)),
        out_shape=jax.ShapeDtypeStruct((N, Ho, Wo, oup), jnp.float32),
        scratch_shapes=[pltpu.VMEM((HpS, Wp, csum), jnp.float32)],
        compiler_params=pltpu.CompilerParams(
            dimension_semantics=("parallel", "parallel"),
            vmem_limit_bytes=_vmem_limit_bytes(est),
        ),
    )(*args)
    return jnp.transpose(out, (0, 3, 1, 2))  # back to NCHW


def ref_forward(x_nchw, params, cfg):
    inp, oup, stride, channels, kernel_sizes, expand = cfg
    if len(channels) == 0:
        return x_nchw
    x = jnp.transpose(x_nchw, (0, 2, 3, 1)).astype(jnp.float32)
    outs = []
    for i, (hid, k) in enumerate(zip(channels, kernel_sizes)):
        p = params["branches"][i]
        if expand:
            h = jnp.einsum("nhwc,cd->nhwd", x, p["w_exp"])
            h = jnp.clip(h * p["bn1_scale"] + p["bn1_shift"], 0.0, 6.0)
        else:
            h = x
        pad = (k - 1) // 2
        dw_w = p["w_dw"].reshape(k, k, 1, hid)
        d = lax.conv_general_dilated(
            h, dw_w, window_strides=(stride, stride),
            padding=((pad, pad), (pad, pad)),
            dimension_numbers=("NHWC", "HWIO", "NHWC"),
            feature_group_count=hid)
        d = jnp.clip(d * p["bn2_scale"] + p["bn2_shift"], 0.0, 6.0)
        outs.append(jnp.einsum("nhwc,cd->nhwd", d, p["w_proj"]))
    tmp = sum(outs)
    tmp = tmp * params["pw_bn_scale"] + params["pw_bn_shift"]
    if stride == 1 and inp == oup:
        tmp = x + tmp
    return jnp.transpose(tmp, (0, 3, 1, 2))


if __name__ == "__main__":
    # Small, deterministic config (stride=1, inp==oup so the residual is used).
    # Two kernel sizes -> two lane-aligned groups; Ho=16, TH=8 -> 2 strips per image.
    N, inp, oup, H, W = 2, 8, 8, 16, 16
    channels = (16, 24)
    kernel_sizes = (3, 5)
    stride = 1
    expand = True
    cfg = (inp, oup, stride, channels, kernel_sizes, expand)

    key = jax.random.PRNGKey(0)
    kx, kp = jax.random.split(key)
    x = jax.random.normal(kx, (N, inp, H, W), jnp.float32)  # NCHW like PyTorch
    params = init_params(kp, inp, oup, channels, kernel_sizes, expand)
    fparams = fold_params(params, cfg)

    fwd = jax.jit(functools.partial(forward, cfg=cfg))
    out = jax.block_until_ready(fwd(x, fparams))

    ref = jax.block_until_ready(ref_forward(x, params, cfg))
    assert out.shape == (N, oup, H, W), out.shape
    # Only the two MXU matmuls use bf16 operands (depthwise stage is f32), so this
    # tolerance is conservative vs the f32 / unfolded-BN reference.
    err = float(jnp.max(jnp.abs(out - ref)))
    assert jnp.allclose(out, ref, rtol=5e-2, atol=5e-2), err

    print("KERNEL_OK")
</pallas_src>

<mosaic_0001>
module attributes {stable_mosaic.version = 11 : i64} {
  func.func @kernel(%arg0: i32, %arg1: i32, %arg2: memref<1x20x16x8xf32, #tpu.memory_space<vmem>>, %arg3: memref<8x256xbf16, #tpu.memory_space<vmem>>, %arg4: memref<1x256xf32, #tpu.memory_space<vmem>>, %arg5: memref<25x256xf32, #tpu.memory_space<vmem>>, %arg6: memref<1x256xf32, #tpu.memory_space<vmem>>, %arg7: memref<256x8xbf16, #tpu.memory_space<vmem>>, %arg8: memref<1x8xf32, #tpu.memory_space<vmem>>, %arg9: memref<1x8x16x8xf32, #tpu.memory_space<vmem>>, %arg10: memref<12x20x256xf32, #tpu.memory_space<vmem>>) attributes {dimension_semantics = [#tpu.dimension_semantics<parallel>, #tpu.dimension_semantics<parallel>], iteration_bounds = array<i64: 2, 2>, scalar_prefetch = 0 : i64, scratch_operands = 1 : i64, tpu.core_type = #tpu.core_type<tc>, window_params = [{transform_indices = @transform_0, window_bounds = array<i64: 1, 20, 16, 8>}, {pipeline_mode = #tpu.pipeline_mode<synchronous>, transform_indices = @transform_1, window_bounds = array<i64: 8, 256>}, {pipeline_mode = #tpu.pipeline_mode<synchronous>, transform_indices = @transform_2, window_bounds = array<i64: 1, 256>}, {pipeline_mode = #tpu.pipeline_mode<synchronous>, transform_indices = @transform_3, window_bounds = array<i64: 25, 256>}, {pipeline_mode = #tpu.pipeline_mode<synchronous>, transform_indices = @transform_4, window_bounds = array<i64: 1, 256>}, {pipeline_mode = #tpu.pipeline_mode<synchronous>, transform_indices = @transform_5, window_bounds = array<i64: 256, 8>}, {pipeline_mode = #tpu.pipeline_mode<synchronous>, transform_indices = @transform_6, window_bounds = array<i64: 1, 8>}, {transform_indices = @transform_7, window_bounds = array<i64: 1, 8, 16, 8>}]} {
    %c8_i32 = arith.constant 8 : i32
    %0 = arith.muli %arg1, %c8_i32 : i32
    %1 = tpu.assume_multiple %0, 8 : i32
    %c0 = arith.constant 0 : index
    %2 = arith.index_cast %1 : i32 to index
    %c0_0 = arith.constant 0 : index
    %c0_1 = arith.constant 0 : index
    %3 = vector.load %arg2[%c0, %2, %c0_0, %c0_1] : memref<1x20x16x8xf32, #tpu.memory_space<vmem>>, vector<1x12x16x8xf32>
    %4 = vector.shape_cast %3 : vector<1x12x16x8xf32> to vector<12x16x8xf32>
    %5 = vector.shape_cast %4 : vector<12x16x8xf32> to vector<192x8xf32>
    %6 = arith.truncf %5 : vector<192x8xf32> to vector<192x8xbf16>
    %c0_2 = arith.constant 0 : index
    %c0_3 = arith.constant 0 : index
    %7 = vector.load %arg3[%c0_2, %c0_3] : memref<8x256xbf16, #tpu.memory_space<vmem>>, vector<8x256xbf16>
    %cst = arith.constant dense<0.000000e+00> : vector<192x256xf32>
    %8 = tpu.matmul %6, %7, %cst {dimension_numbers = #tpu.dot_dimension_numbers<[1], [0], [0], [1], [0, 0, 1, 1], [], []>} : vector<192x8xbf16>, vector<8x256xbf16>, vector<192x256xf32> -> vector<192x256xf32>
    %c0_4 = arith.constant 0 : index
    %c0_5 = arith.constant 0 : index
    %9 = vector.load %arg4[%c0_4, %c0_5] : memref<1x256xf32, #tpu.memory_space<vmem>>, vector<1x256xf32>
    %10 = vector.broadcast %9 : vector<1x256xf32> to vector<192x256xf32>
    %11 = arith.addf %8, %10 : vector<192x256xf32>
    %cst_6 = arith.constant 0.000000e+00 : f32
    %cst_7 = arith.constant 6.000000e+00 : f32
    %12 = vector.broadcast %cst_6 : f32 to vector<192x256xf32>
    %13 = arith.maximumf %12, %11 : vector<192x256xf32>
    %14 = vector.broadcast %cst_7 : f32 to vector<192x256xf32>
    %15 = arith.minimumf %14, %13 : vector<192x256xf32>
    %16 = vector.shape_cast %15 : vector<192x256xf32> to vector<12x16x256xf32>
    %17 = tpu.iota {dimensions = array<i32: 0>} : vector<12x1x1xi32>
    %18 = vector.broadcast %1 : i32 to vector<12x1x1xi32>
    %19 = arith.addi %18, %17 : vector<12x1x1xi32>
    %c2_i32 = arith.constant 2 : i32
    %20 = vector.broadcast %c2_i32 : i32 to vector<12x1x1xi32>
    %21 = arith.cmpi sge, %19, %20 : vector<12x1x1xi32>
    %c18_i32 = arith.constant 18 : i32
    %22 = vector.broadcast %c18_i32 : i32 to vector<12x1x1xi32>
    %23 = arith.cmpi slt, %19, %22 : vector<12x1x1xi32>
    %24 = arith.andi %21, %23 : vector<12x1x1xi1>
    %cst_8 = arith.constant 0.000000e+00 : f32
    %25 = vector.shape_cast %24 : vector<12x1x1xi1> to vector<12x1x1xi1>
    %26 = vector.broadcast %25 : vector<12x1x1xi1> to vector<12x16x256xi1>
    %27 = vector.broadcast %cst_8 : f32 to vector<12x16x256xf32>
    %28 = arith.select %26, %16, %27 : vector<12x16x256xi1>, vector<12x16x256xf32>
    %cst_9 = arith.constant 0.000000e+00 : f32
    %29 = vector.broadcast %cst_9 : f32 to vector<12x2x256xf32>
    %c0_10 = arith.constant 0 : index
    %c0_11 = arith.constant 0 : index
    %c0_12 = arith.constant 0 : index
    %30 = vector.load %arg10[%c0_10, %c0_11, %c0_12] : memref<12x20x256xf32, #tpu.memory_space<vmem>>, vector<12x2x256xf32>
    tpu.vector_store %arg10[%c0_10, %c0_11, %c0_12], %29 {strides = array<i32>} : memref<12x20x256xf32, #tpu.memory_space<vmem>>, vector<12x2x256xf32>,
    %cst_13 = arith.constant 0.000000e+00 : f32
    %31 = vector.broadcast %cst_13 : f32 to vector<12x2x256xf32>
    %c0_14 = arith.constant 0 : index
    %c18 = arith.constant 18 : index
    %c0_15 = arith.constant 0 : index
    %32 = vector.load %arg10[%c0_14, %c18, %c0_15] : memref<12x20x256xf32, #tpu.memory_space<vmem>>, vector<12x2x256xf32>
    tpu.vector_store %arg10[%c0_14, %c18, %c0_15], %31 {strides = array<i32>} : memref<12x20x256xf32, #tpu.memory_space<vmem>>, vector<12x2x256xf32>,
    %c0_16 = arith.constant 0 : index
    %c2 = arith.constant 2 : index
    %c0_17 = arith.constant 0 : index
    %33 = vector.load %arg10[%c0_16, %c2, %c0_17] : memref<12x20x256xf32, #tpu.memory_space<vmem>>, vector<12x16x256xf32>
    tpu.vector_store %arg10[%c0_16, %c2, %c0_17], %28 {strides = array<i32>} : memref<12x20x256xf32, #tpu.memory_space<vmem>>, vector<12x16x256xf32>,
    %cst_18 = arith.constant 0.000000e+00 : f32
    %34 = vector.broadcast %cst_18 : f32 to vector<128x8xf32>
    %c0_19 = arith.constant 0 : index
    %c0_20 = arith.constant 0 : index
    %35 = vector.load %arg5[%c0_19, %c0_20] : memref<25x256xf32, #tpu.memory_space<vmem>>, vector<25x128xf32>
    %cst_21 = arith.constant 0.000000e+00 : f32
    %36 = vector.broadcast %cst_21 : f32 to vector<8x16x128xf32>
    %c1 = arith.constant 1 : index
    %c1_22 = arith.constant 1 : index
    %c0_23 = arith.constant 0 : index
    %37 = vector.load %arg10[%c1, %c1_22, %c0_23] : memref<12x20x256xf32, #tpu.memory_space<vmem>>, vector<8x16x128xf32>
    %38 = vector.extract_strided_slice %35 {offsets = [6, 0], sizes = [1, 128], strides = [1, 1]} : vector<25x128xf32> to vector<1x128xf32>
    %39 = vector.shape_cast %38 : vector<1x128xf32> to vector<128xf32>
    %40 = vector.shape_cast %39 : vector<128xf32> to vector<1x1x128xf32>
    %41 = vector.broadcast %40 : vector<1x1x128xf32> to vector<8x16x128xf32>
    %42 = arith.mulf %37, %41 : vector<8x16x128xf32>
    %43 = arith.addf %36, %42 : vector<8x16x128xf32>
    %c1_24 = arith.constant 1 : index
    %c2_25 = arith.constant 2 : index
    %c0_26 = arith.constant 0 : index
    %44 = vector.load %arg10[%c1_24, %c2_25, %c0_26] : memref<12x20x256xf32, #tpu.memory_space<vmem>>, vector<8x16x128xf32>
    %45 = vector.extract_strided_slice %35 {offsets = [7, 0], sizes = [1, 128], strides = [1, 1]} : vector<25x128xf32> to vector<1x128xf32>
    %46 = vector.shape_cast %45 : vector<1x128xf32> to vector<128xf32>
    %47 = vector.shape_cast %46 : vector<128xf32> to vector<1x1x128xf32>
    %48 = vector.broadcast %47 : vector<1x1x128xf32> to vector<8x16x128xf32>
    %49 = arith.mulf %44, %48 : vector<8x16x128xf32>
    %50 = arith.addf %43, %49 : vector<8x16x128xf32>
    %c1_27 = arith.constant 1 : index
    %c3 = arith.constant 3 : index
    %c0_28 = arith.constant 0 : index
    %51 = vector.load %arg10[%c1_27, %c3, %c0_28] : memref<12x20x256xf32, #tpu.memory_space<vmem>>, vector<8x16x128xf32>
    %52 = vector.extract_strided_slice %35 {offsets = [8, 0], sizes = [1, 128], strides = [1, 1]} : vector<25x128xf32> to vector<1x128xf32>
    %53 = vector.shape_cast %52 : vector<1x128xf32> to vector<128xf32>
    %54 = vector.shape_cast %53 : vector<128xf32> to vector<1x1x128xf32>
    %55 = vector.broadcast %54 : vector<1x1x128xf32> to vector<8x16x128xf32>
    %56 = arith.mulf %51, %55 : vector<8x16x128xf32>
    %57 = arith.addf %50, %56 : vector<8x16x128xf32>
    %c2_29 = arith.constant 2 : index
    %c1_30 = arith.constant 1 : index
    %c0_31 = arith.constant 0 : index
    %58 = vector.load %arg10[%c2_29, %c1_30, %c0_31] : memref<12x20x256xf32, #tpu.memory_space<vmem>>, vector<8x16x128xf32>
    %59 = vector.extract_strided_slice %35 {offsets = [11, 0], sizes = [1, 128], strides = [1, 1]} : vector<25x128xf32> to vector<1x128xf32>
    %60 = vector.shape_cast %59 : vector<1x128xf32> to vector<128xf32>
    %61 = vector.shape_cast %60 : vector<128xf32> to vector<1x1x128xf32>
    %62 = vector.broadcast %61 : vector<1x1x128xf32> to vector<8x16x128xf32>
    %63 = arith.mulf %58, %62 : vector<8x16x128xf32>
    %64 = arith.addf %57, %63 : vector<8x16x128xf32>
    %c2_32 = arith.constant 2 : index
    %c2_33 = arith.constant 2 : index
    %c0_34 = arith.constant 0 : index
    %65 = vector.load %arg10[%c2_32, %c2_33, %c0_34] : memref<12x20x256xf32, #tpu.memory_space<vmem>>, vector<8x16x128xf32>
    %66 = vector.extract_strided_slice %35 {offsets = [12, 0], sizes = [1, 128], strides = [1, 1]} : vector<25x128xf32> to vector<1x128xf32>
    %67 = vector.shape_cast %66 : vector<1x128xf32> to vector<128xf32>
    %68 = vector.shape_cast %67 : vector<128xf32> to vector<1x1x128xf32>
    %69 = vector.broadcast %68 : vector<1x1x128xf32> to vector<8x16x128xf32>
    %70 = arith.mulf %65, %69 : vector<8x16x128xf32>
    %71 = arith.addf %64, %70 : vector<8x16x128xf32>
    %c2_35 = arith.constant 2 : index
    %c3_36 = arith.constant 3 : index
    %c0_37 = arith.constant 0 : index
    %72 = vector.load %arg10[%c2_35, %c3_36, %c0_37] : memref<12x20x256xf32, #tpu.memory_space<vmem>>, vector<8x16x128xf32>
    %73 = vector.extract_strided_slice %35 {offsets = [13, 0], sizes = [1, 128], strides = [1, 1]} : vector<25x128xf32> to vector<1x128xf32>
    %74 = vector.shape_cast %73 : vector<1x128xf32> to vector<128xf32>
    %75 = vector.shape_cast %74 : vector<128xf32> to vector<1x1x128xf32>
    %76 = vector.broadcast %75 : vector<1x1x128xf32> to vector<8x16x128xf32>
    %77 = arith.mulf %72, %76 : vector<8x16x128xf32>
    %78 = arith.addf %71, %77 : vector<8x16x128xf32>
    %c3_38 = arith.constant 3 : index
    %c1_39 = arith.constant 1 : index
    %c0_40 = arith.constant 0 : index
    %79 = vector.load %arg10[%c3_38, %c1_39, %c0_40] : memref<12x20x256xf32, #tpu.memory_space<vmem>>, vector<8x16x128xf32>
    %80 = vector.extract_strided_slice %35 {offsets = [16, 0], sizes = [1, 128], strides = [1, 1]} : vector<25x128xf32> to vector<1x128xf32>
    %81 = vector.shape_cast %80 : vector<1x128xf32> to vector<128xf32>
    %82 = vector.shape_cast %81 : vector<128xf32> to vector<1x1x128xf32>
    %83 = vector.broadcast %82 : vector<1x1x128xf32> to vector<8x16x128xf32>
    %84 = arith.mulf %79, %83 : vector<8x16x128xf32>
    %85 = arith.addf %78, %84 : vector<8x16x128xf32>
    %c3_41 = arith.constant 3 : index
    %c2_42 = arith.constant 2 : index
    %c0_43 = arith.constant 0 : index
    %86 = vector.load %arg10[%c3_41, %c2_42, %c0_43] : memref<12x20x256xf32, #tpu.memory_space<vmem>>, vector<8x16x128xf32>
    %87 = vector.extract_strided_slice %35 {offsets = [17, 0], sizes = [1, 128], strides = [1, 1]} : vector<25x128xf32> to vector<1x128xf32>
    %88 = vector.shape_cast %87 : vector<1x128xf32> to vector<128xf32>
    %89 = vector.shape_cast %88 : vector<128xf32> to vector<1x1x128xf32>
    %90 = vector.broadcast %89 : vector<1x1x128xf32> to vector<8x16x128xf32>
    %91 = arith.mulf %86, %90 : vector<8x16x128xf32>
    %92 = arith.addf %85, %91 : vector<8x16x128xf32>
    %c3_44 = arith.constant 3 : index
    %c3_45 = arith.constant 3 : index
    %c0_46 = arith.constant 0 : index
    %93 = vector.load %arg10[%c3_44, %c3_45, %c0_46] : memref<12x20x256xf32, #tpu.memory_space<vmem>>, vector<8x16x128xf32>
    %94 = vector.extract_strided_slice %35 {offsets = [18, 0], sizes = [1, 128], strides = [1, 1]} : vector<25x128xf32> to vector<1x128xf32>
    %95 = vector.shape_cast %94 : vector<1x128xf32> to vector<128xf32>
    %96 = vector.shape_cast %95 : vector<128xf32> to vector<1x1x128xf32>
    %97 = vector.broadcast %96 : vector<1x1x128xf32> to vector<8x16x128xf32>
    %98 = arith.mulf %93, %97 : vector<8x16x128xf32>
    %99 = arith.addf %92, %98 : vector<8x16x128xf32>
    %c0_47 = arith.constant 0 : index
    %c0_48 = arith.constant 0 : index
    %100 = vector.load %arg6[%c0_47, %c0_48] : memref<1x256xf32, #tpu.memory_space<vmem>>, vector<1x128xf32>
    %101 = vector.shape_cast %100 : vector<1x128xf32> to vector<1x1x128xf32>
    %102 = vector.broadcast %101 : vector<1x1x128xf32> to vector<8x16x128xf32>
    %103 = arith.addf %99, %102 : vector<8x16x128xf32>
    %cst_49 = arith.constant 0.000000e+00 : f32
    %cst_50 = arith.constant 6.000000e+00 : f32
    %104 = vector.broadcast %cst_49 : f32 to vector<8x16x128xf32>
    %105 = arith.maximumf %104, %103 : vector<8x16x128xf32>
    %106 = vector.broadcast %cst_50 : f32 to vector<8x16x128xf32>
    %107 = arith.minimumf %106, %105 : vector<8x16x128xf32>
    %108 = vector.shape_cast %107 : vector<8x16x128xf32> to vector<128x128xf32>
    %109 = arith.truncf %108 : vector<128x128xf32> to vector<128x128xbf16>
    %c0_51 = arith.constant 0 : index
    %c0_52 = arith.constant 0 : index
    %110 = vector.load %arg7[%c0_51, %c0_52] : memref<256x8xbf16, #tpu.memory_space<vmem>>, vector<128x8xbf16>
    %cst_53 = arith.constant dense<0.000000e+00> : vector<128x8xf32>
    %111 = tpu.matmul %109, %110, %cst_53 {dimension_numbers = #tpu.dot_dimension_numbers<[1], [0], [0], [1], [0, 0, 1, 1], [], []>} : vector<128x128xbf16>, vector<128x8xbf16>, vector<128x8xf32> -> vector<128x8xf32>
    %112 = arith.addf %34, %111 : vector<128x8xf32>
    %c0_54 = arith.constant 0 : index
    %c128 = arith.constant 128 : index
    %113 = vector.load %arg5[%c0_54, %c128] : memref<25x256xf32, #tpu.memory_space<vmem>>, vector<25x128xf32>
    %cst_55 = arith.constant 0.000000e+00 : f32
    %114 = vector.broadcast %cst_55 : f32 to vector<8x16x128xf32>
    %c0_56 = arith.constant 0 : index
    %c0_57 = arith.constant 0 : index
    %c128_58 = arith.constant 128 : index
    %115 = vector.load %arg10[%c0_56, %c0_57, %c128_58] : memref<12x20x256xf32, #tpu.memory_space<vmem>>, vector<8x16x128xf32>
    %116 = vector.extract_strided_slice %113 {offsets = [0, 0], sizes = [1, 128], strides = [1, 1]} : vector<25x128xf32> to vector<1x128xf32>
    %117 = vector.shape_cast %116 : vector<1x128xf32> to vector<128xf32>
    %118 = vector.shape_cast %117 : vector<128xf32> to vector<1x1x128xf32>
    %119 = vector.broadcast %118 : vector<1x1x128xf32> to vector<8x16x128xf32>
    %120 = arith.mulf %115, %119 : vector<8x16x128xf32>
    %121 = arith.addf %114, %120 : vector<8x16x128xf32>
    %c0_59 = arith.constant 0 : index
    %c1_60 = arith.constant 1 : index
    %c128_61 = arith.constant 128 : index
    %122 = vector.load %arg10[%c0_59, %c1_60, %c128_61] : memref<12x20x256xf32, #tpu.memory_space<vmem>>, vector<8x16x128xf32>
    %123 = vector.extract_strided_slice %113 {offsets = [1, 0], sizes = [1, 128], strides = [1, 1]} : vector<25x128xf32> to vector<1x128xf32>
    %124 = vector.shape_cast %123 : vector<1x128xf32> to vector<128xf32>
    %125 = vector.shape_cast %124 : vector<128xf32> to vector<1x1x128xf32>
    %126 = vector.broadcast %125 : vector<1x1x128xf32> to vector<8x16x128xf32>
    %127 = arith.mulf %122, %126 : vector<8x16x128xf32>
    %128 = arith.addf %121, %127 : vector<8x16x128xf32>
    %c0_62 = arith.constant 0 : index
    %c2_63 = arith.constant 2 : index
    %c128_64 = arith.constant 128 : index
    %129 = vector.load %arg10[%c0_62, %c2_63, %c128_64] : memref<12x20x256xf32, #tpu.memory_space<vmem>>, vector<8x16x128xf32>
    %130 = vector.extract_strided_slice %113 {offsets = [2, 0], sizes = [1, 128], strides = [1, 1]} : vector<25x128xf32> to vector<1x128xf32>
    %131 = vector.shape_cast %130 : vector<1x128xf32> to vector<128xf32>
    %132 = vector.shape_cast %131 : vector<128xf32> to vector<1x1x128xf32>
    %133 = vector.broadcast %132 : vector<1x1x128xf32> to vector<8x16x128xf32>
    %134 = arith.mulf %129, %133 : vector<8x16x128xf32>
    %135 = arith.addf %128, %134 : vector<8x16x128xf32>
    %c0_65 = arith.constant 0 : index
    %c3_66 = arith.constant 3 : index
    %c128_67 = arith.constant 128 : index
    %136 = vector.load %arg10[%c0_65, %c3_66, %c128_67] : memref<12x20x256xf32, #tpu.memory_space<vmem>>, vector<8x16x128xf32>
    %137 = vector.extract_strided_slice %113 {offsets = [3, 0], sizes = [1, 128], strides = [1, 1]} : vector<25x128xf32> to vector<1x128xf32>
    %138 = vector.shape_cast %137 : vector<1x128xf32> to vector<128xf32>
    %139 = vector.shape_cast %138 : vector<128xf32> to vector<1x1x128xf32>
    %140 = vector.broadcast %139 : vector<1x1x128xf32> to vector<8x16x128xf32>
    %141 = arith.mulf %136, %140 : vector<8x16x128xf32>
    %142 = arith.addf %135, %141 : vector<8x16x128xf32>
    %c0_68 = arith.constant 0 : index
    %c4 = arith.constant 4 : index
    %c128_69 = arith.constant 128 : index
    %143 = vector.load %arg10[%c0_68, %c4, %c128_69] : memref<12x20x256xf32, #tpu.memory_space<vmem>>, vector<8x16x128xf32>
    %144 = vector.extract_strided_slice %113 {offsets = [4, 0], sizes = [1, 128], strides = [1, 1]} : vector<25x128xf32> to vector<1x128xf32>
    %145 = vector.shape_cast %144 : vector<1x128xf32> to vector<128xf32>
    %146 = vector.shape_cast %145 : vector<128xf32> to vector<1x1x128xf32>
    %147 = vector.broadcast %146 : vector<1x1x128xf32> to vector<8x16x128xf32>
    %148 = arith.mulf %143, %147 : vector<8x16x128xf32>
    %149 = arith.addf %142, %148 : vector<8x16x128xf32>
    %c1_70 = arith.constant 1 : index
    %c0_71 = arith.constant 0 : index
    %c128_72 = arith.constant 128 : index
    %150 = vector.load %arg10[%c1_70, %c0_71, %c128_72] : memref<12x20x256xf32, #tpu.memory_space<vmem>>, vector<8x16x128xf32>
    %151 = vector.extract_strided_slice %113 {offsets = [5, 0], sizes = [1, 128], strides = [1, 1]} : vector<25x128xf32> to vector<1x128xf32>
    %152 = vector.shape_cast %151 : vector<1x128xf32> to vector<128xf32>
    %153 = vector.shape_cast %152 : vector<128xf32> to vector<1x1x128xf32>
    %154 = vector.broadcast %153 : vector<1x1x128xf32> to vector<8x16x128xf32>
    %155 = arith.mulf %150, %154 : vector<8x16x128xf32>
    %156 = arith.addf %149, %155 : vector<8x16x128xf32>
    %c1_73 = arith.constant 1 : index
    %c1_74 = arith.constant 1 : index
    %c128_75 = arith.constant 128 : index
    %157 = vector.load %arg10[%c1_73, %c1_74, %c128_75] : memref<12x20x256xf32, #tpu.memory_space<vmem>>, vector<8x16x128xf32>
    %158 = vector.extract_strided_slice %113 {offsets = [6, 0], sizes = [1, 128], strides = [1, 1]} : vector<25x128xf32> to vector<1x128xf32>
    %159 = vector.shape_cast %158 : vector<1x128xf32> to vector<128xf32>
    %160 = vector.shape_cast %159 : vector<128xf32> to vector<1x1x128xf32>
    %161 = vector.broadcast %160 : vector<1x1x128xf32> to vector<8x16x128xf32>
    %162 = arith.mulf %157, %161 : vector<8x16x128xf32>
    %163 = arith.addf %156, %162 : vector<8x16x128xf32>
    %c1_76 = arith.constant 1 : index
    %c2_77 = arith.constant 2 : index
    %c128_78 = arith.constant 128 : index
    %164 = vector.load %arg10[%c1_76, %c2_77, %c128_78] : memref<12x20x256xf32, #tpu.memory_space<vmem>>, vector<8x16x128xf32>
    %165 = vector.extract_strided_slice %113 {offsets = [7, 0], sizes = [1, 128], strides = [1, 1]} : vector<25x128xf32> to vector<1x128xf32>
    %166 = vector.shape_cast %165 : vector<1x128xf32> to vector<128xf32>
    %167 = vector.shape_cast %166 : vector<128xf32> to vector<1x1x128xf32>
    %168 = vector.broadcast %167 : vector<1x1x128xf32> to vector<8x16x128xf32>
    %169 = arith.mulf %164, %168 : vector<8x16x128xf32>
    %170 = arith.addf %163, %169 : vector<8x16x128xf32>
    %c1_79 = arith.constant 1 : index
    %c3_80 = arith.constant 3 : index
    %c128_81 = arith.constant 128 : index
    %171 = vector.load %arg10[%c1_79, %c3_80, %c128_81] : memref<12x20x256xf32, #tpu.memory_space<vmem>>, vector<8x16x128xf32>
    %172 = vector.extract_strided_slice %113 {offsets = [8, 0], sizes = [1, 128], strides = [1, 1]} : vector<25x128xf32> to vector<1x128xf32>
    %173 = vector.shape_cast %172 : vector<1x128xf32> to vector<128xf32>
    %174 = vector.shape_cast %173 : vector<128xf32> to vector<1x1x128xf32>
    %175 = vector.broadcast %174 : vector<1x1x128xf32> to vector<8x16x128xf32>
    %176 = arith.mulf %171, %175 : vector<8x16x128xf32>
    %177 = arith.addf %170, %176 : vector<8x16x128xf32>
    %c1_82 = arith.constant 1 : index
    %c4_83 = arith.constant 4 : index
    %c128_84 = arith.constant 128 : index
    %178 = vector.load %arg10[%c1_82, %c4_83, %c128_84] : memref<12x20x256xf32, #tpu.memory_space<vmem>>, vector<8x16x128xf32>
    %179 = vector.extract_strided_slice %113 {offsets = [9, 0], sizes = [1, 128], strides = [1, 1]} : vector<25x128xf32> to vector<1x128xf32>
    %180 = vector.shape_cast %179 : vector<1x128xf32> to vector<128xf32>
    %181 = vector.shape_cast %180 : vector<128xf32> to vector<1x1x128xf32>
    %182 = vector.broadcast %181 : vector<1x1x128xf32> to vector<8x16x128xf32>
    %183 = arith.mulf %178, %182 : vector<8x16x128xf32>
    %184 = arith.addf %177, %183 : vector<8x16x128xf32>
    %c2_85 = arith.constant 2 : index
    %c0_86 = arith.constant 0 : index
    %c128_87 = arith.constant 128 : index
    %185 = vector.load %arg10[%c2_85, %c0_86, %c128_87] : memref<12x20x256xf32, #tpu.memory_space<vmem>>, vector<8x16x128xf32>
    %186 = vector.extract_strided_slice %113 {offsets = [10, 0], sizes = [1, 128], strides = [1, 1]} : vector<25x128xf32> to vector<1x128xf32>
    %187 = vector.shape_cast %186 : vector<1x128xf32> to vector<128xf32>
    %188 = vector.shape_cast %187 : vector<128xf32> to vector<1x1x128xf32>
    %189 = vector.broadcast %188 : vector<1x1x128xf32> to vector<8x16x128xf32>
    %190 = arith.mulf %185, %189 : vector<8x16x128xf32>
    %191 = arith.addf %184, %190 : vector<8x16x128xf32>
    %c2_88 = arith.constant 2 : index
    %c1_89 = arith.constant 1 : index
    %c128_90 = arith.constant 128 : index
    %192 = vector.load %arg10[%c2_88, %c1_89, %c128_90] : memref<12x20x256xf32, #tpu.memory_space<vmem>>, vector<8x16x128xf32>
    %193 = vector.extract_strided_slice %113 {offsets = [11, 0], sizes = [1, 128], strides = [1, 1]} : vector<25x128xf32> to vector<1x128xf32>
    %194 = vector.shape_cast %193 : vector<1x128xf32> to vector<128xf32>
    %195 = vector.shape_cast %194 : vector<128xf32> to vector<1x1x128xf32>
    %196 = vector.broadcast %195 : vector<1x1x128xf32> to vector<8x16x128xf32>
    %197 = arith.mulf %192, %196 : vector<8x16x128xf32>
    %198 = arith.addf %191, %197 : vector<8x16x128xf32>
    %c2_91 = arith.constant 2 : index
    %c2_92 = arith.constant 2 : index
    %c128_93 = arith.constant 128 : index
    %199 = vector.load %arg10[%c2_91, %c2_92, %c128_93] : memref<12x20x256xf32, #tpu.memory_space<vmem>>, vector<8x16x128xf32>
    %200 = vector.extract_strided_slice %113 {offsets = [12, 0], sizes = [1, 128], strides = [1, 1]} : vector<25x128xf32> to vector<1x128xf32>
    %201 = vector.shape_cast %200 : vector<1x128xf32> to vector<128xf32>
    %202 = vector.shape_cast %201 : vector<128xf32> to vector<1x1x128xf32>
    %203 = vector.broadcast %202 : vector<1x1x128xf32> to vector<8x16x128xf32>
    %204 = arith.mulf %199, %203 : vector<8x16x128xf32>
    %205 = arith.addf %198, %204 : vector<8x16x128xf32>
    %c2_94 = arith.constant 2 : index
    %c3_95 = arith.constant 3 : index
    %c128_96 = arith.constant 128 : index
    %206 = vector.load %arg10[%c2_94, %c3_95, %c128_96] : memref<12x20x256xf32, #tpu.memory_space<vmem>>, vector<8x16x128xf32>
    %207 = vector.extract_strided_slice %113 {offsets = [13, 0], sizes = [1, 128], strides = [1, 1]} : vector<25x128xf32> to vector<1x128xf32>
    %208 = vector.shape_cast %207 : vector<1x128xf32> to vector<128xf32>
    %209 = vector.shape_cast %208 : vector<128xf32> to vector<1x1x128xf32>
    %210 = vector.broadcast %209 : vector<1x1x128xf32> to vector<8x16x128xf32>
    %211 = arith.mulf %206, %210 : vector<8x16x128xf32>
    %212 = arith.addf %205, %211 : vector<8x16x128xf32>
    %c2_97 = arith.constant 2 : index
    %c4_98 = arith.constant 4 : index
    %c128_99 = arith.constant 128 : index
    %213 = vector.load %arg10[%c2_97, %c4_98, %c128_99] : memref<12x20x256xf32, #tpu.memory_space<vmem>>, vector<8x16x128xf32>
    %214 = vector.extract_strided_slice %113 {offsets = [14, 0], sizes = [1, 128], strides = [1, 1]} : vector<25x128xf32> to vector<1x128xf32>
    %215 = vector.shape_cast %214 : vector<1x128xf32> to vector<128xf32>
    %216 = vector.shape_cast %215 : vector<128xf32> to vector<1x1x128xf32>
    %217 = vector.broadcast %216 : vector<1x1x128xf32> to vector<8x16x128xf32>
    %218 = arith.mulf %213, %217 : vector<8x16x128xf32>
    %219 = arith.addf %212, %218 : vector<8x16x128xf32>
    %c3_100 = arith.constant 3 : index
    %c0_101 = arith.constant 0 : index
    %c128_102 = arith.constant 128 : index
    %220 = vector.load %arg10[%c3_100, %c0_101, %c128_102] : memref<12x20x256xf32, #tpu.memory_space<vmem>>, vector<8x16x128xf32>
    %221 = vector.extract_strided_slice %113 {offsets = [15, 0], sizes = [1, 128], strides = [1, 1]} : vector<25x128xf32> to vector<1x128xf32>
    %222 = vector.shape_cast %221 : vector<1x128xf32> to vector<128xf32>
    %223 = vector.shape_cast %222 : vector<128xf32> to vector<1x1x128xf32>
    %224 = vector.broadcast %223 : vector<1x1x128xf32> to vector<8x16x128xf32>
    %225 = arith.mulf %220, %224 : vector<8x16x128xf32>
    %226 = arith.addf %219, %225 : vector<8x16x128xf32>
    %c3_103 = arith.constant 3 : index
    %c1_104 = arith.constant 1 : index
    %c128_105 = arith.constant 128 : index
    %227 = vector.load %arg10[%c3_103, %c1_104, %c128_105] : memref<12x20x256xf32, #tpu.memory_space<vmem>>, vector<8x16x128xf32>
    %228 = vector.extract_strided_slice %113 {offsets = [16, 0], sizes = [1, 128], strides = [1, 1]} : vector<25x128xf32> to vector<1x128xf32>
    %229 = vector.shape_cast %228 : vector<1x128xf32> to vector<128xf32>
    %230 = vector.shape_cast %229 : vector<128xf32> to vector<1x1x128xf32>
    %231 = vector.broadcast %230 : vector<1x1x128xf32> to vector<8x16x128xf32>
    %232 = arith.mulf %227, %231 : vector<8x16x128xf32>
    %233 = arith.addf %226, %232 : vector<8x16x128xf32>
    %c3_106 = arith.constant 3 : index
    %c2_107 = arith.constant 2 : index
    %c128_108 = arith.constant 128 : index
    %234 = vector.load %arg10[%c3_106, %c2_107, %c128_108] : memref<12x20x256xf32, #tpu.memory_space<vmem>>, vector<8x16x128xf32>
    %235 = vector.extract_strided_slice %113 {offsets = [17, 0], sizes = [1, 128], strides = [1, 1]} : vector<25x128xf32> to vector<1x128xf32>
    %236 = vector.shape_cast %235 : vector<1x128xf32> to vector<128xf32>
    %237 = vector.shape_cast %236 : vector<128xf32> to vector<1x1x128xf32>
    %238 = vector.broadcast %237 : vector<1x1x128xf32> to vector<8x16x128xf32>
    %239 = arith.mulf %234, %238 : vector<8x16x128xf32>
    %240 = arith.addf %233, %239 : vector<8x16x128xf32>
    %c3_109 = arith.constant 3 : index
    %c3_110 = arith.constant 3 : index
    %c128_111 = arith.constant 128 : index
    %241 = vector.load %arg10[%c3_109, %c3_110, %c128_111] : memref<12x20x256xf32, #tpu.memory_space<vmem>>, vector<8x16x128xf32>
    %242 = vector.extract_strided_slice %113 {offsets = [18, 0], sizes = [1, 128], strides = [1, 1]} : vector<25x128xf32> to vector<1x128xf32>
    %243 = vector.shape_cast %242 : vector<1x128xf32> to vector<128xf32>
    %244 = vector.shape_cast %243 : vector<128xf32> to vector<1x1x128xf32>
    %245 = vector.broadcast %244 : vector<1x1x128xf32> to vector<8x16x128xf32>
    %246 = arith.mulf %241, %245 : vector<8x16x128xf32>
    %247 = arith.addf %240, %246 : vector<8x16x128xf32>
    %c3_112 = arith.constant 3 : index
    %c4_113 = arith.constant 4 : index
    %c128_114 = arith.constant 128 : index
    %248 = vector.load %arg10[%c3_112, %c4_113, %c128_114] : memref<12x20x256xf32, #tpu.memory_space<vmem>>, vector<8x16x128xf32>
    %249 = vector.extract_strided_slice %113 {offsets = [19, 0], sizes = [1, 128], strides = [1, 1]} : vector<25x128xf32> to vector<1x128xf32>
    %250 = vector.shape_cast %249 : vector<1x128xf32> to vector<128xf32>
    %251 = vector.shape_cast %250 : vector<128xf32> to vector<1x1x128xf32>
    %252 = vector.broadcast %251 : vector<1x1x128xf32> to vector<8x16x128xf32>
    %253 = arith.mulf %248, %252 : vector<8x16x128xf32>
    %254 = arith.addf %247, %253 : vector<8x16x128xf32>
    %c4_115 = arith.constant 4 : index
    %c0_116 = arith.constant 0 : index
    %c128_117 = arith.constant 128 : index
    %255 = vector.load %arg10[%c4_115, %c0_116, %c128_117] : memref<12x20x256xf32, #tpu.memory_space<vmem>>, vector<8x16x128xf32>
    %256 = vector.extract_strided_slice %113 {offsets = [20, 0], sizes = [1, 128], strides = [1, 1]} : vector<25x128xf32> to vector<1x128xf32>
    %257 = vector.shape_cast %256 : vector<1x128xf32> to vector<128xf32>
    %258 = vector.shape_cast %257 : vector<128xf32> to vector<1x1x128xf32>
    %259 = vector.broadcast %258 : vector<1x1x128xf32> to vector<8x16x128xf32>
    %260 = arith.mulf %255, %259 : vector<8x16x128xf32>
    %261 = arith.addf %254, %260 : vector<8x16x128xf32>
    %c4_118 = arith.constant 4 : index
    %c1_119 = arith.constant 1 : index
    %c128_120 = arith.constant 128 : index
    %262 = vector.load %arg10[%c4_118, %c1_119, %c128_120] : memref<12x20x256xf32, #tpu.memory_space<vmem>>, vector<8x16x128xf32>
    %263 = vector.extract_strided_slice %113 {offsets = [21, 0], sizes = [1, 128], strides = [1, 1]} : vector<25x128xf32> to vector<1x128xf32>
    %264 = vector.shape_cast %263 : vector<1x128xf32> to vector<128xf32>
    %265 = vector.shape_cast %264 : vector<128xf32> to vector<1x1x128xf32>
    %266 = vector.broadcast %265 : vector<1x1x128xf32> to vector<8x16x128xf32>
    %267 = arith.mulf %262, %266 : vector<8x16x128xf32>
    %268 = arith.addf %261, %267 : vector<8x16x128xf32>
    %c4_121 = arith.constant 4 : index
    %c2_122 = arith.constant 2 : index
    %c128_123 = arith.constant 128 : index
    %269 = vector.load %arg10[%c4_121, %c2_122, %c128_123] : memref<12x20x256xf32, #tpu.memory_space<vmem>>, vector<8x16x128xf32>
    %270 = vector.extract_strided_slice %113 {offsets = [22, 0], sizes = [1, 128], strides = [1, 1]} : vector<25x128xf32> to vector<1x128xf32>
    %271 = vector.shape_cast %270 : vector<1x128xf32> to vector<128xf32>
    %272 = vector.shape_cast %271 : vector<128xf32> to vector<1x1x128xf32>
    %273 = vector.broadcast %272 : vector<1x1x128xf32> to vector<8x16x128xf32>
    %274 = arith.mulf %269, %273 : vector<8x16x128xf32>
    %275 = arith.addf %268, %274 : vector<8x16x128xf32>
    %c4_124 = arith.constant 4 : index
    %c3_125 = arith.constant 3 : index
    %c128_126 = arith.constant 128 : index
    %276 = vector.load %arg10[%c4_124, %c3_125, %c128_126] : memref<12x20x256xf32, #tpu.memory_space<vmem>>, vector<8x16x128xf32>
    %277 = vector.extract_strided_slice %113 {offsets = [23, 0], sizes = [1, 128], strides = [1, 1]} : vector<25x128xf32> to vector<1x128xf32>
    %278 = vector.shape_cast %277 : vector<1x128xf32> to vector<128xf32>
    %279 = vector.shape_cast %278 : vector<128xf32> to vector<1x1x128xf32>
    %280 = vector.broadcast %279 : vector<1x1x128xf32> to vector<8x16x128xf32>
    %281 = arith.mulf %276, %280 : vector<8x16x128xf32>
    %282 = arith.addf %275, %281 : vector<8x16x128xf32>
    %c4_127 = arith.constant 4 : index
    %c4_128 = arith.constant 4 : index
    %c128_129 = arith.constant 128 : index
    %283 = vector.load %arg10[%c4_127, %c4_128, %c128_129] : memref<12x20x256xf32, #tpu.memory_space<vmem>>, vector<8x16x128xf32>
    %284 = vector.extract_strided_slice %113 {offsets = [24, 0], sizes = [1, 128], strides = [1, 1]} : vector<25x128xf32> to vector<1x128xf32>
    %285 = vector.shape_cast %284 : vector<1x128xf32> to vector<128xf32>
    %286 = vector.shape_cast %285 : vector<128xf32> to vector<1x1x128xf32>
    %287 = vector.broadcast %286 : vector<1x1x128xf32> to vector<8x16x128xf32>
    %288 = arith.mulf %283, %287 : vector<8x16x128xf32>
    %289 = arith.addf %282, %288 : vector<8x16x128xf32>
    %c0_130 = arith.constant 0 : index
    %c128_131 = arith.constant 128 : index
    %290 = vector.load %arg6[%c0_130, %c128_131] : memref<1x256xf32, #tpu.memory_space<vmem>>, vector<1x128xf32>
    %291 = vector.shape_cast %290 : vector<1x128xf32> to vector<1x1x128xf32>
    %292 = vector.broadcast %291 : vector<1x1x128xf32> to vector<8x16x128xf32>
    %293 = arith.addf %289, %292 : vector<8x16x128xf32>
    %cst_132 = arith.constant 0.000000e+00 : f32
    %cst_133 = arith.constant 6.000000e+00 : f32
    %294 = vector.broadcast %cst_132 : f32 to vector<8x16x128xf32>
    %295 = arith.maximumf %294, %293 : vector<8x16x128xf32>
    %296 = vector.broadcast %cst_133 : f32 to vector<8x16x128xf32>
    %297 = arith.minimumf %296, %295 : vector<8x16x128xf32>
    %298 = vector.shape_cast %297 : vector<8x16x128xf32> to vector<128x128xf32>
    %299 = arith.truncf %298 : vector<128x128xf32> to vector<128x128xbf16>
    %c128_134 = arith.constant 128 : index
    %c0_135 = arith.constant 0 : index
    %300 = vector.load %arg7[%c128_134, %c0_135] : memref<256x8xbf16, #tpu.memory_space<vmem>>, vector<128x8xbf16>
    %cst_136 = arith.constant dense<0.000000e+00> : vector<128x8xf32>
    %301 = tpu.matmul %299, %300, %cst_136 {dimension_numbers = #tpu.dot_dimension_numbers<[1], [0], [0], [1], [0, 0, 1, 1], [], []>} : vector<128x128xbf16>, vector<128x8xbf16>, vector<128x8xf32> -> vector<128x8xf32>
    %302 = arith.addf %112, %301 : vector<128x8xf32>
    %303 = vector.shape_cast %302 : vector<128x8xf32> to vector<8x16x8xf32>
    %c0_137 = arith.constant 0 : index
    %c0_138 = arith.constant 0 : index
    %304 = vector.load %arg8[%c0_137, %c0_138] : memref<1x8xf32, #tpu.memory_space<vmem>>, vector<1x8xf32>
    %305 = vector.shape_cast %304 : vector<1x8xf32> to vector<1x1x8xf32>
    %306 = vector.broadcast %305 : vector<1x1x8xf32> to vector<8x16x8xf32>
    %307 = arith.addf %303, %306 : vector<8x16x8xf32>
    %c2_i32_139 = arith.constant 2 : i32
    %308 = arith.addi %1, %c2_i32_139 : i32
    %c0_140 = arith.constant 0 : index
    %309 = arith.index_cast %308 : i32 to index
    %c0_141 = arith.constant 0 : index
    %c0_142 = arith.constant 0 : index
    %310 = vector.load %arg2[%c0_140, %309, %c0_141, %c0_142] : memref<1x20x16x8xf32, #tpu.memory_space<vmem>>, vector<1x8x16x8xf32>
    %311 = vector.shape_cast %310 : vector<1x8x16x8xf32> to vector<8x16x8xf32>
    %312 = arith.addf %307, %311 : vector<8x16x8xf32>
    %c0_143 = arith.constant 0 : index
    %c0_144 = arith.constant 0 : index
    %c0_145 = arith.constant 0 : index
    %c0_146 = arith.constant 0 : index
    %313 = vector.load %arg9[%c0_143, %c0_144, %c0_145, %c0_146] : memref<1x8x16x8xf32, #tpu.memory_space<vmem>>, vector<1x8x16x8xf32>
    %314 = vector.shape_cast %313 : vector<1x8x16x8xf32> to vector<8x16x8xf32>
    %315 = vector.shape_cast %312 : vector<8x16x8xf32> to vector<1x8x16x8xf32>
    tpu.vector_store %arg9[%c0_143, %c0_144, %c0_145, %c0_146], %315 {strides = array<i32>} : memref<1x8x16x8xf32, #tpu.memory_space<vmem>>, vector<1x8x16x8xf32>,
    return
  }
  func.func @transform_0(%arg0: i32, %arg1: i32) -> (i32, i32, i32, i32) {
    %c0_i32 = arith.constant 0 : i32
    %c0_i32_0 = arith.constant 0 : i32
    %c0_i32_1 = arith.constant 0 : i32
    %c0_i32_2 = arith.constant 0 : i32
    return %arg0, %c0_i32, %c0_i32_0, %c0_i32_1 : i32, i32, i32, i32
  }
  func.func @transform_1(%arg0: i32, %arg1: i32) -> (i32, i32) {
    %c0_i32 = arith.constant 0 : i32
    %c0_i32_0 = arith.constant 0 : i32
    %c0_i32_1 = arith.constant 0 : i32
    return %c0_i32, %c0_i32_0 : i32, i32
  }
  func.func @transform_2(%arg0: i32, %arg1: i32) -> (i32, i32) {
    %c0_i32 = arith.constant 0 : i32
    %c0_i32_0 = arith.constant 0 : i32
    %c0_i32_1 = arith.constant 0 : i32
    return %c0_i32, %c0_i32_0 : i32, i32
  }
  func.func @transform_3(%arg0: i32, %arg1: i32) -> (i32, i32) {
    %c0_i32 = arith.constant 0 : i32
    %c0_i32_0 = arith.constant 0 : i32
    %c0_i32_1 = arith.constant 0 : i32
    return %c0_i32, %c0_i32_0 : i32, i32
  }
  func.func @transform_4(%arg0: i32, %arg1: i32) -> (i32, i32) {
    %c0_i32 = arith.constant 0 : i32
    %c0_i32_0 = arith.constant 0 : i32
    %c0_i32_1 = arith.constant 0 : i32
    return %c0_i32, %c0_i32_0 : i32, i32
  }
  func.func @transform_5(%arg0: i32, %arg1: i32) -> (i32, i32) {
    %c0_i32 = arith.constant 0 : i32
    %c0_i32_0 = arith.constant 0 : i32
    %c0_i32_1 = arith.constant 0 : i32
    return %c0_i32, %c0_i32_0 : i32, i32
  }
  func.func @transform_6(%arg0: i32, %arg1: i32) -> (i32, i32) {
    %c0_i32 = arith.constant 0 : i32
    %c0_i32_0 = arith.constant 0 : i32
    %c0_i32_1 = arith.constant 0 : i32
    return %c0_i32, %c0_i32_0 : i32, i32
  }
  func.func @transform_7(%arg0: i32, %arg1: i32) -> (i32, i32, i32, i32) {
    %c0_i32 = arith.constant 0 : i32
    %c0_i32_0 = arith.constant 0 : i32
    %c0_i32_1 = arith.constant 0 : i32
    return %arg0, %arg1, %c0_i32, %c0_i32_0 : i32, i32, i32, i32
  }
}

</mosaic_0001>

<bundles_post_ra>
// kernel: forward.1
= control target key start
LH: loop header
LB: loop body
LE: loop exit
PB: predicated region body
PF: predicated region fallthrough
CT: control target
= control target key end

     0   :  { %s6389_s24 = smov 0   ;;  %s6391_s25 = smov 0   ;;  %s9778_s0 = inlined_call_operand.vmem [shape: f32[2,20,16,8], index: 0, kind: input, shape index: {}]   ;;  %s9779_s1 = inlined_call_operand.vmem [shape: bf16[8,256], index: 1, kind: input, shape index: {}]   ;;  %s9780_s2 = inlined_call_operand.vmem [shape: f32[1,256], index: 2, kind: input, shape index: {}]   ;;  %s9781_s3 = inlined_call_operand.vmem [shape: f32[25,256], index: 3, kind: input, shape index: {}]   ;;  %s9782_s4 = inlined_call_operand.vmem [shape: f32[1,256], index: 4, kind: input, shape index: {}]   ;;  %s9783_s5 = inlined_call_operand.vmem [shape: bf16[256,8], index: 5, kind: input, shape index: {}]   ;;  %s9784_s6 = inlined_call_operand.vmem [shape: f32[1,8], index: 6, kind: input, shape index: {}]   ;;  %s9785_s7 = inlined_call_operand.vmem [shape: f32[2,16,16,8], index: 7, kind: output, shape index: {}]  }
   0x1   :  { %s6393_s26 = smov 0   ;;  %s6395_s27 = smov 0  }
   0x2   :  { %s6397_s28 = smov 0  }
   0x3 LB: > { %s26_s29 = sadd.s32 1, %s6337_s26  ;;  %s29_s30 = sadd.s32 1, %s6341_s27  ;;  %s6345_s28 = sphi %s6397_s28, %s17_s28   ;;  %s6341_s27 = sphi %s6395_s27, %s10348_s27   ;;  %s6337_s26 = sphi %s6393_s26, %s10347_s26   ;;  %s6333_s25 = sphi %s6391_s25, %s10346_s25   ;;  %s6329_s24 = sphi %s6389_s24, %s10345_s24  }
   0x4   : > { %p27_p0 = scmp.ge.s32.totalorder %s26_s29, 2  ;;  %p6052_p1 = scmp.ge.s32.totalorder %s6345_s28, 1 }
   0x5   : > { %p251_p2 = scmp.lt.s32.totalorder %s6345_s28, 5 }
   0x6   : > { %s10350_s29 = smov (%p27_p0, %s26_s29), 0  ;;  %s10352_s30 = smov (!%p27_p0, %s29_s30), %s6341_s27 }
   0x7   : > { %p252_p3 = pnand %p6052_p1, %p251_p2  ;;  %p31_p4 = scmp.ge.s32.totalorder %s10352_s30, 2 }
   0x9   : > { %s10354_s30 = smov (%p31_p4, %s10352_s30), 0  ;;  %255 = sbr.rel (%p252_p3) target bundleno = 1225 (0x4c9), region = 48 }
  0x10   : > { %v344_v0 = vld [vmem:[%s9779_s1] sm:$0xff]  ;;  %vm399_vm0 = vcmask 1043456   ;;  %p288_p5 = scmp.lt.s32.totalorder %s6333_s25, 1  ;;  %v6347_v3 = vmov 0   ;;  %s6115_s11 = sshll.u32 %s6329_s24, 7  ;;  %vm362_vm1 = vcmask 64512   ;;  %v347_v42 = vlaneseq }
  0x11   : > { %v6061_v1 = vcombine.high %v344_v0, %v344_v0  ;;  %v6060_v2 = vcombine.low %v344_v0, %v344_v0  ;;  %438 = vmatprep.mubr.bf16.mxu0 %v6347_v3  ;;  %v6348_v41 = vmov 0.0   ;;  %s6484_s16 = sshll.u32 %s6329_s24, 3  ;;  %v345_v45 = vld [vmem:[%s9780_s2] sm:$0x3]  ;;  %v2443_v52 = vld [vmem:[%s9781_s3 + $0x8] sm:$0xff]  ;;  %v1089_v63 = vld [vmem:[%s9781_s3 + $0x10] sm:$0xff] }
  0x12   : > { %s10356_s25 = smov (!%p288_p5, %s6333_s25), 1  ;;  %776 = vst [vmem:[#allocation2 + $0x8] sm:$0x3] %v6348_v41  ;;  %777 = vst [vmem:[#allocation2 + $0x30] sm:$0x3] %v6348_v41  ;;  %v348_v43 = vshrl.u32 %v347_v42, 7  ;;  %v6494_v47 = vstv %s6484_s16 }
  0x13   : > { %6062 = vmatprep.subr.msk.bf16.mxu0 %vm399_vm0, %v6061_v1  ;;  %v401_v4 = vsel %vm399_vm0, %v6060_v2, 0  ;;  %s6229_s10 = smul.u32 320, %s10356_s25  ;;  %778 = vst [vmem:[#allocation2 + $0x38] sm:$0x3] %v6348_v41  ;;  %779 = vst [vmem:[#allocation2 + $0x60] sm:$0x3] %v6348_v41 }
  0x14   : > { %407 = vmatpush1.bf16.msra.mxu0 %v401_v4  ;;  %780 = vst [vmem:[#allocation2 + $0x68] sm:$0x3] %v6348_v41  ;;  %781 = vst [vmem:[#allocation2 + $0x90] sm:$0x3] %v6348_v41  ;;  %v6486_v44 = vsub.s32 0, %v348_v43  ;;  %v6491_v46 = vsub.s32 1, %v348_v43 }
  0x15   : > { %s292_s14 = scalar_lea.vmem %s9778_s0, %s6229_s10  ;;  %782 = vst [vmem:[#allocation2 + $0x98] sm:$0x3] %v6348_v41  ;;  %783 = vst [vmem:[#allocation2 + $0xc0] sm:$0x3] %v6348_v41  ;;  %v6496_v48 = vsub.s32 3, %v348_v43  ;;  %v6498_v49 = vsub.s32 2, %v348_v43 }
  0x16   : > { %s6434_s15 = scalar_lea.vmem %s292_s14, %s6115_s11  ;;  %784 = vst [vmem:[#allocation2 + $0xc8] sm:$0x3] %v6348_v41  ;;  %785 = vst [vmem:[#allocation2 + $0xf0] sm:$0x3] %v6348_v41  ;;  %v6501_v50 = vrot.slane %v345_v45, %v6486_v44  ;;  %v6503_v51 = vsub.s32 4, %v348_v43  ;;  %v656_v53 = vadd.s32 1, %v6494_v47  ;;  %v6510_v54 = vrot.slane %v345_v45, %v6491_v46 }
  0x17   : > { %v308_v5 = vld [vmem:[%s6434_s15] sm:$0xff]  ;;  %v309_v6 = vld [vmem:[%s6434_s15 + $0x8] sm:$0xff]  ;;  %v310_v8 = vld [vmem:[%s6434_s15 + $0x10] sm:$0xff]  ;;  %786 = vst [vmem:[#allocation2 + $0xf8] sm:$0x3] %v6348_v41  ;;  %v6512_v55 = vsub.s32 6, %v348_v43  ;;  %v6521_v59 = vrot.slane %v2443_v52, %v6486_v44  ;;  %v6524_v60 = vrot.slane %v2443_v52, %v6491_v46  ;;  %v6527_v61 = vrot.slane %v2443_v52, %v6498_v49 }
  0x18   : > { %v332_v7 = vpack.c.bf16 %v309_v6, %v308_v5  ;;  %v311_v9 = vld [vmem:[%s6434_s15 + $0x18] sm:$0xff]  ;;  %v312_v11 = vld [vmem:[%s6434_s15 + $0x20] sm:$0xff]  ;;  %v313_v12 = vld [vmem:[%s6434_s15 + $0x28] sm:$0xff]  ;;  %787 = vst [vmem:[#allocation2 + $0x120] sm:$0x3] %v6348_v41  ;;  %v6514_v56 = vsub.s32 7, %v348_v43  ;;  %v6530_v62 = vrot.slane %v2443_v52, %v6496_v48  ;;  %v6539_v2 = vrot.slane %v2443_v52, %v6503_v51 }
  0x19   : > { %v333_v10 = vpack.c.bf16 %v311_v9, %v310_v8  ;;  %v334_v13 = vpack.c.bf16 %v313_v12, %v312_v11  ;;  %v314_v14 = vld [vmem:[%s6434_s15 + $0x30] sm:$0xff]  ;;  %v315_v15 = vld [vmem:[%s6434_s15 + $0x38] sm:$0xff]  ;;  %v316_v17 = vld [vmem:[%s6434_s15 + $0x40] sm:$0xff]  ;;  %788 = vst [vmem:[#allocation2 + $0x128] sm:$0x3] %v6348_v41  ;;  %v6516_v57 = vsub.s32 5, %v348_v43  ;;  %v6546_v6 = vrot.slane %v2443_v52, %v6512_v55 }
  0x1a   : > { %6063 = vmatmul.mubr.msk.bf16.vlgmr.msra.gmra.mrb[0].mxu0 %vm362_vm1, %v332_v7  ;;  %v335_v16 = vpack.c.bf16 %v315_v15, %v314_v14  ;;  %v317_v18 = vld [vmem:[%s6434_s15 + $0x48] sm:$0xff]  ;;  %v318_v20 = vld [vmem:[%s6434_s15 + $0x50] sm:$0xff]  ;;  %v319_v21 = vld [vmem:[%s6434_s15 + $0x58] sm:$0xff]  ;;  %789 = vst [vmem:[#allocation2 + $0x150] sm:$0x3] %v6348_v41  ;;  %vm667_vm2 = vcmp.ge.s32.totalorder %v6494_v47, 2  ;;  %v6549_v7 = vrot.slane %v2443_v52, %v6514_v56  ;;  %v6552_v9 = vrot.slane %v1089_v63, %v6486_v44 }
  0x1b   : > { %448 = vmatprep.mubr.bf16.mxu0 %v6347_v3  ;;  %v336_v19 = vpack.c.bf16 %v317_v18, %v316_v17  ;;  %v337_v22 = vpack.c.bf16 %v319_v21, %v318_v20  ;;  %v320_v23 = vld [vmem:[%s6434_s15 + $0x60] sm:$0xff]  ;;  %v321_v24 = vld [vmem:[%s6434_s15 + $0x68] sm:$0xff]  ;;  %v322_v26 = vld [vmem:[%s6434_s15 + $0x70] sm:$0xff]  ;;  %790 = vst [vmem:[#allocation2 + $0x158] sm:$0x3] %v6348_v41  ;;  %vm679_vm3 = vcmp.lt.s32.totalorder %v6494_v47, 18  ;;  %v6543_v5 = vrot.slane %v2443_v52, %v6516_v57 }
  0x1c   : > { %v338_v25 = vpack.c.bf16 %v321_v24, %v320_v23  ;;  %v323_v27 = vld [vmem:[%s6434_s15 + $0x78] sm:$0xff]  ;;  %v324_v29 = vld [vmem:[%s6434_s15 + $0x80] sm:$0xff]  ;;  %v325_v30 = vld [vmem:[%s6434_s15 + $0x88] sm:$0xff]  ;;  %791 = vst [vmem:[#allocation2 + $0x180] sm:$0x3] %v6348_v41  ;;  %vm871_vm4 = vcmask 1041408   ;;  %v6567_v14 = vrot.slane %v1089_v63, %v6496_v48  ;;  %v6576_v17 = vrot.slane %v1089_v63, %v6516_v57 }
  0x1d   : > { %v339_v28 = vpack.c.bf16 %v323_v27, %v322_v26  ;;  %v340_v31 = vpack.c.bf16 %v325_v30, %v324_v29  ;;  %v326_v32 = vld [vmem:[%s6434_s15 + $0x90] sm:$0xff]  ;;  %v327_v33 = vld [vmem:[%s6434_s15 + $0x98] sm:$0xff]  ;;  %v328_v35 = vld [vmem:[%s6434_s15 + $0xa0] sm:$0xff]  ;;  %792 = vst [vmem:[#allocation2 + $0x188] sm:$0x3] %v6348_v41  ;;  %vm668_vm5 = vcmp.ge.s32.totalorder %v656_v53, 2 }
  0x1e   : > { %v341_v34 = vpack.c.bf16 %v327_v33, %v326_v32  ;;  %v329_v36 = vld [vmem:[%s6434_s15 + $0xa8] sm:$0xff]  ;;  %v330_v38 = vld [vmem:[%s6434_s15 + $0xb0] sm:$0xff]  ;;  %v331_v39 = vld [vmem:[%s6434_s15 + $0xb8] sm:$0xff]  ;;  %793 = vst [vmem:[#allocation2 + $0x1b0] sm:$0x3] %v6348_v41  ;;  %vm680_vm6 = vcmp.lt.s32.totalorder %v656_v53, 18 }
  0x1f   : > { %v342_v37 = vpack.c.bf16 %v329_v36, %v328_v35  ;;  %v343_v40 = vpack.c.bf16 %v331_v39, %v330_v38  ;;  %794 = vst [vmem:[#allocation2 + $0x1b8] sm:$0x3] %v6348_v41  ;;  %795 = vst [vmem:[#allocation2 + $0x1e0] sm:$0x3] %v6348_v41  ;;  %v2444_v0 = vld [vmem:[%s9781_s3 + $0x18] sm:$0xff]  ;;  %v6591_v24 = vadd.s32 3, %v6494_v47 }
  0x20   : > { %796 = vst [vmem:[#allocation2 + $0x1e8] sm:$0x3] %v6348_v41  ;;  %798 = vst [vmem:[#allocation2 + $0x218] sm:$0x3] %v6348_v41  ;;  %v6570_v15 = vrot.slane %v2444_v0, %v6491_v46  ;;  %v6579_v18 = vrot.slane %v2444_v0, %v6496_v48  ;;  %v6582_v21 = vrot.slane %v2444_v0, %v6516_v57  ;;  %vm1236_vm8 = vcmask 1046528   ;;  %p296_p6 = scmp.lt.s32.totalorder %s6484_s16, 15 }
  0x21   : > { %800 = vst [vmem:[#allocation2 + $0x28] sm:$0xc] %v6348_v41  ;;  %801 = vst [vmem:[#allocation2 + $0x50] sm:$0xc] %v6348_v41  ;;  %v6599_v29 = vrot.slane %v2444_v0, %v6498_v49  ;;  %v6603_v33 = vrot.slane %v2444_v0, %v6503_v51  ;;  %vm1393_vm9 = vcmask 1045504   ;;  %v6622_v52 = vadd.s32 4, %v6494_v47 }
  0x22   : > { %6064 = vmatmul.mubr.msk.bf16.gmra.mrb[4].mxu0 %vm362_vm1, %v333_v10  ;;  %802 = vst [vmem:[#allocation2 + $0x58] sm:$0xc] %v6348_v41  ;;  %803 = vst [vmem:[#allocation2 + $0x80] sm:$0xc] %v6348_v41  ;;  %v6555_v10 = vrot.slane %v2444_v0, %v6486_v44  ;;  %vm2847_vm11 = vcmask 1044480   ;;  %v6641_v11 = vadd.s32 6, %v6494_v47 }
  0x23   : > { %458 = vmatprep.mubr.bf16.mxu0 %v6347_v3  ;;  %804 = vst [vmem:[#allocation2 + $0x88] sm:$0xc] %v6348_v41  ;;  %805 = vst [vmem:[#allocation2 + $0xb0] sm:$0xc] %v6348_v41  ;;  %vm670_vm15 = vcmp.ge.s32.totalorder %v6591_v24, 2  ;;  %s10358_s16 = smov (!%p296_p6, %s6484_s16), 15 }
  0x24   : > { %806 = vst [vmem:[#allocation2 + $0xb8] sm:$0xc] %v6348_v41  ;;  %807 = vst [vmem:[#allocation2 + $0xe0] sm:$0xc] %v6348_v41  ;;  %s6055_s8 = sshll.u32 %s10358_s16, 1  ;;  %s6056_s9 = sshll.u32 %s10356_s25, 5 }
  0x25   : > { %808 = vst [vmem:[#allocation2 + $0xe8] sm:$0xc] %v6348_v41  ;;  %809 = vst [vmem:[#allocation2 + $0x110] sm:$0xc] %v6348_v41  ;;  %s300_s10 = sadd.s32 %s6056_s9, %s6055_s8 }
  0x26   : > { %810 = vst [vmem:[#allocation2 + $0x118] sm:$0xc] %v6348_v41  ;;  %811 = vst [vmem:[#allocation2 + $0x140] sm:$0xc] %v6348_v41  ;;  %s6057_s13 = sshll.u32 %s300_s10, 3 }
  0x27   : > { %812 = vst [vmem:[#allocation2 + $0x148] sm:$0xc] %v6348_v41  ;;  %813 = vst [vmem:[#allocation2 + $0x170] sm:$0xc] %v6348_v41  ;;  %s9700_s18 = scalar_lea.vmem %s9785_s7, %s6057_s13 }
  0x28   : > { %814 = vst [vmem:[#allocation2 + $0x178] sm:$0xc] %v6348_v41  ;;  %815 = vst [vmem:[#allocation2 + $0x1a0] sm:$0xc] %v6348_v41 }
  0x29   : > { %816 = vst [vmem:[#allocation2 + $0x1a8] sm:$0xc] %v6348_v41  ;;  %817 = vst [vmem:[#allocation2 + $0x1d0] sm:$0xc] %v6348_v41 }
  0x2a   : > { %6065 = vmatmul.mubr.msk.bf16.gmra.mrb[8].mxu0 %vm362_vm1, %v334_v13  ;;  %818 = vst [vmem:[#allocation2 + $0x1d8] sm:$0xc] %v6348_v41  ;;  %819 = vst [vmem:[#allocation2 + $0x200] sm:$0xc] %v6348_v41 }
  0x2b   : > { %468 = vmatprep.mubr.bf16.mxu0 %v6347_v3  ;;  %820 = vst [vmem:[#allocation2 + $0x208] sm:$0xc] %v6348_v41  ;;  %822 = vst [vmem:[#allocation2 + $0x238] sm:$0xc] %v6348_v41 }
  0x2c   : > { %9889 = vst [vmem:[#allocation3_spill] sm:$0xff] %v6486_v44  ;;  %9890 = vst [vmem:[#allocation4_spill] sm:$0xff] %v6491_v46 }
  0x2d   : > { %9891 = vst [vmem:[#allocation5_spill] sm:$0xff] %v6494_v47  ;;  %9892 = vst [vmem:[#allocation6_spill] sm:$0xff] %v6496_v48 }
  0x2e   : > { %9893 = vst [vmem:[#allocation7_spill] sm:$0xff] %v6498_v49  ;;  %9894 = vst [vmem:[#allocation8_spill] sm:$0xff] %v6503_v51 }
  0x2f   : > { %9895 = vst [vmem:[#allocation9_spill] sm:$0xff] %v6510_v54  ;;  %9896 = vst [vmem:[#allocation10_spill] sm:$0xff] %v6512_v55 }
  0x30   : > { %9897 = vst [vmem:[#allocation11_spill] sm:$0xff] %v6514_v56  ;;  %9898 = vst [vmem:[#allocation12_spill] sm:$0xff] %v6516_v57 }
  0x31   : > { %9899 = vst [vmem:[#allocation13_spill] sm:$0xff] %v6552_v9  ;;  %vm6561_vm7 = vmand %vm667_vm2, %vm679_vm3  ;;  %vm682_vm2 = vcmp.lt.s32.totalorder %v6591_v24, 18  ;;  %v6275_v24 = vld [vmem:[%s9783_s5 + $0x48] sm:$0xff]  }
  0x32   : > { %6066 = vmatmul.mubr.msk.bf16.gmra.mrb[12].mxu0 %vm362_vm1, %v335_v16  ;;  %9902 = vst [vmem:[#allocation14_spill] sm:$0xff] %v6567_v14  ;;  %v1088_v16 = vld [vmem:[%s9781_s3] sm:$0xff]  ;;  %9903 = vst [vmem:[#allocation15_spill] sm:$0xff] %v6576_v17 }
  0x33   : > { %478 = vmatprep.mubr.bf16.mxu0 %v6347_v3  ;;  %9904 = vst [vmem:[#allocation16_spill] sm:$0xff] %v6582_v21  ;;  %v6588_v23 = vrot.slane %v1088_v16, %v6514_v56  ;;  %vm6617_vm10 = vmand %vm668_vm5, %vm680_vm6  ;;  %vm671_vm5 = vcmp.ge.s32.totalorder %v6622_v52, 2  ;;  %vm683_vm6 = vcmp.lt.s32.totalorder %v6622_v52, 18  ;;  %v6279_v52 = vld [vmem:[%s9783_s5 + $0x68] sm:$0xff]  }
  0x34   : > { %9910 = vst [vmem:[#allocation20_spill] sm:$0xff] %v6641_v11  ;;  %vm6894_vm3 = vmand %vm670_vm15, %vm682_vm2 }
  0x35   : > { %9905 = vst [vmem:[#allocation17_spill] sm:$0xff] %v6588_v23 }
  0x3a   : > { %6067 = vmatmul.mubr.msk.bf16.gmra.mrb[16].mxu0 %vm362_vm1, %v336_v19 }
  0x3b   : > { %488 = vmatprep.mubr.bf16.mxu0 %v6347_v3 }
  0x42   : > { %6068 = vmatmul.mubr.msk.bf16.gmra.mrb[20].mxu0 %vm362_vm1, %v337_v22  ;;  %v6585_v22 = vadd.s32 2, %v6494_v47 }
  0x43   : > { %498 = vmatprep.mubr.bf16.mxu0 %v6347_v3 }
  0x44   : > { %vm669_vm12 = vcmp.ge.s32.totalorder %v6585_v22, 2  ;;  %vm681_vm13 = vcmp.lt.s32.totalorder %v6585_v22, 18 }
  0x45   : > { %vm6752_vm14 = vmand %vm669_vm12, %vm681_vm13 }
  0x46   : > { %vm7133_vm12 = vmand %vm671_vm5, %vm683_vm6 }
  0x4a   : > { %6069 = vmatmul.mubr.msk.bf16.gmra.mrb[24].mxu0 %vm362_vm1, %v338_v25  ;;  %v1090_v25 = vld [vmem:[%s9781_s3 + $0x20] sm:$0xff] }
  0x4b   : > { %508 = vmatprep.mubr.bf16.mxu0 %v6347_v3  ;;  %v6613_v42 = vrot.slane %v1090_v25, %v6491_v46 }
  0x4d   : > { %9907 = vst [vmem:[#allocation19_spill] sm:$0xff] %v6613_v42 }
  0x52   : > { %6070 = vmatmul.mubr.msk.bf16.gmra.mrb[28].mxu0 %vm362_vm1, %v339_v28 }
  0x53   : > { %518 = vmatprep.mubr.bf16.mxu0 %v6347_v3 }
  0x5a   : > { %6071 = vmatmul.mubr.msk.bf16.gmra.mrb[32].mxu0 %vm362_vm1, %v340_v31 }
  0x5b   : > { %528 = vmatprep.mubr.bf16.mxu0 %v6347_v3 }
  0x62   : > { %6072 = vmatmul.mubr.msk.bf16.gmra.mrb[36].mxu0 %vm362_vm1, %v341_v34 }
  0x63   : > { %538 = vmatprep.mubr.bf16.mxu0 %v6347_v3 }
  0x6a   : > { %6073 = vmatmul.mubr.msk.bf16.gmra.mrb[40].mxu0 %vm362_vm1, %v342_v37  ;;  %v6609_v37 = vrot.slane %v1090_v25, %v6486_v44 }
  0x6b   : > { %548 = vmatprep.mubr.bf16.mxu0 %v6347_v3 }
  0x6c   : > { %9906 = vst [vmem:[#allocation18_spill] sm:$0xff] %v6609_v37 }
  0x72   : > { %6074 = vmatmul.mubr.msk.bf16.gmra.mrb[44].mxu0 %vm362_vm1, %v343_v40 }
  0xed   : > { %v440_v58 = vpop.f32.mrb[0].mxu0 }
  0xee   : > { %v442_v1 = vpop.f32.mrb[1].mxu0  ;;  %v6625_v58 = vadd.s32 5, %v6494_v47 }
  0xef   : > { %v443_v3 = vadd.f32 %v442_v1, %v6510_v54  ;;  %v444_v4 = vpop.f32.mrb[2].mxu0 }
  0xf0   : > { %v446_v8 = vpop.f32.mrb[3].mxu0 }
  0xf1   : > { %v560_v12 = vmax.f32 %v443_v3, 0.0  ;;  %v447_v13 = vadd.f32 %v446_v8, %v6510_v54 }
  0xf3   : > { %v608_v19 = vmin.f32 %v560_v12, 6.0  ;;  %v562_v20 = vmax.f32 %v447_v13, 0.0 }
  0xf5   : > { %v728_v26 = vsel %vm6561_vm7, %v608_v19, 0.0  ;;  %v610_v27 = vmin.f32 %v562_v20, 6.0  ;;  %v450_v28 = vpop.f32.mrb[4].mxu0 }
  0xf6   : > { %v873_v30 = vrot.slane %v728_v26, 6  ;;  %v451_v31 = vadd.f32 %v450_v28, %v6501_v50  ;;  %v452_v32 = vpop.f32.mrb[5].mxu0 }
  0xf7   : > { %v730_v34 = vsel %vm6561_vm7, %v610_v27, 0.0  ;;  %v453_v35 = vadd.f32 %v452_v32, %v6510_v54  ;;  %v454_v36 = vpop.f32.mrb[6].mxu0  ;;  %vm672_vm7 = vcmp.ge.s32.totalorder %v6625_v58, 2 }
  0xf8   : > { %1017 = vst [vmem:[#allocation2 + $0x8] sm:$0xfc] %v873_v30  ;;  %v876_v38 = vrot.slane %v730_v34, 6  ;;  %v563_v39 = vmax.f32 %v451_v31, 0.0  ;;  %v455_v40 = vadd.f32 %v454_v36, %v6501_v50  ;;  %v456_v41 = vpop.f32.mrb[7].mxu0 }
  0xf9   : > { %v564_v45 = vmax.f32 %v453_v35, 0.0  ;;  %v6629_v3 = vadd.f32 %v456_v41, %v6510_v54 }
  0xfa   : > { %v877_v63 = vsel %vm871_vm4, %v873_v30, %v876_v38  ;;  %1021 = vst [vmem:[#allocation2 + $0x28] sm:$0x3] %v876_v38  ;;  %v611_v0 = vmin.f32 %v563_v39, 6.0  ;;  %v565_v1 = vmax.f32 %v455_v40, 0.0 }
  0xfb   : > { %v6632_v53 = vmul.f32 %v6524_v60, %v877_v63  ;;  %v6635_v4 = vmul.f32 %v6527_v61, %v877_v63  ;;  %v6638_v8 = vmul.f32 %v6530_v62, %v877_v63  ;;  %v6644_v12 = vmul.f32 %v6539_v2, %v877_v63 }
  0xfc   : > { %v731_v13 = vsel %vm6617_vm10, %v611_v0, 0.0  ;;  %v612_v16 = vmin.f32 %v564_v45, 6.0  ;;  %v613_v19 = vmin.f32 %v565_v1, 6.0  ;;  %v566_v35 = vmax.f32 %v6629_v3, 0.0 }
  0xfd   : > { %v2568_v20 = vrot.slane %v6632_v53, 1  ;;  %v2708_v26 = vrot.slane %v6635_v4, 2  ;;  %v2849_v27 = vrot.slane %v6638_v8, 3  ;;  %v878_v28 = vrot.slane %v731_v13, 6  ;;  %v460_v30 = vpop.f32.mrb[8].mxu0 }
  0xfe   : > { %v2989_v31 = vrot.slane %v6644_v12, 4  ;;  %v732_v32 = vsel %vm6617_vm10, %v612_v16, 0.0  ;;  %v733_v34 = vsel %vm6617_vm10, %v613_v19, 0.0  ;;  %v462_v36 = vpop.f32.mrb[9].mxu0  ;;  %v2468_v41 = vmul.f32 %v6521_v59, %v877_v63 }
  0xff   : > { %v2447_v38 = vld [vmem:[#allocation2 + $0x8] sm:$0xff]  ;;  %1022 = vst [vmem:[#allocation2 + $0x30] sm:$0xfc] %v878_v28  ;;  %v6658_v45 = vrot.slane %v732_v32, 6  ;;  %v6661_v0 = vadd.f32 %v460_v30, %v6501_v50  ;;  %v6664_v1 = vrot.slane %v1090_v25, %v6498_v49  ;;  %v880_v12 = vrot.slane %v733_v34, 6  ;;  %v464_v63 = vpop.f32.mrb[10].mxu0 }
 0x100   : > { %v2499_v39 = vld [vmem:[#allocation2 + $0x8] sm:$0xfe]  ;;  %v6669_v13 = vadd.f32 %v462_v36, %v6510_v54  ;;  %v2467_v16 = vmul.f32 %v6521_v59, %v2447_v38  ;;  %v466_v38 = vpop.f32.mrb[11].mxu0  ;;  %v614_v46 = vmin.f32 %v566_v35, 6.0 }
 0x101   : > { %v2639_v40 = vld [vmem:[#allocation2 + $0x8] sm:$0xfc]  ;;  %9911 = vst [vmem:[#allocation21_spill] sm:$0xff] %v6664_v1  ;;  %v2519_v53 = vmul.f32 %v6524_v60, %v2499_v39  ;;  %v2500_v32 = vld [vmem:[#allocation2 + $0x28] sm:$0x1]  ;;  %v6676_v39 = vadd.f32 %v464_v63, %v6501_v50 }
 0x102   : > { %v2659_v4 = vmul.f32 %v6527_v61, %v2639_v40  ;;  %v2779_v3 = vld [vmem:[#allocation2 + $0x8] sm:$0xf8]  ;;  %v2640_v25 = vld [vmem:[#allocation2 + $0x28] sm:$0x3]  ;;  %1023 = vst [vmem:[#allocation2 + $0x38] sm:$0xfc] %v6658_v45  ;;  %v2521_v36 = vmul.f32 %v6524_v60, %v2500_v32 }
 0x103   : > { %v2920_v8 = vld [vmem:[#allocation2 + $0x8] sm:$0xf0]  ;;  %v2799_v19 = vmul.f32 %v6530_v62, %v2779_v3  ;;  %v2780_v1 = vld [vmem:[#allocation2 + $0x28] sm:$0x7]  ;;  %v2567_v40 = vrot.slane %v2519_v53, 1  ;;  %v2661_v42 = vmul.f32 %v6527_v61, %v2640_v25 }
 0x104   : > { %v2940_v30 = vmul.f32 %v6539_v2, %v2920_v8  ;;  %v2707_v34 = vrot.slane %v2659_v4, 2  ;;  %v2921_v37 = vld [vmem:[#allocation2 + $0x28] sm:$0xf]  ;;  %1026 = vst [vmem:[#allocation2 + $0x50] sm:$0x3] %v880_v12  ;;  %v2801_v8 = vmul.f32 %v6530_v62, %v2780_v1  ;;  %v2570_v57 = vrot.slane %v2521_v36, 1 }
 0x105   : > { %v2848_v3 = vrot.slane %v2799_v19, 3  ;;  %v2942_v14 = vmul.f32 %v6539_v2, %v2921_v37  ;;  %v2710_v51 = vrot.slane %v2661_v42, 2  ;;  %v2569_v63 = vsel %vm1236_vm8, %v2567_v40, %v2568_v20  ;;  %v470_v19 = vpop.f32.mrb[12].mxu0 }
 0x106   : > { %v2988_v17 = vrot.slane %v2940_v30, 4  ;;  %v2709_v53 = vsel %vm1393_vm9, %v2707_v34, %v2708_v26  ;;  %v2851_v4 = vrot.slane %v2801_v8, 3  ;;  %v2623_v32 = vadd.f32 %v2569_v63, %v2467_v16  ;;  %v472_v40 = vpop.f32.mrb[13].mxu0 }
 0x107   : > { %v2991_v48 = vrot.slane %v2942_v14, 4  ;;  %v2850_v25 = vsel %vm2847_vm11, %v2848_v3, %v2849_v27  ;;  %v2571_v1 = vsel %vm1236_vm8, %v2568_v20, %v2570_v57  ;;  %v2711_v37 = vsel %vm1393_vm9, %v2708_v26, %v2710_v51  ;;  %v474_v3 = vpop.f32.mrb[14].mxu0 }
 0x108   : > { %v2990_v42 = vsel %vm399_vm0, %v2988_v17, %v2989_v31  ;;  %v881_v30 = vsel %vm871_vm4, %v878_v28, %v880_v12  ;;  %v2624_v34 = vadd.f32 %v2571_v1, %v2468_v41  ;;  %v2852_v14 = vsel %vm2847_vm11, %v2849_v27, %v2851_v4 }
 0x109   : > { %v2992_v16 = vsel %vm399_vm0, %v2989_v31, %v2991_v48  ;;  %v2763_v36 = vadd.f32 %v2709_v53, %v2623_v32  ;;  %1024 = vst [vmem:[#allocation2 + $0x40] sm:$0xff] %v881_v30  ;;  %v2449_v8 = vld [vmem:[#allocation2 + $0x38] sm:$0xff]  ;;  %v6694_v57 = vadd.f32 %v466_v38, %v6510_v54  ;;  %v6697_v51 = vadd.f32 %v470_v19, %v6501_v50 }
 0x10a   : > { %v2501_v63 = vld [vmem:[#allocation2 + $0x38] sm:$0xfe]  ;;  %v6700_v17 = vadd.f32 %v472_v40, %v6510_v54  ;;  %v2764_v20 = vadd.f32 %v2711_v37, %v2624_v34  ;;  %v6703_v26 = vmul.f32 %v6521_v59, %v2449_v8  ;;  %v3080_v53 = vmul.f32 %v6543_v5, %v2449_v8  ;;  %v6723_v40 = vpop.f32.mrb[15].mxu0 }
 0x10b   : > { %v2641_v49 = vld [vmem:[#allocation2 + $0x38] sm:$0xfc]  ;;  %v6706_v48 = vmul.f32 %v6524_v60, %v2501_v63  ;;  %v2904_v12 = vadd.f32 %v2850_v25, %v2763_v36  ;;  %v570_v43 = vmax.f32 %v6694_v57, 0.0  ;;  %v6765_v22 = vadd.f32 %v474_v3, %v6501_v50 }
 0x10c   : > { %v6709_v27 = vmul.f32 %v6527_v61, %v2641_v49  ;;  %v2781_v28 = vld [vmem:[#allocation2 + $0x38] sm:$0xf8]  ;;  %v2905_v1 = vadd.f32 %v2852_v14, %v2764_v20 }
 0x10d   : > { %v2922_v31 = vld [vmem:[#allocation2 + $0x38] sm:$0xf0]  ;;  %v6712_v41 = vmul.f32 %v6530_v62, %v2781_v28  ;;  %v2572_v37 = vrot.slane %v6706_v48, 1  ;;  %v3044_v36 = vadd.f32 %v2990_v42, %v2904_v12  ;;  %v734_v42 = vsel %vm6617_vm10, %v614_v46, 0.0 }
 0x10e   : > { %v3112_v35 = vld [vmem:[#allocation2 + $0x38] sm:$0xfe]  ;;  %v6715_v38 = vmul.f32 %v6539_v2, %v2922_v31  ;;  %v2712_v49 = vrot.slane %v6709_v27, 2  ;;  %v6730_v63 = vadd.f32 %v2992_v16, %v2905_v1  ;;  %v480_v27 = vpop.f32.mrb[16].mxu0  ;;  %v569_v46 = vmax.f32 %v6676_v39, 0.0 }
 0x10f   : > { %v3252_v4 = vld [vmem:[#allocation2 + $0x38] sm:$0xfc]  ;;  %v6721_v30 = vmul.f32 %v6546_v6, %v3112_v35  ;;  %v2853_v25 = vrot.slane %v6712_v41, 3  ;;  %v6739_v28 = vadd.f32 %v3080_v53, %v3044_v36  ;;  %v567_v35 = vmax.f32 %v6661_v0, 0.0  ;;  %v482_v16 = vpop.f32.mrb[17].mxu0 }
 0x110   : > { %v3392_v32 = vld [vmem:[#allocation2 + $0x38] sm:$0xf8]  ;;  %v2993_v34 = vrot.slane %v6715_v38, 4  ;;  %v6728_v8 = vmul.f32 %v6549_v7, %v3252_v4  ;;  %9914 = vst [vmem:[#allocation24_spill] sm:$0xff] %v6730_v63  ;;  %v882_v38 = vrot.slane %v734_v42, 6  ;;  %v568_v4 = vmax.f32 %v6669_v13, 0.0 }
 0x111   : > { %v3532_v19 = vld [vmem:[#allocation2 + $0x38] sm:$0xf0]  ;;  %9912 = vst [vmem:[#allocation22_spill] sm:$0xff] %v6721_v30  ;;  %v6734_v20 = vmul.f32 %v6555_v10, %v3392_v32  ;;  %9917 = vst [vmem:[#allocation27_spill] sm:$0xff] %v6739_v28  ;;  %v484_v32 = vpop.f32.mrb[18].mxu0  ;;  %v571_v0 = vmax.f32 %v6697_v51, 0.0 }
 0x112   : > { %9913 = vst [vmem:[#allocation23_spill] sm:$0xff] %v6728_v8  ;;  %v6737_v48 = vmul.f32 %v6570_v15, %v3532_v19  ;;  %v615_v19 = vmin.f32 %v567_v35, 6.0  ;;  %v6759_v1 = vpop.f32.mrb[19].mxu0  ;;  %v883_v13 = vsel %vm871_vm4, %v6658_v45, %v882_v38  ;;  %1027 = vst [vmem:[#allocation2 + $0x58] sm:$0x3] %v882_v38  ;;  %v616_v36 = vmin.f32 %v568_v4, 6.0 }
 0x113   : > { %9915 = vst [vmem:[#allocation25_spill] sm:$0xff] %v6734_v20  ;;  %1025 = vst [vmem:[#allocation2 + $0x48] sm:$0xff] %v883_v13  ;;  %v6768_v35 = vmul.f32 %v6521_v59, %v883_v13  ;;  %v2523_v39 = vmul.f32 %v6524_v60, %v883_v13  ;;  %v2663_v57 = vmul.f32 %v6527_v61, %v883_v13  ;;  %v617_v56 = vmin.f32 %v569_v46, 6.0 }
 0x114   : > { %9916 = vst [vmem:[#allocation26_spill] sm:$0xff] %v6737_v48  ;;  %v2803_v51 = vmul.f32 %v6530_v62, %v883_v13  ;;  %v6774_v12 = vmul.f32 %v6539_v2, %v883_v13  ;;  %v6777_v45 = vmul.f32 %v6546_v6, %v883_v13  ;;  %v735_v3 = vsel %vm6752_vm14, %v615_v19, 0.0 }
 0x115   : > { %v736_v38 = vsel %vm6752_vm14, %v616_v36, 0.0  ;;  %v2573_v4 = vrot.slane %v2523_v39, 1  ;;  %v2713_v41 = vrot.slane %v2663_v57, 2  ;;  %v6783_v14 = vrot.slane %v735_v3, 6  ;;  %v6790_v13 = vpop.f32.mrb[20].mxu0 }
 0x116   : > { %9920 = vst [vmem:[#allocation28_spill] sm:$0xff] %v6777_v45  ;;  %v2854_v31 = vrot.slane %v2803_v51, 3  ;;  %v2994_v42 = vrot.slane %v6774_v12, 4  ;;  %v6786_v44 = vrot.slane %v736_v38, 6  ;;  %v6788_v55 = vmin.f32 %v570_v43, 6.0  ;;  %v6798_v51 = vpop.f32.mrb[21].mxu0 }
 0x117   : > { %1028 = vst [vmem:[#allocation2 + $0x60] sm:$0xfc] %v6783_v14  ;;  %v2574_v19 = vsel %vm1236_vm8, %v2572_v37, %v2573_v4  ;;  %v2714_v36 = vsel %vm1393_vm9, %v2712_v49, %v2713_v41  ;;  %v6796_v57 = vmin.f32 %v571_v0, 6.0  ;;  %v737_v43 = vsel %vm6752_vm14, %v617_v56, 0.0  ;;  %v6812_v49 = vpop.f32.mrb[22].mxu0 }
 0x118   : > { %v2855_v39 = vsel %vm2847_vm11, %v2853_v25, %v2854_v31  ;;  %1029 = vst [vmem:[#allocation2 + $0x68] sm:$0xfc] %v6786_v44  ;;  %v2625_v12 = vadd.f32 %v2574_v19, %v6703_v26  ;;  %v6803_v46 = vsel %vm399_vm0, %v2993_v34, %v2994_v42  ;;  %v6816_v26 = vadd.f32 %v6723_v40, %v6510_v54 }
 0x119   : > { %v2502_v25 = vld [vmem:[#allocation2 + $0x58] sm:$0x1]  ;;  %v6819_v34 = vadd.f32 %v480_v27, %v6501_v50  ;;  %v6822_v56 = vadd.f32 %v482_v16, %v6510_v54  ;;  %v6825_v38 = vadd.f32 %v484_v32, %v6501_v50  ;;  %v886_v45 = vrot.slane %v737_v43, 6 }
 0x11a   : > { %v2642_v0 = vld [vmem:[#allocation2 + $0x58] sm:$0x3]  ;;  %v2524_v19 = vmul.f32 %v6524_v60, %v2502_v25  ;;  %v2765_v40 = vadd.f32 %v2714_v36, %v2625_v12  ;;  %v6837_v25 = vpop.f32.mrb[23].mxu0  ;;  %vm684_vm10 = vcmp.lt.s32.totalorder %v6625_v58, 18 }
 0x11b   : > { %v2782_v3 = vld [vmem:[#allocation2 + $0x58] sm:$0x7]  ;;  %v2664_v37 = vmul.f32 %v6527_v61, %v2642_v0  ;;  %1032 = vst [vmem:[#allocation2 + $0x80] sm:$0x3] %v886_v45  ;;  %vm7219_vm13 = vmand %vm672_vm7, %vm684_vm10 }
 0x11c   : > { %v2804_v21 = vmul.f32 %v6530_v62, %v2782_v3  ;;  %v2923_v48 = vld [vmem:[#allocation2 + $0x58] sm:$0xf]  ;;  %v2575_v0 = vrot.slane %v2524_v19, 1 }
 0x11d   : > { %v3113_v20 = vld [vmem:[#allocation2 + $0x58] sm:$0x1]  ;;  %v2945_v28 = vmul.f32 %v6539_v2, %v2923_v48  ;;  %v2715_v63 = vrot.slane %v2664_v37, 2 }
 0x11e   : > { %v3253_v8 = vld [vmem:[#allocation2 + $0x58] sm:$0x3]  ;;  %v6832_v27 = vmul.f32 %v6546_v6, %v3113_v20  ;;  %v2856_v3 = vrot.slane %v2804_v21, 3  ;;  %v1170_v37 = vld [vmem:[#allocation2 + $0x60] sm:$0xfc] }
 0x11f   : > { %v6835_v16 = vmul.f32 %v6549_v7, %v3253_v8  ;;  %v3393_v32 = vld [vmem:[#allocation2 + $0x58] sm:$0x7]  ;;  %v2996_v36 = vrot.slane %v2945_v28, 4  ;;  %v2576_v8 = vsel %vm1236_vm8, %v2573_v4, %v2575_v0  ;;  %v2716_v43 = vsel %vm1393_vm9, %v2713_v41, %v2715_v63  ;;  %v2451_v4 = vld [vmem:[#allocation2 + $0x68] sm:$0xff] }
 0x120   : > { %9921 = vst [vmem:[#allocation29_spill] sm:$0xff] %v6832_v27  ;;  %v3533_v30 = vld [vmem:[#allocation2 + $0x58] sm:$0xf]  ;;  %v6840_v47 = vmul.f32 %v6555_v10, %v3393_v32  ;;  %v2857_v19 = vsel %vm2847_vm11, %v2854_v31, %v2856_v3  ;;  %v6851_v32 = vpop.f32.mrb[24].mxu0  ;;  %v2626_v28 = vadd.f32 %v2576_v8, %v6768_v35  ;;  %v2503_v0 = vld [vmem:[#allocation2 + $0x68] sm:$0xfe]  ;;  %v6863_v31 = vmul.f32 %v6521_v59, %v2451_v4 }
 0x121   : > { %9922 = vst [vmem:[#allocation30_spill] sm:$0xff] %v6835_v16  ;;  %v6845_v12 = vmul.f32 %v6570_v15, %v3533_v30  ;;  %v2997_v48 = vsel %vm399_vm0, %v2994_v42, %v2996_v36  ;;  %v6857_v30 = vmul.f32 %v6588_v23, %v1170_v37  ;;  %v1327_v16 = vld [vmem:[#allocation2 + $0x60] sm:$0xf8]  ;;  %v6866_v41 = vmul.f32 %v6524_v60, %v2503_v0  ;;  %v2643_v35 = vld [vmem:[#allocation2 + $0x68] sm:$0xfc] }
 0x122   : > { %9923 = vst [vmem:[#allocation31_spill] sm:$0xff] %v6840_v47  ;;  %v6860_v63 = vmul.f32 %v6552_v9, %v1327_v16  ;;  %v2783_v3 = vld [vmem:[#allocation2 + $0x68] sm:$0xf8]  ;;  %v2906_v42 = vadd.f32 %v2855_v39, %v2765_v40  ;;  %v2766_v8 = vadd.f32 %v2716_v43, %v2626_v28  ;;  %v6870_v20 = vmul.f32 %v6527_v61, %v2643_v35  ;;  %v6875_v9 = vpop.f32.mrb[25].mxu0 }
 0x123   : > { %9924 = vst [vmem:[#allocation32_spill] sm:$0xff] %v6845_v12  ;;  %9925 = vst [vmem:[#allocation33_spill] sm:$0xff] %v6857_v30  ;;  %v2924_v36 = vld [vmem:[#allocation2 + $0x68] sm:$0xf0]  ;;  %v6873_v21 = vmul.f32 %v6530_v62, %v2783_v3  ;;  %v3082_v40 = vmul.f32 %v6543_v5, %v2451_v4  ;;  %v6883_v35 = vpop.f32.mrb[26].mxu0 }
 0x124   : > { %9926 = vst [vmem:[#allocation34_spill] sm:$0xff] %v6860_v63  ;;  %v3114_v16 = vld [vmem:[#allocation2 + $0x68] sm:$0xfe]  ;;  %v6879_v23 = vmul.f32 %v6539_v2, %v2924_v36  ;;  %v3046_v39 = vadd.f32 %v6803_v46, %v2906_v42  ;;  %v2907_v37 = vadd.f32 %v2857_v19, %v2766_v8  ;;  %v2717_v3 = vrot.slane %v6870_v20, 2  ;;  %v6898_v4 = vpop.f32.mrb[27].mxu0  ;;  %v6274_v19 = vld [vmem:[%s9783_s5 + $0x40] sm:$0xff]  }
 0x125   : > { %v3254_v63 = vld [vmem:[#allocation2 + $0x68] sm:$0xfc]  ;;  %v2858_v30 = vrot.slane %v6873_v21, 3  ;;  %v6888_v12 = vmul.f32 %v6546_v6, %v3114_v16  ;;  %6149 = vmatprep.subr.bf16.mxu1 %v6274_v19 }
 0x126   : > { %v3394_v43 = vld [vmem:[#allocation2 + $0x68] sm:$0xf8]  ;;  %v2998_v20 = vrot.slane %v6879_v23, 4  ;;  %v6904_v21 = vadd.f32 %v3082_v40, %v3046_v39  ;;  %v6907_v42 = vmul.f32 %v6549_v7, %v3254_v63  ;;  %v3047_v8 = vadd.f32 %v2997_v48, %v2907_v37  ;;  %v6930_v37 = vpop.f32.mrb[28].mxu0  ;;  %6150 = vmatpush3.bf16.msra.mxu1 %v6274_v19 }
 0x127   : > { %v3534_v28 = vld [vmem:[#allocation2 + $0x68] sm:$0xf0]  ;;  %9927 = vst [vmem:[#allocation35_spill] sm:$0xff] %v6888_v12  ;;  %v6910_v36 = vmul.f32 %v6555_v10, %v3394_v43  ;;  %v887_v23 = vsel %vm871_vm4, %v6783_v14, %v886_v45  ;;  %v9934_v40 = vsel %vm6752_vm14, %v6788_v55, 0.0  ;;  %v739_v48 = vsel %vm6894_vm3, %v6796_v57, 0.0  ;;  %9935 = vst [vmem:[#allocation40_spill] sm:$0xff] %v6930_v37  ;;  %6151 = vmatprep.subr.bf16.mxu1 %v6275_v24 }
 0x128   : > { %9930 = vst [vmem:[#allocation36_spill] sm:$0xff] %v6904_v21  ;;  %9931 = vst [vmem:[#allocation37_spill] sm:$0xff] %v6907_v42  ;;  %v6917_v0 = vmul.f32 %v6570_v15, %v3534_v28  ;;  %v888_v43 = vrot.slane %v9934_v40, 6  ;;  %v6933_v45 = vrot.slane %v739_v48, 6  ;;  %v9936_v28 = vmax.f32 %v6700_v17, 0.0  ;;  %v6938_v53 = vpop.f32.mrb[29].mxu0 }
 0x129   : > { %9932 = vst [vmem:[#allocation38_spill] sm:$0xff] %v6910_v36  ;;  %1030 = vst [vmem:[#allocation2 + $0x70] sm:$0xff] %v887_v23  ;;  %v573_v23 = vmax.f32 %v6765_v22, 0.0  ;;  %v6945_v48 = vpop.f32.mrb[30].mxu0 }
 0x12a   : > { %9933 = vst [vmem:[#allocation39_spill] sm:$0xff] %v6917_v0  ;;  %v620_v39 = vmin.f32 %v9936_v28, 6.0  ;;  %9937 = vst [vmem:[#allocation41_spill] sm:$0xff] %v6938_v53  ;;  %v889_v55 = vsel %vm871_vm4, %v6786_v44, %v888_v43  ;;  %6152 = vmatpush3.bf16.msra.mxu1 %v6275_v24  ;;  %v9943_v24 = vrot.slane %v6866_v41, 1  ;;  %v6998_v41 = vadd.f32 %v6759_v1, %v6510_v54 }
 0x12b   : > { %1033 = vst [vmem:[#allocation2 + $0x88] sm:$0x3] %v888_v43  ;;  %9938 = vst [vmem:[#allocation42_spill] sm:$0xff] %v6945_v48  ;;  %v6948_v17 = vmul.f32 %v6521_v59, %v889_v55  ;;  %v6951_v22 = vmul.f32 %v6524_v60, %v889_v55  ;;  %v6954_v28 = vmul.f32 %v6527_v61, %v889_v55  ;;  %v6960_v43 = vpop.f32.mrb[31].mxu0 }
 0x12c   : > { %1031 = vst [vmem:[#allocation2 + $0x78] sm:$0xff] %v889_v55  ;;  %v6957_v44 = vmul.f32 %v6530_v62, %v889_v55  ;;  %1034 = vst [vmem:[#allocation2 + $0x90] sm:$0xfc] %v6933_v45  ;;  %v6963_v14 = vmul.f32 %v6539_v2, %v889_v55  ;;  %v3083_v63 = vmul.f32 %v6543_v5, %v889_v55  ;;  %v740_v27 = vsel %vm6894_vm3, %v620_v39, 0.0 }
 0x12d   : > { %9939 = vst [vmem:[#allocation43_spill] sm:$0xff] %v6960_v43  ;;  %v6967_v16 = vmul.f32 %v6546_v6, %v889_v55  ;;  %v6970_v40 = vmul.f32 %v6549_v7, %v889_v55  ;;  %v2578_v19 = vrot.slane %v6951_v22, 1  ;;  %v2718_v57 = vrot.slane %v6954_v28, 2  ;;  %v6994_v47 = vpop.f32.mrb[32].mxu0 }
 0x12e   : > { %v2859_v0 = vrot.slane %v6957_v44, 3  ;;  %v6976_v36 = vmul.f32 %v6555_v10, %v889_v55  ;;  %v2999_v21 = vrot.slane %v6963_v14, 4  ;;  %v3099_v42 = vadd.f32 %v3083_v63, %v3047_v8  ;;  %9944 = vst [vmem:[#allocation47_spill] sm:$0xff] %v6994_v47 }
 0x12f   : > { %9940 = vst [vmem:[#allocation44_spill] sm:$0xff] %v6967_v16  ;;  %9941 = vst [vmem:[#allocation45_spill] sm:$0xff] %v6970_v40  ;;  %v2579_v22 = vsel %vm1236_vm8, %v9943_v24, %v2578_v19  ;;  %v2719_v28 = vsel %vm1393_vm9, %v2717_v3, %v2718_v57  ;;  %v6988_v55 = vrot.slane %v740_v27, 6  ;;  %v621_v63 = vmin.f32 %v573_v23, 6.0 }
 0x130   : > { %9942 = vst [vmem:[#allocation46_spill] sm:$0xff] %v6976_v36  ;;  %v2860_v44 = vsel %vm2847_vm11, %v2858_v30, %v2859_v0  ;;  %v2627_v14 = vadd.f32 %v2579_v22, %v6863_v31  ;;  %v6992_v8 = vsel %vm399_vm0, %v2998_v20, %v2999_v21  ;;  %v7002_v30 = vadd.f32 %v6790_v13, %v6501_v50 }
 0x131   : > { %v7006_v27 = vadd.f32 %v6798_v51, %v6510_v54  ;;  %v7010_v31 = vadd.f32 %v6812_v49, %v6501_v50  ;;  %1035 = vst [vmem:[#allocation2 + $0x98] sm:$0xfc] %v6988_v55 }
 0x132   : > { %v2504_v12 = vld [vmem:[#allocation2 + $0x88] sm:$0x1]  ;;  %v2767_v13 = vadd.f32 %v2719_v28, %v2627_v14  ;;  %v7028_v28 = vpop.f32.mrb[33].mxu0  ;;  %v6276_v14 = vld [vmem:[%s9783_s5 + $0x50] sm:$0xff]  }
 0x133   : > { %v2644_v39 = vld [vmem:[#allocation2 + $0x88] sm:$0x3]  ;;  %v2527_v3 = vmul.f32 %v6524_v60, %v2504_v12  ;;  %v7021_v12 = vadd.f32 %v6837_v25, %v6510_v54  ;;  %9946 = vst [vmem:[#allocation49_spill] sm:$0xff] %v7028_v28  ;;  %6153 = vmatprep.subr.bf16.mxu1 %v6276_v14 }
 0x134   : > { %v2784_v36 = vld [vmem:[#allocation2 + $0x88] sm:$0x7]  ;;  %v2667_v20 = vmul.f32 %v6527_v61, %v2644_v39  ;;  %6154 = vmatpush3.bf16.msra.mxu1 %v6276_v14  ;;  %v7064_v14 = vadd.f32 %v6851_v32, %v6501_v50 }
 0x135   : > { %v2807_v23 = vmul.f32 %v6530_v62, %v2784_v36  ;;  %v2925_v1 = vld [vmem:[#allocation2 + $0x88] sm:$0xf]  ;;  %v2580_v39 = vrot.slane %v2527_v3, 1 }
 0x136   : > { %v3115_v24 = vld [vmem:[#allocation2 + $0x88] sm:$0x1]  ;;  %v2948_v11 = vmul.f32 %v6539_v2, %v2925_v1  ;;  %v2720_v36 = vrot.slane %v2667_v20, 2  ;;  %v7036_v20 = vpop.f32.mrb[34].mxu0 }
 0x137   : > { %v3255_v22 = vld [vmem:[#allocation2 + $0x88] sm:$0x3]  ;;  %v3137_v51 = vmul.f32 %v6546_v6, %v3115_v24  ;;  %v2861_v48 = vrot.slane %v2807_v23, 3  ;;  %9948 = vst [vmem:[#allocation51_spill] sm:$0xff] %v7036_v20  ;;  %v2581_v23 = vsel %vm1236_vm8, %v2578_v19, %v2580_v39  ;;  %v7042_v37 = vpop.f32.mrb[35].mxu0  ;;  %v9950_v20 = vrot.slane %v6970_v40, 2 }
 0x138   : > { %v3277_v47 = vmul.f32 %v6549_v7, %v3255_v22  ;;  %v3395_v49 = vld [vmem:[#allocation2 + $0x88] sm:$0x7]  ;;  %v3001_v1 = vrot.slane %v2948_v11, 4  ;;  %v2721_v22 = vsel %vm1393_vm9, %v2718_v57, %v2720_v36  ;;  %v2628_v11 = vadd.f32 %v2581_v23, %v6948_v17  ;;  %v2453_v36 = vld [vmem:[#allocation2 + $0x98] sm:$0xff] }
 0x139   : > { %v3535_v43 = vld [vmem:[#allocation2 + $0x88] sm:$0xf]  ;;  %v7024_v53 = vmul.f32 %v6555_v10, %v3395_v49  ;;  %v3188_v24 = vrot.slane %v3137_v51, 1  ;;  %v2862_v49 = vsel %vm2847_vm11, %v2859_v0, %v2861_v48  ;;  %v2908_v48 = vadd.f32 %v2860_v44, %v2767_v13  ;;  %v3536_v57 = vld [vmem:[#allocation2 + $0x98] sm:$0xf0] }
 0x13a   : > { %v3328_v25 = vrot.slane %v3277_v47, 2  ;;  %v7034_v3 = vmul.f32 %v6570_v15, %v3535_v43  ;;  %v3002_v47 = vsel %vm399_vm0, %v2999_v21, %v3001_v1  ;;  %v9949_v43 = vrot.slane %v6967_v16, 1  ;;  %v6277_v21 = vld [vmem:[%s9783_s5 + $0x58] sm:$0xff]  }
 0x13b   : > { %9945 = vst [vmem:[#allocation48_spill] sm:$0xff] %v7024_v53  ;;  %v741_v17 = vsel %vm6894_vm3, %v621_v63, 0.0  ;;  %v2768_v39 = vadd.f32 %v2721_v22, %v2628_v11  ;;  %v2505_v1 = vld [vmem:[#allocation2 + $0x98] sm:$0xfe]  ;;  %v7071_v44 = vmul.f32 %v6521_v59, %v2453_v36  ;;  %v3048_v22 = vadd.f32 %v6992_v8, %v2908_v48  ;;  %6155 = vmatprep.subr.bf16.mxu1 %v6277_v21 }
 0x13c   : > { %9947 = vst [vmem:[#allocation50_spill] sm:$0xff] %v7034_v3  ;;  %v3189_v51 = vsel %vm1236_vm8, %v9949_v43, %v3188_v24  ;;  %v7052_v19 = vsel %vm1393_vm9, %v9950_v20, %v3328_v25  ;;  %v2645_v24 = vld [vmem:[#allocation2 + $0x98] sm:$0xfc]  ;;  %v892_v23 = vrot.slane %v741_v17, 6  ;;  %v7074_v63 = vmul.f32 %v6524_v60, %v2505_v1  ;;  %6156 = vmatpush3.bf16.msra.mxu1 %v6277_v21  ;;  %v7103_v21 = vpop.f32.mrb[36].mxu0 }
 0x13d   : > { %9951 = vst [vmem:[#allocation52_spill] sm:$0xff] %v7052_v19  ;;  %v7054_v0 = vadd.f32 %v3189_v51, %v3099_v42  ;;  %v7068_v42 = vadd.f32 %v6875_v9, %v6510_v54  ;;  %v7077_v13 = vmul.f32 %v6527_v61, %v2645_v24  ;;  %v2785_v25 = vld [vmem:[#allocation2 + $0x98] sm:$0xf8]  ;;  %v2909_v32 = vadd.f32 %v2862_v49, %v2768_v39 }
 0x13e   : > { %v2926_v20 = vld [vmem:[#allocation2 + $0x98] sm:$0xf0]  ;;  %v7081_v43 = vmul.f32 %v6530_v62, %v2785_v25  ;;  %v3084_v51 = vmul.f32 %v6543_v5, %v2453_v36  ;;  %1038 = vst [vmem:[#allocation2 + $0xb0] sm:$0x3] %v892_v23  ;;  %v7119_v3 = vmul.f32 %v6599_v29, %v2453_v36  ;;  %v9968_v36 = vmax.f32 %v6822_v56, 0.0 }
 0x13f   : > { %9952 = vst [vmem:[#allocation53_spill] sm:$0xff] %v7054_v0  ;;  %v3116_v11 = vld [vmem:[#allocation2 + $0x98] sm:$0xfe]  ;;  %v7084_v9 = vmul.f32 %v6539_v2, %v2926_v20  ;;  %v7095_v20 = vadd.f32 %v3002_v47, %v2909_v32  ;;  %v893_v47 = vsel %vm871_vm4, %v6933_v45, %v892_v23  ;;  %v9966_v45 = vmax.f32 %v6819_v34, 0.0 }
 0x140   : > { %v3256_v17 = vld [vmem:[#allocation2 + $0x98] sm:$0xfc]  ;;  %v7090_v48 = vmul.f32 %v6546_v6, %v3116_v11  ;;  %v7099_v53 = vadd.f32 %v3084_v51, %v3048_v22  ;;  %v6278_v11 = vld [vmem:[%s9783_s5 + $0x60] sm:$0xff]   ;;  %v7114_v22 = vmul.f32 %v6570_v15, %v3536_v57  ;;  %v7116_v51 = vpop.f32.mrb[37].mxu0  ;;  %9959 = vst [vmem:[#allocation60_spill] sm:$0xff] %v7119_v3  ;;  %1036 = vst [vmem:[#allocation2 + $0xa0] sm:$0xff] %v893_v47 }
 0x141   : > { %v3396_v1 = vld [vmem:[#allocation2 + $0x98] sm:$0xf8]  ;;  %v7093_v49 = vmul.f32 %v6549_v7, %v3256_v17  ;;  %9958 = vst [vmem:[#allocation59_spill] sm:$0xff] %v7116_v51  ;;  %6157 = vmatprep.subr.bf16.mxu1 %v6278_v11  ;;  %v623_v23 = vmin.f32 %v9966_v45, 6.0  ;;  %v577_v47 = vmax.f32 %v6825_v38, 0.0  ;;  %v580_v45 = vmax.f32 %v7006_v27, 0.0 }
 0x142   : > { %9953 = vst [vmem:[#allocation54_spill] sm:$0xff] %v7090_v48  ;;  %v3726_v39 = vld [vmem:[#allocation2 + $0x98] sm:$0xfe]  ;;  %9955 = vst [vmem:[#allocation56_spill] sm:$0xff] %v7099_v53  ;;  %v7111_v32 = vmul.f32 %v6555_v10, %v3396_v1  ;;  %v7137_v1 = vpop.f32.mrb[38].mxu0  ;;  %6158 = vmatpush3.bf16.msra.mxu1 %v6278_v11  ;;  %v579_v11 = vmax.f32 %v7002_v30, 0.0 }
 0x143   : > { %9954 = vst [vmem:[#allocation55_spill] sm:$0xff] %v7093_v49  ;;  %v3866_v25 = vld [vmem:[#allocation2 + $0x98] sm:$0xfc]  ;;  %9957 = vst [vmem:[#allocation58_spill] sm:$0xff] %v7114_v22  ;;  %v7122_v28 = vmul.f32 %v6579_v18, %v3726_v39  ;;  %v7145_v24 = vpop.f32.mrb[39].mxu0  ;;  %6159 = vmatprep.subr.bf16.mxu1 %v6279_v52  ;;  %v9978_v58 = vrot.slane %v7077_v13, 2 }
 0x144   : > { %9956 = vst [vmem:[#allocation57_spill] sm:$0xff] %v7111_v32  ;;  %v7125_v8 = vmul.f32 %v6603_v33, %v3866_v25  ;;  %9964 = vst [vmem:[#allocation63_spill] sm:$0xff] %v7137_v1  ;;  %v9965_v25 = vmax.f32 %v6816_v26, 0.0  ;;  %v624_v32 = vmin.f32 %v9968_v36, 6.0  ;;  %v578_v26 = vmax.f32 %v6998_v41, 0.0 }
 0x145   : > { %9960 = vst [vmem:[#allocation61_spill] sm:$0xff] %v7122_v28  ;;  %9967 = vst [vmem:[#allocation64_spill] sm:$0xff] %v7145_v24  ;;  %v625_v36 = vmin.f32 %v577_v47, 6.0  ;;  %v7167_v46 = vmin.f32 %v579_v11, 6.0  ;;  %v6280_v11 = vld [vmem:[%s9783_s5 + $0x70] sm:$0xff]   ;;  %v9979_v19 = vrot.slane %v7081_v43, 3 }
 0x146   : > { %9961 = vst [vmem:[#allocation62_spill] sm:$0xff] %v7125_v8  ;;  %v622_v17 = vmin.f32 %v9965_v25, 6.0  ;;  %v743_v25 = vsel %vm7133_vm12, %v623_v23, 0.0  ;;  %v744_v56 = vsel %vm7133_vm12, %v624_v32, 0.0  ;;  %v7165_v41 = vmin.f32 %v578_v26, 6.0  ;;  %v7171_v23 = vpop.f32.mrb[40].mxu0  ;;  %6160 = vmatpush3.bf16.msra.mxu1 %v6279_v52 }
 0x147   : > { %v896_v49 = vrot.slane %v743_v25, 6  ;;  %v7163_v38 = vrot.slane %v744_v56, 6  ;;  %9969 = vst [vmem:[#allocation65_spill] sm:$0xff] %v7171_v23  ;;  %v745_v27 = vsel %vm7133_vm12, %v625_v36, 0.0  ;;  %v7179_v26 = vpop.f32.mrb[41].mxu0  ;;  %6161 = vmatprep.subr.bf16.mxu1 %v6280_v11  ;;  %v10034_v28 = vld [vmem:[#allocation5_spill] sm:$0xff] }
 0x148   : > { %v742_v34 = vsel %vm6894_vm3, %v622_v17, 0.0  ;;  %v7169_v17 = vmin.f32 %v580_v45, 6.0  ;;  %9970 = vst [vmem:[#allocation66_spill] sm:$0xff] %v7179_v26  ;;  %v7194_v25 = vpop.f32.mrb[42].mxu0 }
 0x149   : > { %v894_v39 = vrot.slane %v742_v34, 6  ;;  %1040 = vst [vmem:[#allocation2 + $0xc0] sm:$0xfc] %v896_v49  ;;  %1041 = vst [vmem:[#allocation2 + $0xc8] sm:$0xfc] %v7163_v38 }
 0x14a   : > { %9971 = vst [vmem:[#allocation67_spill] sm:$0xff] %v7194_v25  ;;  %6162 = vmatpush3.bf16.msra.mxu1 %v6280_v11  ;;  %v9982_v25 = vld [vmem:[#allocation41_spill] sm:$0xff] }
 0x14b   : > { %v895_v30 = vsel %vm871_vm4, %v6988_v55, %v894_v39  ;;  %1039 = vst [vmem:[#allocation2 + $0xb8] sm:$0x3] %v894_v39 }
 0x14c   : > { %1037 = vst [vmem:[#allocation2 + $0xa8] sm:$0xff] %v895_v30  ;;  %v7182_v34 = vmul.f32 %v6521_v59, %v895_v30  ;;  %v7185_v52 = vmul.f32 %v6524_v60, %v895_v30  ;;  %v7188_v55 = vmul.f32 %v6527_v61, %v895_v30  ;;  %v7191_v39 = vmul.f32 %v6530_v62, %v895_v30 }
 0x14d   : > { %v7200_v45 = vmul.f32 %v6539_v2, %v895_v30  ;;  %v3085_v56 = vmul.f32 %v6543_v5, %v895_v30  ;;  %v7204_v36 = vmul.f32 %v6546_v6, %v895_v30  ;;  %v7207_v47 = vmul.f32 %v6549_v7, %v895_v30 }
 0x14e   : > { %v2583_v32 = vrot.slane %v7185_v52, 1  ;;  %v2723_v22 = vrot.slane %v7188_v55, 2  ;;  %v2864_v53 = vrot.slane %v7191_v39, 3  ;;  %v7213_v48 = vmul.f32 %v6555_v10, %v895_v30 }
 0x14f   : > { %9972 = vst [vmem:[#allocation68_spill] sm:$0xff] %v7204_v36  ;;  %9973 = vst [vmem:[#allocation69_spill] sm:$0xff] %v7207_v47  ;;  %v3004_v3 = vrot.slane %v7200_v45, 4  ;;  %v3101_v52 = vadd.f32 %v3085_v56, %v7095_v20  ;;  %v9977_v30 = vrot.slane %v7074_v63, 1  ;;  %v898_v45 = vrot.slane %v745_v27, 6 }
 0x150   : > { %9974 = vst [vmem:[#allocation70_spill] sm:$0xff] %v7213_v48  ;;  %v2724_v8 = vsel %vm1393_vm9, %v9978_v58, %v2723_v22  ;;  %v7236_v0 = vsel %vm2847_vm11, %v9979_v19, %v2864_v53  ;;  %v9980_v56 = vrot.slane %v7084_v9, 4  ;;  %v7257_v9 = vadd.f32 %v6898_v4, %v6510_v54 }
 0x151   : > { %v2584_v48 = vsel %vm1236_vm8, %v9977_v30, %v2583_v32  ;;  %v899_v27 = vsel %vm871_vm4, %v896_v49, %v898_v45  ;;  %1044 = vst [vmem:[#allocation2 + $0xe0] sm:$0x3] %v898_v45 }
 0x152   : > { %v2629_v20 = vadd.f32 %v2584_v48, %v7071_v44  ;;  %v7242_v11 = vsel %vm399_vm0, %v9980_v56, %v3004_v3  ;;  %v2506_v43 = vld [vmem:[#allocation2 + $0xb8] sm:$0x1]  ;;  %v7253_v44 = vadd.f32 %v6883_v35, %v6501_v50  ;;  %v9981_v48 = vld [vmem:[#allocation40_spill] sm:$0xff]  ;;  %1042 = vst [vmem:[#allocation2 + $0xd0] sm:$0xff] %v899_v27 }
 0x153   : > { %v2646_v30 = vld [vmem:[#allocation2 + $0xb8] sm:$0x3]  ;;  %v7261_v58 = vadd.f32 %v9981_v48, %v6501_v50  ;;  %v2530_v56 = vmul.f32 %v6524_v60, %v2506_v43  ;;  %v7271_v43 = vadd.f32 %v9982_v25, %v6510_v54 }
 0x154   : > { %v2786_v19 = vld [vmem:[#allocation2 + $0xb8] sm:$0x7]  ;;  %v2670_v13 = vmul.f32 %v6527_v61, %v2646_v30  ;;  %v2769_v55 = vadd.f32 %v2724_v8, %v2629_v20 }
 0x155   : > { %v2810_v63 = vmul.f32 %v6530_v62, %v2786_v19  ;;  %v2927_v49 = vld [vmem:[#allocation2 + $0xb8] sm:$0xf]  ;;  %v2585_v30 = vrot.slane %v2530_v56, 1  ;;  %v2507_v56 = vld [vmem:[#allocation2 + $0xc8] sm:$0xfe] }
 0x156   : > { %v3117_v45 = vld [vmem:[#allocation2 + $0xb8] sm:$0x1]  ;;  %v2951_v35 = vmul.f32 %v6539_v2, %v2927_v49  ;;  %v2725_v26 = vrot.slane %v2670_v13, 2  ;;  %v3728_v13 = vld [vmem:[#allocation2 + $0xc8] sm:$0xfe] }
 0x157   : > { %v3257_v39 = vld [vmem:[#allocation2 + $0xb8] sm:$0x3]  ;;  %v3140_v4 = vmul.f32 %v6546_v6, %v3117_v45  ;;  %v2866_v19 = vrot.slane %v2810_v63, 3  ;;  %v2586_v24 = vsel %vm1236_vm8, %v2583_v32, %v2585_v30  ;;  %v2455_v63 = vld [vmem:[#allocation2 + $0xc8] sm:$0xff] }
 0x158   : > { %v3280_v40 = vmul.f32 %v6549_v7, %v3257_v39  ;;  %v3397_v16 = vld [vmem:[#allocation2 + $0xb8] sm:$0x7]  ;;  %v3006_v20 = vrot.slane %v2951_v35, 4  ;;  %v2726_v1 = vsel %vm1393_vm9, %v2723_v22, %v2725_v26  ;;  %v2630_v51 = vadd.f32 %v2586_v24, %v7182_v34  ;;  %v2787_v22 = vld [vmem:[#allocation2 + $0xc8] sm:$0xf8] }
 0x159   : > { %v3537_v48 = vld [vmem:[#allocation2 + $0xb8] sm:$0xf]  ;;  %v7274_v23 = vmul.f32 %v6555_v10, %v3397_v16  ;;  %v3193_v27 = vrot.slane %v3140_v4, 1  ;;  %v2867_v25 = vsel %vm2847_vm11, %v2864_v53, %v2866_v19  ;;  %v2647_v16 = vld [vmem:[#allocation2 + $0xc8] sm:$0xfc]  ;;  %v7303_v34 = vmul.f32 %v6521_v59, %v2455_v63 }
 0x15a   : > { %v3727_v8 = vld [vmem:[#allocation2 + $0xb8] sm:$0x1]  ;;  %v3333_v49 = vrot.slane %v3280_v40, 2  ;;  %v7277_v45 = vmul.f32 %v6570_v15, %v3537_v48  ;;  %v3007_v35 = vsel %vm399_vm0, %v3004_v3, %v3006_v20  ;;  %v9985_v40 = vrot.slane %v7204_v36, 1  ;;  %v2928_v53 = vld [vmem:[#allocation2 + $0xc8] sm:$0xf0] }
 0x15b   : > { %9983 = vst [vmem:[#allocation40_spill] sm:$0xff] %v7274_v23  ;;  %v3867_v39 = vld [vmem:[#allocation2 + $0xb8] sm:$0x3]  ;;  %v9986_v48 = vrot.slane %v7207_v47, 2  ;;  %v7297_v19 = vmul.f32 %v6579_v18, %v3727_v8  ;;  %v2770_v24 = vadd.f32 %v2726_v1, %v2630_v51  ;;  %v7306_v20 = vmul.f32 %v6524_v60, %v2507_v56  ;;  %v3398_v1 = vld [vmem:[#allocation2 + $0xc8] sm:$0xf8] }
 0x15c   : > { %9984 = vst [vmem:[#allocation41_spill] sm:$0xff] %v7277_v45  ;;  %v3194_v4 = vsel %vm1236_vm8, %v9985_v40, %v3193_v27  ;;  %v7300_v3 = vmul.f32 %v6603_v33, %v3867_v39  ;;  %v7309_v27 = vmul.f32 %v6527_v61, %v2647_v16  ;;  %v7313_v8 = vmul.f32 %v6530_v62, %v2787_v22 }
 0x15d   : > { %v7291_v32 = vsel %vm1393_vm9, %v9986_v48, %v3333_v49  ;;  %v7293_v26 = vadd.f32 %v3194_v4, %v3101_v52  ;;  %9989 = vst [vmem:[#allocation73_spill] sm:$0xff] %v7297_v19  ;;  %v3118_v52 = vld [vmem:[#allocation2 + $0xc8] sm:$0xfe]  ;;  %v2910_v39 = vadd.f32 %v7236_v0, %v2769_v55  ;;  %v7317_v51 = vmul.f32 %v6539_v2, %v2928_v53 }
 0x15e   : > { %9987 = vst [vmem:[#allocation71_spill] sm:$0xff] %v7291_v32  ;;  %9990 = vst [vmem:[#allocation74_spill] sm:$0xff] %v7300_v3  ;;  %v3258_v49 = vld [vmem:[#allocation2 + $0xc8] sm:$0xfc]  ;;  %v2911_v48 = vadd.f32 %v2867_v25, %v2770_v24  ;;  %v2587_v56 = vrot.slane %v7306_v20, 1  ;;  %v2727_v16 = vrot.slane %v7309_v27, 2  ;;  %v3086_v30 = vmul.f32 %v6543_v5, %v2455_v63 }
 0x15f   : > { %9988 = vst [vmem:[#allocation72_spill] sm:$0xff] %v7293_v26  ;;  %v3538_v4 = vld [vmem:[#allocation2 + $0xc8] sm:$0xf0]  ;;  %v2868_v40 = vrot.slane %v7313_v8, 3  ;;  %v3008_v22 = vrot.slane %v7317_v51, 4  ;;  %v3050_v45 = vadd.f32 %v7242_v11, %v2910_v39  ;;  %v7326_v0 = vmul.f32 %v6546_v6, %v3118_v52 }
 0x160   : > { %v3868_v55 = vld [vmem:[#allocation2 + $0xc8] sm:$0xfc]  ;;  %v3051_v53 = vadd.f32 %v3007_v35, %v2911_v48  ;;  %v7329_v25 = vmul.f32 %v6549_v7, %v3258_v49  ;;  %v7332_v24 = vmul.f32 %v6555_v10, %v3398_v1  ;;  %v7335_v20 = vmul.f32 %v6570_v15, %v3538_v4 }
 0x161   : > { %9991 = vst [vmem:[#allocation75_spill] sm:$0xff] %v7326_v0  ;;  %v7337_v27 = vadd.f32 %v3086_v30, %v3050_v45  ;;  %v7341_v11 = vmul.f32 %v6599_v29, %v2455_v63  ;;  %v7344_v52 = vmul.f32 %v6579_v18, %v3728_v13  ;;  %v7350_v51 = vmul.f32 %v6603_v33, %v3868_v55 }
 0x162   : > { %9992 = vst [vmem:[#allocation76_spill] sm:$0xff] %v7329_v25  ;;  %9993 = vst [vmem:[#allocation77_spill] sm:$0xff] %v7332_v24  ;;  %v9999_v30 = vsel %vm7133_vm12, %v7165_v41, 0.0  ;;  %v10000_v13 = vsel %vm7219_vm13, %v7167_v46, 0.0  ;;  %v748_v4 = vsel %vm7219_vm13, %v7169_v17, 0.0  ;;  %v10001_v55 = vmax.f32 %v7010_v31, 0.0 }
 0x163   : > { %9994 = vst [vmem:[#allocation78_spill] sm:$0xff] %v7335_v20  ;;  %9995 = vst [vmem:[#allocation79_spill] sm:$0xff] %v7337_v27  ;;  %v900_v63 = vrot.slane %v9999_v30, 6  ;;  %v902_v1 = vrot.slane %v10000_v13, 6  ;;  %v7364_v48 = vrot.slane %v748_v4, 6  ;;  %v10002_v49 = vmax.f32 %v7021_v12, 0.0 }
 0x164   : > { %9996 = vst [vmem:[#allocation80_spill] sm:$0xff] %v7341_v11  ;;  %9997 = vst [vmem:[#allocation81_spill] sm:$0xff] %v7344_v52  ;;  %v629_v39 = vmin.f32 %v10001_v55, 6.0  ;;  %v10007_v24 = vld [vmem:[#allocation43_spill] sm:$0xff] }
 0x165   : > { %9998 = vst [vmem:[#allocation82_spill] sm:$0xff] %v7350_v51  ;;  %v7370_v57 = vmin.f32 %v10002_v49, 6.0  ;;  %v901_v30 = vsel %vm871_vm4, %v7163_v38, %v900_v63  ;;  %1045 = vst [vmem:[#allocation2 + $0xe8] sm:$0x3] %v900_v63 }
 0x166   : > { %1046 = vst [vmem:[#allocation2 + $0xf0] sm:$0xfc] %v902_v1  ;;  %1043 = vst [vmem:[#allocation2 + $0xd8] sm:$0xff] %v901_v30  ;;  %v7379_v31 = vmul.f32 %v6521_v59, %v901_v30  ;;  %v2532_v12 = vmul.f32 %v6524_v60, %v901_v30  ;;  %v2672_v49 = vmul.f32 %v6527_v61, %v901_v30 }
 0x167   : > { %v2812_v4 = vmul.f32 %v6530_v62, %v901_v30  ;;  %1047 = vst [vmem:[#allocation2 + $0xf8] sm:$0xfc] %v7364_v48  ;;  %v7386_v38 = vmul.f32 %v6539_v2, %v901_v30  ;;  %v3087_v63 = vmul.f32 %v6543_v5, %v901_v30  ;;  %v7390_v55 = vmul.f32 %v6546_v6, %v901_v30 }
 0x168   : > { %v7393_v35 = vmul.f32 %v6549_v7, %v901_v30  ;;  %v2588_v8 = vrot.slane %v2532_v12, 1  ;;  %v2728_v45 = vrot.slane %v2672_v49, 2  ;;  %v7396_v17 = vmul.f32 %v6555_v10, %v901_v30 }
 0x169   : > { %10003 = vst [vmem:[#allocation83_spill] sm:$0xff] %v7390_v55  ;;  %v2869_v13 = vrot.slane %v2812_v4, 3  ;;  %v3009_v46 = vrot.slane %v7386_v38, 4  ;;  %v3103_v41 = vadd.f32 %v3087_v63, %v3051_v53  ;;  %v749_v12 = vsel %vm7219_vm13, %v629_v39, 0.0 }
 0x16a   : > { %10004 = vst [vmem:[#allocation84_spill] sm:$0xff] %v7393_v35  ;;  %10005 = vst [vmem:[#allocation85_spill] sm:$0xff] %v7396_v17  ;;  %v2589_v25 = vsel %vm1236_vm8, %v2587_v56, %v2588_v8  ;;  %v2729_v27 = vsel %vm1393_vm9, %v2727_v16, %v2728_v45  ;;  %v904_v53 = vrot.slane %v749_v12, 6  ;;  %v10006_v16 = vld [vmem:[#allocation42_spill] sm:$0xff]  ;;  %v7421_v39 = vadd.f32 %v10007_v24, %v6510_v54 }
 0x16b   : > { %v7404_v0 = vsel %vm2847_vm11, %v2868_v40, %v2869_v13  ;;  %v2631_v30 = vadd.f32 %v2589_v25, %v7303_v34  ;;  %v7410_v49 = vsel %vm399_vm0, %v3008_v22, %v3009_v46  ;;  %v7417_v40 = vadd.f32 %v10006_v16, %v6501_v50  ;;  %v10008_v34 = vld [vmem:[#allocation47_spill] sm:$0xff]  ;;  %v10009_v25 = vld [vmem:[#allocation49_spill] sm:$0xff] }
 0x16c   : > { %v2508_v38 = vld [vmem:[#allocation2 + $0xe8] sm:$0x1]  ;;  %v7425_v22 = vadd.f32 %v10008_v34, %v6501_v50  ;;  %v7429_v12 = vadd.f32 %v10009_v25, %v6510_v54  ;;  %1050 = vst [vmem:[#allocation2 + $0x110] sm:$0x3] %v904_v53  ;;  %v905_v26 = vsel %vm871_vm4, %v902_v1, %v904_v53 }
 0x16d   : > { %v2648_v56 = vld [vmem:[#allocation2 + $0xe8] sm:$0x3]  ;;  %v2533_v4 = vmul.f32 %v6524_v60, %v2508_v38  ;;  %v2771_v51 = vadd.f32 %v2729_v27, %v2631_v30  ;;  %1048 = vst [vmem:[#allocation2 + $0x100] sm:$0xff] %v905_v26 }
 0x16e   : > { %v2788_v63 = vld [vmem:[#allocation2 + $0xe8] sm:$0x7]  ;;  %v2673_v20 = vmul.f32 %v6527_v61, %v2648_v56  ;;  %v2457_v26 = vld [vmem:[#allocation2 + $0xf8] sm:$0xff] }
 0x16f   : > { %v2813_v17 = vmul.f32 %v6530_v62, %v2788_v63  ;;  %v2929_v16 = vld [vmem:[#allocation2 + $0xe8] sm:$0xf]  ;;  %v2590_v38 = vrot.slane %v2533_v4, 1  ;;  %v2509_v53 = vld [vmem:[#allocation2 + $0xf8] sm:$0xfe] }
 0x170   : > { %v3119_v52 = vld [vmem:[#allocation2 + $0xe8] sm:$0x1]  ;;  %v2954_v24 = vmul.f32 %v6539_v2, %v2929_v16  ;;  %v2730_v47 = vrot.slane %v2673_v20, 2  ;;  %v2649_v4 = vld [vmem:[#allocation2 + $0xf8] sm:$0xfc] }
 0x171   : > { %v3259_v11 = vld [vmem:[#allocation2 + $0xe8] sm:$0x3]  ;;  %v3143_v34 = vmul.f32 %v6546_v6, %v3119_v52  ;;  %v2871_v56 = vrot.slane %v2813_v17, 3  ;;  %v2591_v1 = vsel %vm1236_vm8, %v2588_v8, %v2590_v38  ;;  %v3088_v38 = vmul.f32 %v6543_v5, %v2457_v26  ;;  %v3730_v17 = vld [vmem:[#allocation2 + $0xf8] sm:$0xfe] }
 0x172   : > { %v3283_v23 = vmul.f32 %v6549_v7, %v3259_v11  ;;  %v3399_v32 = vld [vmem:[#allocation2 + $0xe8] sm:$0x7]  ;;  %v3011_v30 = vrot.slane %v2954_v24, 4  ;;  %v2731_v20 = vsel %vm1393_vm9, %v2728_v45, %v2730_v47  ;;  %v2632_v3 = vadd.f32 %v2591_v1, %v7379_v31  ;;  %v2789_v47 = vld [vmem:[#allocation2 + $0xf8] sm:$0xf8] }
 0x173   : > { %v3539_v25 = vld [vmem:[#allocation2 + $0xe8] sm:$0xf]  ;;  %v7439_v63 = vmul.f32 %v6555_v10, %v3399_v32  ;;  %v3198_v52 = vrot.slane %v3143_v34, 1  ;;  %v2872_v32 = vsel %vm2847_vm11, %v2869_v13, %v2871_v56  ;;  %v2930_v45 = vld [vmem:[#allocation2 + $0xf8] sm:$0xf0] }
 0x174   : > { %v3729_v36 = vld [vmem:[#allocation2 + $0xe8] sm:$0x1]  ;;  %v3338_v16 = vrot.slane %v3283_v23, 2  ;;  %v7444_v11 = vmul.f32 %v6570_v15, %v3539_v25  ;;  %v3012_v24 = vsel %vm399_vm0, %v3009_v46, %v3011_v30  ;;  %v10013_v23 = vrot.slane %v7390_v55, 1  ;;  %v3260_v1 = vld [vmem:[#allocation2 + $0xf8] sm:$0xfc] }
 0x175   : > { %10010 = vst [vmem:[#allocation42_spill] sm:$0xff] %v7439_v63  ;;  %v10011_v27 = vld [vmem:[#allocation20_spill] sm:$0xff]  ;;  %v10014_v25 = vrot.slane %v7393_v35, 2  ;;  %v7464_v56 = vmul.f32 %v6579_v18, %v3729_v36  ;;  %v2772_v31 = vadd.f32 %v2731_v20, %v2632_v3  ;;  %v7470_v30 = vmul.f32 %v6521_v59, %v2457_v26  ;;  %v3400_v20 = vld [vmem:[#allocation2 + $0xf8] sm:$0xf8] }
 0x176   : > { %vm673_vm14 = vcmp.ge.s32.totalorder %v10011_v27, 2  ;;  %vm685_vm15 = vcmp.lt.s32.totalorder %v10011_v27, 18  ;;  %10012 = vst [vmem:[#allocation43_spill] sm:$0xff] %v7444_v11  ;;  %v3869_v19 = vld [vmem:[#allocation2 + $0xe8] sm:$0x3]  ;;  %v3199_v34 = vsel %vm1236_vm8, %v10013_v23, %v3198_v52  ;;  %v7473_v52 = vmul.f32 %v6524_v60, %v2509_v53 }
 0x177   : > { %v7458_v8 = vsel %vm1393_vm9, %v10014_v25, %v3338_v16  ;;  %v7460_v13 = vadd.f32 %v3199_v34, %v3103_v41  ;;  %10017 = vst [vmem:[#allocation20_spill] sm:$0xff] %v7464_v56  ;;  %v7467_v46 = vmul.f32 %v6603_v33, %v3869_v19  ;;  %v7476_v16 = vmul.f32 %v6527_v61, %v2649_v4  ;;  %v3120_v41 = vld [vmem:[#allocation2 + $0xf8] sm:$0xfe]  ;;  %vm7523_vm2 = vmand %vm673_vm14, %vm685_vm15 }
 0x178   : > { %10015 = vst [vmem:[#allocation47_spill] sm:$0xff] %v7458_v8  ;;  %v7480_v36 = vmul.f32 %v6530_v62, %v2789_v47  ;;  %v2912_v19 = vadd.f32 %v7404_v0, %v2771_v51  ;;  %v7484_v3 = vmul.f32 %v6539_v2, %v2930_v45  ;;  %v3540_v34 = vld [vmem:[#allocation2 + $0xf8] sm:$0xf0]  ;;  %v2913_v25 = vadd.f32 %v2872_v32, %v2772_v31 }
 0x179   : > { %10016 = vst [vmem:[#allocation49_spill] sm:$0xff] %v7460_v13  ;;  %10018 = vst [vmem:[#allocation86_spill] sm:$0xff] %v7467_v46  ;;  %v2592_v53 = vrot.slane %v7473_v52, 1  ;;  %v2732_v4 = vrot.slane %v7476_v16, 2  ;;  %v7493_v0 = vmul.f32 %v6546_v6, %v3120_v41  ;;  %v3870_v51 = vld [vmem:[#allocation2 + $0xf8] sm:$0xfc]  ;;  %v7496_v32 = vmul.f32 %v6549_v7, %v3260_v1 }
 0x17a   : > { %v2873_v23 = vrot.slane %v7480_v36, 3  ;;  %v3013_v47 = vrot.slane %v7484_v3, 4  ;;  %v3052_v11 = vadd.f32 %v7410_v49, %v2912_v19  ;;  %v3053_v45 = vadd.f32 %v3012_v24, %v2913_v25 }
 0x17b   : > { %10019 = vst [vmem:[#allocation87_spill] sm:$0xff] %v7493_v0  ;;  %10020 = vst [vmem:[#allocation88_spill] sm:$0xff] %v7496_v32  ;;  %v7499_v31 = vmul.f32 %v6555_v10, %v3400_v20  ;;  %v7502_v52 = vmul.f32 %v6570_v15, %v3540_v34  ;;  %v7508_v49 = vmul.f32 %v6599_v29, %v2457_v26  ;;  %v10029_v26 = vsel %vm7219_vm13, %v7370_v57, 0.0 }
 0x17c   : > { %v7504_v16 = vadd.f32 %v3088_v38, %v3052_v11  ;;  %v7511_v41 = vmul.f32 %v6579_v18, %v3730_v17  ;;  %v7517_v3 = vmul.f32 %v6603_v33, %v3870_v51  ;;  %v906_v38 = vrot.slane %v10029_v26, 6 }
 0x17d   : > { %10021 = vst [vmem:[#allocation89_spill] sm:$0xff] %v7499_v31  ;;  %10022 = vst [vmem:[#allocation90_spill] sm:$0xff] %v7502_v52  ;;  %v10030_v20 = vmax.f32 %v7064_v14, 0.0  ;;  %v10031_v25 = vmax.f32 %v7068_v42, 0.0  ;;  %v10032_v19 = vmax.f32 %v7253_v44, 0.0  ;;  %v10033_v1 = vmax.f32 %v7257_v9, 0.0 }
 0x17e   : > { %10023 = vst [vmem:[#allocation91_spill] sm:$0xff] %v7504_v16  ;;  %10024 = vst [vmem:[#allocation92_spill] sm:$0xff] %v7508_v49  ;;  %v7546_v17 = vadd.s32 7, %v10034_v28  ;;  %v907_v14 = vsel %vm871_vm4, %v7364_v48, %v906_v38 }
 0x17f   : > { %10025 = vst [vmem:[#allocation93_spill] sm:$0xff] %v7511_v41  ;;  %10026 = vst [vmem:[#allocation94_spill] sm:$0xff] %v7517_v3  ;;  %v631_v34 = vmin.f32 %v10030_v20, 6.0  ;;  %v632_v51 = vmin.f32 %v10031_v25, 6.0  ;;  %v7538_v27 = vmin.f32 %v10032_v19, 6.0  ;;  %v7542_v24 = vmin.f32 %v10033_v1, 6.0 }
 0x180   : > { %1051 = vst [vmem:[#allocation2 + $0x118] sm:$0x3] %v906_v38  ;;  %1049 = vst [vmem:[#allocation2 + $0x108] sm:$0xff] %v907_v14  ;;  %v2478_v9 = vmul.f32 %v6521_v59, %v907_v14  ;;  %v2535_v1 = vmul.f32 %v6524_v60, %v907_v14  ;;  %v2675_v19 = vmul.f32 %v6527_v61, %v907_v14  ;;  %vm674_vm3 = vcmp.ge.s32.totalorder %v7546_v17, 2 }
 0x181   : > { %v751_v42 = vsel %vm7523_vm2, %v631_v34, 0.0  ;;  %v752_v44 = vsel %vm7523_vm2, %v632_v51, 0.0  ;;  %v2815_v26 = vmul.f32 %v6530_v62, %v907_v14  ;;  %v2956_v48 = vmul.f32 %v6539_v2, %v907_v14 }
 0x182   : > { %v3089_v38 = vmul.f32 %v6543_v5, %v907_v14  ;;  %v7562_v20 = vmul.f32 %v6546_v6, %v907_v14  ;;  %v7565_v34 = vmul.f32 %v6549_v7, %v907_v14  ;;  %v2593_v25 = vrot.slane %v2535_v1, 1 }
 0x183   : > { %v2733_v51 = vrot.slane %v2675_v19, 2  ;;  %v2874_v57 = vrot.slane %v2815_v26, 3  ;;  %v7568_v36 = vmul.f32 %v6555_v10, %v907_v14  ;;  %v3014_v52 = vrot.slane %v2956_v48, 4 }
 0x184   : > { %10035 = vst [vmem:[#allocation5_spill] sm:$0xff] %v7562_v20  ;;  %10036 = vst [vmem:[#allocation95_spill] sm:$0xff] %v7565_v34  ;;  %v3105_v31 = vadd.f32 %v3089_v38, %v3053_v45  ;;  %v7572_v0 = vrot.slane %v751_v42, 6  ;;  %v7574_v49 = vrot.slane %v752_v44, 6  ;;  %v2594_v41 = vsel %vm1236_vm8, %v2592_v53, %v2593_v25  ;;  %v10038_v53 = vld [vmem:[#allocation51_spill] sm:$0xff] }
 0x185   : > { %10037 = vst [vmem:[#allocation96_spill] sm:$0xff] %v7568_v36  ;;  %v2734_v3 = vsel %vm1393_vm9, %v2732_v4, %v2733_v51  ;;  %v2633_v1 = vadd.f32 %v2594_v41, %v7470_v30  ;;  %v7580_v19 = vsel %vm2847_vm11, %v2873_v23, %v2874_v57  ;;  %v7583_v14 = vsel %vm399_vm0, %v3013_v47, %v3014_v52  ;;  %v10039_v47 = vld [vmem:[#allocation59_spill] sm:$0xff] }
 0x186   : > { %1052 = vst [vmem:[#allocation2 + $0x120] sm:$0xfc] %v7572_v0  ;;  %1053 = vst [vmem:[#allocation2 + $0x128] sm:$0xfc] %v7574_v49  ;;  %v7592_v30 = vadd.f32 %v10038_v53, %v6501_v50  ;;  %v7596_v23 = vadd.f32 %v7042_v37, %v6510_v54  ;;  %v7600_v4 = vadd.f32 %v7103_v21, %v6501_v50  ;;  %vm686_vm5 = vcmp.lt.s32.totalorder %v7546_v17, 18 }
 0x187   : > { %v2510_v42 = vld [vmem:[#allocation2 + $0x118] sm:$0x1]  ;;  %v7604_v41 = vadd.f32 %v10039_v47, %v6510_v54  ;;  %v2773_v36 = vadd.f32 %v2734_v3, %v2633_v1  ;;  %v10041_v47 = vld [vmem:[#allocation63_spill] sm:$0xff]  ;;  %vm7715_vm6 = vmand %vm674_vm3, %vm686_vm5 }
 0x188   : > { %v2650_v26 = vld [vmem:[#allocation2 + $0x118] sm:$0x3]  ;;  %v2536_v48 = vmul.f32 %v6524_v60, %v2510_v42  ;;  %v7614_v35 = vadd.f32 %v10041_v47, %v6501_v50 }
 0x189   : > { %v2790_v44 = vld [vmem:[#allocation2 + $0x118] sm:$0x7]  ;;  %10040 = vst [vmem:[#allocation51_spill] sm:$0xff] %v7604_v41  ;;  %v2676_v38 = vmul.f32 %v6527_v61, %v2650_v26 }
 0x18a   : > { %v2816_v45 = vmul.f32 %v6530_v62, %v2790_v44  ;;  %v2931_v53 = vld [vmem:[#allocation2 + $0x118] sm:$0xf]  ;;  %v2595_v42 = vrot.slane %v2536_v48, 1 }
 0x18b   : > { %v3121_v16 = vld [vmem:[#allocation2 + $0x118] sm:$0x1]  ;;  %v2957_v37 = vmul.f32 %v6539_v2, %v2931_v53  ;;  %v2735_v26 = vrot.slane %v2676_v38, 2 }
 0x18c   : > { %v3261_v32 = vld [vmem:[#allocation2 + $0x118] sm:$0x3]  ;;  %v3146_v63 = vmul.f32 %v6546_v6, %v3121_v16  ;;  %v2876_v55 = vrot.slane %v2816_v45, 3  ;;  %v2596_v46 = vsel %vm1236_vm8, %v2593_v25, %v2595_v42  ;;  %v7626_v45 = vpop.f32.mrb[43].mxu0  ;;  %v10046_v25 = vrot.slane %v7565_v34, 2 }
 0x18d   : > { %v3286_v21 = vmul.f32 %v6549_v7, %v3261_v32  ;;  %v3401_v8 = vld [vmem:[#allocation2 + $0x118] sm:$0x7]  ;;  %v3016_v3 = vrot.slane %v2957_v37, 4  ;;  %v2736_v41 = vsel %vm1393_vm9, %v2733_v51, %v2735_v26  ;;  %10044 = vst [vmem:[#allocation97_spill] sm:$0xff] %v7626_v45  ;;  %v2651_v42 = vld [vmem:[#allocation2 + $0x128] sm:$0xfc] }
 0x18e   : > { %v3541_v13 = vld [vmem:[#allocation2 + $0x118] sm:$0xf]  ;;  %v7617_v44 = vmul.f32 %v6555_v10, %v3401_v8  ;;  %v3203_v1 = vrot.slane %v3146_v63, 1  ;;  %v2877_v47 = vsel %vm2847_vm11, %v2874_v57, %v2876_v55  ;;  %v2634_v63 = vadd.f32 %v2596_v46, %v2478_v9  ;;  %v2511_v9 = vld [vmem:[#allocation2 + $0x128] sm:$0xfe] }
 0x18f   : > { %v3731_v56 = vld [vmem:[#allocation2 + $0x118] sm:$0x1]  ;;  %v3343_v53 = vrot.slane %v3286_v21, 2  ;;  %v7620_v16 = vmul.f32 %v6570_v15, %v3541_v13  ;;  %v3017_v38 = vsel %vm399_vm0, %v3014_v52, %v3016_v3  ;;  %v10045_v13 = vrot.slane %v7562_v20, 1  ;;  %v2459_v52 = vld [vmem:[#allocation2 + $0x128] sm:$0xff] }
 0x190   : > { %10042 = vst [vmem:[#allocation59_spill] sm:$0xff] %v7617_v44  ;;  %v3871_v32 = vld [vmem:[#allocation2 + $0x118] sm:$0x3]  ;;  %v7644_v21 = vmul.f32 %v6579_v18, %v3731_v56  ;;  %v2774_v26 = vadd.f32 %v2736_v41, %v2634_v63  ;;  %v7650_v3 = vmul.f32 %v6521_v59, %v2459_v52  ;;  %v2932_v56 = vld [vmem:[#allocation2 + $0x128] sm:$0xf0]  ;;  %v2914_v41 = vadd.f32 %v7580_v19, %v2773_v36 }
 0x191   : > { %10043 = vst [vmem:[#allocation63_spill] sm:$0xff] %v7620_v16  ;;  %v6281_v8 = vld [vmem:[%s9783_s5 + $0x78] sm:$0xff]   ;;  %v3204_v37 = vsel %vm1236_vm8, %v10045_v13, %v3203_v1  ;;  %v7638_v51 = vsel %vm1393_vm9, %v10046_v25, %v3343_v53  ;;  %v7647_v46 = vmul.f32 %v6603_v33, %v3871_v32  ;;  %v7653_v1 = vmul.f32 %v6524_v60, %v2511_v9  ;;  %v2791_v53 = vld [vmem:[#allocation2 + $0x128] sm:$0xf8] }
 0x192   : > { %10047 = vst [vmem:[#allocation98_spill] sm:$0xff] %v7638_v51  ;;  %v7640_v55 = vadd.f32 %v3204_v37, %v3105_v31  ;;  %10049 = vst [vmem:[#allocation100_spill] sm:$0xff] %v7644_v21  ;;  %6163 = vmatprep.subr.bf16.mxu1 %v6281_v8  ;;  %v7656_v31 = vmul.f32 %v6527_v61, %v2651_v42  ;;  %v3122_v13 = vld [vmem:[#allocation2 + $0x128] sm:$0xfe]  ;;  %v7660_v37 = vmul.f32 %v6530_v62, %v2791_v53 }
 0x193   : > { %10050 = vst [vmem:[#allocation101_spill] sm:$0xff] %v7647_v46  ;;  %6164 = vmatpush3.bf16.msra.mxu1 %v6281_v8  ;;  %v7664_v63 = vmul.f32 %v6539_v2, %v2932_v56  ;;  %v3262_v25 = vld [vmem:[#allocation2 + $0x128] sm:$0xfc]  ;;  %v2915_v57 = vadd.f32 %v2877_v47, %v2774_v26  ;;  %v2597_v42 = vrot.slane %v7653_v1, 1  ;;  %v3090_v16 = vmul.f32 %v6543_v5, %v2459_v52 }
 0x194   : > { %10048 = vst [vmem:[#allocation99_spill] sm:$0xff] %v7640_v55  ;;  %v3402_v9 = vld [vmem:[#allocation2 + $0x128] sm:$0xf8]  ;;  %v2737_v48 = vrot.slane %v7656_v31, 2  ;;  %v2878_v32 = vrot.slane %v7660_v37, 3  ;;  %v3054_v36 = vadd.f32 %v7583_v14, %v2914_v41  ;;  %v7673_v19 = vmul.f32 %v6546_v6, %v3122_v13 }
 0x195   : > { %v3542_v8 = vld [vmem:[#allocation2 + $0x128] sm:$0xf0]  ;;  %v3018_v53 = vrot.slane %v7664_v63, 4  ;;  %v3055_v51 = vadd.f32 %v3017_v38, %v2915_v57  ;;  %v7676_v47 = vmul.f32 %v6549_v7, %v3262_v25  ;;  %v7679_v26 = vmul.f32 %v6555_v10, %v3402_v9 }
 0x196   : > { %v3732_v44 = vld [vmem:[#allocation2 + $0x128] sm:$0xfe]  ;;  %10051 = vst [vmem:[#allocation102_spill] sm:$0xff] %v7673_v19  ;;  %v7682_v1 = vmul.f32 %v6570_v15, %v3542_v8  ;;  %v7684_v31 = vadd.f32 %v3090_v16, %v3054_v36  ;;  %v7688_v14 = vmul.f32 %v6599_v29, %v2459_v52  ;;  %v10059_v25 = vsel %vm7523_vm2, %v7538_v27, 0.0 }
 0x197   : > { %v3872_v56 = vld [vmem:[#allocation2 + $0x128] sm:$0xfc]  ;;  %10052 = vst [vmem:[#allocation103_spill] sm:$0xff] %v7676_v47  ;;  %10053 = vst [vmem:[#allocation104_spill] sm:$0xff] %v7679_v26  ;;  %v7691_v13 = vmul.f32 %v6579_v18, %v3732_v44  ;;  %v910_v52 = vrot.slane %v10059_v25, 6  ;;  %v754_v44 = vsel %vm7523_vm2, %v7542_v24, 0.0 }
 0x198   : > { %10054 = vst [vmem:[#allocation105_spill] sm:$0xff] %v7682_v1  ;;  %10055 = vst [vmem:[#allocation106_spill] sm:$0xff] %v7684_v31  ;;  %v7697_v63 = vmul.f32 %v6603_v33, %v3872_v56  ;;  %v10060_v9 = vmax.f32 %v7261_v58, 0.0  ;;  %v912_v36 = vrot.slane %v754_v44, 6  ;;  %v10061_v56 = vmax.f32 %v7271_v43, 0.0 }
 0x199   : > { %10056 = vst [vmem:[#allocation107_spill] sm:$0xff] %v7688_v14  ;;  %10057 = vst [vmem:[#allocation108_spill] sm:$0xff] %v7691_v13  ;;  %v911_v57 = vsel %vm871_vm4, %v7572_v0, %v910_v52  ;;  %v589_v24 = vmax.f32 %v7417_v40, 0.0  ;;  %v7729_v25 = vadd.s32 8, %v10034_v28 }
 0x19a   : > { %10058 = vst [vmem:[#allocation109_spill] sm:$0xff] %v7697_v63  ;;  %v635_v8 = vmin.f32 %v10060_v9, 6.0  ;;  %v636_v41 = vmin.f32 %v10061_v56, 6.0  ;;  %1056 = vst [vmem:[#allocation2 + $0x140] sm:$0x3] %v910_v52  ;;  %v913_v17 = vsel %vm871_vm4, %v7574_v49, %v912_v36 }
 0x19b   : > { %1054 = vst [vmem:[#allocation2 + $0x130] sm:$0xff] %v911_v57  ;;  %1057 = vst [vmem:[#allocation2 + $0x148] sm:$0x3] %v912_v36  ;;  %v2480_v40 = vmul.f32 %v6521_v59, %v913_v17  ;;  %v2538_v52 = vmul.f32 %v6524_v60, %v913_v17  ;;  %v2678_v57 = vmul.f32 %v6527_v61, %v913_v17  ;;  %vm675_vm7 = vcmp.ge.s32.totalorder %v7729_v25, 2 }
 0x19c   : > { %v755_v43 = vsel %vm7715_vm6, %v635_v8, 0.0  ;;  %v756_v0 = vsel %vm7715_vm6, %v636_v41, 0.0  ;;  %1055 = vst [vmem:[#allocation2 + $0x138] sm:$0xff] %v913_v17  ;;  %v2818_v44 = vmul.f32 %v6530_v62, %v913_v17  ;;  %v2959_v49 = vmul.f32 %v6539_v2, %v913_v17 }
 0x19d   : > { %v3091_v9 = vmul.f32 %v6543_v5, %v913_v17  ;;  %v7738_v8 = vmul.f32 %v6546_v6, %v913_v17  ;;  %v7741_v41 = vmul.f32 %v6549_v7, %v913_v17  ;;  %v2598_v36 = vrot.slane %v2538_v52, 1 }
 0x19e   : > { %v2738_v56 = vrot.slane %v2678_v57, 2  ;;  %v2879_v38 = vrot.slane %v2818_v44, 3  ;;  %v7744_v37 = vmul.f32 %v6555_v10, %v913_v17  ;;  %v3019_v16 = vrot.slane %v2959_v49, 4 }
 0x19f   : > { %10064 = vst [vmem:[#allocation110_spill] sm:$0xff] %v7741_v41  ;;  %v3107_v11 = vadd.f32 %v3091_v9, %v3055_v51  ;;  %v7748_v26 = vrot.slane %v755_v43, 6  ;;  %v7750_v47 = vrot.slane %v756_v0, 6  ;;  %v2599_v31 = vsel %vm1236_vm8, %v2597_v42, %v2598_v36  ;;  %v10066_v42 = vld [vmem:[#allocation64_spill] sm:$0xff] }
 0x1a0   : > { %10065 = vst [vmem:[#allocation111_spill] sm:$0xff] %v7744_v37  ;;  %v2739_v19 = vsel %vm1393_vm9, %v2737_v48, %v2738_v56  ;;  %v2635_v52 = vadd.f32 %v2599_v31, %v7650_v3  ;;  %v2880_v57 = vsel %vm2847_vm11, %v2878_v32, %v2879_v38  ;;  %v7757_v17 = vsel %vm399_vm0, %v3018_v53, %v3019_v16  ;;  %v10067_v48 = vld [vmem:[#allocation65_spill] sm:$0xff]  ;;  %v10068_v32 = vld [vmem:[#allocation66_spill] sm:$0xff]  ;;  %v10069_v31 = vld [vmem:[#allocation67_spill] sm:$0xff] }
 0x1a1   : > { %v7759_v51 = vmin.f32 %v589_v24, 6.0  ;;  %1058 = vst [vmem:[#allocation2 + $0x150] sm:$0xfc] %v7748_v26  ;;  %1059 = vst [vmem:[#allocation2 + $0x158] sm:$0xfc] %v7750_v47  ;;  %v7765_v43 = vadd.f32 %v10066_v42, %v6510_v54  ;;  %v7769_v3 = vadd.f32 %v10067_v48, %v6501_v50  ;;  %v7773_v53 = vadd.f32 %v10068_v32, %v6510_v54 }
 0x1a2   : > { %v2512_v44 = vld [vmem:[#allocation2 + $0x148] sm:$0x1]  ;;  %v7777_v24 = vadd.f32 %v10069_v31, %v6501_v50  ;;  %v2775_v13 = vadd.f32 %v2739_v19, %v2635_v52  ;;  %vm687_vm10 = vcmp.lt.s32.totalorder %v7729_v25, 18 }
 0x1a3   : > { %v2652_v49 = vld [vmem:[#allocation2 + $0x148] sm:$0x3]  ;;  %v2539_v0 = vmul.f32 %v6524_v60, %v2512_v44  ;;  %vm7881_vm12 = vmand %vm675_vm7, %vm687_vm10 }
 0x1a4   : > { %v2792_v9 = vld [vmem:[#allocation2 + $0x148] sm:$0x7]  ;;  %v2679_v1 = vmul.f32 %v6527_v61, %v2652_v49 }
 0x1a5   : > { %v2819_v58 = vmul.f32 %v6530_v62, %v2792_v9  ;;  %v2933_v42 = vld [vmem:[#allocation2 + $0x148] sm:$0xf]  ;;  %v2600_v49 = vrot.slane %v2539_v0, 1  ;;  %v10072_v0 = vrot.slane %v7738_v8, 1 }
 0x1a6   : > { %v3123_v37 = vld [vmem:[#allocation2 + $0x148] sm:$0x1]  ;;  %v2960_v48 = vmul.f32 %v6539_v2, %v2933_v42  ;;  %v2740_v9 = vrot.slane %v2679_v1, 2 }
 0x1a7   : > { %v3263_v14 = vld [vmem:[#allocation2 + $0x148] sm:$0x3]  ;;  %v3149_v63 = vmul.f32 %v6546_v6, %v3123_v37  ;;  %v2881_v31 = vrot.slane %v2819_v58, 3  ;;  %v2601_v21 = vsel %vm1236_vm8, %v2598_v36, %v2600_v49 }
 0x1a8   : > { %v3289_v32 = vmul.f32 %v6549_v7, %v3263_v14  ;;  %v3403_v55 = vld [vmem:[#allocation2 + $0x148] sm:$0x7]  ;;  %v3021_v52 = vrot.slane %v2960_v48, 4  ;;  %v2741_v45 = vsel %vm1393_vm9, %v2738_v56, %v2740_v9  ;;  %v2636_v58 = vadd.f32 %v2601_v21, %v2480_v40  ;;  %v2513_v40 = vld [vmem:[#allocation2 + $0x158] sm:$0xfe] }
 0x1a9   : > { %v3543_v34 = vld [vmem:[#allocation2 + $0x148] sm:$0xf]  ;;  %v7792_v20 = vmul.f32 %v6555_v10, %v3403_v55  ;;  %v3208_v42 = vrot.slane %v3149_v63, 1  ;;  %v2882_v54 = vsel %vm2847_vm11, %v2879_v38, %v2881_v31  ;;  %v10073_v48 = vrot.slane %v7741_v41, 2  ;;  %v2653_v56 = vld [vmem:[#allocation2 + $0x158] sm:$0xfc] }
 0x1aa   : > { %v7785_v50 = vld [vmem:[#allocation2 + $0x48] sm:$0xff]  ;;  %v3348_v37 = vrot.slane %v3289_v32, 2  ;;  %v7795_v14 = vmul.f32 %v6570_v15, %v3543_v34  ;;  %v3022_v55 = vsel %vm399_vm0, %v3019_v16, %v3021_v52  ;;  %v2461_v16 = vld [vmem:[#allocation2 + $0x158] sm:$0xff]  ;;  %v2776_v49 = vadd.f32 %v2741_v45, %v2636_v58 }
 0x1ab   : > { %v7789_v44 = vmul.f32 %v7785_v50, %v6543_v5  ;;  %10070 = vst [vmem:[#allocation64_spill] sm:$0xff] %v7792_v20  ;;  %v3733_v19 = vld [vmem:[#allocation2 + $0x148] sm:$0x1]  ;;  %v3209_v63 = vsel %vm1236_vm8, %v10072_v0, %v3208_v42  ;;  %v7820_v9 = vmul.f32 %v6521_v59, %v2461_v16  ;;  %v7823_v31 = vmul.f32 %v6524_v60, %v2513_v40  ;;  %v2793_v52 = vld [vmem:[#allocation2 + $0x158] sm:$0xf8] }
 0x1ac   : > { %10071 = vst [vmem:[#allocation65_spill] sm:$0xff] %v7795_v14  ;;  %v3873_v46 = vld [vmem:[#allocation2 + $0x148] sm:$0x3]  ;;  %v7808_v34 = vsel %vm1393_vm9, %v10073_v48, %v3348_v37  ;;  %v7810_v32 = vadd.f32 %v3209_v63, %v3107_v11  ;;  %v7814_v38 = vmul.f32 %v6579_v18, %v3733_v19  ;;  %v7826_v11 = vmul.f32 %v6527_v61, %v2653_v56  ;;  %v2934_v42 = vld [vmem:[#allocation2 + $0x158] sm:$0xf0] }
 0x1ad   : > { %10074 = vst [vmem:[#allocation66_spill] sm:$0xff] %v7808_v34  ;;  %v7817_v21 = vmul.f32 %v6603_v33, %v3873_v46  ;;  %v3124_v19 = vld [vmem:[#allocation2 + $0x158] sm:$0xfe]  ;;  %v7830_v46 = vmul.f32 %v6530_v62, %v2793_v52  ;;  %v2916_v0 = vadd.f32 %v2880_v57, %v2775_v13  ;;  %v7833_v45 = vmul.f32 %v6539_v2, %v2934_v42 }
 0x1ae   : > { %10075 = vst [vmem:[#allocation67_spill] sm:$0xff] %v7810_v32  ;;  %v3264_v58 = vld [vmem:[#allocation2 + $0x158] sm:$0xfc]  ;;  %v2917_v48 = vadd.f32 %v2882_v54, %v2776_v49  ;;  %v3092_v36 = vmul.f32 %v6543_v5, %v2461_v16  ;;  %v7842_v57 = vmul.f32 %v6546_v6, %v3124_v19 }
 0x1af   : > { %v3404_v63 = vld [vmem:[#allocation2 + $0x158] sm:$0xf8]  ;;  %v3056_v13 = vadd.f32 %v7757_v17, %v2916_v0  ;;  %v7845_v54 = vmul.f32 %v6549_v7, %v3264_v58  ;;  %v7857_v17 = vmul.f32 %v6599_v29, %v2461_v16  ;;  %v10084_v16 = vmax.f32 %v7421_v39, 0.0 }
 0x1b0   : > { %v3544_v1 = vld [vmem:[#allocation2 + $0x158] sm:$0xf0]  ;;  %10076 = vst [vmem:[#allocation112_spill] sm:$0xff] %v7842_v57  ;;  %v3057_v20 = vadd.f32 %v3022_v55, %v2917_v48  ;;  %v7848_v49 = vmul.f32 %v6555_v10, %v3404_v63  ;;  %v593_v39 = vmax.f32 %v7592_v30, 0.0  ;;  %v10090_v57 = vrot.slane %v7823_v31, 1 }
 0x1b1   : > { %v3734_v14 = vld [vmem:[#allocation2 + $0x158] sm:$0xfe]  ;;  %10077 = vst [vmem:[#allocation113_spill] sm:$0xff] %v7845_v54  ;;  %v7851_v56 = vmul.f32 %v6570_v15, %v3544_v1  ;;  %v7853_v40 = vadd.f32 %v3092_v36, %v3056_v13  ;;  %10081 = vst [vmem:[#allocation117_spill] sm:$0xff] %v7857_v17  ;;  %v757_v36 = vsel %vm7715_vm6, %v7759_v51, 0.0  ;;  %v638_v48 = vmin.f32 %v10084_v16, 6.0 }
 0x1b2   : > { %v3874_v42 = vld [vmem:[#allocation2 + $0x158] sm:$0xfc]  ;;  %10078 = vst [vmem:[#allocation114_spill] sm:$0xff] %v7848_v49  ;;  %v7860_v19 = vmul.f32 %v6579_v18, %v3734_v14  ;;  %v10085_v14 = vmax.f32 %v7425_v22, 0.0  ;;  %v916_v55 = vrot.slane %v757_v36, 6  ;;  %v594_v51 = vmax.f32 %v7596_v23, 0.0 }
 0x1b3   : > { %10079 = vst [vmem:[#allocation115_spill] sm:$0xff] %v7851_v56  ;;  %10080 = vst [vmem:[#allocation116_spill] sm:$0xff] %v7853_v40  ;;  %v7866_v63 = vmul.f32 %v6603_v33, %v3874_v42  ;;  %v592_v42 = vmax.f32 %v7429_v12, 0.0  ;;  %v758_v58 = vsel %vm7715_vm6, %v638_v48, 0.0  ;;  %v595_v22 = vmax.f32 %v7600_v4, 0.0  ;;  %v550_v23 = vpop.f32.mrb[44].mxu0 }
 0x1b4   : > { %10082 = vst [vmem:[#allocation118_spill] sm:$0xff] %v7860_v19  ;;  %v639_v13 = vmin.f32 %v10085_v14, 6.0  ;;  %v917_v36 = vsel %vm871_vm4, %v7748_v26, %v916_v55  ;;  %1062 = vst [vmem:[#allocation2 + $0x170] sm:$0x3] %v916_v55  ;;  %v918_v25 = vrot.slane %v758_v58, 6  ;;  %v7894_v48 = vmin.f32 %v593_v39, 6.0 }
 0x1b5   : > { %10083 = vst [vmem:[#allocation119_spill] sm:$0xff] %v7866_v63  ;;  %v640_v27 = vmin.f32 %v592_v42, 6.0  ;;  %1060 = vst [vmem:[#allocation2 + $0x160] sm:$0xff] %v917_v36  ;;  %v7896_v14 = vmin.f32 %v594_v51, 6.0  ;;  %v7898_v30 = vmin.f32 %v595_v22, 6.0  ;;  %v7905_v55 = vadd.s32 9, %v10034_v28 }
 0x1b6   : > { %v759_v12 = vsel %vm7881_vm12, %v639_v13, 0.0  ;;  %v919_v4 = vsel %vm871_vm4, %v7750_v47, %v918_v25  ;;  %1063 = vst [vmem:[#allocation2 + $0x178] sm:$0x3] %v918_v25  ;;  %v10088_v58 = vld [vmem:[#allocation51_spill] sm:$0xff]  ;;  %v7908_v42 = vpop.f32.mrb[45].mxu0  ;;  %v10091_v19 = vrot.slane %v7826_v11, 2 }
 0x1b7   : > { %v7892_v16 = vrot.slane %v759_v12, 6  ;;  %v760_v26 = vsel %vm7881_vm12, %v640_v27, 0.0  ;;  %1061 = vst [vmem:[#allocation2 + $0x168] sm:$0xff] %v919_v4  ;;  %v7911_v39 = vmul.f32 %v6521_v59, %v919_v4  ;;  %v2541_v51 = vmul.f32 %v6524_v60, %v919_v4  ;;  %v554_v36 = vpop.f32.mrb[46].mxu0 }
 0x1b8   : > { %v2681_v22 = vmul.f32 %v6527_v61, %v919_v4  ;;  %v2821_v47 = vmul.f32 %v6530_v62, %v919_v4  ;;  %v2962_v25 = vmul.f32 %v6539_v2, %v919_v4  ;;  %v3093_v12 = vmul.f32 %v6543_v5, %v919_v4  ;;  %v7925_v59 = vpop.f32.mrb[47].mxu0 }
 0x1b9   : > { %1064 = vst [vmem:[#allocation2 + $0x180] sm:$0xfc] %v7892_v16  ;;  %v7920_v27 = vmul.f32 %v6546_v6, %v919_v4  ;;  %v7923_v23 = vmul.f32 %v6549_v7, %v919_v4  ;;  %v2603_v52 = vrot.slane %v2541_v51, 1  ;;  %v7928_v37 = vmul.f32 %v6555_v10, %v919_v4 }
 0x1ba   : > { %v2743_v1 = vrot.slane %v2681_v22, 2  ;;  %v2884_v13 = vrot.slane %v2821_v47, 3  ;;  %v3024_v56 = vrot.slane %v2962_v25, 4  ;;  %v3109_v36 = vadd.f32 %v3093_v12, %v3057_v20 }
 0x1bb   : > { %10089 = vst [vmem:[#allocation51_spill] sm:$0xff] %v7928_v37  ;;  %v7932_v40 = vrot.slane %v760_v26, 6  ;;  %v2604_v17 = vsel %vm1236_vm8, %v10090_v57, %v2603_v52  ;;  %v10092_v22 = vrot.slane %v7830_v46, 3  ;;  %v10093_v47 = vrot.slane %v7833_v45, 4  ;;  %v3672_v57 = vld [vmem:[#allocation2 + $0x68] sm:$0xff] }
 0x1bc   : > { %v2744_v51 = vsel %vm1393_vm9, %v10091_v19, %v2743_v1  ;;  %v2637_v20 = vadd.f32 %v2604_v17, %v7820_v9  ;;  %v10094_v9 = vld [vmem:[#allocation24_spill] sm:$0xff]  ;;  %v7962_v17 = vmul.f32 %v7785_v50, %v6549_v7  ;;  %v7966_v12 = vmul.f32 %v7785_v50, %v6555_v10 }
 0x1bd   : > { %v2885_v4 = vsel %vm2847_vm11, %v10092_v22, %v2884_v13  ;;  %v7947_v25 = vsel %vm399_vm0, %v10093_v47, %v3024_v56  ;;  %v2514_v19 = vld [vmem:[#allocation2 + $0x178] sm:$0x1]  ;;  %1065 = vst [vmem:[#allocation2 + $0x188] sm:$0xfc] %v7932_v40  ;;  %v7958_v45 = vadd.f32 %v7789_v44, %v10094_v9  ;;  %v7970_v22 = vmul.f32 %v7785_v50, %v6570_v15 }
 0x1be   : > { %v2654_v46 = vld [vmem:[#allocation2 + $0x178] sm:$0x3]  ;;  %v2542_v47 = vmul.f32 %v6524_v60, %v2514_v19  ;;  %v2777_v49 = vadd.f32 %v2744_v51, %v2637_v20  ;;  %v7979_v50 = vmul.f32 %v6599_v29, %v3672_v57  ;;  %vm676_vm13 = vcmp.ge.s32.totalorder %v7905_v55, 2 }
 0x1bf   : > { %v2794_v26 = vld [vmem:[#allocation2 + $0x178] sm:$0x7]  ;;  %v2682_v11 = vmul.f32 %v6527_v61, %v2654_v46  ;;  %vm688_vm14 = vcmp.lt.s32.totalorder %v7905_v55, 18  ;;  %v597_v0 = vmax.f32 %v7614_v35, 0.0  ;;  %v599_v55 = vmax.f32 %v7769_v3, 0.0 }
 0x1c0   : > { %v2822_v31 = vmul.f32 %v6530_v62, %v2794_v26  ;;  %v2935_v44 = vld [vmem:[#allocation2 + $0x178] sm:$0xf]  ;;  %v2605_v60 = vrot.slane %v2542_v47, 1  ;;  %vm8053_vm15 = vmand %vm676_vm13, %vm688_vm14 }
 0x1c1   : > { %v3125_v9 = vld [vmem:[#allocation2 + $0x178] sm:$0x1]  ;;  %v2963_v37 = vmul.f32 %v6539_v2, %v2935_v44  ;;  %v2745_v19 = vrot.slane %v2682_v11, 2 }
 0x1c2   : > { %v3265_v54 = vld [vmem:[#allocation2 + $0x178] sm:$0x3]  ;;  %v3152_v63 = vmul.f32 %v6546_v6, %v3125_v9  ;;  %v2886_v61 = vrot.slane %v2822_v31, 3 }
 0x1c3   : > { %v3292_v34 = vmul.f32 %v6549_v7, %v3265_v54  ;;  %v3405_v32 = vld [vmem:[#allocation2 + $0x178] sm:$0x7]  ;;  %v3026_v26 = vrot.slane %v2963_v37, 4  ;;  %v2606_v54 = vsel %vm1236_vm8, %v2603_v52, %v2605_v60  ;;  %v2746_v9 = vsel %vm1393_vm9, %v2743_v1, %v2745_v19 }
 0x1c4   : > { %v3545_v41 = vld [vmem:[#allocation2 + $0x178] sm:$0xf]  ;;  %v7982_v62 = vmul.f32 %v6555_v10, %v3405_v32  ;;  %v3213_v51 = vrot.slane %v3152_v63, 1  ;;  %v2887_v57 = vsel %vm2847_vm11, %v2884_v13, %v2886_v61  ;;  %v2638_v31 = vadd.f32 %v2606_v54, %v7911_v39  ;;  %v3126_v47 = vld [vmem:[#allocation2 + $0x188] sm:$0xfe] }
 0x1c5   : > { %v3735_v46 = vld [vmem:[#allocation2 + $0x178] sm:$0x1]  ;;  %v3353_v20 = vrot.slane %v3292_v34, 2  ;;  %v7985_v2 = vmul.f32 %v6570_v15, %v3545_v41  ;;  %v3027_v32 = vsel %vm399_vm0, %v3024_v56, %v3026_v26  ;;  %v10096_v37 = vrot.slane %v7920_v27, 1  ;;  %v3074_v56 = vld [vmem:[#allocation2 + $0x188] sm:$0xff] }
 0x1c6   : > { %v3875_v44 = vld [vmem:[#allocation2 + $0x178] sm:$0x3]  ;;  %v10097_v41 = vrot.slane %v7923_v23, 2  ;;  %v8005_v13 = vmul.f32 %v6579_v18, %v3735_v46  ;;  %v3266_v60 = vld [vmem:[#allocation2 + $0x188] sm:$0xfc]  ;;  %v2778_v19 = vadd.f32 %v2746_v9, %v2638_v31  ;;  %v2918_v61 = vadd.f32 %v2885_v4, %v2777_v49 }
 0x1c7   : > { %10095 = vst [vmem:[#allocation24_spill] sm:$0xff] %v7985_v2  ;;  %v3214_v34 = vsel %vm1236_vm8, %v10096_v37, %v3213_v51  ;;  %v8008_v39 = vmul.f32 %v6603_v33, %v3875_v44  ;;  %v3094_v26 = vmul.f32 %v6543_v5, %v3074_v56  ;;  %v8012_v51 = vmul.f32 %v6546_v6, %v3126_v47  ;;  %v3736_v54 = vld [vmem:[#allocation2 + $0x188] sm:$0xfe] }
 0x1c8   : > { %v7999_v63 = vsel %vm1393_vm9, %v10097_v41, %v3353_v20  ;;  %v8001_v52 = vadd.f32 %v3214_v34, %v3109_v36  ;;  %v3406_v36 = vld [vmem:[#allocation2 + $0x188] sm:$0xf8]  ;;  %v8016_v46 = vmul.f32 %v6549_v7, %v3266_v60  ;;  %v2919_v4 = vadd.f32 %v2887_v57, %v2778_v19  ;;  %v8086_v60 = vld [vmem:[#allocation2 + $0x78] sm:$0xff] }
 0x1c9   : > { %10098 = vst [vmem:[#allocation120_spill] sm:$0xff] %v8012_v51  ;;  %v3546_v20 = vld [vmem:[#allocation2 + $0x188] sm:$0xf0]  ;;  %v8019_v44 = vmul.f32 %v6555_v10, %v3406_v36  ;;  %v3058_v9 = vadd.f32 %v7947_v25, %v2918_v61  ;;  %v8027_v41 = vmul.f32 %v6599_v29, %v3074_v56  ;;  %v8033_v36 = vmul.f32 %v6579_v18, %v3736_v54 }
 0x1ca   : > { %10099 = vst [vmem:[#allocation121_spill] sm:$0xff] %v8016_v46  ;;  %v8022_v34 = vmul.f32 %v6570_v15, %v3546_v20  ;;  %v3876_v49 = vld [vmem:[#allocation2 + $0x188] sm:$0xfc]  ;;  %v3059_v20 = vadd.f32 %v3027_v32, %v2919_v4  ;;  %v10105_v25 = vsel %vm7881_vm12, %v7894_v48, 0.0  ;;  %v10106_v61 = vsel %vm7881_vm12, %v7896_v14, 0.0 }
 0x1cb   : > { %10100 = vst [vmem:[#allocation122_spill] sm:$0xff] %v8019_v44  ;;  %10102 = vst [vmem:[#allocation124_spill] sm:$0xff] %v8027_v41  ;;  %v8035_v11 = vadd.f32 %v3094_v26, %v3058_v9  ;;  %v8038_v57 = vmul.f32 %v6603_v33, %v3876_v49  ;;  %v922_v56 = vrot.slane %v10105_v25, 6  ;;  %v924_v1 = vrot.slane %v10106_v61, 6  ;;  %v3724_v25 = vld [vmem:[#allocation2 + $0x68] sm:$0xfe] }
 0x1cc   : > { %10101 = vst [vmem:[#allocation123_spill] sm:$0xff] %v8022_v34  ;;  %10103 = vst [vmem:[#allocation125_spill] sm:$0xff] %v8033_v36  ;;  %v10109_v48 = vmax.f32 %v10088_v58, 0.0  ;;  %v598_v14 = vmax.f32 %v7765_v43, 0.0  ;;  %v665_v4 = vadd.s32 10, %v10034_v28  ;;  %v645_v9 = vmin.f32 %v597_v0, 6.0 }
 0x1cd   : > { %10104 = vst [vmem:[#allocation126_spill] sm:$0xff] %v8035_v11  ;;  %v923_v32 = vsel %vm871_vm4, %v7892_v16, %v922_v56  ;;  %1068 = vst [vmem:[#allocation2 + $0x1a0] sm:$0x3] %v922_v56  ;;  %v925_v49 = vsel %vm871_vm4, %v7932_v40, %v924_v1  ;;  %v763_v16 = vsel %vm8053_vm15, %v7898_v30, 0.0  ;;  %v3321_v26 = vrot.slane %v7962_v17, 2  ;;  %v10147_v44 = vld [vmem:[#allocation4_spill] sm:$0xff] }
 0x1ce   : > { %v644_v54 = vmin.f32 %v10109_v48, 6.0  ;;  %1066 = vst [vmem:[#allocation2 + $0x190] sm:$0xff] %v923_v32  ;;  %1069 = vst [vmem:[#allocation2 + $0x1a8] sm:$0x3] %v924_v1  ;;  %v3095_v58 = vmul.f32 %v6543_v5, %v925_v49  ;;  %v8070_v35 = vmul.f32 %v6546_v6, %v925_v49  ;;  %v8073_v43 = vmul.f32 %v6549_v7, %v925_v49  ;;  %v10164_v2 = vld [vmem:[#allocation52_spill] sm:$0xff] }
 0x1cf   : > { %1067 = vst [vmem:[#allocation2 + $0x198] sm:$0xff] %v925_v49  ;;  %v8076_v40 = vmul.f32 %v6555_v10, %v925_v49  ;;  %v926_v1 = vrot.slane %v763_v16, 6  ;;  %v646_v3 = vmin.f32 %v598_v14, 6.0  ;;  %v765_v48 = vsel %vm8053_vm15, %v645_v9, 0.0 }
 0x1d0   : > { %10110 = vst [vmem:[#allocation127_spill] sm:$0xff] %v8070_v35  ;;  %10111 = vst [vmem:[#allocation128_spill] sm:$0xff] %v8073_v43  ;;  %v764_v30 = vsel %vm8053_vm15, %v644_v54, 0.0  ;;  %v3111_v56 = vadd.f32 %v3095_v58, %v3059_v20  ;;  %v9874_v61 = vrot.slane %v8070_v35, 1  ;;  %v9873_v5 = vrot.slane %v8073_v43, 2 }
 0x1d1   : > { %10112 = vst [vmem:[#allocation129_spill] sm:$0xff] %v8076_v40  ;;  %v927_v32 = vrot.slane %v764_v30, 6  ;;  %1070 = vst [vmem:[#allocation2 + $0x1b0] sm:$0xfc] %v926_v1  ;;  %v766_v49 = vsel %vm8053_vm15, %v646_v3, 0.0  ;;  %v647_v16 = vmin.f32 %v599_v55, 6.0 }
 0x1d2   : > { %vm677_vm2 = vcmp.ge.s32.totalorder %v665_v4, 2  ;;  %v928_v54 = vrot.slane %v765_v48, 6  ;;  %v930_v0 = vrot.slane %v766_v49, 6  ;;  %vm689_vm3 = vcmp.lt.s32.totalorder %v665_v4, 18  ;;  %v10115_v30 = vld [vmem:[#allocation28_spill] sm:$0xff] }
 0x1d3   : > { %1071 = vst [vmem:[#allocation2 + $0x1b8] sm:$0xfc] %v927_v32  ;;  %v600_v20 = vmax.f32 %v7773_v53, 0.0  ;;  %vm8089_vm5 = vmand %vm677_vm2, %vm689_vm3  ;;  %v601_v58 = vmax.f32 %v7777_v24, 0.0  ;;  %v3181_v9 = vrot.slane %v10115_v30, 1  ;;  %v3461_v55 = vrot.slane %v7966_v12, 3 }
 0x1d4   : > { %v929_v48 = vsel %vm871_vm4, %v926_v1, %v928_v54  ;;  %1074 = vst [vmem:[#allocation2 + $0x1d0] sm:$0x3] %v928_v54  ;;  %v931_v53 = vsel %vm871_vm4, %v927_v32, %v930_v0  ;;  %1075 = vst [vmem:[#allocation2 + $0x1d8] sm:$0x3] %v930_v0  ;;  %v8101_v4 = vmul.f32 %v6599_v29, %v8086_v60  ;;  %v10117_v32 = vld [vmem:[#allocation22_spill] sm:$0xff] }
 0x1d5   : > { %v3127_v3 = vld [vmem:[#allocation2 + $0x1a8] sm:$0x1]  ;;  %v8104_v24 = vmul.f32 %v6579_v18, %v3724_v25  ;;  %1072 = vst [vmem:[#allocation2 + $0x1c0] sm:$0xff] %v929_v48  ;;  %1073 = vst [vmem:[#allocation2 + $0x1c8] sm:$0xff] %v931_v53  ;;  %v10118_v0 = vrot.slane %v10117_v32, 1  ;;  %v649_v32 = vmin.f32 %v601_v58, 6.0 }
 0x1d6   : > { %v3267_v47 = vld [vmem:[#allocation2 + $0x1a8] sm:$0x3]  ;;  %v3155_v17 = vmul.f32 %v6546_v6, %v3127_v3  ;;  %v4757_v35 = vld [vmem:[#allocation2 + $0xb8] sm:$0xf] }
 0x1d7   : > { %v3407_v31 = vld [vmem:[#allocation2 + $0x1a8] sm:$0x7]  ;;  %v3295_v12 = vmul.f32 %v6549_v7, %v3267_v47  ;;  %v3182_v19 = vsel %vm1236_vm8, %v10118_v0, %v3181_v9  ;;  %v767_v7 = vsel %vm8089_vm5, %v647_v16, 0.0  ;;  %v10122_v0 = vld [vmem:[#allocation29_spill] sm:$0xff]  ;;  %v10124_v47 = vld [vmem:[#allocation27_spill] sm:$0xff] }
 0x1d8   : > { %v8109_v49 = vmul.f32 %v6555_v10, %v3407_v31  ;;  %v3547_v30 = vld [vmem:[#allocation2 + $0x1a8] sm:$0xf]  ;;  %v3218_v10 = vrot.slane %v3155_v17, 1  ;;  %v932_v3 = vrot.slane %v767_v7, 6  ;;  %v10123_v7 = vrot.slane %v10122_v0, 1  ;;  %v10129_v0 = vld [vmem:[#allocation23_spill] sm:$0xff] }
 0x1d9   : > { %v3737_v1 = vld [vmem:[#allocation2 + $0x1a8] sm:$0x1]  ;;  %v8115_v37 = vmul.f32 %v6570_v15, %v3547_v30  ;;  %v3358_v31 = vrot.slane %v3295_v12, 2  ;;  %v648_v30 = vmin.f32 %v600_v20, 6.0  ;;  %v3236_v20 = vadd.f32 %v3182_v19, %v10124_v47  ;;  %v10131_v19 = vld [vmem:[#allocation30_spill] sm:$0xff] }
 0x1da   : > { %10116 = vst [vmem:[#allocation28_spill] sm:$0xff] %v8109_v49  ;;  %v3877_v54 = vld [vmem:[#allocation2 + $0x1a8] sm:$0x3]  ;;  %v8118_v25 = vmul.f32 %v6579_v18, %v3737_v1  ;;  %v3219_v1 = vsel %vm1236_vm8, %v9874_v61, %v3218_v10  ;;  %v3686_v16 = vld [vmem:[#allocation2 + $0x1b8] sm:$0xff]  ;;  %1076 = vst [vmem:[#allocation2 + $0x1e0] sm:$0xfc] %v932_v3  ;;  %v3184_v48 = vsel %vm1236_vm8, %v3181_v9, %v10123_v7 }
 0x1db   : > { %10119 = vst [vmem:[#allocation22_spill] sm:$0xff] %v8115_v37  ;;  %v8121_v6 = vmul.f32 %v6603_v33, %v3877_v54  ;;  %v8134_v54 = vsel %vm1393_vm9, %v9873_v5, %v3358_v31  ;;  %v3738_v17 = vld [vmem:[#allocation2 + $0x1b8] sm:$0xfe]  ;;  %v8140_v58 = vadd.f32 %v3219_v1, %v3111_v56  ;;  %v8143_v53 = vmul.f32 %v6599_v29, %v3686_v16  ;;  %v3739_v5 = vld [vmem:[#allocation2 + $0x1d8] sm:$0x1]  ;;  %v10133_v1 = vld [vmem:[#allocation25_spill] sm:$0xff] }
 0x1dc   : > { %10120 = vst [vmem:[#allocation130_spill] sm:$0xff] %v8118_v25  ;;  %10121 = vst [vmem:[#allocation131_spill] sm:$0xff] %v8134_v54  ;;  %v3878_v12 = vld [vmem:[#allocation2 + $0x1b8] sm:$0xfc]  ;;  %v8146_v10 = vmul.f32 %v6579_v18, %v3738_v17  ;;  %v3879_v61 = vld [vmem:[#allocation2 + $0x1d8] sm:$0x3]  ;;  %v3237_v37 = vadd.f32 %v3184_v48, %v7958_v45 }
 0x1dd   : > { %10125 = vst [vmem:[#allocation29_spill] sm:$0xff] %v8140_v58  ;;  %10126 = vst [vmem:[#allocation27_spill] sm:$0xff] %v8143_v53  ;;  %v8149_v31 = vmul.f32 %v6603_v33, %v3878_v12  ;;  %v10130_v34 = vrot.slane %v10129_v0, 2  ;;  %v10132_v56 = vrot.slane %v10131_v19, 2  ;;  %v10134_v16 = vrot.slane %v10133_v1, 3 }
 0x1de   : > { %10127 = vst [vmem:[#allocation132_spill] sm:$0xff] %v8146_v10  ;;  %v3725_v7 = vld [vmem:[#allocation2 + $0x88] sm:$0x1]  ;;  %v8163_v53 = vmul.f32 %v6579_v18, %v3739_v5  ;;  %v8166_v45 = vmul.f32 %v6603_v33, %v3879_v61  ;;  %v3601_v61 = vrot.slane %v7970_v22, 4  ;;  %v4617_v58 = vld [vmem:[#allocation2 + $0xb8] sm:$0x7] }
 0x1df   : > { %10128 = vst [vmem:[#allocation133_spill] sm:$0xff] %v8149_v31  ;;  %v3322_v9 = vsel %vm1393_vm9, %v10130_v34, %v3321_v26  ;;  %v3324_v47 = vsel %vm1393_vm9, %v3321_v26, %v10132_v56  ;;  %v3462_v17 = vsel %vm2847_vm11, %v10134_v16, %v3461_v55  ;;  %v768_v34 = vsel %vm8089_vm5, %v648_v30, 0.0  ;;  %v10137_v16 = vld [vmem:[#allocation31_spill] sm:$0xff]  ;;  %v10141_v22 = vld [vmem:[#allocation32_spill] sm:$0xff]  ;;  %v4337_v31 = vld [vmem:[#allocation2 + $0xb8] sm:$0x1] }
 0x1e0   : > { %10135 = vst [vmem:[#allocation23_spill] sm:$0xff] %v8163_v53  ;;  %10136 = vst [vmem:[#allocation30_spill] sm:$0xff] %v8166_v45  ;;  %v8170_v48 = vrot.slane %v768_v34, 6  ;;  %v769_v26 = vsel %vm8089_vm5, %v649_v32, 0.0  ;;  %v3376_v0 = vadd.f32 %v3322_v9, %v3236_v20  ;;  %v3377_v19 = vadd.f32 %v3324_v47, %v3237_v37  ;;  %v3864_v20 = vld [vmem:[#allocation2 + $0x68] sm:$0xfc] }
 0x1e1   : > { %v934_v1 = vrot.slane %v769_v26, 6  ;;  %v10138_v12 = vrot.slane %v10137_v16, 3  ;;  %v3745_v34 = vmul.f32 %v6579_v18, %v8086_v60  ;;  %v3746_v32 = vmul.f32 %v6579_v18, %v3725_v7  ;;  %v3865_v37 = vld [vmem:[#allocation2 + $0x88] sm:$0x3]  ;;  %v4004_v9 = vld [vmem:[#allocation2 + $0x68] sm:$0xf8] }
 0x1e2   : > { %1077 = vst [vmem:[#allocation2 + $0x1e8] sm:$0xfc] %v8170_v48  ;;  %v3516_v45 = vadd.f32 %v3462_v17, %v3376_v0  ;;  %v10139_v26 = vld [vmem:[#allocation26_spill] sm:$0xff]  ;;  %v3792_v0 = vrot.slane %v8104_v24, 1  ;;  %v3884_v53 = vmul.f32 %v6603_v33, %v3864_v20 }
 0x1e3   : > { %v3464_v5 = vsel %vm2847_vm11, %v3461_v55, %v10138_v12  ;;  %v935_v47 = vsel %vm871_vm4, %v932_v3, %v934_v1  ;;  %1080 = vst [vmem:[#allocation2 + $0x200] sm:$0x3] %v934_v1  ;;  %v10140_v16 = vrot.slane %v10139_v26, 4  ;;  %v10142_v12 = vrot.slane %v10141_v22, 4  ;;  %v4005_v26 = vld [vmem:[#allocation2 + $0x88] sm:$0x7] }
 0x1e4   : > { %v3517_v30 = vadd.f32 %v3464_v5, %v3377_v19  ;;  %1078 = vst [vmem:[#allocation2 + $0x1f0] sm:$0xff] %v935_v47  ;;  %v3793_v7 = vrot.slane %v3745_v34, 1  ;;  %v3795_v56 = vrot.slane %v3746_v32, 1  ;;  %v3885_v3 = vmul.f32 %v6603_v33, %v8086_v60 }
 0x1e5   : > { %v3602_v55 = vsel %vm399_vm0, %v10140_v16, %v3601_v61  ;;  %v3604_v17 = vsel %vm399_vm0, %v3601_v61, %v10142_v12  ;;  %v3886_v1 = vmul.f32 %v6603_v33, %v3865_v37  ;;  %v10143_v16 = vld [vmem:[#allocation16_spill] sm:$0xff] }
 0x1e6   : > { %v3656_v19 = vadd.f32 %v3602_v55, %v3516_v45  ;;  %v3657_v5 = vadd.f32 %v3604_v17, %v3517_v30  ;;  %v4024_v10 = vmul.f32 %v10143_v16, %v4004_v9  ;;  %v3794_v24 = vsel %vm1236_vm8, %v3792_v0, %v3793_v7  ;;  %v4144_v9 = vld [vmem:[#allocation2 + $0x68] sm:$0xf0]  ;;  %v4145_v17 = vld [vmem:[#allocation2 + $0x88] sm:$0xf] }
 0x1e7   : > { %v3796_v45 = vsel %vm1236_vm8, %v3793_v7, %v3795_v56  ;;  %v3932_v30 = vrot.slane %v3884_v53, 2  ;;  %v3933_v34 = vrot.slane %v3885_v3, 2  ;;  %v3935_v32 = vrot.slane %v3886_v1, 2  ;;  %v6291_v53 = vld [vmem:[%s9781_s3 + $0x18] sm:$0xff]  ;;  %v8211_v7 = vld [vmem:[#allocation2 + $0xa8] sm:$0xff] }
 0x1e8   : > { %v3708_v22 = vadd.f32 %v7979_v50, %v3656_v19  ;;  %v3709_v61 = vadd.f32 %v8101_v4, %v3657_v5  ;;  %v4025_v20 = vmul.f32 %v10143_v16, %v8086_v60  ;;  %v4026_v37 = vmul.f32 %v10143_v16, %v4005_v26  ;;  %v10144_v56 = vld [vmem:[#allocation10_spill] sm:$0xff]  ;;  %v10145_v26 = vld [vmem:[#allocation11_spill] sm:$0xff] }
 0x1e9   : > { %v4072_v12 = vrot.slane %v4024_v10, 3  ;;  %v3934_v50 = vsel %vm1393_vm9, %v3932_v30, %v3933_v34  ;;  %v3936_v4 = vsel %vm1393_vm9, %v3933_v34, %v3935_v32  ;;  %v8209_v19 = vrot.slane %v6291_v53, %v10144_v56  ;;  %v4284_v5 = vld [vmem:[#allocation2 + $0x98] sm:$0xff] }
 0x1ea   : > { %v3848_v47 = vadd.f32 %v3794_v24, %v3708_v22  ;;  %v3849_v55 = vadd.f32 %v3796_v45, %v3709_v61  ;;  %v4073_v0 = vrot.slane %v4025_v20, 3  ;;  %v4075_v10 = vrot.slane %v4026_v37, 3  ;;  %v8219_v61 = vld [vmem:[%s9781_s3 + $0x28] sm:$0xff] }
 0x1eb   : > { %v8214_v22 = vrot.slane %v6291_v53, %v10145_v26  ;;  %v4164_v45 = vmul.f32 %v8209_v19, %v4144_v9  ;;  %v4165_v30 = vmul.f32 %v8209_v19, %v8086_v60  ;;  %v4166_v34 = vmul.f32 %v8209_v19, %v4145_v17  ;;  %v10146_v9 = vld [vmem:[#allocation3_spill] sm:$0xff]  ;;  %v4476_v60 = vld [vmem:[#allocation2 + $0x98] sm:$0xfc]  ;;  %v4477_v17 = vld [vmem:[#allocation2 + $0xb8] sm:$0x3] }
 0x1ec   : > { %v3988_v3 = vadd.f32 %v3934_v50, %v3848_v47  ;;  %v3989_v1 = vadd.f32 %v3936_v4, %v3849_v55  ;;  %v4074_v24 = vsel %vm2847_vm11, %v4072_v12, %v4073_v0  ;;  %v4076_v32 = vsel %vm2847_vm11, %v4073_v0, %v4075_v10  ;;  %v4336_v12 = vld [vmem:[#allocation2 + $0x98] sm:$0xfe] }
 0x1ed   : > { %v4304_v47 = vmul.f32 %v8214_v22, %v4284_v5  ;;  %v4305_v55 = vmul.f32 %v8214_v22, %v8211_v7  ;;  %v4212_v50 = vrot.slane %v4164_v45, 4  ;;  %v4213_v4 = vrot.slane %v4165_v30, 4  ;;  %v10148_v5 = vld [vmem:[#allocation7_spill] sm:$0xff]  ;;  %v10150_v30 = vld [vmem:[#allocation8_spill] sm:$0xff] }
 0x1ee   : > { %v4128_v20 = vadd.f32 %v4074_v24, %v3988_v3  ;;  %v4129_v37 = vadd.f32 %v4076_v32, %v3989_v1  ;;  %v4215_v53 = vrot.slane %v4166_v34, 4  ;;  %v8232_v49 = vrot.slane %v8219_v61, %v10146_v9  ;;  %v10149_v1 = vld [vmem:[#allocation6_spill] sm:$0xff]  ;;  %v10151_v32 = vld [vmem:[#allocation12_spill] sm:$0xff] }
 0x1ef   : > { %v8236_v0 = vrot.slane %v8219_v61, %v10147_v44  ;;  %v8240_v3 = vrot.slane %v8219_v61, %v10148_v5  ;;  %v8244_v10 = vrot.slane %v8219_v61, %v10149_v1  ;;  %v4214_v24 = vsel %vm399_vm0, %v4212_v50, %v4213_v4 }
 0x1f0   : > { %v4216_v45 = vsel %vm399_vm0, %v4213_v4, %v4215_v53  ;;  %v8250_v34 = vrot.slane %v8219_v61, %v10150_v30  ;;  %v8254_v44 = vrot.slane %v8219_v61, %v10151_v32  ;;  %v4268_v9 = vadd.f32 %v4214_v24, %v4128_v20  ;;  %v4616_v30 = vld [vmem:[#allocation2 + $0x98] sm:$0xf8] }
 0x1f1   : > { %v4269_v40 = vadd.f32 %v4216_v45, %v4129_v37  ;;  %v4356_v5 = vmul.f32 %v8232_v49, %v4336_v12  ;;  %v4357_v1 = vmul.f32 %v8232_v49, %v8211_v7  ;;  %v4358_v54 = vmul.f32 %v8232_v49, %v4337_v31 }
 0x1f2   : > { %v4496_v50 = vmul.f32 %v8236_v0, %v4476_v60  ;;  %v4497_v4 = vmul.f32 %v8236_v0, %v8211_v7  ;;  %v4498_v53 = vmul.f32 %v8236_v0, %v4477_v17  ;;  %v4320_v32 = vadd.f32 %v4304_v47, %v4268_v9  ;;  %v4756_v17 = vld [vmem:[#allocation2 + $0x98] sm:$0xf0]  ;;  %v8272_v9 = vld [vmem:[#allocation2 + $0xc8] sm:$0xff] }
 0x1f3   : > { %v4321_v46 = vadd.f32 %v4305_v55, %v4269_v40  ;;  %v4404_v20 = vrot.slane %v4356_v5, 1  ;;  %v4405_v37 = vrot.slane %v4357_v1, 1  ;;  %v4407_v24 = vrot.slane %v4358_v54, 1 }
 0x1f4   : > { %v4544_v12 = vrot.slane %v4496_v50, 2  ;;  %v4545_v45 = vrot.slane %v4497_v4, 2  ;;  %v4547_v43 = vrot.slane %v4498_v53, 2  ;;  %v4636_v31 = vmul.f32 %v8240_v3, %v4616_v30 }
 0x1f5   : > { %v4406_v11 = vsel %vm1236_vm8, %v4404_v20, %v4405_v37  ;;  %v4637_v60 = vmul.f32 %v8240_v3, %v8211_v7  ;;  %v4638_v51 = vmul.f32 %v8240_v3, %v4617_v58  ;;  %v4408_v47 = vsel %vm1236_vm8, %v4405_v37, %v4407_v24  ;;  %v8278_v37 = vld [vmem:[#allocation2 + $0xd8] sm:$0xff] }
 0x1f6   : > { %v4460_v40 = vadd.f32 %v4406_v11, %v4320_v32  ;;  %v4546_v55 = vsel %vm1393_vm9, %v4544_v12, %v4545_v45  ;;  %v4548_v54 = vsel %vm1393_vm9, %v4545_v45, %v4547_v43  ;;  %v4461_v5 = vadd.f32 %v4408_v47, %v4321_v46  ;;  %v4949_v11 = vld [vmem:[#allocation2 + $0xc8] sm:$0xfe] }
 0x1f7   : > { %v4684_v1 = vrot.slane %v4636_v31, 3  ;;  %v4685_v50 = vrot.slane %v4637_v60, 3  ;;  %v4687_v30 = vrot.slane %v4638_v51, 3  ;;  %v4776_v53 = vmul.f32 %v8244_v10, %v4756_v17  ;;  %v4950_v51 = vld [vmem:[#allocation2 + $0xe8] sm:$0x1] }
 0x1f8   : > { %v4600_v4 = vadd.f32 %v4546_v55, %v4460_v40  ;;  %v4777_v58 = vmul.f32 %v8244_v10, %v8211_v7  ;;  %v4778_v20 = vmul.f32 %v8244_v10, %v4757_v35  ;;  %v4601_v32 = vadd.f32 %v4548_v54, %v4461_v5  ;;  %v5089_v40 = vld [vmem:[#allocation2 + $0xc8] sm:$0xfc]  ;;  %v5090_v55 = vld [vmem:[#allocation2 + $0xe8] sm:$0x3] }
 0x1f9   : > { %v4686_v43 = vsel %vm2847_vm11, %v4684_v1, %v4685_v50  ;;  %v4688_v24 = vsel %vm2847_vm11, %v4685_v50, %v4687_v30  ;;  %v4917_v46 = vmul.f32 %v8250_v34, %v8272_v9  ;;  %v4824_v45 = vrot.slane %v4776_v53, 4 }
 0x1fa   : > { %v4740_v12 = vadd.f32 %v4686_v43, %v4600_v4  ;;  %v4825_v31 = vrot.slane %v4777_v58, 4  ;;  %v4827_v60 = vrot.slane %v4778_v20, 4  ;;  %v4741_v17 = vadd.f32 %v4688_v24, %v4601_v32  ;;  %v5229_v24 = vld [vmem:[#allocation2 + $0xc8] sm:$0xf8] }
 0x1fb   : > { %v4918_v35 = vmul.f32 %v8250_v34, %v8278_v37  ;;  %v4969_v7 = vmul.f32 %v8254_v44, %v4949_v11  ;;  %v4970_v47 = vmul.f32 %v8254_v44, %v8278_v37  ;;  %v4971_v1 = vmul.f32 %v8254_v44, %v4950_v51  ;;  %v8303_v51 = vld [vmem:[%s9781_s3 + $0x38] ss:$0 sm:$0xff] }
 0x1fc   : > { %v4826_v54 = vsel %vm399_vm0, %v4824_v45, %v4825_v31  ;;  %v4828_v5 = vsel %vm399_vm0, %v4825_v31, %v4827_v60  ;;  %v8294_v50 = vrot.slane %v8219_v61, %v10144_v56  ;;  %v5230_v60 = vld [vmem:[#allocation2 + $0xe8] sm:$0x7] }
 0x1fd   : > { %v4880_v30 = vadd.f32 %v4826_v54, %v4740_v12  ;;  %v4881_v4 = vadd.f32 %v4828_v5, %v4741_v17  ;;  %v5017_v53 = vrot.slane %v4969_v7, 1  ;;  %v5018_v58 = vrot.slane %v4970_v47, 1  ;;  %v5369_v7 = vld [vmem:[#allocation2 + $0xc8] sm:$0xf0] }
 0x1fe   : > { %v5020_v20 = vrot.slane %v4971_v1, 1  ;;  %v5109_v11 = vmul.f32 %v8294_v50, %v5089_v40  ;;  %v5110_v32 = vmul.f32 %v8294_v50, %v8278_v37  ;;  %v5111_v43 = vmul.f32 %v8294_v50, %v5090_v55 }
 0x1ff   : > { %v4933_v45 = vadd.f32 %v4917_v46, %v4880_v30  ;;  %v4934_v31 = vadd.f32 %v4918_v35, %v4881_v4  ;;  %v5019_v12 = vsel %vm1236_vm8, %v5017_v53, %v5018_v58  ;;  %v8308_v17 = vrot.slane %v8219_v61, %v10145_v26  ;;  %v5370_v35 = vld [vmem:[#allocation2 + $0xe8] sm:$0xf] }
 0x200   : > { %v5021_v47 = vsel %vm1236_vm8, %v5018_v58, %v5020_v20  ;;  %v5157_v40 = vrot.slane %v5109_v11, 2  ;;  %v5158_v55 = vrot.slane %v5110_v32, 2  ;;  %v5160_v54 = vrot.slane %v5111_v43, 2 }
 0x201   : > { %v5073_v5 = vadd.f32 %v5019_v12, %v4933_v45  ;;  %v5074_v1 = vadd.f32 %v5021_v47, %v4934_v31  ;;  %v5249_v56 = vmul.f32 %v8308_v17, %v5229_v24  ;;  %v5250_v46 = vmul.f32 %v8308_v17, %v8278_v37  ;;  %v10152_v12 = vld [vmem:[#allocation9_spill] sm:$0xff] }
 0x202   : > { %v5159_v30 = vsel %vm1393_vm9, %v5157_v40, %v5158_v55  ;;  %v5161_v4 = vsel %vm1393_vm9, %v5158_v55, %v5160_v54  ;;  %v5251_v26 = vmul.f32 %v8308_v17, %v5230_v60  ;;  %v5389_v61 = vmul.f32 %v8303_v51, %v5369_v7  ;;  %v10153_v47 = vld [vmem:[#allocation97_spill] sm:$0xff]  ;;  %v10154_v55 = vld [vmem:[#allocation44_spill] sm:$0xff]  ;;  %v10156_v54 = vld [vmem:[#allocation35_spill] sm:$0xff] }
 0x203   : > { %v5213_v53 = vadd.f32 %v5159_v30, %v5073_v5  ;;  %v5214_v58 = vadd.f32 %v5161_v4, %v5074_v1  ;;  %v5297_v20 = vrot.slane %v5249_v56, 3  ;;  %v5298_v11 = vrot.slane %v5250_v46, 3  ;;  %v10158_v56 = vld [vmem:[#allocation45_spill] sm:$0xff] }
 0x204   : > { %v5300_v32 = vrot.slane %v5251_v26, 3  ;;  %v5390_v43 = vmul.f32 %v8303_v51, %v8278_v37  ;;  %v5391_v24 = vmul.f32 %v8303_v51, %v5370_v35  ;;  %v5437_v45 = vrot.slane %v5389_v61, 4  ;;  %v10160_v46 = vld [vmem:[#allocation37_spill] sm:$0xff] }
 0x205   : > { %v5299_v31 = vsel %vm2847_vm11, %v5297_v20, %v5298_v11  ;;  %v547_v40 = vadd.f32 %v10153_v47, %v10152_v12  ;;  %v10155_v60 = vrot.slane %v10154_v55, 1  ;;  %v10157_v7 = vrot.slane %v10156_v54, 1  ;;  %v10162_v47 = vld [vmem:[#allocation36_spill] sm:$0xff]  ;;  %v10163_v55 = vld [vmem:[#allocation53_spill] sm:$0xff] }
 0x206   : > { %v10159_v1 = vrot.slane %v10158_v56, 2  ;;  %v10161_v30 = vrot.slane %v10160_v46, 2  ;;  %v5301_v35 = vsel %vm2847_vm11, %v5298_v11, %v5300_v32  ;;  %v5353_v26 = vadd.f32 %v5299_v31, %v5213_v53  ;;  %v8343_v56 = vld [vmem:[%s9782_s4 + $0x1] ss:$0 sm:$0xff]  ;;  %v10165_v11 = vld [vmem:[#allocation46_spill] sm:$0xff]  ;;  %v10168_v46 = vld [vmem:[#allocation48_spill] sm:$0xff] }
 0x207   : > { %v3187_v5 = vsel %vm1236_vm8, %v10157_v7, %v10155_v60  ;;  %v5438_v61 = vrot.slane %v5390_v43, 4  ;;  %v5440_v20 = vrot.slane %v5391_v24, 4  ;;  %v5354_v41 = vadd.f32 %v5301_v35, %v5214_v58  ;;  %v6292_v32 = vld [vmem:[#allocation2 + $0x78] sm:$0xff] }
 0x208   : > { %v3327_v4 = vsel %vm1393_vm9, %v10161_v30, %v10159_v1  ;;  %v602_v25 = vmax.f32 %v547_v40, 0.0  ;;  %v3238_v36 = vadd.f32 %v3187_v5, %v10162_v47  ;;  %v3379_v54 = vadd.f32 %v10164_v2, %v10163_v55  ;;  %v8350_v2 = vld [vmem:[%s9783_s5] sm:$0xff]  }
 0x209   : > { %v5439_v60 = vsel %vm399_vm0, %v5437_v45, %v5438_v61  ;;  %v5441_v7 = vsel %vm399_vm0, %v5438_v61, %v5440_v20  ;;  %v3466_v53 = vrot.slane %v10165_v11, 3  ;;  %v3556_v58 = vmul.f32 %v6292_v32, %v6570_v15  ;;  %v10166_v45 = vld [vmem:[#allocation38_spill] sm:$0xff]  ;;  %v8358_v20 = vld [vmem:[#allocation2 + $0xa8] sm:$0xff]  ;;  %6181 = vmatprep.subr.bf16.mxu1 %v8350_v2 }
 0x20a   : > { %v5493_v43 = vadd.f32 %v5439_v60, %v5353_v26  ;;  %v5494_v24 = vadd.f32 %v5441_v7, %v5354_v41  ;;  %v650_v31 = vmin.f32 %v602_v25, 6.0  ;;  %v3378_v40 = vadd.f32 %v3327_v4, %v3238_v36  ;;  %v10170_v60 = vld [vmem:[#allocation39_spill] sm:$0xff] }
 0x20b   : > { %v10167_v5 = vrot.slane %v10166_v45, 3  ;;  %v10169_v30 = vrot.slane %v10168_v46, 3  ;;  %v3606_v61 = vrot.slane %v3556_v58, 4  ;;  %v3695_v41 = vmul.f32 %v8358_v20, %v6599_v29  ;;  %v4006_v45 = vld [vmem:[#allocation2 + $0x98] sm:$0xf8] }
 0x20c   : > { %v5516_v36 = vadd.f32 %v8343_v56, %v5493_v43  ;;  %v5517_v25 = vadd.f32 %v8343_v56, %v5494_v24  ;;  %v770_v4 = vsel %vm8089_vm5, %v650_v31, 0.0  ;;  %v10171_v7 = vrot.slane %v10170_v60, 4 }
 0x20d   : > { %v3467_v1 = vsel %vm2847_vm11, %v10167_v5, %v3466_v53  ;;  %v3469_v35 = vsel %vm2847_vm11, %v3466_v53, %v10169_v30  ;;  %v936_v47 = vrot.slane %v770_v4, 6  ;;  %v10172_v53 = vld [vmem:[#allocation50_spill] sm:$0xff]  ;;  %v3748_v14 = vmul.f32 %v8358_v20, %v6579_v18 }
 0x20e   : > { %v3518_v26 = vadd.f32 %v3467_v1, %v3378_v40  ;;  %v3519_v55 = vadd.f32 %v3469_v35, %v3379_v54  ;;  %v3607_v11 = vsel %vm399_vm0, %v10171_v7, %v3606_v61  ;;  %v10173_v32 = vrot.slane %v10172_v53, 4  ;;  %v10174_v1 = vld [vmem:[#allocation62_spill] sm:$0xff]  ;;  %v10177_v53 = vld [vmem:[#allocation61_spill] sm:$0xff] }
 0x20f   : > { %v5532_v43 = vmax.f32 %v5516_v36, 0.0  ;;  %v5533_v5 = vmax.f32 %v5517_v25, 0.0  ;;  %v937_v31 = vsel %vm871_vm4, %v8170_v48, %v936_v47  ;;  %1081 = vst [vmem:[#allocation2 + $0x208] sm:$0x3] %v936_v47  ;;  %v3888_v40 = vmul.f32 %v8358_v20, %v6603_v33  ;;  %v4007_v4 = vld [vmem:[#allocation2 + $0xb8] sm:$0x7] }
 0x210   : > { %v3609_v58 = vsel %vm399_vm0, %v3606_v61, %v10173_v32  ;;  %v3658_v24 = vadd.f32 %v3607_v11, %v3518_v26  ;;  %v3937_v46 = vrot.slane %v10174_v1, 2  ;;  %1079 = vst [vmem:[#allocation2 + $0x1f8] sm:$0xff] %v937_v31  ;;  %v10175_v61 = vld [vmem:[#allocation60_spill] sm:$0xff]  ;;  %v3798_v25 = vrot.slane %v3748_v14, 1  ;;  %v10176_v7 = vld [vmem:[#allocation74_spill] sm:$0xff]  ;;  %v10179_v1 = vld [vmem:[#allocation73_spill] sm:$0xff] }
 0x211   : > { %v3659_v54 = vadd.f32 %v3609_v58, %v3519_v55  ;;  %v5548_v30 = vmin.f32 %v5532_v43, 6.0  ;;  %v5549_v35 = vmin.f32 %v5533_v5, 6.0  ;;  %v3938_v60 = vrot.slane %v3888_v40, 2  ;;  %v4146_v47 = vld [vmem:[#allocation2 + $0x98] sm:$0xf0] }
 0x212   : > { %v3710_v36 = vadd.f32 %v10175_v61, %v3658_v24  ;;  %v3940_v11 = vrot.slane %v10176_v7, 2  ;;  %v4027_v48 = vmul.f32 %v10143_v16, %v4006_v45  ;;  %v10178_v32 = vrot.slane %v10177_v53, 1  ;;  %v4147_v14 = vld [vmem:[#allocation2 + $0xb8] sm:$0xf] }
 0x213   : > { %v3711_v26 = vadd.f32 %v3695_v41, %v3659_v54  ;;  %v5564_v55 = vpack.c.bf16 %v5549_v35, %v5548_v30  ;;  %v10180_v43 = vrot.slane %v10179_v1, 1  ;;  %v4028_v24 = vmul.f32 %v8358_v20, %v10143_v16 }
 0x214   : > { %v3799_v58 = vsel %vm1236_vm8, %v10178_v32, %v3798_v25  ;;  %v3939_v54 = vsel %vm1393_vm9, %v3937_v46, %v3938_v60  ;;  %v3941_v45 = vsel %vm1393_vm9, %v3938_v60, %v3940_v11  ;;  %v4029_v40 = vmul.f32 %v10143_v16, %v4007_v4  ;;  %v4478_v11 = vld [vmem:[#allocation2 + $0xc8] sm:$0xfc] }
 0x215   : > { %v3801_v5 = vsel %vm1236_vm8, %v3798_v25, %v10180_v43  ;;  %v3850_v41 = vadd.f32 %v3799_v58, %v3710_v36  ;;  %6165 = vmatprep.mubr.bf16.mxu1 %v5564_v55  ;;  %v4077_v30 = vrot.slane %v4027_v48, 3  ;;  %v4078_v35 = vrot.slane %v4028_v24, 3  ;;  %v4338_v36 = vld [vmem:[#allocation2 + $0xc8] sm:$0xfe] }
 0x216   : > { %v3851_v31 = vadd.f32 %v3801_v5, %v3711_v26  ;;  %v4167_v61 = vmul.f32 %v8209_v19, %v4146_v47  ;;  %v4168_v25 = vmul.f32 %v8358_v20, %v8209_v19  ;;  %v4169_v32 = vmul.f32 %v8209_v19, %v4147_v14  ;;  %v4339_v26 = vld [vmem:[#allocation2 + $0xe8] sm:$0x1] }
 0x217   : > { %v3990_v7 = vadd.f32 %v3939_v54, %v3850_v41  ;;  %v4079_v46 = vsel %vm2847_vm11, %v4077_v30, %v4078_v35  ;;  %v4080_v58 = vrot.slane %v4029_v40, 3  ;;  %v4306_v4 = vmul.f32 %v8272_v9, %v8214_v22  ;;  %v4479_v41 = vld [vmem:[#allocation2 + $0xe8] sm:$0x3]  ;;  %v4618_v40 = vld [vmem:[#allocation2 + $0xc8] sm:$0xf8] }
 0x218   : > { %v3991_v53 = vadd.f32 %v3941_v45, %v3851_v31  ;;  %v4217_v60 = vrot.slane %v4167_v61, 4  ;;  %v4218_v55 = vrot.slane %v4168_v25, 4  ;;  %v4220_v47 = vrot.slane %v4169_v32, 4 }
 0x219   : > { %v4130_v48 = vadd.f32 %v4079_v46, %v3990_v7  ;;  %v4307_v1 = vmul.f32 %v8278_v37, %v8214_v22  ;;  %v4081_v43 = vsel %vm2847_vm11, %v4078_v35, %v4080_v58  ;;  %v4359_v5 = vmul.f32 %v8232_v49, %v4338_v36  ;;  %v4619_v46 = vld [vmem:[#allocation2 + $0xe8] sm:$0x7] }
 0x21a   : > { %v4360_v24 = vmul.f32 %v8278_v37, %v8232_v49  ;;  %v4361_v14 = vmul.f32 %v8232_v49, %v4339_v26  ;;  %v4131_v31 = vadd.f32 %v4081_v43, %v3991_v53  ;;  %v4219_v9 = vsel %vm399_vm0, %v4217_v60, %v4218_v55  ;;  %v4758_v53 = vld [vmem:[#allocation2 + $0xc8] sm:$0xf0] }
 0x21b   : > { %v4221_v54 = vsel %vm399_vm0, %v4218_v55, %v4220_v47  ;;  %v4499_v45 = vmul.f32 %v8236_v0, %v4478_v11  ;;  %v4270_v30 = vadd.f32 %v4219_v9, %v4130_v48  ;;  %v4409_v61 = vrot.slane %v4359_v5, 1 }
 0x21c   : > { %v4410_v7 = vrot.slane %v4360_v24, 1  ;;  %v4412_v35 = vrot.slane %v4361_v14, 1  ;;  %v4271_v25 = vadd.f32 %v4221_v54, %v4131_v31  ;;  %v4500_v32 = vmul.f32 %v8278_v37, %v8236_v0  ;;  %v4759_v24 = vld [vmem:[#allocation2 + $0xe8] sm:$0xf] }
 0x21d   : > { %v4501_v36 = vmul.f32 %v8236_v0, %v4479_v41  ;;  %v4549_v26 = vrot.slane %v4499_v45, 2  ;;  %v4322_v58 = vadd.f32 %v4306_v4, %v4270_v30  ;;  %v4639_v11 = vmul.f32 %v8240_v3, %v4618_v40  ;;  %v8421_v4 = vld [vmem:[#allocation2 + $0xf8] sm:$0xff] }
 0x21e   : > { %v4411_v60 = vsel %vm1236_vm8, %v4409_v61, %v4410_v7  ;;  %v4413_v55 = vsel %vm1236_vm8, %v4410_v7, %v4412_v35  ;;  %v4323_v48 = vadd.f32 %v4307_v1, %v4271_v25  ;;  %v4550_v47 = vrot.slane %v4500_v32, 2  ;;  %v8428_v25 = vld [vmem:[#allocation2 + $0x108] sm:$0xff]  ;;  %v4951_v32 = vld [vmem:[#allocation2 + $0xf8] sm:$0xfe] }
 0x21f   : > { %v4552_v43 = vrot.slane %v4501_v36, 2  ;;  %v4640_v5 = vmul.f32 %v8278_v37, %v8240_v3  ;;  %v4462_v14 = vadd.f32 %v4411_v60, %v4322_v58  ;;  %v4641_v41 = vmul.f32 %v8240_v3, %v4619_v46  ;;  %v4952_v58 = vld [vmem:[#allocation2 + $0x118] sm:$0x1]  ;;  %v5091_v60 = vld [vmem:[#allocation2 + $0xf8] sm:$0xfc] }
 0x220   : > { %v4689_v31 = vrot.slane %v4639_v11, 3  ;;  %v4779_v9 = vmul.f32 %v8244_v10, %v4758_v53  ;;  %v4463_v54 = vadd.f32 %v4413_v55, %v4323_v48  ;;  %v4551_v45 = vsel %vm1393_vm9, %v4549_v26, %v4550_v47 }
 0x221   : > { %v4553_v40 = vsel %vm1393_vm9, %v4550_v47, %v4552_v43  ;;  %v4690_v1 = vrot.slane %v4640_v5, 3  ;;  %v4602_v30 = vadd.f32 %v4551_v45, %v4462_v14  ;;  %v4692_v61 = vrot.slane %v4641_v41, 3  ;;  %v5092_v14 = vld [vmem:[#allocation2 + $0x118] sm:$0x3]  ;;  %v5231_v45 = vld [vmem:[#allocation2 + $0xf8] sm:$0xf8] }
 0x222   : > { %v4780_v7 = vmul.f32 %v8278_v37, %v8244_v10  ;;  %v4781_v35 = vmul.f32 %v8244_v10, %v4759_v24  ;;  %v4603_v36 = vadd.f32 %v4553_v40, %v4463_v54  ;;  %v4829_v53 = vrot.slane %v4779_v9, 4 }
 0x223   : > { %v4691_v46 = vsel %vm2847_vm11, %v4689_v31, %v4690_v1  ;;  %v4919_v26 = vmul.f32 %v8250_v34, %v8421_v4  ;;  %v4693_v55 = vsel %vm2847_vm11, %v4690_v1, %v4692_v61  ;;  %v4920_v43 = vmul.f32 %v8250_v34, %v8428_v25 }
 0x224   : > { %v4742_v11 = vadd.f32 %v4691_v46, %v4602_v30  ;;  %v4830_v48 = vrot.slane %v4780_v7, 4  ;;  %v4832_v47 = vrot.slane %v4781_v35, 4  ;;  %v4743_v37 = vadd.f32 %v4693_v55, %v4603_v36  ;;  %v5232_v46 = vld [vmem:[#allocation2 + $0x118] sm:$0x7] }
 0x225   : > { %v4972_v5 = vmul.f32 %v8254_v44, %v4951_v32  ;;  %v4973_v24 = vmul.f32 %v8254_v44, %v8428_v25  ;;  %v4974_v9 = vmul.f32 %v8254_v44, %v4952_v58  ;;  %v5112_v54 = vmul.f32 %v8294_v50, %v5091_v60  ;;  %v5371_v60 = vld [vmem:[#allocation2 + $0xf8] sm:$0xf0] }
 0x226   : > { %v4831_v41 = vsel %vm399_vm0, %v4829_v53, %v4830_v48  ;;  %v4833_v31 = vsel %vm399_vm0, %v4830_v48, %v4832_v47  ;;  %v5113_v35 = vmul.f32 %v8294_v50, %v8428_v25  ;;  %v5114_v32 = vmul.f32 %v8294_v50, %v5092_v14 }
 0x227   : > { %v4882_v40 = vadd.f32 %v4831_v41, %v4742_v11  ;;  %v4883_v1 = vadd.f32 %v4833_v31, %v4743_v37  ;;  %v5022_v30 = vrot.slane %v4972_v5, 1  ;;  %v5023_v61 = vrot.slane %v4973_v24, 1 }
 0x228   : > { %v5025_v7 = vrot.slane %v4974_v9, 1  ;;  %v5162_v36 = vrot.slane %v5112_v54, 2  ;;  %v5252_v58 = vmul.f32 %v8308_v17, %v5231_v45  ;;  %v5163_v47 = vrot.slane %v5113_v35, 2  ;;  %v5372_v9 = vld [vmem:[#allocation2 + $0x118] sm:$0xf] }
 0x229   : > { %v4935_v53 = vadd.f32 %v4919_v26, %v4882_v40  ;;  %v4936_v55 = vadd.f32 %v4920_v43, %v4883_v1  ;;  %v5024_v48 = vsel %vm1236_vm8, %v5022_v30, %v5023_v61  ;;  %v5165_v37 = vrot.slane %v5114_v32, 2 }
 0x22a   : > { %v5026_v11 = vsel %vm1236_vm8, %v5023_v61, %v5025_v7  ;;  %v5253_v5 = vmul.f32 %v8308_v17, %v8428_v25  ;;  %v5254_v14 = vmul.f32 %v8308_v17, %v5232_v46  ;;  %v5302_v31 = vrot.slane %v5252_v58, 3 }
 0x22b   : > { %v5075_v24 = vadd.f32 %v5024_v48, %v4935_v53  ;;  %v5076_v41 = vadd.f32 %v5026_v11, %v4936_v55  ;;  %v5164_v26 = vsel %vm1393_vm9, %v5162_v36, %v5163_v47  ;;  %v5166_v43 = vsel %vm1393_vm9, %v5163_v47, %v5165_v37 }
 0x22c   : > { %v5303_v54 = vrot.slane %v5253_v5, 3  ;;  %v5392_v45 = vmul.f32 %v8303_v51, %v5371_v60  ;;  %v5305_v30 = vrot.slane %v5254_v14, 3  ;;  %v5393_v61 = vmul.f32 %v8303_v51, %v8428_v25  ;;  %v10183_v14 = vld [vmem:[#allocation68_spill] sm:$0xff] }
 0x22d   : > { %v5215_v40 = vadd.f32 %v5164_v26, %v5075_v24  ;;  %v5216_v1 = vadd.f32 %v5166_v43, %v5076_v41  ;;  %v5394_v35 = vmul.f32 %v8303_v51, %v5372_v9  ;;  %v666_v55 = vadd.s32 11, %v10034_v28  ;;  %v10185_v9 = vld [vmem:[#allocation54_spill] sm:$0xff] }
 0x22e   : > { %v5304_v7 = vsel %vm2847_vm11, %v5302_v31, %v5303_v54  ;;  %v5442_v32 = vrot.slane %v5392_v45, 4  ;;  %v5306_v46 = vsel %vm2847_vm11, %v5303_v54, %v5305_v30  ;;  %v5443_v36 = vrot.slane %v5393_v61, 4  ;;  %v10187_v45 = vld [vmem:[#allocation56_spill] sm:$0xff] }
 0x22f   : > { %v5355_v53 = vadd.f32 %v5304_v7, %v5215_v40  ;;  %v5356_v48 = vadd.f32 %v5306_v46, %v5216_v1  ;;  %v5445_v58 = vrot.slane %v5394_v35, 4  ;;  %v553_v60 = vadd.f32 %v7908_v42, %v10152_v12  ;;  %v10188_v35 = vld [vmem:[#allocation69_spill] sm:$0xff] }
 0x230   : > { %v5444_v11 = vsel %vm399_vm0, %v5442_v32, %v5443_v36  ;;  %vm678_vm6 = vcmp.ge.s32.totalorder %v666_v55, 2  ;;  %vm690_vm7 = vcmp.lt.s32.totalorder %v666_v55, 18  ;;  %v557_v28 = vadd.f32 %v7925_v59, %v10152_v12  ;;  %v10190_v12 = vld [vmem:[#allocation55_spill] sm:$0xff] }
 0x231   : > { %v5446_v47 = vsel %vm399_vm0, %v5443_v36, %v5445_v58  ;;  %v5495_v37 = vadd.f32 %v5444_v11, %v5355_v53  ;;  %vm8465_vm10 = vmand %vm678_vm6, %vm690_vm7  ;;  %v604_v24 = vmax.f32 %v553_v60, 0.0  ;;  %v10184_v31 = vrot.slane %v10183_v14, 1  ;;  %v10192_v53 = vld [vmem:[#allocation72_spill] sm:$0xff]  ;;  %v10193_v36 = vld [vmem:[#allocation71_spill] sm:$0xff] }
 0x232   : > { %v5496_v41 = vadd.f32 %v5446_v47, %v5356_v48  ;;  %v10186_v42 = vrot.slane %v10185_v9, 1  ;;  %v606_v30 = vmax.f32 %v557_v28, 0.0  ;;  %v10189_v59 = vrot.slane %v10188_v35, 2 }
 0x233   : > { %v5518_v43 = vadd.f32 %v8343_v56, %v5495_v37  ;;  %v652_v54 = vmin.f32 %v604_v24, 6.0  ;;  %v10191_v32 = vrot.slane %v10190_v12, 2  ;;  %v3381_v55 = vadd.f32 %v10193_v36, %v10192_v53  ;;  %v10194_v37 = vld [vmem:[#allocation70_spill] sm:$0xff] }
 0x234   : > { %v3192_v26 = vsel %vm1236_vm8, %v10186_v42, %v10184_v31  ;;  %v5519_v1 = vadd.f32 %v8343_v56, %v5496_v41  ;;  %v654_v60 = vmin.f32 %v606_v30, 6.0  ;;  %v3471_v24 = vrot.slane %v10194_v37, 3  ;;  %v8493_v31 = vld [vmem:[#allocation2 + $0xd8] sm:$0xff]  ;;  %v4008_v42 = vld [vmem:[#allocation2 + $0xc8] sm:$0xf8] }
 0x235   : > { %v3240_v40 = vadd.f32 %v3192_v26, %v10187_v45  ;;  %v5534_v61 = vmax.f32 %v5518_v43, 0.0  ;;  %v772_v7 = vsel %vm8465_vm10, %v652_v54, 0.0  ;;  %v3332_v46 = vsel %vm1393_vm9, %v10191_v32, %v10189_v59  ;;  %v10195_v43 = vld [vmem:[#allocation57_spill] sm:$0xff]  ;;  %v4009_v59 = vld [vmem:[#allocation2 + $0xe8] sm:$0x7]  ;;  %v10199_v53 = vld [vmem:[#allocation82_spill] sm:$0xff] }
 0x236   : > { %v5535_v48 = vmax.f32 %v5519_v1, 0.0  ;;  %v939_v58 = vrot.slane %v772_v7, 6  ;;  %v774_v28 = vsel %vm8465_vm10, %v654_v60, 0.0  ;;  %v3559_v14 = vmul.f32 %v8358_v20, %v6570_v15  ;;  %v6283_v20 = vld [vmem:[%s9783_s5 + $0x8] sm:$0xff]  }
 0x237   : > { %v5550_v11 = vmin.f32 %v5534_v61, 6.0  ;;  %v3380_v47 = vadd.f32 %v3332_v46, %v3240_v40  ;;  %v3697_v9 = vmul.f32 %v8493_v31, %v6599_v29  ;;  %v942_v26 = vrot.slane %v774_v28, 6  ;;  %v10197_v40 = vld [vmem:[#allocation40_spill] sm:$0xff] }
 0x238   : > { %v5551_v41 = vmin.f32 %v5535_v48, 6.0  ;;  %1083 = vst [vmem:[#allocation2 + $0x218] sm:$0xfc] %v939_v58  ;;  %v10196_v54 = vrot.slane %v10195_v43, 3  ;;  %v10198_v1 = vrot.slane %v10197_v40, 3  ;;  %v3611_v35 = vrot.slane %v3559_v14, 4 }
 0x239   : > { %v943_v12 = vsel %vm871_vm4, %v939_v58, %v942_v26  ;;  %1087 = vst [vmem:[#allocation2 + $0x238] sm:$0x3] %v942_v26  ;;  %v3751_v32 = vmul.f32 %v8493_v31, %v6579_v18  ;;  %v3891_v46 = vmul.f32 %v8493_v31, %v6603_v33  ;;  %v3942_v36 = vrot.slane %v10199_v53, 2  ;;  %v4148_v48 = vld [vmem:[#allocation2 + $0xc8] sm:$0xf0] }
 0x23a   : > { %v3472_v45 = vsel %vm2847_vm11, %v10196_v54, %v3471_v24  ;;  %v3474_v30 = vsel %vm2847_vm11, %v3471_v24, %v10198_v1  ;;  %v5565_v5 = vpack.c.bf16 %v5551_v41, %v5550_v11  ;;  %1085 = vst [vmem:[#allocation2 + $0x228] sm:$0xff] %v943_v12  ;;  %v10204_v24 = vld [vmem:[#allocation86_spill] sm:$0xff]  ;;  %v4030_v28 = vmul.f32 %v10143_v16, %v4008_v42  ;;  %v6284_v42 = vld [vmem:[%s9783_s5 + $0x10] sm:$0xff]  }
 0x23b   : > { %v3520_v61 = vadd.f32 %v3472_v45, %v3380_v47  ;;  %v3521_v7 = vadd.f32 %v3474_v30, %v3381_v55  ;;  %v10200_v55 = vld [vmem:[#allocation58_spill] sm:$0xff]  ;;  %v10202_v47 = vld [vmem:[#allocation41_spill] sm:$0xff]  ;;  %v3945_v41 = vrot.slane %v10204_v24, 2  ;;  %v3803_v43 = vrot.slane %v3751_v32, 1  ;;  %v4149_v30 = vld [vmem:[#allocation2 + $0xe8] sm:$0xf] }
 0x23c   : > { %6166 = vmatmul.mubr.bf16.vlgmr.msra.gmra.mrb[0].mxu1 %v5565_v5  ;;  %v10201_v60 = vrot.slane %v10200_v55, 4  ;;  %v10203_v37 = vrot.slane %v10202_v47, 4  ;;  %v3943_v54 = vrot.slane %v3891_v46, 2  ;;  %v4031_v45 = vmul.f32 %v8493_v31, %v10143_v16  ;;  %v10206_v12 = vld [vmem:[#allocation81_spill] sm:$0xff]  ;;  %v10208_v46 = vld [vmem:[#allocation20_spill] sm:$0xff] }
 0x23d   : > { %6182 = vmatpush3.bf16.msra.mxu1 %v8350_v2  ;;  %v4032_v40 = vmul.f32 %v10143_v16, %v4009_v59  ;;  %v4082_v1 = vrot.slane %v4030_v28, 3  ;;  %v4170_v5 = vmul.f32 %v8209_v19, %v4148_v48  ;;  %v10207_v32 = vrot.slane %v10206_v12, 1  ;;  %v4340_v24 = vld [vmem:[#allocation2 + $0xf8] sm:$0xfe]  ;;  %v4341_v28 = vld [vmem:[#allocation2 + $0x118] sm:$0x1] }
 0x23e   : > { %v3612_v11 = vsel %vm399_vm0, %v10201_v60, %v3611_v35  ;;  %v3614_v58 = vsel %vm399_vm0, %v3611_v35, %v10203_v37  ;;  %6183 = vmatprep.subr.bf16.mxu1 %v6283_v20  ;;  %v10209_v53 = vrot.slane %v10208_v46, 1  ;;  %v3944_v55 = vsel %vm1393_vm9, %v3942_v36, %v3943_v54 }
 0x23f   : > { %v3660_v14 = vadd.f32 %v3612_v11, %v3520_v61  ;;  %v3661_v26 = vadd.f32 %v3614_v58, %v3521_v7  ;;  %v10205_v61 = vld [vmem:[#allocation80_spill] sm:$0xff]  ;;  %v3804_v2 = vsel %vm1236_vm8, %v10207_v32, %v3803_v43  ;;  %v3946_v48 = vsel %vm1393_vm9, %v3943_v54, %v3945_v41 }
 0x240   : > { %v3806_v59 = vsel %vm1236_vm8, %v3803_v43, %v10209_v53  ;;  %v4083_v60 = vrot.slane %v4031_v45, 3  ;;  %v4085_v11 = vrot.slane %v4032_v40, 3  ;;  %v4171_v58 = vmul.f32 %v8493_v31, %v8209_v19 }
 0x241   : > { %v3712_v7 = vadd.f32 %v10205_v61, %v3660_v14  ;;  %v3713_v35 = vadd.f32 %v3697_v9, %v3661_v26  ;;  %v4172_v9 = vmul.f32 %v8209_v19, %v4149_v30  ;;  %6184 = vmatpush3.bf16.msra.mxu1 %v6283_v20  ;;  %v4222_v43 = vrot.slane %v4170_v5, 4  ;;  %v4480_v61 = vld [vmem:[#allocation2 + $0xf8] sm:$0xfc]  ;;  %v4481_v5 = vld [vmem:[#allocation2 + $0x118] sm:$0x3] }
 0x242   : > { %v4084_v14 = vsel %vm2847_vm11, %v4082_v1, %v4083_v60  ;;  %v4086_v26 = vsel %vm2847_vm11, %v4083_v60, %v4085_v11  ;;  %v4308_v36 = vmul.f32 %v8421_v4, %v8214_v22  ;;  %6185 = vmatprep.subr.bf16.mxu1 %v6284_v42  ;;  %v4223_v45 = vrot.slane %v4171_v58, 4  ;;  %v4760_v58 = vld [vmem:[#allocation2 + $0xf8] sm:$0xf0] }
 0x243   : > { %v3852_v47 = vadd.f32 %v3804_v2, %v3712_v7  ;;  %v3853_v37 = vadd.f32 %v3806_v59, %v3713_v35  ;;  %v4225_v40 = vrot.slane %v4172_v9, 4  ;;  %v4309_v30 = vmul.f32 %v8428_v25, %v8214_v22  ;;  %v4620_v2 = vld [vmem:[#allocation2 + $0xf8] sm:$0xf8] }
 0x244   : > { %v4362_v7 = vmul.f32 %v8232_v49, %v4340_v24  ;;  %v4363_v20 = vmul.f32 %v8428_v25, %v8232_v49  ;;  %v4364_v1 = vmul.f32 %v8232_v49, %v4341_v28  ;;  %v4224_v4 = vsel %vm399_vm0, %v4222_v43, %v4223_v45 }
 0x245   : > { %v3992_v41 = vadd.f32 %v3944_v55, %v3852_v47  ;;  %v3993_v54 = vadd.f32 %v3946_v48, %v3853_v37  ;;  %v4226_v32 = vsel %vm399_vm0, %v4223_v45, %v4225_v40  ;;  %6186 = vmatpush3.bf16.msra.mxu1 %v6284_v42  ;;  %v4502_v55 = vmul.f32 %v8236_v0, %v4480_v61  ;;  %v4621_v37 = vld [vmem:[#allocation2 + $0x118] sm:$0x7] }
 0x246   : > { %v4414_v46 = vrot.slane %v4362_v7, 1  ;;  %v4415_v53 = vrot.slane %v4363_v20, 1  ;;  %v4417_v59 = vrot.slane %v4364_v1, 1  ;;  %v4503_v11 = vmul.f32 %v8428_v25, %v8236_v0  ;;  %v8563_v20 = vld [vmem:[#allocation2 + $0x128] sm:$0xff] }
 0x247   : > { %v4132_v35 = vadd.f32 %v4084_v14, %v3992_v41  ;;  %v4133_v12 = vadd.f32 %v4086_v26, %v3993_v54  ;;  %v4504_v47 = vmul.f32 %v8236_v0, %v4481_v5  ;;  %v4554_v28 = vrot.slane %v4502_v55, 2  ;;  %v4761_v54 = vld [vmem:[#allocation2 + $0x118] sm:$0xf] }
 0x248   : > { %v4416_v9 = vsel %vm1236_vm8, %v4414_v46, %v4415_v53  ;;  %v4418_v24 = vsel %vm1236_vm8, %v4415_v53, %v4417_v59  ;;  %v4642_v42 = vmul.f32 %v8240_v3, %v4620_v2  ;;  %v4555_v43 = vrot.slane %v4503_v11, 2  ;;  %v8570_v2 = vld [vmem:[#allocation2 + $0x138] sm:$0xff]  ;;  %v4953_v46 = vld [vmem:[#allocation2 + $0x128] sm:$0xfe] }
 0x249   : > { %v4272_v48 = vadd.f32 %v4224_v4, %v4132_v35  ;;  %v4273_v60 = vadd.f32 %v4226_v32, %v4133_v12  ;;  %v4557_v41 = vrot.slane %v4504_v47, 2  ;;  %v4643_v45 = vmul.f32 %v8428_v25, %v8240_v3 }
 0x24a   : > { %v4644_v40 = vmul.f32 %v8240_v3, %v4621_v37  ;;  %v4694_v61 = vrot.slane %v4642_v42, 3  ;;  %v4782_v7 = vmul.f32 %v8244_v10, %v4760_v58  ;;  %v4556_v35 = vsel %vm1393_vm9, %v4554_v28, %v4555_v43 }
 0x24b   : > { %v4324_v14 = vadd.f32 %v4308_v36, %v4272_v48  ;;  %v4325_v26 = vadd.f32 %v4309_v30, %v4273_v60  ;;  %v4558_v36 = vsel %vm1393_vm9, %v4555_v43, %v4557_v41  ;;  %v4695_v30 = vrot.slane %v4643_v45, 3  ;;  %v4954_v60 = vld [vmem:[#allocation2 + $0x148] sm:$0x1]  ;;  %v5233_v45 = vld [vmem:[#allocation2 + $0x128] sm:$0xf8] }
 0x24c   : > { %v4697_v12 = vrot.slane %v4644_v40, 3  ;;  %v4783_v4 = vmul.f32 %v8428_v25, %v8244_v10  ;;  %v4784_v32 = vmul.f32 %v8244_v10, %v4761_v54  ;;  %v4834_v55 = vrot.slane %v4782_v7, 4 }
 0x24d   : > { %v4464_v1 = vadd.f32 %v4416_v9, %v4324_v14  ;;  %v4465_v5 = vadd.f32 %v4418_v24, %v4325_v26  ;;  %v4921_v48 = vmul.f32 %v8250_v34, %v8563_v20  ;;  %v4696_v11 = vsel %vm2847_vm11, %v4694_v61, %v4695_v30  ;;  %v5093_v9 = vld [vmem:[#allocation2 + $0x128] sm:$0xfc]  ;;  %v5094_v14 = vld [vmem:[#allocation2 + $0x148] sm:$0x3] }
 0x24e   : > { %v4698_v47 = vsel %vm2847_vm11, %v4695_v30, %v4697_v12  ;;  %v4835_v37 = vrot.slane %v4783_v4, 4  ;;  %v4837_v58 = vrot.slane %v4784_v32, 4  ;;  %v4922_v28 = vmul.f32 %v8250_v34, %v8570_v2  ;;  %v5234_v12 = vld [vmem:[#allocation2 + $0x148] sm:$0x7] }
 0x24f   : > { %v4604_v53 = vadd.f32 %v4556_v35, %v4464_v1  ;;  %v4605_v59 = vadd.f32 %v4558_v36, %v4465_v5  ;;  %v4975_v42 = vmul.f32 %v8254_v44, %v4953_v46  ;;  %v4976_v41 = vmul.f32 %v8254_v44, %v8570_v2 }
 0x250   : > { %v4836_v26 = vsel %vm399_vm0, %v4834_v55, %v4835_v37  ;;  %v4838_v43 = vsel %vm399_vm0, %v4835_v37, %v4837_v58  ;;  %v4977_v54 = vmul.f32 %v8254_v44, %v4954_v60  ;;  %v5115_v1 = vmul.f32 %v8294_v50, %v5093_v9 }
 0x251   : > { %v4744_v25 = vadd.f32 %v4696_v11, %v4604_v53  ;;  %v4745_v24 = vadd.f32 %v4698_v47, %v4605_v59  ;;  %v5027_v7 = vrot.slane %v4975_v42, 1  ;;  %v5028_v5 = vrot.slane %v4976_v41, 1  ;;  %v5373_v59 = vld [vmem:[#allocation2 + $0x128] sm:$0xf0] }
 0x252   : > { %v5030_v35 = vrot.slane %v4977_v54, 1  ;;  %v5116_v36 = vmul.f32 %v8294_v50, %v8570_v2  ;;  %v5117_v30 = vmul.f32 %v8294_v50, %v5094_v14  ;;  %v5167_v46 = vrot.slane %v5115_v1, 2 }
 0x253   : > { %v4884_v40 = vadd.f32 %v4836_v26, %v4744_v25  ;;  %v4885_v61 = vadd.f32 %v4838_v43, %v4745_v24  ;;  %v5255_v53 = vmul.f32 %v8308_v17, %v5233_v45  ;;  %v5029_v55 = vsel %vm1236_vm8, %v5027_v7, %v5028_v5  ;;  %v5374_v24 = vld [vmem:[#allocation2 + $0x148] sm:$0xf] }
 0x254   : > { %v5031_v60 = vsel %vm1236_vm8, %v5028_v5, %v5030_v35  ;;  %v5168_v11 = vrot.slane %v5116_v36, 2  ;;  %v5170_v47 = vrot.slane %v5117_v30, 2  ;;  %v5256_v9 = vmul.f32 %v8308_v17, %v8570_v2  ;;  %v10210_v5 = vld [vmem:[#allocation83_spill] sm:$0xff] }
 0x255   : > { %v4937_v4 = vadd.f32 %v4921_v48, %v4884_v40  ;;  %v4938_v32 = vadd.f32 %v4922_v28, %v4885_v61  ;;  %v5257_v25 = vmul.f32 %v8308_v17, %v5234_v12  ;;  %v6285_v48 = vld [vmem:[%s9783_s5 + $0x18] sm:$0xff]   ;;  %v6286_v28 = vld [vmem:[%s9783_s5 + $0x20] sm:$0xff]   ;;  %v5307_v26 = vrot.slane %v5255_v53, 3 }
 0x256   : > { %v5169_v42 = vsel %vm1393_vm9, %v5167_v46, %v5168_v11  ;;  %v5171_v14 = vsel %vm1393_vm9, %v5168_v11, %v5170_v47  ;;  %v5395_v43 = vmul.f32 %v8303_v51, %v5373_v59  ;;  %v5308_v45 = vrot.slane %v5256_v9, 3  ;;  %6187 = vmatprep.subr.bf16.mxu1 %v6285_v48  ;;  %v10212_v36 = vld [vmem:[#allocation75_spill] sm:$0xff]  ;;  %v10215_v59 = vld [vmem:[#allocation84_spill] sm:$0xff] }
 0x257   : > { %v5077_v37 = vadd.f32 %v5029_v55, %v4937_v4  ;;  %v5078_v58 = vadd.f32 %v5031_v60, %v4938_v32  ;;  %v5310_v40 = vrot.slane %v5257_v25, 3  ;;  %v5396_v61 = vmul.f32 %v8303_v51, %v8570_v2  ;;  %6188 = vmatpush3.bf16.msra.mxu1 %v6285_v48  ;;  %v10214_v46 = vld [vmem:[#allocation79_spill] sm:$0xff]  ;;  %v10217_v60 = vld [vmem:[#allocation76_spill] sm:$0xff] }
 0x258   : > { %v5397_v7 = vmul.f32 %v8303_v51, %v5374_v24  ;;  %v5447_v1 = vrot.slane %v5395_v43, 4  ;;  %v10211_v35 = vrot.slane %v10210_v5, 1  ;;  %v10213_v30 = vrot.slane %v10212_v36, 1  ;;  %6189 = vmatprep.subr.bf16.mxu1 %v6286_v28  ;;  %v10219_v24 = vld [vmem:[#allocation49_spill] sm:$0xff]  ;;  %v10220_v48 = vld [vmem:[#allocation47_spill] sm:$0xff]  ;;  %v8626_v5 = vld [vmem:[#allocation2 + $0x108] sm:$0xff] }
 0x259   : > { %v5217_v41 = vadd.f32 %v5169_v42, %v5077_v37  ;;  %v5218_v54 = vadd.f32 %v5171_v14, %v5078_v58  ;;  %v5309_v4 = vsel %vm2847_vm11, %v5307_v26, %v5308_v45  ;;  %v5311_v32 = vsel %vm2847_vm11, %v5308_v45, %v5310_v40  ;;  %v10221_v14 = vld [vmem:[#allocation85_spill] sm:$0xff] }
 0x25a   : > { %v3197_v12 = vsel %vm1236_vm8, %v10213_v30, %v10211_v35  ;;  %v10216_v55 = vrot.slane %v10215_v59, 2  ;;  %v10218_v11 = vrot.slane %v10217_v60, 2  ;;  %v5448_v58 = vrot.slane %v5396_v61, 4  ;;  %v10222_v35 = vld [vmem:[#allocation77_spill] sm:$0xff]  ;;  %v4010_v59 = vld [vmem:[#allocation2 + $0xf8] sm:$0xf8] }
 0x25b   : > { %v3242_v53 = vadd.f32 %v3197_v12, %v10214_v46  ;;  %v5357_v47 = vadd.f32 %v5309_v4, %v5217_v41  ;;  %v5358_v37 = vadd.f32 %v5311_v32, %v5218_v54  ;;  %v5450_v9 = vrot.slane %v5397_v7, 4  ;;  %6190 = vmatpush3.bf16.msra.mxu1 %v6286_v28 }
 0x25c   : > { %v3337_v51 = vsel %vm1393_vm9, %v10218_v11, %v10216_v55  ;;  %v3383_v42 = vadd.f32 %v10220_v48, %v10219_v24  ;;  %v3476_v26 = vrot.slane %v10221_v14, 3  ;;  %v3562_v43 = vmul.f32 %v8493_v31, %v6570_v15  ;;  %v10224_v31 = vld [vmem:[#allocation42_spill] sm:$0xff]  ;;  %v10231_v48 = vld [vmem:[#allocation93_spill] sm:$0xff] }
 0x25d   : > { %v3382_v25 = vadd.f32 %v3337_v51, %v3242_v53  ;;  %v5449_v45 = vsel %vm399_vm0, %v5447_v1, %v5448_v58  ;;  %v5451_v40 = vsel %vm399_vm0, %v5448_v58, %v5450_v9  ;;  %v3699_v41 = vmul.f32 %v8626_v5, %v6599_v29  ;;  %v10226_v11 = vld [vmem:[#allocation94_spill] sm:$0xff]  ;;  %v10229_v9 = vld [vmem:[#allocation43_spill] sm:$0xff] }
 0x25e   : > { %v3754_v54 = vmul.f32 %v8626_v5, %v6579_v18  ;;  %v5497_v61 = vadd.f32 %v5449_v45, %v5357_v47  ;;  %v5498_v7 = vadd.f32 %v5451_v40, %v5358_v37  ;;  %v10223_v36 = vrot.slane %v10222_v35, 3  ;;  %v10227_v47 = vld [vmem:[#allocation78_spill] sm:$0xff] }
 0x25f   : > { %v10225_v12 = vrot.slane %v10224_v31, 3  ;;  %v3616_v46 = vrot.slane %v3562_v43, 4  ;;  %v3894_v28 = vmul.f32 %v8626_v5, %v6603_v33  ;;  %v3947_v51 = vrot.slane %v10226_v11, 2  ;;  %v4011_v45 = vld [vmem:[#allocation2 + $0x118] sm:$0x7]  ;;  %v10236_v11 = vld [vmem:[#allocation92_spill] sm:$0xff] }
 0x260   : > { %v3477_v30 = vsel %vm2847_vm11, %v10223_v36, %v3476_v26  ;;  %v3808_v53 = vrot.slane %v3754_v54, 1  ;;  %v5520_v55 = vadd.f32 %v8343_v56, %v5497_v61  ;;  %v5521_v60 = vadd.f32 %v8343_v56, %v5498_v7  ;;  %v10235_v36 = vld [vmem:[#allocation101_spill] sm:$0xff] }
 0x261   : > { %v3479_v1 = vsel %vm2847_vm11, %v3476_v26, %v10225_v12  ;;  %v3522_v4 = vadd.f32 %v3477_v30, %v3382_v25  ;;  %v10228_v37 = vrot.slane %v10227_v47, 4  ;;  %v10230_v24 = vrot.slane %v10229_v9, 4  ;;  %v10233_v26 = vld [vmem:[#allocation100_spill] sm:$0xff]  ;;  %v4150_v9 = vld [vmem:[#allocation2 + $0xf8] sm:$0xf0] }
 0x262   : > { %v3523_v32 = vadd.f32 %v3479_v1, %v3383_v42  ;;  %v10232_v42 = vrot.slane %v10231_v48, 1  ;;  %v10234_v43 = vrot.slane %v10233_v26, 1  ;;  %v5536_v40 = vmax.f32 %v5520_v55, 0.0  ;;  %v4342_v26 = vld [vmem:[#allocation2 + $0x128] sm:$0xfe] }
 0x263   : > { %v3617_v58 = vsel %vm399_vm0, %v10228_v37, %v3616_v46  ;;  %v3619_v25 = vsel %vm399_vm0, %v3616_v46, %v10230_v24  ;;  %v5537_v54 = vmax.f32 %v5521_v60, 0.0  ;;  %v3948_v35 = vrot.slane %v3894_v28, 2 }
 0x264   : > { %v3809_v14 = vsel %vm1236_vm8, %v10232_v42, %v3808_v53  ;;  %v3811_v56 = vsel %vm1236_vm8, %v3808_v53, %v10234_v43  ;;  %v3662_v61 = vadd.f32 %v3617_v58, %v3522_v4  ;;  %v3663_v7 = vadd.f32 %v3619_v25, %v3523_v32  ;;  %v4151_v53 = vld [vmem:[#allocation2 + $0x118] sm:$0xf] }
 0x265   : > { %v3950_v30 = vrot.slane %v10235_v36, 2  ;;  %v4033_v31 = vmul.f32 %v10143_v16, %v4010_v59  ;;  %v4034_v12 = vmul.f32 %v8626_v5, %v10143_v16  ;;  %v5552_v1 = vmin.f32 %v5536_v40, 6.0 }
 0x266   : > { %v5553_v46 = vmin.f32 %v5537_v54, 6.0  ;;  %v3714_v47 = vadd.f32 %v10236_v11, %v3662_v61  ;;  %v3715_v37 = vadd.f32 %v3699_v41, %v3663_v7  ;;  %v3949_v55 = vsel %vm1393_vm9, %v3947_v51, %v3948_v35 }
 0x267   : > { %v3951_v4 = vsel %vm1393_vm9, %v3948_v35, %v3950_v30  ;;  %v4035_v32 = vmul.f32 %v10143_v16, %v4011_v45  ;;  %v4087_v60 = vrot.slane %v4033_v31, 3  ;;  %v4088_v24 = vrot.slane %v4034_v12, 3  ;;  %v4482_v35 = vld [vmem:[#allocation2 + $0x128] sm:$0xfc] }
 0x268   : > { %v5566_v28 = vpack.c.bf16 %v5553_v46, %v5552_v1  ;;  %v3854_v58 = vadd.f32 %v3809_v14, %v3714_v47  ;;  %v3855_v59 = vadd.f32 %v3811_v56, %v3715_v37  ;;  %v4173_v48 = vmul.f32 %v8209_v19, %v4150_v9  ;;  %v4343_v14 = vld [vmem:[#allocation2 + $0x148] sm:$0x1]  ;;  %v4622_v37 = vld [vmem:[#allocation2 + $0x128] sm:$0xf8] }
 0x269   : > { %v4090_v25 = vrot.slane %v4035_v32, 3  ;;  %v4174_v42 = vmul.f32 %v8626_v5, %v8209_v19  ;;  %v4175_v41 = vmul.f32 %v8209_v19, %v4151_v53  ;;  %v4089_v40 = vsel %vm2847_vm11, %v4087_v60, %v4088_v24  ;;  %v4483_v1 = vld [vmem:[#allocation2 + $0x148] sm:$0x3] }
 0x26a   : > { %6169 = vmatprep.mubr.bf16.mxu1 %v5566_v28  ;;  %v3994_v51 = vadd.f32 %v3949_v55, %v3854_v58  ;;  %v3995_v43 = vadd.f32 %v3951_v4, %v3855_v59  ;;  %v4310_v45 = vmul.f32 %v8563_v20, %v8214_v22  ;;  %v4227_v54 = vrot.slane %v4173_v48, 4  ;;  %v4623_v59 = vld [vmem:[#allocation2 + $0x148] sm:$0x7] }
 0x26b   : > { %v4091_v56 = vsel %vm2847_vm11, %v4088_v24, %v4090_v25  ;;  %v4228_v61 = vrot.slane %v4174_v42, 4  ;;  %v4230_v7 = vrot.slane %v4175_v41, 4  ;;  %v4311_v31 = vmul.f32 %v8570_v2, %v8214_v22  ;;  %v4762_v41 = vld [vmem:[#allocation2 + $0x128] sm:$0xf0] }
 0x26c   : > { %v4134_v36 = vadd.f32 %v4089_v40, %v3994_v51  ;;  %v4135_v30 = vadd.f32 %v4091_v56, %v3995_v43  ;;  %v4365_v12 = vmul.f32 %v8232_v49, %v4342_v26  ;;  %v4366_v20 = vmul.f32 %v8570_v2, %v8232_v49 }
 0x26d   : > { %v4229_v46 = vsel %vm399_vm0, %v4227_v54, %v4228_v61  ;;  %v4231_v11 = vsel %vm399_vm0, %v4228_v61, %v4230_v7  ;;  %v4367_v47 = vmul.f32 %v8232_v49, %v4343_v14  ;;  %v4505_v4 = vmul.f32 %v8236_v0, %v4482_v35  ;;  %v4763_v7 = vld [vmem:[#allocation2 + $0x148] sm:$0xf] }
 0x26e   : > { %v4274_v9 = vadd.f32 %v4229_v46, %v4134_v36  ;;  %v4275_v53 = vadd.f32 %v4231_v11, %v4135_v30  ;;  %v4419_v55 = vrot.slane %v4365_v12, 1  ;;  %v4420_v32 = vrot.slane %v4366_v20, 1  ;;  %v8694_v12 = vld [vmem:[#allocation2 + $0x168] sm:$0xff] }
 0x26f   : > { %v4422_v60 = vrot.slane %v4367_v47, 1  ;;  %v4506_v28 = vmul.f32 %v8570_v2, %v8236_v0  ;;  %v4507_v58 = vmul.f32 %v8236_v0, %v4483_v1  ;;  %v4559_v48 = vrot.slane %v4505_v4, 2  ;;  %v4955_v1 = vld [vmem:[#allocation2 + $0x158] sm:$0xfe]  ;;  %v4956_v4 = vld [vmem:[#allocation2 + $0x178] sm:$0x1] }
 0x270   : > { %v4326_v24 = vadd.f32 %v4310_v45, %v4274_v9  ;;  %v4327_v25 = vadd.f32 %v4311_v31, %v4275_v53  ;;  %v4645_v42 = vmul.f32 %v8240_v3, %v4622_v37  ;;  %v4421_v26 = vsel %vm1236_vm8, %v4419_v55, %v4420_v32  ;;  %v8689_v45 = vld [vmem:[#allocation2 + $0x158] sm:$0xff] }
 0x271   : > { %v4423_v51 = vsel %vm1236_vm8, %v4420_v32, %v4422_v60  ;;  %v4560_v43 = vrot.slane %v4506_v28, 2  ;;  %v4562_v40 = vrot.slane %v4507_v58, 2  ;;  %v4646_v54 = vmul.f32 %v8570_v2, %v8240_v3  ;;  %v5095_v32 = vld [vmem:[#allocation2 + $0x158] sm:$0xfc] }
 0x272   : > { %v4466_v14 = vadd.f32 %v4421_v26, %v4326_v24  ;;  %v4467_v56 = vadd.f32 %v4423_v51, %v4327_v25  ;;  %v4647_v61 = vmul.f32 %v8240_v3, %v4623_v59  ;;  %v4699_v30 = vrot.slane %v4645_v42, 3  ;;  %v5096_v24 = vld [vmem:[#allocation2 + $0x178] sm:$0x3] }
 0x273   : > { %v4561_v35 = vsel %vm1393_vm9, %v4559_v48, %v4560_v43  ;;  %v4563_v36 = vsel %vm1393_vm9, %v4560_v43, %v4562_v40  ;;  %v4785_v31 = vmul.f32 %v8244_v10, %v4762_v41  ;;  %v4700_v20 = vrot.slane %v4646_v54, 3  ;;  %v5235_v40 = vld [vmem:[#allocation2 + $0x158] sm:$0xf8] }
 0x274   : > { %v4606_v46 = vadd.f32 %v4561_v35, %v4466_v14  ;;  %v4607_v11 = vadd.f32 %v4563_v36, %v4467_v56  ;;  %v4702_v47 = vrot.slane %v4647_v61, 3  ;;  %v4786_v37 = vmul.f32 %v8570_v2, %v8244_v10 }
 0x275   : > { %v4787_v9 = vmul.f32 %v8244_v10, %v4763_v7  ;;  %v4839_v53 = vrot.slane %v4785_v31, 4  ;;  %v4923_v55 = vmul.f32 %v8250_v34, %v8689_v45  ;;  %v4701_v60 = vsel %vm2847_vm11, %v4699_v30, %v4700_v20  ;;  %v5236_v31 = vld [vmem:[#allocation2 + $0x178] sm:$0x7] }
 0x276   : > { %v4703_v28 = vsel %vm2847_vm11, %v4700_v20, %v4702_v47  ;;  %v4924_v58 = vmul.f32 %v8250_v34, %v8694_v12  ;;  %v4978_v59 = vmul.f32 %v8254_v44, %v4955_v1  ;;  %v4746_v25 = vadd.f32 %v4701_v60, %v4606_v46  ;;  %v5375_v47 = vld [vmem:[#allocation2 + $0x158] sm:$0xf0] }
 0x277   : > { %v4747_v2 = vadd.f32 %v4703_v28, %v4607_v11  ;;  %v4840_v48 = vrot.slane %v4786_v37, 4  ;;  %v4842_v42 = vrot.slane %v4787_v9, 4  ;;  %v4979_v41 = vmul.f32 %v8254_v44, %v8694_v12 }
 0x278   : > { %v4980_v26 = vmul.f32 %v8254_v44, %v4956_v4  ;;  %v5032_v51 = vrot.slane %v4978_v59, 1  ;;  %v5118_v43 = vmul.f32 %v8294_v50, %v5095_v32  ;;  %v5119_v54 = vmul.f32 %v8294_v50, %v8694_v12  ;;  %v5376_v32 = vld [vmem:[#allocation2 + $0x178] sm:$0xf] }
 0x279   : > { %v4841_v14 = vsel %vm399_vm0, %v4839_v53, %v4840_v48  ;;  %v4843_v56 = vsel %vm399_vm0, %v4840_v48, %v4842_v42  ;;  %v5120_v61 = vmul.f32 %v8294_v50, %v5096_v24  ;;  %v5033_v36 = vrot.slane %v4979_v41, 1  ;;  %v6287_v42 = vld [vmem:[%s9783_s5 + $0x28] sm:$0xff]   ;;  %v6288_v41 = vld [vmem:[%s9783_s5 + $0x30] sm:$0xff]  }
 0x27a   : > { %v4886_v7 = vadd.f32 %v4841_v14, %v4746_v25  ;;  %v4887_v35 = vadd.f32 %v4843_v56, %v4747_v2  ;;  %v5035_v30 = vrot.slane %v4980_v26, 1  ;;  %v5172_v1 = vrot.slane %v5118_v43, 2  ;;  %6191 = vmatprep.subr.bf16.mxu1 %v6287_v42 }
 0x27b   : > { %v5173_v46 = vrot.slane %v5119_v54, 2  ;;  %v5175_v11 = vrot.slane %v5120_v61, 2  ;;  %v5258_v20 = vmul.f32 %v8308_v17, %v5235_v40  ;;  %v5034_v53 = vsel %vm1236_vm8, %v5032_v51, %v5033_v36  ;;  %v10237_v61 = vld [vmem:[#allocation5_spill] sm:$0xff]  ;;  %6192 = vmatpush3.bf16.msra.mxu1 %v6287_v42 }
 0x27c   : > { %v4939_v37 = vadd.f32 %v4923_v55, %v4886_v7  ;;  %v4940_v9 = vadd.f32 %v4924_v58, %v4887_v35  ;;  %v5036_v4 = vsel %vm1236_vm8, %v5033_v36, %v5035_v30  ;;  %v5259_v59 = vmul.f32 %v8308_v17, %v8694_v12  ;;  %v8726_v55 = vld [vmem:[%s9781_s3 + $0x38] ss:$0 sm:$0xff]  ;;  %v10239_v35 = vld [vmem:[#allocation87_spill] sm:$0xff]  ;;  %6193 = vmatprep.subr.bf16.mxu1 %v6288_v41 }
 0x27d   : > { %v5174_v60 = vsel %vm1393_vm9, %v5172_v1, %v5173_v46  ;;  %v5176_v28 = vsel %vm1393_vm9, %v5173_v46, %v5175_v11  ;;  %v5260_v24 = vmul.f32 %v8308_v17, %v5236_v31  ;;  %v5312_v48 = vrot.slane %v5258_v20, 3 }
 0x27e   : > { %v5079_v25 = vadd.f32 %v5034_v53, %v4939_v37  ;;  %v5080_v2 = vadd.f32 %v5036_v4, %v4940_v9  ;;  %v5398_v58 = vmul.f32 %v8726_v55, %v5375_v47  ;;  %v5313_v26 = vrot.slane %v5259_v59, 3  ;;  %v10241_v37 = vld [vmem:[#allocation91_spill] sm:$0xff] }
 0x27f   : > { %v5315_v51 = vrot.slane %v5260_v24, 3  ;;  %v5399_v43 = vmul.f32 %v8726_v55, %v8694_v12  ;;  %v5400_v40 = vmul.f32 %v8726_v55, %v5376_v32  ;;  %v10238_v7 = vrot.slane %v10237_v61, 1  ;;  %v10242_v53 = vld [vmem:[#allocation95_spill] sm:$0xff]  ;;  %v10244_v32 = vld [vmem:[#allocation88_spill] sm:$0xff]  ;;  %6194 = vmatpush3.bf16.msra.mxu1 %v6288_v41 }
 0x280   : > { %v5219_v14 = vadd.f32 %v5174_v60, %v5079_v25  ;;  %v5220_v56 = vadd.f32 %v5176_v28, %v5080_v2  ;;  %v5452_v54 = vrot.slane %v5398_v58, 4  ;;  %v10240_v36 = vrot.slane %v10239_v35, 1  ;;  %v10246_v25 = vld [vmem:[#allocation99_spill] sm:$0xff]  ;;  %v10247_v2 = vld [vmem:[#allocation98_spill] sm:$0xff]  ;;  %v10248_v58 = vld [vmem:[#allocation96_spill] sm:$0xff] }
 0x281   : > { %v5314_v31 = vsel %vm2847_vm11, %v5312_v48, %v5313_v26  ;;  %v5316_v1 = vsel %vm2847_vm11, %v5313_v26, %v5315_v51  ;;  %v5453_v46 = vrot.slane %v5399_v43, 4  ;;  %v5455_v11 = vrot.slane %v5400_v40, 4  ;;  %v10251_v35 = vld [vmem:[#allocation59_spill] sm:$0xff] }
 0x282   : > { %v3202_v30 = vsel %vm1236_vm8, %v10240_v36, %v10238_v7  ;;  %v5359_v20 = vadd.f32 %v5314_v31, %v5219_v14  ;;  %v5360_v47 = vadd.f32 %v5316_v1, %v5220_v56  ;;  %v10243_v4 = vrot.slane %v10242_v53, 2  ;;  %v4012_v14 = vld [vmem:[#allocation2 + $0x128] sm:$0xf8]  ;;  %v10249_v56 = vld [vmem:[#allocation89_spill] sm:$0xff] }
 0x283   : > { %v3244_v9 = vadd.f32 %v3202_v30, %v10241_v37  ;;  %v10245_v60 = vrot.slane %v10244_v32, 2  ;;  %v5454_v59 = vsel %vm399_vm0, %v5452_v54, %v5453_v46  ;;  %v5456_v24 = vsel %vm399_vm0, %v5453_v46, %v5455_v11  ;;  %v8764_v30 = vld [vmem:[#allocation2 + $0x138] sm:$0xff] }
 0x284   : > { %v3385_v48 = vadd.f32 %v10247_v2, %v10246_v25  ;;  %v3481_v42 = vrot.slane %v10248_v58, 3  ;;  %v5499_v26 = vadd.f32 %v5454_v59, %v5359_v20  ;;  %v5500_v51 = vadd.f32 %v5456_v24, %v5360_v47  ;;  %v10254_v25 = vld [vmem:[#allocation90_spill] sm:$0xff] }
 0x285   : > { %v3342_v28 = vsel %vm1393_vm9, %v10245_v60, %v10243_v4  ;;  %v3565_v40 = vmul.f32 %v8626_v5, %v6570_v15  ;;  %v10250_v61 = vrot.slane %v10249_v56, 3  ;;  %v10252_v54 = vrot.slane %v10251_v35, 3  ;;  %v8773_v5 = vld [vmem:[%s9782_s4 + $0x1] ss:$0 sm:$0xff]  ;;  %v10253_v4 = vld [vmem:[#allocation109_spill] sm:$0xff] }
 0x286   : > { %v3384_v43 = vadd.f32 %v3342_v28, %v3244_v9  ;;  %v3701_v31 = vmul.f32 %v8764_v30, %v6599_v29  ;;  %v3757_v1 = vmul.f32 %v8764_v30, %v6579_v18  ;;  %v5522_v46 = vadd.f32 %v8773_v5, %v5499_v26  ;;  %v4013_v60 = vld [vmem:[#allocation2 + $0x148] sm:$0x7] }
 0x287   : > { %v3482_v7 = vsel %vm2847_vm11, %v10250_v61, %v3481_v42  ;;  %v3484_v36 = vsel %vm2847_vm11, %v3481_v42, %v10252_v54  ;;  %v5523_v11 = vadd.f32 %v8773_v5, %v5500_v51  ;;  %v3621_v37 = vrot.slane %v3565_v40, 4  ;;  %v10256_v42 = vld [vmem:[#allocation63_spill] sm:$0xff]  ;;  %v10258_v51 = vld [vmem:[#allocation108_spill] sm:$0xff] }
 0x288   : > { %v3524_v20 = vadd.f32 %v3482_v7, %v3384_v43  ;;  %v3525_v47 = vadd.f32 %v3484_v36, %v3385_v48  ;;  %v3813_v9 = vrot.slane %v3757_v1, 1  ;;  %v3897_v53 = vmul.f32 %v8764_v30, %v6603_v33  ;;  %v4152_v7 = vld [vmem:[#allocation2 + $0x128] sm:$0xf0] }
 0x289   : > { %v3952_v32 = vrot.slane %v10253_v4, 2  ;;  %v5538_v41 = vmax.f32 %v5522_v46, 0.0  ;;  %v5539_v28 = vmax.f32 %v5523_v11, 0.0  ;;  %v3955_v59 = vrot.slane %v7817_v21, 2 }
 0x28a   : > { %v4036_v24 = vmul.f32 %v10143_v16, %v4012_v14  ;;  %v10255_v2 = vrot.slane %v10254_v25, 4  ;;  %v10257_v48 = vrot.slane %v10256_v42, 4  ;;  %v10259_v43 = vrot.slane %v10258_v51, 1  ;;  %v10261_v25 = vld [vmem:[#allocation107_spill] sm:$0xff] }
 0x28b   : > { %v10260_v56 = vrot.slane %v7814_v38, 1  ;;  %v5554_v21 = vmin.f32 %v5538_v41, 6.0  ;;  %v5555_v35 = vmin.f32 %v5539_v28, 6.0  ;;  %v3953_v36 = vrot.slane %v3897_v53, 2 }
 0x28c   : > { %v3622_v58 = vsel %vm399_vm0, %v10255_v2, %v3621_v37  ;;  %v3624_v26 = vsel %vm399_vm0, %v3621_v37, %v10257_v48  ;;  %v3814_v40 = vsel %vm1236_vm8, %v10259_v43, %v3813_v9  ;;  %v4037_v1 = vmul.f32 %v8764_v30, %v10143_v16  ;;  %v4153_v37 = vld [vmem:[#allocation2 + $0x148] sm:$0xf]  ;;  %v4345_v48 = vld [vmem:[#allocation2 + $0x178] sm:$0x1] }
 0x28d   : > { %v3816_v61 = vsel %vm1236_vm8, %v3813_v9, %v10260_v56  ;;  %v3664_v14 = vadd.f32 %v3622_v58, %v3524_v20  ;;  %v3665_v54 = vadd.f32 %v3624_v26, %v3525_v47  ;;  %v4038_v46 = vmul.f32 %v10143_v16, %v4013_v60  ;;  %v4344_v58 = vld [vmem:[#allocation2 + $0x158] sm:$0xfe] }
 0x28e   : > { %v4092_v11 = vrot.slane %v4036_v24, 3  ;;  %v5567_v4 = vpack.c.bf16 %v5555_v35, %v5554_v21  ;;  %v4176_v38 = vmul.f32 %v8209_v19, %v4152_v7  ;;  %v3954_v9 = vsel %vm1393_vm9, %v3952_v32, %v3953_v36 }
 0x28f   : > { %v3716_v2 = vadd.f32 %v10261_v25, %v3664_v14  ;;  %v3717_v42 = vadd.f32 %v3701_v31, %v3665_v54  ;;  %v3956_v41 = vsel %vm1393_vm9, %v3953_v36, %v3955_v59  ;;  %v4093_v20 = vrot.slane %v4037_v1, 3  ;;  %v4485_v54 = vld [vmem:[#allocation2 + $0x178] sm:$0x3] }
 0x290   : > { %v4095_v47 = vrot.slane %v4038_v46, 3  ;;  %6170 = vmatmul.mubr.bf16.gmra.mrb[4].mxu1 %v5567_v4  ;;  %v4177_v60 = vmul.f32 %v8764_v30, %v8209_v19  ;;  %v4178_v24 = vmul.f32 %v8209_v19, %v4153_v37  ;;  %v4232_v51 = vrot.slane %v4176_v38, 4 }
 0x291   : > { %v3856_v53 = vadd.f32 %v3814_v40, %v3716_v2  ;;  %v3857_v28 = vadd.f32 %v3816_v61, %v3717_v42  ;;  %v4094_v31 = vsel %vm2847_vm11, %v4092_v11, %v4093_v20  ;;  %v4312_v32 = vmul.f32 %v8689_v45, %v8214_v22  ;;  %v4484_v61 = vld [vmem:[#allocation2 + $0x158] sm:$0xfc] }
 0x292   : > { %v4096_v26 = vsel %vm2847_vm11, %v4093_v20, %v4095_v47  ;;  %v4233_v56 = vrot.slane %v4177_v60, 4  ;;  %v4235_v40 = vrot.slane %v4178_v24, 4  ;;  %v4313_v7 = vmul.f32 %v8694_v12, %v8214_v22  ;;  %v4624_v11 = vld [vmem:[#allocation2 + $0x158] sm:$0xf8]  ;;  %v4625_v20 = vld [vmem:[#allocation2 + $0x178] sm:$0x7] }
 0x293   : > { %v3996_v59 = vadd.f32 %v3954_v9, %v3856_v53  ;;  %v3997_v43 = vadd.f32 %v3956_v41, %v3857_v28  ;;  %v4368_v21 = vmul.f32 %v8232_v49, %v4344_v58  ;;  %v4369_v35 = vmul.f32 %v8694_v12, %v8232_v49  ;;  %v4764_v47 = vld [vmem:[#allocation2 + $0x158] sm:$0xf0] }
 0x294   : > { %v4370_v14 = vmul.f32 %v8232_v49, %v4345_v48  ;;  %v4234_v45 = vsel %vm399_vm0, %v4232_v51, %v4233_v56  ;;  %v4236_v46 = vsel %vm399_vm0, %v4233_v56, %v4235_v40  ;;  %v4508_v2 = vmul.f32 %v8236_v0, %v4484_v61  ;;  %v4765_v51 = vld [vmem:[#allocation2 + $0x178] sm:$0xf]  ;;  %v8827_v61 = vld [vmem:[#allocation2 + $0x188] sm:$0xff] }
 0x295   : > { %v4136_v36 = vadd.f32 %v4094_v31, %v3996_v59  ;;  %v4137_v1 = vadd.f32 %v4096_v26, %v3997_v43  ;;  %v4424_v37 = vrot.slane %v4368_v21, 1  ;;  %v4425_v4 = vrot.slane %v4369_v35, 1 }
 0x296   : > { %v4427_v25 = vrot.slane %v4370_v14, 1  ;;  %v4509_v9 = vmul.f32 %v8694_v12, %v8236_v0  ;;  %v4510_v41 = vmul.f32 %v8236_v0, %v4485_v54  ;;  %v4564_v60 = vrot.slane %v4508_v2, 2  ;;  %v4958_v2 = vld [vmem:[#allocation2 + $0x1a8] sm:$0x1] }
 0x297   : > { %v4276_v42 = vadd.f32 %v4234_v45, %v4136_v36  ;;  %v4277_v38 = vadd.f32 %v4236_v46, %v4137_v1  ;;  %v4426_v53 = vsel %vm1236_vm8, %v4424_v37, %v4425_v4  ;;  %v4648_v24 = vmul.f32 %v8240_v3, %v4624_v11  ;;  %v8834_v45 = vld [vmem:[#allocation2 + $0x198] sm:$0xff]  ;;  %v4957_v46 = vld [vmem:[#allocation2 + $0x188] sm:$0xfe] }
 0x298   : > { %v4428_v28 = vsel %vm1236_vm8, %v4425_v4, %v4427_v25  ;;  %v4565_v31 = vrot.slane %v4509_v9, 2  ;;  %v4567_v26 = vrot.slane %v4510_v41, 2  ;;  %v4649_v59 = vmul.f32 %v8694_v12, %v8240_v3 }
 0x299   : > { %v4328_v58 = vadd.f32 %v4312_v32, %v4276_v42  ;;  %v4329_v48 = vadd.f32 %v4313_v7, %v4277_v38  ;;  %v4650_v43 = vmul.f32 %v8240_v3, %v4625_v20  ;;  %v4704_v56 = vrot.slane %v4648_v24, 3  ;;  %v5097_v20 = vld [vmem:[#allocation2 + $0x188] sm:$0xfc] }
 0x29a   : > { %v4788_v40 = vmul.f32 %v8244_v10, %v4764_v47  ;;  %v4566_v14 = vsel %vm1393_vm9, %v4564_v60, %v4565_v31  ;;  %v4568_v32 = vsel %vm1393_vm9, %v4565_v31, %v4567_v26  ;;  %v4705_v7 = vrot.slane %v4649_v59, 3  ;;  %v5098_v60 = vld [vmem:[#allocation2 + $0x1a8] sm:$0x3]  ;;  %v5237_v26 = vld [vmem:[#allocation2 + $0x188] sm:$0xf8] }
 0x29b   : > { %v4468_v21 = vadd.f32 %v4426_v53, %v4328_v58  ;;  %v4469_v35 = vadd.f32 %v4428_v28, %v4329_v48  ;;  %v4707_v54 = vrot.slane %v4650_v43, 3  ;;  %v4789_v36 = vmul.f32 %v8694_v12, %v8244_v10 }
 0x29c   : > { %v4790_v1 = vmul.f32 %v8244_v10, %v4765_v51  ;;  %v4844_v4 = vrot.slane %v4788_v40, 4  ;;  %v4925_v25 = vmul.f32 %v8250_v34, %v8827_v61  ;;  %v4706_v42 = vsel %vm2847_vm11, %v4704_v56, %v4705_v7 }
 0x29d   : > { %v4608_v11 = vadd.f32 %v4566_v14, %v4468_v21  ;;  %v4609_v37 = vadd.f32 %v4568_v32, %v4469_v35  ;;  %v4708_v38 = vsel %vm2847_vm11, %v4705_v7, %v4707_v54  ;;  %v4845_v9 = vrot.slane %v4789_v36, 4  ;;  %v5238_v32 = vld [vmem:[#allocation2 + $0x1a8] sm:$0x7] }
 0x29e   : > { %v4847_v41 = vrot.slane %v4790_v1, 4  ;;  %v4926_v53 = vmul.f32 %v8250_v34, %v8834_v45  ;;  %v4981_v28 = vmul.f32 %v8254_v44, %v4957_v46  ;;  %v4982_v48 = vmul.f32 %v8254_v44, %v8834_v45  ;;  %v5377_v46 = vld [vmem:[#allocation2 + $0x188] sm:$0xf0] }
 0x29f   : > { %v4748_v12 = vadd.f32 %v4706_v42, %v4608_v11  ;;  %v4749_v47 = vadd.f32 %v4708_v38, %v4609_v37  ;;  %v4846_v24 = vsel %vm399_vm0, %v4844_v4, %v4845_v9  ;;  %v4983_v31 = vmul.f32 %v8254_v44, %v4958_v2 }
 0x2a0   : > { %v4848_v58 = vsel %vm399_vm0, %v4845_v9, %v4847_v41  ;;  %v5037_v43 = vrot.slane %v4981_v28, 1  ;;  %v5121_v56 = vmul.f32 %v8294_v50, %v5097_v20  ;;  %v5038_v40 = vrot.slane %v4982_v48, 1  ;;  %v5378_v20 = vld [vmem:[#allocation2 + $0x1a8] sm:$0xf] }
 0x2a1   : > { %v4888_v51 = vadd.f32 %v4846_v24, %v4748_v12  ;;  %v4889_v59 = vadd.f32 %v4848_v58, %v4749_v47  ;;  %v5040_v21 = vrot.slane %v4983_v31, 1  ;;  %v5122_v35 = vmul.f32 %v8294_v50, %v8834_v45 }
 0x2a2   : > { %v5123_v14 = vmul.f32 %v8294_v50, %v5098_v60  ;;  %v5177_v36 = vrot.slane %v5121_v56, 2  ;;  %v5261_v1 = vmul.f32 %v8308_v17, %v5237_v26  ;;  %v5039_v11 = vsel %vm1236_vm8, %v5037_v43, %v5038_v40 }
 0x2a3   : > { %v4941_v7 = vadd.f32 %v4925_v25, %v4888_v51  ;;  %v4942_v54 = vadd.f32 %v4926_v53, %v4889_v59  ;;  %v5041_v37 = vsel %vm1236_vm8, %v5038_v40, %v5040_v21  ;;  %v5178_v4 = vrot.slane %v5122_v35, 2  ;;  %v10263_v59 = vld [vmem:[#allocation102_spill] sm:$0xff] }
 0x2a4   : > { %v5180_v2 = vrot.slane %v5123_v14, 2  ;;  %v5262_v9 = vmul.f32 %v8308_v17, %v8834_v45  ;;  %v5263_v41 = vmul.f32 %v8308_v17, %v5238_v32  ;;  %v5317_v47 = vrot.slane %v5261_v1, 3  ;;  %v10265_v35 = vld [vmem:[#allocation106_spill] sm:$0xff] }
 0x2a5   : > { %v5081_v42 = vadd.f32 %v5039_v11, %v4941_v7  ;;  %v5082_v38 = vadd.f32 %v5041_v37, %v4942_v54  ;;  %v5179_v25 = vsel %vm1393_vm9, %v5177_v36, %v5178_v4  ;;  %v5401_v53 = vmul.f32 %v8726_v55, %v5377_v46  ;;  %v10266_v32 = vld [vmem:[#allocation110_spill] sm:$0xff]  ;;  %v10268_v54 = vld [vmem:[#allocation103_spill] sm:$0xff] }
 0x2a6   : > { %v5181_v12 = vsel %vm1393_vm9, %v5178_v4, %v5180_v2  ;;  %v5318_v24 = vrot.slane %v5262_v9, 3  ;;  %v5320_v58 = vrot.slane %v5263_v41, 3  ;;  %v5402_v48 = vmul.f32 %v8726_v55, %v8834_v45  ;;  %v10270_v2 = vld [vmem:[#allocation67_spill] sm:$0xff] }
 0x2a7   : > { %v5221_v28 = vadd.f32 %v5179_v25, %v5081_v42  ;;  %v5222_v60 = vadd.f32 %v5181_v12, %v5082_v38  ;;  %v5403_v31 = vmul.f32 %v8726_v55, %v5378_v20  ;;  %v5457_v26 = vrot.slane %v5401_v53, 4  ;;  %v10271_v42 = vld [vmem:[#allocation66_spill] sm:$0xff]  ;;  %v10272_v9 = vld [vmem:[#allocation111_spill] sm:$0xff] }
 0x2a8   : > { %v10262_v51 = vrot.slane %v7738_v8, 1  ;;  %v10264_v43 = vrot.slane %v10263_v59, 1  ;;  %v5319_v40 = vsel %vm2847_vm11, %v5317_v47, %v5318_v24  ;;  %v5321_v21 = vsel %vm2847_vm11, %v5318_v24, %v5320_v58  ;;  %v8884_v47 = vld [vmem:[#allocation2 + $0x168] sm:$0xff] }
 0x2a9   : > { %v10267_v7 = vrot.slane %v10266_v32, 2  ;;  %v10269_v36 = vrot.slane %v10268_v54, 2  ;;  %v5361_v46 = vadd.f32 %v5319_v40, %v5221_v28  ;;  %v5362_v11 = vadd.f32 %v5321_v21, %v5222_v60  ;;  %v10273_v58 = vld [vmem:[#allocation104_spill] sm:$0xff]  ;;  %v4014_v21 = vld [vmem:[#allocation2 + $0x158] sm:$0xf8] }
 0x2aa   : > { %v3207_v56 = vsel %vm1236_vm8, %v10264_v43, %v10262_v51  ;;  %v5458_v37 = vrot.slane %v5402_v48, 4  ;;  %v5460_v8 = vrot.slane %v5403_v31, 4  ;;  %v3387_v38 = vadd.f32 %v10271_v42, %v10270_v2  ;;  %v10275_v51 = vld [vmem:[#allocation64_spill] sm:$0xff] }
 0x2ab   : > { %v3246_v14 = vadd.f32 %v3207_v56, %v10265_v35  ;;  %v3347_v1 = vsel %vm1393_vm9, %v10269_v36, %v10267_v7  ;;  %v3486_v41 = vrot.slane %v10272_v9, 3  ;;  %v3568_v20 = vmul.f32 %v8764_v30, %v6570_v15  ;;  %v10277_v7 = vld [vmem:[#allocation119_spill] sm:$0xff]  ;;  %v10278_v36 = vld [vmem:[#allocation105_spill] sm:$0xff] }
 0x2ac   : > { %v5459_v25 = vsel %vm399_vm0, %v5457_v26, %v5458_v37  ;;  %v5461_v12 = vsel %vm399_vm0, %v5458_v37, %v5460_v8  ;;  %v3703_v53 = vmul.f32 %v8884_v47, %v6599_v29  ;;  %v3760_v28 = vmul.f32 %v8884_v47, %v6579_v18 }
 0x2ad   : > { %v3386_v4 = vadd.f32 %v3347_v1, %v3246_v14  ;;  %v5501_v60 = vadd.f32 %v5459_v25, %v5361_v46  ;;  %v5502_v24 = vadd.f32 %v5461_v12, %v5362_v11  ;;  %v10274_v48 = vrot.slane %v10273_v58, 3  ;;  %v10280_v11 = vld [vmem:[#allocation65_spill] sm:$0xff] }
 0x2ae   : > { %v10276_v30 = vrot.slane %v10275_v51, 3  ;;  %v3626_v56 = vrot.slane %v3568_v20, 4  ;;  %v3818_v40 = vrot.slane %v3760_v28, 1  ;;  %v3900_v32 = vmul.f32 %v8884_v47, %v6603_v33 }
 0x2af   : > { %v3487_v31 = vsel %vm2847_vm11, %v10274_v48, %v3486_v41  ;;  %v5524_v35 = vadd.f32 %v8773_v5, %v5501_v60  ;;  %v5525_v14 = vadd.f32 %v8773_v5, %v5502_v24  ;;  %v3957_v54 = vrot.slane %v10277_v7, 2 }
 0x2b0   : > { %v3489_v26 = vsel %vm2847_vm11, %v3486_v41, %v10276_v30  ;;  %v3526_v59 = vadd.f32 %v3487_v31, %v3386_v4  ;;  %v10279_v1 = vrot.slane %v10278_v36, 4  ;;  %v10281_v37 = vrot.slane %v10280_v11, 4  ;;  %v10282_v4 = vld [vmem:[#allocation118_spill] sm:$0xff]  ;;  %v10285_v30 = vld [vmem:[#allocation117_spill] sm:$0xff]  ;;  %v4346_v11 = vld [vmem:[#allocation2 + $0x188] sm:$0xfe] }
 0x2b1   : > { %v3527_v43 = vadd.f32 %v3489_v26, %v3387_v38  ;;  %v10283_v2 = vrot.slane %v10282_v4, 1  ;;  %v10284_v38 = vrot.slane %v8005_v13, 1  ;;  %v4015_v41 = vld [vmem:[#allocation2 + $0x178] sm:$0x7]  ;;  %v5540_v20 = vmax.f32 %v5524_v35, 0.0 }
 0x2b2   : > { %v3627_v46 = vsel %vm399_vm0, %v10279_v1, %v3626_v56  ;;  %v3629_v8 = vsel %vm399_vm0, %v3626_v56, %v10281_v37  ;;  %v5541_v25 = vmax.f32 %v5525_v14, 0.0  ;;  %v3958_v60 = vrot.slane %v3900_v32, 2  ;;  %v4154_v56 = vld [vmem:[#allocation2 + $0x158] sm:$0xf0] }
 0x2b3   : > { %v3819_v42 = vsel %vm1236_vm8, %v10283_v2, %v3818_v40  ;;  %v3821_v9 = vsel %vm1236_vm8, %v3818_v40, %v10284_v38  ;;  %v3666_v12 = vadd.f32 %v3627_v46, %v3526_v59  ;;  %v3667_v28 = vadd.f32 %v3629_v8, %v3527_v43  ;;  %v4155_v40 = vld [vmem:[#allocation2 + $0x178] sm:$0xf]  ;;  %v4347_v2 = vld [vmem:[#allocation2 + $0x1a8] sm:$0x1] }
 0x2b4   : > { %v3960_v24 = vrot.slane %v8008_v39, 2  ;;  %v4039_v58 = vmul.f32 %v10143_v16, %v4014_v21  ;;  %v4040_v48 = vmul.f32 %v8884_v47, %v10143_v16  ;;  %v5556_v31 = vmin.f32 %v5540_v20, 6.0  ;;  %v4486_v20 = vld [vmem:[#allocation2 + $0x188] sm:$0xfc] }
 0x2b5   : > { %v5557_v51 = vmin.f32 %v5541_v25, 6.0  ;;  %v3718_v26 = vadd.f32 %v10285_v30, %v3666_v12  ;;  %v3719_v13 = vadd.f32 %v3703_v53, %v3667_v28  ;;  %v3959_v35 = vsel %vm1393_vm9, %v3957_v54, %v3958_v60 }
 0x2b6   : > { %v3961_v59 = vsel %vm1393_vm9, %v3958_v60, %v3960_v24  ;;  %v4041_v43 = vmul.f32 %v10143_v16, %v4015_v41  ;;  %v4097_v14 = vrot.slane %v4039_v58, 3  ;;  %v4098_v7 = vrot.slane %v4040_v48, 3  ;;  %v4487_v24 = vld [vmem:[#allocation2 + $0x1a8] sm:$0x3] }
 0x2b7   : > { %v5568_v39 = vpack.c.bf16 %v5557_v51, %v5556_v31  ;;  %v3858_v32 = vadd.f32 %v3819_v42, %v3718_v26  ;;  %v3859_v21 = vadd.f32 %v3821_v9, %v3719_v13  ;;  %v4179_v1 = vmul.f32 %v8209_v19, %v4154_v56  ;;  %v4626_v51 = vld [vmem:[#allocation2 + $0x188] sm:$0xf8] }
 0x2b8   : > { %v4100_v36 = vrot.slane %v4041_v43, 3  ;;  %v4180_v46 = vmul.f32 %v8884_v47, %v8209_v19  ;;  %v4181_v53 = vmul.f32 %v8209_v19, %v4155_v40  ;;  %v4099_v8 = vsel %vm2847_vm11, %v4097_v14, %v4098_v7  ;;  %v4627_v14 = vld [vmem:[#allocation2 + $0x1a8] sm:$0x7] }
 0x2b9   : > { %6173 = vmatprep.mubr.bf16.mxu1 %v5568_v39  ;;  %v3998_v54 = vadd.f32 %v3959_v35, %v3858_v32  ;;  %v3999_v37 = vadd.f32 %v3961_v59, %v3859_v21  ;;  %v4314_v4 = vmul.f32 %v8827_v61, %v8214_v22  ;;  %v4237_v38 = vrot.slane %v4179_v1, 4 }
 0x2ba   : > { %v4101_v42 = vsel %vm2847_vm11, %v4098_v7, %v4100_v36  ;;  %v4238_v9 = vrot.slane %v4180_v46, 4  ;;  %v4240_v41 = vrot.slane %v4181_v53, 4  ;;  %v4315_v28 = vmul.f32 %v8834_v45, %v8214_v22  ;;  %v4766_v36 = vld [vmem:[#allocation2 + $0x188] sm:$0xf0] }
 0x2bb   : > { %v4138_v25 = vadd.f32 %v4099_v8, %v3998_v54  ;;  %v4139_v12 = vadd.f32 %v4101_v42, %v3999_v37  ;;  %v4371_v60 = vmul.f32 %v8232_v49, %v4346_v11  ;;  %v4372_v61 = vmul.f32 %v8834_v45, %v8232_v49  ;;  %v4767_v42 = vld [vmem:[#allocation2 + $0x1a8] sm:$0xf] }
 0x2bc   : > { %v4239_v58 = vsel %vm399_vm0, %v4237_v38, %v4238_v9  ;;  %v4241_v48 = vsel %vm399_vm0, %v4238_v9, %v4240_v41  ;;  %v4373_v31 = vmul.f32 %v8232_v49, %v4347_v2  ;;  %v4511_v56 = vmul.f32 %v8236_v0, %v4486_v20  ;;  %v6289_v38 = vld [vmem:[%s9783_s5 + $0x38] sm:$0xff]  }
 0x2bd   : > { %v4278_v30 = vadd.f32 %v4239_v58, %v4138_v25  ;;  %v4279_v26 = vadd.f32 %v4241_v48, %v4139_v12  ;;  %v4429_v13 = vrot.slane %v4371_v60, 1  ;;  %v4430_v40 = vrot.slane %v4372_v61, 1  ;;  %v8955_v12 = vld [vmem:[#allocation2 + $0x1c8] sm:$0xff]  ;;  %6195 = vmatprep.subr.bf16.mxu1 %v6289_v38 }
 0x2be   : > { %v4432_v35 = vrot.slane %v4373_v31, 1  ;;  %v4512_v59 = vmul.f32 %v8834_v45, %v8236_v0  ;;  %v4513_v43 = vmul.f32 %v8236_v0, %v4487_v24  ;;  %v4569_v21 = vrot.slane %v4511_v56, 2  ;;  %6196 = vmatpush3.bf16.msra.mxu1 %v6289_v38 }
 0x2bf   : > { %v4330_v39 = vadd.f32 %v4314_v4, %v4278_v30  ;;  %v4331_v32 = vadd.f32 %v4315_v28, %v4279_v26  ;;  %v4651_v7 = vmul.f32 %v8240_v3, %v4626_v51  ;;  %v4431_v1 = vsel %vm1236_vm8, %v4429_v13, %v4430_v40  ;;  %v8947_v4 = vld [vmem:[#allocation2 + $0x1b8] sm:$0xff] }
 0x2c0   : > { %v4433_v46 = vsel %vm1236_vm8, %v4430_v40, %v4432_v35  ;;  %v4570_v53 = vrot.slane %v4512_v59, 2  ;;  %v4572_v11 = vrot.slane %v4513_v43, 2  ;;  %v4652_v8 = vmul.f32 %v8834_v45, %v8240_v3  ;;  %v4959_v28 = vld [vmem:[#allocation2 + $0x1b8] sm:$0xfe]  ;;  %v4960_v26 = vld [vmem:[#allocation2 + $0x1d8] sm:$0x1] }
 0x2c1   : > { %v4470_v54 = vadd.f32 %v4431_v1, %v4330_v39  ;;  %v4471_v37 = vadd.f32 %v4433_v46, %v4331_v32  ;;  %v4653_v2 = vmul.f32 %v8240_v3, %v4627_v14  ;;  %v4709_v20 = vrot.slane %v4651_v7, 3  ;;  %v5099_v13 = vld [vmem:[#allocation2 + $0x1b8] sm:$0xfc]  ;;  %v5100_v43 = vld [vmem:[#allocation2 + $0x1d8] sm:$0x3] }
 0x2c2   : > { %v4571_v9 = vsel %vm1393_vm9, %v4569_v21, %v4570_v53  ;;  %v4573_v41 = vsel %vm1393_vm9, %v4570_v53, %v4572_v11  ;;  %v4791_v25 = vmul.f32 %v8244_v10, %v4766_v36  ;;  %v4710_v58 = vrot.slane %v4652_v8, 3  ;;  %v5239_v46 = vld [vmem:[#allocation2 + $0x1b8] sm:$0xf8] }
 0x2c3   : > { %v4610_v60 = vadd.f32 %v4571_v9, %v4470_v54  ;;  %v4611_v24 = vadd.f32 %v4573_v41, %v4471_v37  ;;  %v4712_v48 = vrot.slane %v4653_v2, 3  ;;  %v4792_v61 = vmul.f32 %v8834_v45, %v8244_v10  ;;  %v5240_v9 = vld [vmem:[#allocation2 + $0x1d8] sm:$0x7] }
 0x2c4   : > { %v4793_v31 = vmul.f32 %v8244_v10, %v4767_v42  ;;  %v4849_v51 = vrot.slane %v4791_v25, 4  ;;  %v4927_v30 = vmul.f32 %v8250_v34, %v8947_v4  ;;  %v4711_v56 = vsel %vm2847_vm11, %v4709_v20, %v4710_v58 }
 0x2c5   : > { %v4713_v40 = vsel %vm2847_vm11, %v4710_v58, %v4712_v48  ;;  %v4928_v35 = vmul.f32 %v8250_v34, %v8955_v12  ;;  %v4984_v59 = vmul.f32 %v8254_v44, %v4959_v28  ;;  %v4750_v45 = vadd.f32 %v4711_v56, %v4610_v60  ;;  %v5379_v60 = vld [vmem:[#allocation2 + $0x1b8] sm:$0xf0] }
 0x2c6   : > { %v4751_v14 = vadd.f32 %v4713_v40, %v4611_v24  ;;  %v4850_v39 = vrot.slane %v4792_v61, 4  ;;  %v4852_v32 = vrot.slane %v4793_v31, 4  ;;  %v4985_v21 = vmul.f32 %v8254_v44, %v8955_v12  ;;  %v5380_v31 = vld [vmem:[#allocation2 + $0x1d8] sm:$0xf] }
 0x2c7   : > { %v4986_v7 = vmul.f32 %v8254_v44, %v4960_v26  ;;  %v5042_v36 = vrot.slane %v4984_v59, 1  ;;  %v5124_v1 = vmul.f32 %v8294_v50, %v5099_v13  ;;  %v5125_v54 = vmul.f32 %v8294_v50, %v8955_v12 }
 0x2c8   : > { %v4851_v53 = vsel %vm399_vm0, %v4849_v51, %v4850_v39  ;;  %v4853_v11 = vsel %vm399_vm0, %v4850_v39, %v4852_v32  ;;  %v5126_v37 = vmul.f32 %v8294_v50, %v5100_v43  ;;  %v5043_v42 = vrot.slane %v4985_v21, 1 }
 0x2c9   : > { %v4890_v8 = vadd.f32 %v4851_v53, %v4750_v45  ;;  %v4891_v2 = vadd.f32 %v4853_v11, %v4751_v14  ;;  %v5045_v38 = vrot.slane %v4986_v7, 1  ;;  %v5182_v41 = vrot.slane %v5124_v1, 2  ;;  %v10287_v1 = vld [vmem:[#allocation112_spill] sm:$0xff] }
 0x2ca   : > { %v5183_v20 = vrot.slane %v5125_v54, 2  ;;  %v5185_v25 = vrot.slane %v5126_v37, 2  ;;  %v5264_v28 = vmul.f32 %v8308_v17, %v5239_v46  ;;  %v5044_v48 = vsel %vm1236_vm8, %v5042_v36, %v5043_v42 }
 0x2cb   : > { %v4943_v24 = vadd.f32 %v4927_v30, %v4890_v8  ;;  %v4944_v58 = vadd.f32 %v4928_v35, %v4891_v2  ;;  %v5046_v61 = vsel %vm1236_vm8, %v5043_v42, %v5045_v38  ;;  %v5265_v13 = vmul.f32 %v8308_v17, %v8955_v12  ;;  %v10289_v38 = vld [vmem:[#allocation116_spill] sm:$0xff] }
 0x2cc   : > { %v5184_v51 = vsel %vm1393_vm9, %v5182_v41, %v5183_v20  ;;  %v5186_v26 = vsel %vm1393_vm9, %v5183_v20, %v5185_v25  ;;  %v5266_v56 = vmul.f32 %v8308_v17, %v5240_v9  ;;  %v5322_v43 = vrot.slane %v5264_v28, 3  ;;  %v10291_v41 = vld [vmem:[#allocation113_spill] sm:$0xff] }
 0x2cd   : > { %v5083_v40 = vadd.f32 %v5044_v48, %v4943_v24  ;;  %v5084_v59 = vadd.f32 %v5046_v61, %v4944_v58  ;;  %v5404_v30 = vmul.f32 %v8726_v55, %v5379_v60  ;;  %v5323_v35 = vrot.slane %v5265_v13, 3  ;;  %v10293_v24 = vld [vmem:[#allocation51_spill] sm:$0xff] }
 0x2ce   : > { %v5325_v45 = vrot.slane %v5266_v56, 3  ;;  %v5405_v14 = vmul.f32 %v8726_v55, %v8955_v12  ;;  %v5406_v39 = vmul.f32 %v8726_v55, %v5380_v31  ;;  %v10286_v36 = vrot.slane %v7920_v27, 1 }
 0x2cf   : > { %v5223_v32 = vadd.f32 %v5184_v51, %v5083_v40  ;;  %v5224_v21 = vadd.f32 %v5186_v26, %v5084_v59  ;;  %v5462_v7 = vrot.slane %v5404_v30, 4  ;;  %v10288_v46 = vrot.slane %v10287_v1, 1  ;;  %v10294_v26 = vld [vmem:[#allocation114_spill] sm:$0xff] }
 0x2d0   : > { %v5324_v11 = vsel %vm2847_vm11, %v5322_v43, %v5323_v35  ;;  %v5326_v54 = vsel %vm2847_vm11, %v5323_v35, %v5325_v45  ;;  %v5463_v37 = vrot.slane %v5405_v14, 4  ;;  %v5465_v8 = vrot.slane %v5406_v39, 4  ;;  %v9014_v43 = vld [vmem:[#allocation2 + $0x198] sm:$0xff] }
 0x2d1   : > { %v3212_v53 = vsel %vm1236_vm8, %v10288_v46, %v10286_v36  ;;  %v5363_v2 = vadd.f32 %v5324_v11, %v5223_v32  ;;  %v5364_v42 = vadd.f32 %v5326_v54, %v5224_v21  ;;  %v10290_v55 = vrot.slane %v7923_v23, 2  ;;  %v4016_v23 = vld [vmem:[#allocation2 + $0x188] sm:$0xf8]  ;;  %v4017_v21 = vld [vmem:[#allocation2 + $0x1a8] sm:$0x7] }
 0x2d2   : > { %v3248_v9 = vadd.f32 %v3212_v53, %v10289_v38  ;;  %v10292_v20 = vrot.slane %v10291_v41, 2  ;;  %v5464_v25 = vsel %vm399_vm0, %v5462_v7, %v5463_v37  ;;  %v5466_v28 = vsel %vm399_vm0, %v5463_v37, %v5465_v8  ;;  %v10297_v53 = vld [vmem:[#allocation115_spill] sm:$0xff]  ;;  %v10299_v54 = vld [vmem:[#allocation24_spill] sm:$0xff] }
 0x2d3   : > { %v3389_v60 = vadd.f32 %v7999_v63, %v8001_v52  ;;  %v3491_v58 = vrot.slane %v10293_v24, 3  ;;  %v5503_v48 = vadd.f32 %v5464_v25, %v5363_v2  ;;  %v5504_v61 = vadd.f32 %v5466_v28, %v5364_v42  ;;  %v10301_v2 = vld [vmem:[#allocation125_spill] sm:$0xff]  ;;  %v4156_v41 = vld [vmem:[#allocation2 + $0x188] sm:$0xf0] }
 0x2d4   : > { %v3352_v27 = vsel %vm1393_vm9, %v10292_v20, %v10290_v55  ;;  %v3571_v51 = vmul.f32 %v8884_v47, %v6570_v15  ;;  %v10295_v13 = vrot.slane %v10294_v26, 3  ;;  %v10296_v40 = vrot.slane %v7982_v62, 3 }
 0x2d5   : > { %v3388_v31 = vadd.f32 %v3352_v27, %v3248_v9  ;;  %v3705_v63 = vmul.f32 %v9014_v43, %v6599_v29  ;;  %v3763_v52 = vmul.f32 %v9014_v43, %v6579_v18  ;;  %v5526_v30 = vadd.f32 %v8773_v5, %v5503_v48  ;;  %v4157_v48 = vld [vmem:[#allocation2 + $0x1a8] sm:$0xf] }
 0x2d6   : > { %v3492_v56 = vsel %vm2847_vm11, %v10295_v13, %v3491_v58  ;;  %v3494_v59 = vsel %vm2847_vm11, %v3491_v58, %v10296_v40  ;;  %v5527_v47 = vadd.f32 %v8773_v5, %v5504_v61  ;;  %v3631_v14 = vrot.slane %v3571_v51, 4 }
 0x2d7   : > { %v3528_v35 = vadd.f32 %v3492_v56, %v3388_v31  ;;  %v3529_v45 = vadd.f32 %v3494_v59, %v3389_v60  ;;  %v3823_v39 = vrot.slane %v3763_v52, 1  ;;  %v3903_v62 = vmul.f32 %v9014_v43, %v6603_v33  ;;  %v10305_v31 = vld [vmem:[#allocation124_spill] sm:$0xff] }
 0x2d8   : > { %v3962_v32 = vrot.slane %v8038_v57, 2  ;;  %v5542_v7 = vmax.f32 %v5526_v30, 0.0  ;;  %v5543_v36 = vmax.f32 %v5527_v47, 0.0  ;;  %v3965_v1 = vrot.slane %v8121_v6, 2  ;;  %v10303_v57 = vld [vmem:[#allocation130_spill] sm:$0xff] }
 0x2d9   : > { %v4042_v46 = vmul.f32 %v10143_v16, %v4016_v23  ;;  %v10298_v11 = vrot.slane %v10297_v53, 4  ;;  %v10300_v37 = vrot.slane %v10299_v54, 4  ;;  %v10302_v42 = vrot.slane %v10301_v2, 1 }
 0x2da   : > { %v10304_v9 = vrot.slane %v10303_v57, 1  ;;  %v5558_v6 = vmin.f32 %v5542_v7, 6.0  ;;  %v5559_v20 = vmin.f32 %v5543_v36, 6.0  ;;  %v3963_v28 = vrot.slane %v3903_v62, 2 }
 0x2db   : > { %v3632_v5 = vsel %vm399_vm0, %v10298_v11, %v3631_v14  ;;  %v3634_v8 = vsel %vm399_vm0, %v3631_v14, %v10300_v37  ;;  %v3824_v38 = vsel %vm1236_vm8, %v10302_v42, %v3823_v39  ;;  %v4043_v60 = vmul.f32 %v9014_v43, %v10143_v16  ;;  %v4349_v14 = vld [vmem:[#allocation2 + $0x1d8] sm:$0x1] }
 0x2dc   : > { %v3826_v55 = vsel %vm1236_vm8, %v3823_v39, %v10304_v9  ;;  %v3668_v27 = vadd.f32 %v3632_v5, %v3528_v35  ;;  %v3669_v25 = vadd.f32 %v3634_v8, %v3529_v45  ;;  %v4044_v24 = vmul.f32 %v10143_v16, %v4017_v21  ;;  %v4348_v45 = vld [vmem:[#allocation2 + $0x1b8] sm:$0xfe] }
 0x2dd   : > { %v4102_v58 = vrot.slane %v4042_v46, 3  ;;  %v5569_v61 = vpack.c.bf16 %v5559_v20, %v5558_v6  ;;  %v4182_v26 = vmul.f32 %v8209_v19, %v4156_v41  ;;  %v3964_v13 = vsel %vm1393_vm9, %v3962_v32, %v3963_v28  ;;  %v4488_v46 = vld [vmem:[#allocation2 + $0x1b8] sm:$0xfc]  ;;  %v4489_v37 = vld [vmem:[#allocation2 + $0x1d8] sm:$0x3] }
 0x2de   : > { %v3720_v51 = vadd.f32 %v10305_v31, %v3668_v27  ;;  %v3721_v23 = vadd.f32 %v3705_v63, %v3669_v25  ;;  %v3966_v56 = vsel %vm1393_vm9, %v3963_v28, %v3965_v1  ;;  %v4103_v40 = vrot.slane %v4043_v60, 3  ;;  %v4629_v28 = vld [vmem:[#allocation2 + $0x1d8] sm:$0x7]  ;;  %v4768_v60 = vld [vmem:[#allocation2 + $0x1b8] sm:$0xf0] }
 0x2df   : > { %v4105_v59 = vrot.slane %v4044_v24, 3  ;;  %6174 = vmatmul.mubr.bf16.gmra.mrb[8].mxu1 %v5569_v61  ;;  %v4183_v47 = vmul.f32 %v9014_v43, %v8209_v19  ;;  %v4184_v35 = vmul.f32 %v8209_v19, %v4157_v48  ;;  %v4242_v62 = vrot.slane %v4182_v26, 4 }
 0x2e0   : > { %v3860_v52 = vadd.f32 %v3824_v38, %v3720_v51  ;;  %v3861_v30 = vadd.f32 %v3826_v55, %v3721_v23  ;;  %v4104_v63 = vsel %vm2847_vm11, %v4102_v58, %v4103_v40  ;;  %v4316_v32 = vmul.f32 %v8947_v4, %v8214_v22  ;;  %v4628_v38 = vld [vmem:[#allocation2 + $0x1b8] sm:$0xf8] }
 0x2e1   : > { %v4106_v39 = vsel %vm2847_vm11, %v4103_v40, %v4105_v59  ;;  %v4243_v36 = vrot.slane %v4183_v47, 4  ;;  %v4245_v1 = vrot.slane %v4184_v35, 4  ;;  %v4317_v53 = vmul.f32 %v8955_v12, %v8214_v22 }
 0x2e2   : > { %v4000_v21 = vadd.f32 %v3964_v13, %v3860_v52  ;;  %v4001_v7 = vadd.f32 %v3966_v56, %v3861_v30  ;;  %v4374_v11 = vmul.f32 %v8232_v49, %v4348_v45  ;;  %v4375_v5 = vmul.f32 %v8955_v12, %v8232_v49  ;;  %v4769_v13 = vld [vmem:[#allocation2 + $0x1d8] sm:$0xf]  ;;  %v9072_v30 = vld [vmem:[#allocation2 + $0x1e8] sm:$0xff] }
 0x2e3   : > { %v4376_v54 = vmul.f32 %v8232_v49, %v4349_v14  ;;  %v4244_v4 = vsel %vm399_vm0, %v4242_v62, %v4243_v36  ;;  %v4246_v42 = vsel %vm399_vm0, %v4243_v36, %v4245_v1  ;;  %v4514_v41 = vmul.f32 %v8236_v0, %v4488_v46 }
 0x2e4   : > { %v4140_v8 = vadd.f32 %v4104_v63, %v4000_v21  ;;  %v4141_v2 = vadd.f32 %v4106_v39, %v4001_v7  ;;  %v4434_v57 = vrot.slane %v4374_v11, 1  ;;  %v4435_v9 = vrot.slane %v4375_v5, 1  ;;  %v9079_v21 = vld [vmem:[#allocation2 + $0x1f8] sm:$0xff]  ;;  %v4961_v7 = vld [vmem:[#allocation2 + $0x1e8] sm:$0xfe] }
 0x2e5   : > { %v4437_v55 = vrot.slane %v4376_v54, 1  ;;  %v4515_v27 = vmul.f32 %v8955_v12, %v8236_v0  ;;  %v4516_v25 = vmul.f32 %v8236_v0, %v4489_v37  ;;  %v4574_v48 = vrot.slane %v4514_v41, 2  ;;  %v4962_v11 = vld [vmem:[#allocation2 + $0x208] sm:$0x1] }
 0x2e6   : > { %v4280_v6 = vadd.f32 %v4244_v4, %v4140_v8  ;;  %v4281_v20 = vadd.f32 %v4246_v42, %v4141_v2  ;;  %v4436_v24 = vsel %vm1236_vm8, %v4434_v57, %v4435_v9  ;;  %v4654_v61 = vmul.f32 %v8240_v3, %v4628_v38  ;;  %v5101_v2 = vld [vmem:[#allocation2 + $0x1e8] sm:$0xfc]  ;;  %v5102_v57 = vld [vmem:[#allocation2 + $0x208] sm:$0x3] }
 0x2e7   : > { %v4438_v58 = vsel %vm1236_vm8, %v4435_v9, %v4437_v55  ;;  %v4575_v23 = vrot.slane %v4515_v27, 2  ;;  %v4577_v26 = vrot.slane %v4516_v25, 2  ;;  %v4655_v56 = vmul.f32 %v8955_v12, %v8240_v3 }
 0x2e8   : > { %v4332_v31 = vadd.f32 %v4316_v32, %v4280_v6  ;;  %v4333_v51 = vadd.f32 %v4317_v53, %v4281_v20  ;;  %v4656_v40 = vmul.f32 %v8240_v3, %v4629_v28  ;;  %v4714_v59 = vrot.slane %v4654_v61, 3  ;;  %v5241_v20 = vld [vmem:[#allocation2 + $0x1e8] sm:$0xf8] }
 0x2e9   : > { %v4794_v52 = vmul.f32 %v8244_v10, %v4768_v60  ;;  %v4576_v45 = vsel %vm1393_vm9, %v4574_v48, %v4575_v23  ;;  %v4578_v14 = vsel %vm1393_vm9, %v4575_v23, %v4577_v26  ;;  %v4715_v63 = vrot.slane %v4655_v56, 3  ;;  %v5381_v56 = vld [vmem:[#allocation2 + $0x1e8] sm:$0xf0] }
 0x2ea   : > { %v4472_v47 = vadd.f32 %v4436_v24, %v4332_v31  ;;  %v4473_v35 = vadd.f32 %v4438_v58, %v4333_v51  ;;  %v4717_v39 = vrot.slane %v4656_v40, 3  ;;  %v4795_v62 = vmul.f32 %v8955_v12, %v8244_v10  ;;  %v5242_v31 = vld [vmem:[#allocation2 + $0x208] sm:$0x7] }
 0x2eb   : > { %v4796_v32 = vmul.f32 %v8244_v10, %v4769_v13  ;;  %v4854_v46 = vrot.slane %v4794_v52, 4  ;;  %v4929_v53 = vmul.f32 %v8250_v34, %v9072_v30  ;;  %v4716_v5 = vsel %vm2847_vm11, %v4714_v59, %v4715_v63 }
 0x2ec   : > { %v4612_v36 = vadd.f32 %v4576_v45, %v4472_v47  ;;  %v4613_v1 = vadd.f32 %v4578_v14, %v4473_v35  ;;  %v4718_v54 = vsel %vm2847_vm11, %v4715_v63, %v4717_v39  ;;  %v4855_v37 = vrot.slane %v4795_v62, 4  ;;  %v5382_v39 = vld [vmem:[#allocation2 + $0x208] sm:$0xf] }
 0x2ed   : > { %v4857_v8 = vrot.slane %v4796_v32, 4  ;;  %v4930_v42 = vmul.f32 %v8250_v34, %v9079_v21  ;;  %v4987_v38 = vmul.f32 %v8254_v44, %v4961_v7  ;;  %v4988_v41 = vmul.f32 %v8254_v44, %v9079_v21 }
 0x2ee   : > { %v4752_v12 = vadd.f32 %v4716_v5, %v4612_v36  ;;  %v4753_v4 = vadd.f32 %v4718_v54, %v4613_v1  ;;  %v4856_v9 = vsel %vm399_vm0, %v4854_v46, %v4855_v37  ;;  %v4989_v6 = vmul.f32 %v8254_v44, %v4962_v11  ;;  %v9108_v36 = vld [vmem:[%s9781_s3 + $0x38] ss:$0 sm:$0xff] }
 0x2ef   : > { %v4858_v55 = vsel %vm399_vm0, %v4855_v37, %v4857_v8  ;;  %v5047_v28 = vrot.slane %v4987_v38, 1  ;;  %v5127_v60 = vmul.f32 %v8294_v50, %v5101_v2  ;;  %v5048_v24 = vrot.slane %v4988_v41, 1  ;;  %v10306_v2 = vld [vmem:[#allocation127_spill] sm:$0xff] }
 0x2f0   : > { %v4892_v27 = vadd.f32 %v4856_v9, %v4752_v12  ;;  %v4893_v25 = vadd.f32 %v4858_v55, %v4753_v4  ;;  %v5050_v58 = vrot.slane %v4989_v6, 1  ;;  %v5128_v48 = vmul.f32 %v8294_v50, %v9079_v21  ;;  %v10308_v4 = vld [vmem:[#allocation120_spill] sm:$0xff]  ;;  %v10310_v55 = vld [vmem:[#allocation126_spill] sm:$0xff] }
 0x2f1   : > { %v5129_v61 = vmul.f32 %v8294_v50, %v5102_v57  ;;  %v5187_v26 = vrot.slane %v5127_v60, 2  ;;  %v5267_v13 = vmul.f32 %v8308_v17, %v5241_v20  ;;  %v5049_v40 = vsel %vm1236_vm8, %v5047_v28, %v5048_v24  ;;  %v10311_v6 = vld [vmem:[#allocation128_spill] sm:$0xff] }
 0x2f2   : > { %v4945_v51 = vadd.f32 %v4929_v53, %v4892_v27  ;;  %v4946_v23 = vadd.f32 %v4930_v42, %v4893_v25  ;;  %v5051_v59 = vsel %vm1236_vm8, %v5048_v24, %v5050_v58  ;;  %v5188_v52 = vrot.slane %v5128_v48, 2  ;;  %v10313_v27 = vld [vmem:[#allocation121_spill] sm:$0xff] }
 0x2f3   : > { %v5190_v47 = vrot.slane %v5129_v61, 2  ;;  %v5268_v14 = vmul.f32 %v8308_v17, %v9079_v21  ;;  %v5269_v63 = vmul.f32 %v8308_v17, %v5242_v31  ;;  %v5327_v7 = vrot.slane %v5267_v13, 3  ;;  %v10315_v31 = vld [vmem:[#allocation29_spill] sm:$0xff] }
 0x2f4   : > { %v5085_v35 = vadd.f32 %v5049_v40, %v4945_v51  ;;  %v5086_v45 = vadd.f32 %v5051_v59, %v4946_v23  ;;  %v5189_v62 = vsel %vm1393_vm9, %v5187_v26, %v5188_v52  ;;  %v5407_v1 = vmul.f32 %v9108_v36, %v5381_v56  ;;  %v10316_v51 = vld [vmem:[#allocation131_spill] sm:$0xff]  ;;  %v10317_v26 = vld [vmem:[#allocation129_spill] sm:$0xff] }
 0x2f5   : > { %v5191_v32 = vsel %vm1393_vm9, %v5188_v52, %v5190_v47  ;;  %v5328_v11 = vrot.slane %v5268_v14, 3  ;;  %v5330_v5 = vrot.slane %v5269_v63, 3  ;;  %v5408_v54 = vmul.f32 %v9108_v36, %v9079_v21  ;;  %v6302_v52 = vld [vmem:[#allocation2 + $0x1c8] sm:$0xff]  ;;  %v10318_v63 = vld [vmem:[#allocation122_spill] sm:$0xff] }
 0x2f6   : > { %v5225_v46 = vadd.f32 %v5189_v62, %v5085_v35  ;;  %v5226_v53 = vadd.f32 %v5191_v32, %v5086_v45  ;;  %v5409_v37 = vmul.f32 %v9108_v36, %v5382_v39  ;;  %v5467_v8 = vrot.slane %v5407_v1, 4  ;;  %v10320_v32 = vld [vmem:[#allocation28_spill] sm:$0xff] }
 0x2f7   : > { %v10307_v12 = vrot.slane %v10306_v2, 1  ;;  %v10309_v42 = vrot.slane %v10308_v4, 1  ;;  %v5329_v57 = vsel %vm2847_vm11, %v5327_v7, %v5328_v11  ;;  %v5331_v9 = vsel %vm2847_vm11, %v5328_v11, %v5330_v5  ;;  %v4018_v11 = vld [vmem:[#allocation2 + $0x1b8] sm:$0xf8]  ;;  %v10323_v2 = vld [vmem:[#allocation123_spill] sm:$0xff] }
 0x2f8   : > { %v10312_v20 = vrot.slane %v10311_v6, 2  ;;  %v10314_v25 = vrot.slane %v10313_v27, 2  ;;  %v5365_v60 = vadd.f32 %v5329_v57, %v5225_v46  ;;  %v5366_v24 = vadd.f32 %v5331_v9, %v5226_v53  ;;  %v10327_v9 = vld [vmem:[#allocation132_spill] sm:$0xff]  ;;  %v10329_v6 = vld [vmem:[#allocation23_spill] sm:$0xff] }
 0x2f9   : > { %v3217_v38 = vsel %vm1236_vm8, %v10309_v42, %v10307_v12  ;;  %v5468_v58 = vrot.slane %v5408_v54, 4  ;;  %v5470_v48 = vrot.slane %v5409_v37, 4  ;;  %v3391_v23 = vadd.f32 %v10316_v51, %v10315_v31  ;;  %v10322_v37 = vld [vmem:[#allocation133_spill] sm:$0xff]  ;;  %v10325_v42 = vld [vmem:[#allocation22_spill] sm:$0xff] }
 0x2fa   : > { %v3250_v41 = vadd.f32 %v3217_v38, %v10310_v55  ;;  %v3357_v28 = vsel %vm1393_vm9, %v10314_v25, %v10312_v20  ;;  %v3496_v13 = vrot.slane %v10317_v26, 3  ;;  %v3574_v56 = vmul.f32 %v9014_v43, %v6570_v15  ;;  %v4019_v25 = vld [vmem:[#allocation2 + $0x1d8] sm:$0x7] }
 0x2fb   : > { %v5469_v40 = vsel %vm399_vm0, %v5467_v8, %v5468_v58  ;;  %v5471_v59 = vsel %vm399_vm0, %v5468_v58, %v5470_v48  ;;  %v3707_v47 = vmul.f32 %v6302_v52, %v6599_v29  ;;  %v3766_v35 = vmul.f32 %v6302_v52, %v6579_v18  ;;  %v9145_v29 = vld [vmem:[%s9782_s4 + $0x1] ss:$0 sm:$0xff]  ;;  %v10331_v48 = vld [vmem:[#allocation30_spill] sm:$0xff] }
 0x2fc   : > { %v3390_v61 = vadd.f32 %v3357_v28, %v3250_v41  ;;  %v5505_v45 = vadd.f32 %v5469_v40, %v5365_v60  ;;  %v5506_v14 = vadd.f32 %v5471_v59, %v5366_v24  ;;  %v10319_v39 = vrot.slane %v10318_v63, 3  ;;  %v4158_v59 = vld [vmem:[#allocation2 + $0x1b8] sm:$0xf0] }
 0x2fd   : > { %v10321_v7 = vrot.slane %v10320_v32, 3  ;;  %v3636_v46 = vrot.slane %v3574_v56, 4  ;;  %v3828_v53 = vrot.slane %v3766_v35, 1  ;;  %v3906_v54 = vmul.f32 %v6302_v52, %v6603_v33  ;;  %v4159_v35 = vld [vmem:[#allocation2 + $0x1d8] sm:$0xf] }
 0x2fe   : > { %v3497_v62 = vsel %vm2847_vm11, %v10319_v39, %v3496_v13  ;;  %v5528_v18 = vadd.f32 %v9145_v29, %v5505_v45  ;;  %v5529_v5 = vadd.f32 %v9145_v29, %v5506_v14  ;;  %v3967_v8 = vrot.slane %v10322_v37, 2 }
 0x2ff   : > { %v3499_v1 = vsel %vm2847_vm11, %v3496_v13, %v10321_v7  ;;  %v3530_v15 = vadd.f32 %v3497_v62, %v3390_v61  ;;  %v10324_v12 = vrot.slane %v10323_v2, 4  ;;  %v10326_v38 = vrot.slane %v10325_v42, 4  ;;  %v10332_v13 = vld [vmem:[#allocation27_spill] sm:$0xff] }
 0x300   : > { %v3531_v43 = vadd.f32 %v3499_v1, %v3391_v23  ;;  %v10328_v55 = vrot.slane %v10327_v9, 1  ;;  %v10330_v20 = vrot.slane %v10329_v6, 1  ;;  %v5544_v33 = vmax.f32 %v5528_v18, 0.0  ;;  %v4630_v6 = vld [vmem:[#allocation2 + $0x1e8] sm:$0xf8] }
 0x301   : > { %v3637_v4 = vsel %vm399_vm0, %v10324_v12, %v3636_v46  ;;  %v3639_v57 = vsel %vm399_vm0, %v3636_v46, %v10326_v38  ;;  %v5545_v28 = vmax.f32 %v5529_v5, 0.0  ;;  %v3968_v58 = vrot.slane %v3906_v54, 2  ;;  %v4351_v54 = vld [vmem:[#allocation2 + $0x208] sm:$0x1] }
 0x302   : > { %v3829_v41 = vsel %vm1236_vm8, %v10328_v55, %v3828_v53  ;;  %v3831_v27 = vsel %vm1236_vm8, %v3828_v53, %v10330_v20  ;;  %v3670_v60 = vadd.f32 %v3637_v4, %v3530_v15  ;;  %v3671_v24 = vadd.f32 %v3639_v57, %v3531_v43  ;;  %v4350_v53 = vld [vmem:[#allocation2 + $0x1e8] sm:$0xfe] }
 0x303   : > { %v3970_v61 = vrot.slane %v10331_v48, 2  ;;  %v4045_v31 = vmul.f32 %v10143_v16, %v4018_v11  ;;  %v4046_v51 = vmul.f32 %v6302_v52, %v10143_v16  ;;  %v5560_v23 = vmin.f32 %v5544_v33, 6.0  ;;  %v4490_v4 = vld [vmem:[#allocation2 + $0x1e8] sm:$0xfc]  ;;  %v4491_v57 = vld [vmem:[#allocation2 + $0x208] sm:$0x3] }
 0x304   : > { %v5561_v26 = vmin.f32 %v5545_v28, 6.0  ;;  %v3722_v56 = vadd.f32 %v10332_v13, %v3670_v60  ;;  %v3723_v40 = vadd.f32 %v3707_v47, %v3671_v24  ;;  %v3969_v45 = vsel %vm1393_vm9, %v3967_v8, %v3968_v58 }
 0x305   : > { %v3971_v14 = vsel %vm1393_vm9, %v3968_v58, %v3970_v61  ;;  %v4047_v63 = vmul.f32 %v10143_v16, %v4019_v25  ;;  %v4107_v39 = vrot.slane %v4045_v31, 3  ;;  %v4108_v1 = vrot.slane %v4046_v51, 3  ;;  %v4631_v58 = vld [vmem:[#allocation2 + $0x208] sm:$0x7] }
 0x306   : > { %v5570_v62 = vpack.c.bf16 %v5561_v26, %v5560_v23  ;;  %v3862_v32 = vadd.f32 %v3829_v41, %v3722_v56  ;;  %v3863_v7 = vadd.f32 %v3831_v27, %v3723_v40  ;;  %v4185_v43 = vmul.f32 %v8209_v19, %v4158_v59 }
 0x307   : > { %v4110_v15 = vrot.slane %v4047_v63, 3  ;;  %v4186_v46 = vmul.f32 %v6302_v52, %v8209_v19  ;;  %v4187_v47 = vmul.f32 %v8209_v19, %v4159_v35  ;;  %v4109_v5 = vsel %vm2847_vm11, %v4107_v39, %v4108_v1 }
 0x308   : > { %6177 = vmatprep.mubr.bf16.mxu1 %v5570_v62  ;;  %v4002_v11 = vadd.f32 %v3969_v45, %v3862_v32  ;;  %v4003_v18 = vadd.f32 %v3971_v14, %v3863_v7  ;;  %v4318_v16 = vmul.f32 %v9072_v30, %v8214_v22  ;;  %v4247_v8 = vrot.slane %v4185_v43, 4  ;;  %v4771_v45 = vld [vmem:[#allocation2 + $0x208] sm:$0xf]  ;;  %v4911_v14 = vld [vmem:[#allocation2 + $0x218] sm:$0xff] }
 0x309   : > { %v4111_v37 = vsel %vm2847_vm11, %v4108_v1, %v4110_v15  ;;  %v4248_v2 = vrot.slane %v4186_v46, 4  ;;  %v4250_v12 = vrot.slane %v4187_v47, 4  ;;  %v4319_v19 = vmul.f32 %v9079_v21, %v8214_v22  ;;  %v4912_v7 = vld [vmem:[#allocation2 + $0x228] sm:$0xff]  ;;  %v4963_v1 = vld [vmem:[#allocation2 + $0x218] sm:$0xfe] }
 0x30a   : > { %v4142_v42 = vadd.f32 %v4109_v5, %v4002_v11  ;;  %v4143_v52 = vadd.f32 %v4111_v37, %v4003_v18  ;;  %v4377_v38 = vmul.f32 %v8232_v49, %v4350_v53  ;;  %v4378_v30 = vmul.f32 %v9079_v21, %v8232_v49  ;;  %v4964_v5 = vld [vmem:[#allocation2 + $0x238] sm:$0x1] }
 0x30b   : > { %v4249_v9 = vsel %vm399_vm0, %v4247_v8, %v4248_v2  ;;  %v4251_v55 = vsel %vm399_vm0, %v4248_v2, %v4250_v12  ;;  %v4379_v41 = vmul.f32 %v8232_v49, %v4351_v54  ;;  %v4517_v33 = vmul.f32 %v8236_v0, %v4490_v4  ;;  %v4770_v49 = vld [vmem:[#allocation2 + $0x1e8] sm:$0xf0]  ;;  %v5104_v12 = vld [vmem:[#allocation2 + $0x238] sm:$0x3] }
 0x30c   : > { %v4282_v20 = vadd.f32 %v4249_v9, %v4142_v42  ;;  %v4283_v27 = vadd.f32 %v4251_v55, %v4143_v52  ;;  %v4439_v25 = vrot.slane %v4377_v38, 1  ;;  %v4440_v28 = vrot.slane %v4378_v30, 1  ;;  %v5243_v9 = vld [vmem:[#allocation2 + $0x218] sm:$0xf8] }
 0x30d   : > { %v4442_v22 = vrot.slane %v4379_v41, 1  ;;  %v4518_v60 = vmul.f32 %v9079_v21, %v8236_v0  ;;  %v4519_v24 = vmul.f32 %v8236_v0, %v4491_v57  ;;  %v4579_v31 = vrot.slane %v4517_v33, 2  ;;  %v5244_v33 = vld [vmem:[#allocation2 + $0x238] sm:$0x7] }
 0x30e   : > { %v4334_v48 = vadd.f32 %v4318_v16, %v4282_v20  ;;  %v4335_v61 = vadd.f32 %v4319_v19, %v4283_v27  ;;  %v4657_v51 = vmul.f32 %v8240_v3, %v4630_v6  ;;  %v4441_v23 = vsel %vm1236_vm8, %v4439_v25, %v4440_v28  ;;  %v5103_v16 = vld [vmem:[#allocation2 + $0x218] sm:$0xfc] }
 0x30f   : > { %v4443_v26 = vsel %vm1236_vm8, %v4440_v28, %v4442_v22  ;;  %v4580_v13 = vrot.slane %v4518_v60, 2  ;;  %v4582_v56 = vrot.slane %v4519_v24, 2  ;;  %v4658_v35 = vmul.f32 %v9079_v21, %v8240_v3  ;;  %v5383_v24 = vld [vmem:[#allocation2 + $0x218] sm:$0xf0] }
 0x310   : > { %v4474_v40 = vadd.f32 %v4441_v23, %v4334_v48  ;;  %v4475_v59 = vadd.f32 %v4443_v26, %v4335_v61  ;;  %v4659_v0 = vmul.f32 %v8240_v3, %v4631_v58  ;;  %v4719_v62 = vrot.slane %v4657_v51, 3  ;;  %v5384_v51 = vld [vmem:[#allocation2 + $0x238] sm:$0xf] }
 0x311   : > { %v4581_v63 = vsel %vm1393_vm9, %v4579_v31, %v4580_v13  ;;  %v4583_v39 = vsel %vm1393_vm9, %v4580_v13, %v4582_v56  ;;  %v4797_v32 = vmul.f32 %v8244_v10, %v4770_v49  ;;  %v4720_v46 = vrot.slane %v4658_v35, 3 }
 0x312   : > { %v4614_v15 = vadd.f32 %v4581_v63, %v4474_v40  ;;  %v4615_v43 = vadd.f32 %v4583_v39, %v4475_v59  ;;  %v4722_v47 = vrot.slane %v4659_v0, 3  ;;  %v4798_v53 = vmul.f32 %v9079_v21, %v8244_v10  ;;  %v1092_v63 = vld [vmem:[#allocation2 + $0x30] sm:$0xfe]  ;;  %v1093_v39 = vld [vmem:[#allocation2 + $0x40] sm:$0xff] }
 0x313   : > { %v4799_v3 = vmul.f32 %v8244_v10, %v4771_v45  ;;  %v4859_v11 = vrot.slane %v4797_v32, 4  ;;  %v4931_v18 = vmul.f32 %v8250_v34, %v4911_v14  ;;  %v4721_v54 = vsel %vm2847_vm11, %v4719_v62, %v4720_v46 }
 0x314   : > { %v4723_v37 = vsel %vm2847_vm11, %v4720_v46, %v4722_v47  ;;  %v4932_v8 = vmul.f32 %v8250_v34, %v4912_v7  ;;  %v4990_v2 = vmul.f32 %v8254_v44, %v4963_v1  ;;  %v4754_v4 = vadd.f32 %v4721_v54, %v4614_v15  ;;  %v1094_v15 = vld [vmem:[#allocation2 + $0x50] sm:$0x1]  ;;  %v1168_v47 = vld [vmem:[#allocation2 + $0x30] sm:$0xfc] }
 0x315   : > { %v4755_v42 = vadd.f32 %v4723_v37, %v4615_v43  ;;  %v4860_v52 = vrot.slane %v4798_v53, 4  ;;  %v4862_v21 = vrot.slane %v4799_v3, 4  ;;  %v4991_v10 = vmul.f32 %v8254_v44, %v4912_v7  ;;  %v10333_v43 = vld [vmem:[#allocation10_spill] sm:$0xff]  ;;  %v1325_v37 = vld [vmem:[#allocation2 + $0x30] sm:$0xf8] }
 0x316   : > { %v4992_v19 = vmul.f32 %v8254_v44, %v4964_v5  ;;  %v5052_v38 = vrot.slane %v4990_v2, 1  ;;  %v5130_v57 = vmul.f32 %v8294_v50, %v5103_v16  ;;  %v5131_v34 = vmul.f32 %v8294_v50, %v4912_v7 }
 0x317   : > { %v4861_v55 = vsel %vm399_vm0, %v4859_v11, %v4860_v52  ;;  %v4863_v30 = vsel %vm399_vm0, %v4860_v52, %v4862_v21  ;;  %v5132_v41 = vmul.f32 %v8294_v50, %v5104_v12  ;;  %v5053_v27 = vrot.slane %v4991_v10, 1  ;;  %v1169_v11 = vld [vmem:[#allocation2 + $0x50] sm:$0x3] }
 0x318   : > { %v4894_v6 = vadd.f32 %v4861_v55, %v4754_v4  ;;  %v4895_v20 = vadd.f32 %v4863_v30, %v4755_v42  ;;  %v5055_v25 = vrot.slane %v4992_v19, 1  ;;  %v5192_v28 = vrot.slane %v5130_v57, 2  ;;  %v10334_v42 = vld [vmem:[#allocation17_spill] sm:$0xff]  ;;  %v1483_v57 = vld [vmem:[#allocation2 + $0x60] sm:$0xfe] }
 0x319   : > { %v5193_v22 = vrot.slane %v5131_v34, 2  ;;  %v5195_v44 = vrot.slane %v5132_v41, 2  ;;  %v5270_v60 = vmul.f32 %v8308_v17, %v5243_v9  ;;  %v5054_v61 = vsel %vm1236_vm8, %v5052_v38, %v5053_v27  ;;  %v10335_v55 = vld [vmem:[#allocation13_spill] sm:$0xff] }
 0x31a   : > { %v4947_v58 = vadd.f32 %v4931_v18, %v4894_v6  ;;  %v4948_v48 = vadd.f32 %v4932_v8, %v4895_v20  ;;  %v5056_v31 = vsel %vm1236_vm8, %v5053_v27, %v5055_v25  ;;  %v5271_v23 = vmul.f32 %v8308_v17, %v4912_v7  ;;  %v1326_v8 = vld [vmem:[#allocation2 + $0x50] sm:$0x7] }
 0x31b   : > { %v5194_v50 = vsel %vm1393_vm9, %v5192_v28, %v5193_v22  ;;  %v5196_v49 = vsel %vm1393_vm9, %v5193_v22, %v5195_v44  ;;  %v5272_v26 = vmul.f32 %v8308_v17, %v5244_v33  ;;  %v5332_v40 = vrot.slane %v5270_v60, 3  ;;  %v6304_v17 = vld [vmem:[%s9781_s3] sm:$0xff]  ;;  %v9244_v44 = vld [vmem:[#allocation2 + $0x70] sm:$0xff]  ;;  %v10336_v60 = vld [vmem:[#allocation14_spill] sm:$0xff] }
 0x31c   : > { %v5087_v13 = vadd.f32 %v5054_v61, %v4947_v58  ;;  %v5088_v56 = vadd.f32 %v5056_v31, %v4948_v48  ;;  %v5410_v59 = vmul.f32 %v9108_v36, %v5383_v24  ;;  %v5333_v35 = vrot.slane %v5271_v23, 3 }
 0x31d   : > { %v5335_v0 = vrot.slane %v5272_v26, 3  ;;  %v5411_v45 = vmul.f32 %v9108_v36, %v4912_v7  ;;  %v5412_v14 = vmul.f32 %v9108_v36, %v5384_v51  ;;  %v9227_v46 = vrot.slane %v6304_v17, %v10333_v43  ;;  %v1485_v51 = vld [vmem:[#allocation2 + $0x80] sm:$0x1]  ;;  %v1715_v26 = vld [vmem:[#allocation2 + $0x60] sm:$0xf8] }
 0x31e   : > { %v5227_v62 = vadd.f32 %v5194_v50, %v5087_v13  ;;  %v5228_v32 = vadd.f32 %v5196_v49, %v5088_v56  ;;  %v5472_v1 = vrot.slane %v5410_v59, 4  ;;  %v5334_v53 = vsel %vm2847_vm11, %v5332_v40, %v5333_v35  ;;  %v10338_v43 = vld [vmem:[#allocation15_spill] sm:$0xff] }
 0x31f   : > { %v5336_v7 = vsel %vm2847_vm11, %v5333_v35, %v5335_v0  ;;  %v5473_v3 = vrot.slane %v5411_v45, 4  ;;  %v5475_v36 = vrot.slane %v5412_v14, 4  ;;  %v1120_v16 = vmul.f32 %v9227_v46, %v1092_v63  ;;  %v1716_v35 = vld [vmem:[#allocation2 + $0x80] sm:$0x7] }
 0x320   : > { %v5367_v18 = vadd.f32 %v5334_v53, %v5227_v62  ;;  %v5368_v5 = vadd.f32 %v5336_v7, %v5228_v32  ;;  %v1121_v54 = vmul.f32 %v9227_v46, %v1093_v39  ;;  %v1122_v4 = vmul.f32 %v9227_v46, %v1094_v15  ;;  %v1560_v62 = vld [vmem:[#allocation2 + $0x80] sm:$0x3]  ;;  %v10337_v15 = vld [vmem:[#allocation8_spill] sm:$0xff]  ;;  %v1872_v7 = vld [vmem:[#allocation2 + $0x90] sm:$0xfe] }
 0x321   : > { %v5474_v2 = vsel %vm399_vm0, %v5472_v1, %v5473_v3  ;;  %v5476_v12 = vsel %vm399_vm0, %v5473_v3, %v5475_v36  ;;  %v1188_v52 = vmul.f32 %v10334_v42, %v1168_v47  ;;  %v1189_v19 = vmul.f32 %v10334_v42, %v1093_v39  ;;  %v6305_v1 = vld [vmem:[%s9781_s3 + $0x10] sm:$0xff]  ;;  %v9263_v3 = vld [vmem:[#allocation2 + $0xa0] sm:$0xff] }
 0x322   : > { %v5507_v21 = vadd.f32 %v5474_v2, %v5367_v18  ;;  %v5508_v10 = vadd.f32 %v5476_v12, %v5368_v5  ;;  %v1190_v38 = vmul.f32 %v10334_v42, %v1169_v11  ;;  %v1345_v30 = vmul.f32 %v10335_v55, %v1325_v37  ;;  %v1948_v12 = vld [vmem:[#allocation2 + $0x90] sm:$0xfc] }
 0x323   : > { %v1237_v9 = vrot.slane %v1188_v52, 1  ;;  %v1346_v34 = vmul.f32 %v10335_v55, %v1093_v39  ;;  %v1347_v41 = vmul.f32 %v10335_v55, %v1326_v8  ;;  %v1238_v27 = vrot.slane %v1189_v19, 1  ;;  %v1559_v39 = vld [vmem:[#allocation2 + $0x60] sm:$0xfc] }
 0x324   : > { %v5530_v6 = vadd.f32 %v9145_v29, %v5507_v21  ;;  %v5531_v20 = vadd.f32 %v9145_v29, %v5508_v10  ;;  %v1240_v25 = vrot.slane %v1190_v38, 1  ;;  %v1394_v33 = vrot.slane %v1345_v30, 2  ;;  %v10339_v21 = vld [vmem:[#allocation18_spill] sm:$0xff]  ;;  %v1949_v38 = vld [vmem:[#allocation2 + $0xb0] sm:$0x3] }
 0x325   : > { %v1395_v28 = vrot.slane %v1346_v34, 2  ;;  %v1397_v22 = vrot.slane %v1347_v41, 2  ;;  %v1511_v24 = vmul.f32 %v10336_v60, %v1483_v57  ;;  %v1239_v61 = vsel %vm1236_vm8, %v1237_v9, %v1238_v27 }
 0x326   : > { %v5546_v58 = vmax.f32 %v5530_v6, 0.0  ;;  %v5547_v48 = vmax.f32 %v5531_v20, 0.0  ;;  %v1241_v31 = vsel %vm1236_vm8, %v1238_v27, %v1240_v25  ;;  %v1301_v50 = vadd.f32 %v1239_v61, %v1120_v16  ;;  %v1874_v16 = vld [vmem:[#allocation2 + $0xb0] sm:$0x1]  ;;  %v10340_v20 = vld [vmem:[#allocation19_spill] sm:$0xff] }
 0x327   : > { %v1302_v49 = vadd.f32 %v1241_v31, %v1121_v54  ;;  %v1303_v23 = vadd.f32 %v1240_v25, %v1122_v4  ;;  %v1396_v29 = vsel %vm1393_vm9, %v1394_v33, %v1395_v28  ;;  %v1398_v40 = vsel %vm1393_vm9, %v1395_v28, %v1397_v22  ;;  %v2104_v33 = vld [vmem:[#allocation2 + $0x90] sm:$0xf8] }
 0x328   : > { %v5562_v13 = vmin.f32 %v5546_v58, 6.0  ;;  %v5563_v56 = vmin.f32 %v5547_v48, 6.0  ;;  %v1512_v59 = vmul.f32 %v10336_v60, %v9244_v44  ;;  %v1458_v0 = vadd.f32 %v1396_v29, %v1301_v50  ;;  %v2105_v48 = vld [vmem:[#allocation2 + $0xb0] sm:$0x7] }
 0x329   : > { %v1459_v45 = vadd.f32 %v1398_v40, %v1302_v49  ;;  %v1460_v14 = vadd.f32 %v1397_v22, %v1303_v23  ;;  %v1513_v63 = vmul.f32 %v10336_v60, %v1485_v51  ;;  %v9258_v17 = vrot.slane %v6305_v1, %v10337_v15  ;;  %v1095_v49 = vld [vmem:[#allocation2 + $0x60] sm:$0xfe]  ;;  %v1097_v40 = vld [vmem:[#allocation2 + $0x80] sm:$0x1] }
 0x32a   : > { %v5571_v32 = vpack.c.bf16 %v5563_v56, %v5562_v13  ;;  %v1735_v47 = vmul.f32 %v10338_v43, %v1715_v26  ;;  %v1736_v53 = vmul.f32 %v10338_v43, %v9244_v44  ;;  %v1535_v36 = vadd.f32 %v1511_v24, %v1458_v0  ;;  %v10341_v26 = vld [vmem:[#allocation21_spill] sm:$0xff] }
 0x32b   : > { %v1536_v11 = vadd.f32 %v1512_v59, %v1459_v45  ;;  %v1537_v18 = vadd.f32 %v1513_v63, %v1460_v14  ;;  %v1737_v5 = vmul.f32 %v10338_v43, %v1716_v35  ;;  %v1579_v54 = vmul.f32 %v9258_v17, %v1559_v39 }
 0x32c   : > { %6178 = vmatmul.mubr.bf16.gmra.mrb[12].mxu1 %v5571_v32  ;;  %v1580_v37 = vmul.f32 %v9258_v17, %v9244_v44  ;;  %v1581_v8 = vmul.f32 %v9258_v17, %v1560_v62  ;;  %v1783_v2 = vrot.slane %v1735_v47, 2  ;;  %v1784_v4 = vrot.slane %v1736_v53, 2  ;;  %v1171_v32 = vld [vmem:[#allocation2 + $0x80] sm:$0x3] }
 0x32d   : > { %v1786_v52 = vrot.slane %v1737_v5, 2  ;;  %v1900_v10 = vmul.f32 %v10339_v21, %v1872_v7  ;;  %v1901_v19 = vmul.f32 %v10339_v21, %v9263_v3  ;;  %v1627_v57 = vrot.slane %v1579_v54, 1  ;;  %v1328_v7 = vld [vmem:[#allocation2 + $0x80] sm:$0x7] }
 0x32e   : > { %v1628_v9 = vrot.slane %v1580_v37, 1  ;;  %v1630_v30 = vrot.slane %v1581_v8, 1  ;;  %v1902_v34 = vmul.f32 %v10339_v21, %v1874_v16  ;;  %v1785_v41 = vsel %vm1393_vm9, %v1783_v2, %v1784_v4  ;;  %v9297_v8 = vld [vmem:[%s9782_s4] ss:$0 sm:$0xff] }
 0x32f   : > { %v1787_v6 = vsel %vm1393_vm9, %v1784_v4, %v1786_v52  ;;  %v1968_v27 = vmul.f32 %v10340_v20, %v1948_v12  ;;  %v1969_v25 = vmul.f32 %v10340_v20, %v9263_v3  ;;  %v1970_v58 = vmul.f32 %v10340_v20, %v1949_v38 }
 0x330   : > { %v1629_v28 = vsel %vm1236_vm8, %v1627_v57, %v1628_v9  ;;  %v1631_v22 = vsel %vm1236_vm8, %v1628_v9, %v1630_v30  ;;  %v1693_v24 = vadd.f32 %v1630_v30, %v1537_v18  ;;  %v2124_v13 = vmul.f32 %v10341_v26, %v2104_v33  ;;  %v10342_v30 = vld [vmem:[#allocation34_spill] sm:$0xff] }
 0x331   : > { %v1691_v61 = vadd.f32 %v1629_v28, %v1535_v36  ;;  %v1692_v31 = vadd.f32 %v1631_v22, %v1536_v11  ;;  %v2016_v51 = vrot.slane %v1968_v27, 1  ;;  %v2017_v50 = vrot.slane %v1969_v25, 1  ;;  %v10343_v22 = vld [vmem:[#allocation33_spill] sm:$0xff] }
 0x332   : > { %v1849_v23 = vadd.f32 %v1786_v52, %v1693_v24  ;;  %v2019_v29 = vrot.slane %v1970_v58, 1  ;;  %v2125_v56 = vmul.f32 %v10341_v26, %v9263_v3  ;;  %v2126_v45 = vmul.f32 %v10341_v26, %v2105_v48 }
 0x333   : > { %v1847_v59 = vadd.f32 %v1785_v41, %v1691_v61  ;;  %v1848_v35 = vadd.f32 %v1787_v6, %v1692_v31  ;;  %v2018_v0 = vsel %vm1236_vm8, %v2016_v51, %v2017_v50  ;;  %v2172_v39 = vrot.slane %v2124_v13, 2  ;;  %v1488_v13 = vld [vmem:[#allocation2 + $0xb0] sm:$0x1] }
 0x334   : > { %v1926_v14 = vadd.f32 %v1902_v34, %v1849_v23  ;;  %v2020_v63 = vsel %vm1236_vm8, %v2017_v50, %v2019_v29  ;;  %v2173_v62 = vrot.slane %v2125_v56, 2  ;;  %v2175_v47 = vrot.slane %v2126_v45, 2  ;;  %v1561_v56 = vld [vmem:[#allocation2 + $0x90] sm:$0xfc] }
 0x335   : > { %v1924_v1 = vadd.f32 %v1900_v10, %v1847_v59  ;;  %v1925_v15 = vadd.f32 %v1901_v19, %v1848_v35  ;;  %v1123_v53 = vmul.f32 %v9227_v46, %v1095_v49  ;;  %v1124_v18 = vmul.f32 %v9244_v44, %v9227_v46  ;;  %v1486_v19 = vld [vmem:[#allocation2 + $0x90] sm:$0xfe] }
 0x336   : > { %v2082_v36 = vadd.f32 %v2019_v29, %v1926_v14  ;;  %v2174_v11 = vsel %vm1393_vm9, %v2172_v39, %v2173_v62  ;;  %v1125_v5 = vmul.f32 %v9227_v46, %v1097_v40  ;;  %v2176_v37 = vsel %vm1393_vm9, %v2173_v62, %v2175_v47  ;;  %v1562_v62 = vld [vmem:[#allocation2 + $0xb0] sm:$0x3] }
 0x337   : > { %v2080_v16 = vadd.f32 %v2018_v0, %v1924_v1  ;;  %v2081_v54 = vadd.f32 %v2020_v63, %v1925_v15  ;;  %v1192_v2 = vmul.f32 %v9244_v44, %v10334_v42  ;;  %v1193_v4 = vmul.f32 %v10334_v42, %v1171_v32  ;;  %v1717_v32 = vld [vmem:[#allocation2 + $0x90] sm:$0xf8] }
 0x338   : > { %v2238_v12 = vadd.f32 %v2175_v47, %v2082_v36  ;;  %v1349_v52 = vmul.f32 %v9244_v44, %v10335_v55  ;;  %v1350_v10 = vmul.f32 %v10335_v55, %v1328_v7  ;;  %v1399_v34 = vrot.slane %v10342_v30, 2 }
 0x339   : > { %v2236_v38 = vadd.f32 %v2174_v11, %v2080_v16  ;;  %v2237_v57 = vadd.f32 %v2176_v37, %v2081_v54  ;;  %v1243_v9 = vrot.slane %v1192_v2, 1  ;;  %v1245_v6 = vrot.slane %v1193_v4, 1  ;;  %v9324_v4 = vld [vmem:[#allocation2 + $0xd0] sm:$0xff] }
 0x33a   : > { %v2269_v41 = vadd.f32 %v9297_v8, %v2238_v12  ;;  %v1400_v27 = vrot.slane %v1349_v52, 2  ;;  %v1402_v25 = vrot.slane %v1350_v10, 2  ;;  %v10344_v24 = vrot.slane %v10343_v22, 1  ;;  %v1875_v12 = vld [vmem:[#allocation2 + $0xc0] sm:$0xfe] }
 0x33b   : > { %v2267_v33 = vadd.f32 %v9297_v8, %v2236_v38  ;;  %v2268_v28 = vadd.f32 %v9297_v8, %v2237_v57  ;;  %v1514_v58 = vmul.f32 %v10336_v60, %v1486_v19  ;;  %v1246_v61 = vsel %vm1236_vm8, %v1243_v9, %v1245_v6 }
 0x33c   : > { %v1244_v44 = vsel %vm1236_vm8, %v10344_v24, %v1243_v9  ;;  %v2293_v48 = vmax.f32 %v2269_v41, 0.0  ;;  %v1306_v51 = vadd.f32 %v1245_v6, %v1125_v5  ;;  %v1305_v23 = vadd.f32 %v1246_v61, %v1124_v18  ;;  %v1718_v5 = vld [vmem:[#allocation2 + $0xb0] sm:$0x7]  ;;  %v1877_v41 = vld [vmem:[#allocation2 + $0xe0] sm:$0x1] }
 0x33d   : > { %v1304_v31 = vadd.f32 %v1244_v44, %v1123_v53  ;;  %v2291_v50 = vmax.f32 %v2267_v33, 0.0  ;;  %v2292_v49 = vmax.f32 %v2268_v28, 0.0  ;;  %v1401_v29 = vsel %vm1393_vm9, %v1399_v34, %v1400_v27  ;;  %v1950_v6 = vld [vmem:[#allocation2 + $0xc0] sm:$0xfc] }
 0x33e   : > { %v2317_v40 = vmin.f32 %v2293_v48, 6.0  ;;  %v1403_v59 = vsel %vm1393_vm9, %v1400_v27, %v1402_v25  ;;  %v1463_v0 = vadd.f32 %v1402_v25, %v1306_v51  ;;  %v1515_v39 = vmul.f32 %v9263_v3, %v10336_v60  ;;  %v1951_v48 = vld [vmem:[#allocation2 + $0xe0] sm:$0x3]  ;;  %v2106_v61 = vld [vmem:[#allocation2 + $0xc0] sm:$0xf8] }
 0x33f   : > { %v1461_v35 = vadd.f32 %v1401_v29, %v1304_v31  ;;  %v2315_v45 = vmin.f32 %v2291_v50, 6.0  ;;  %v2316_v14 = vmin.f32 %v2292_v49, 6.0  ;;  %v1462_v63 = vadd.f32 %v1403_v59, %v1305_v23 }
 0x340   : > { %v2366_v1 = vrot.slane %v2317_v40, 1  ;;  %v1516_v15 = vmul.f32 %v10336_v60, %v1488_v13  ;;  %v1582_v53 = vmul.f32 %v9258_v17, %v1561_v56  ;;  %v1583_v18 = vmul.f32 %v9263_v3, %v9258_v17  ;;  %v2107_v40 = vld [vmem:[#allocation2 + $0xe0] sm:$0x7] }
 0x341   : > { %v1538_v47 = vadd.f32 %v1514_v58, %v1461_v35  ;;  %v2363_v7 = vrot.slane %v2315_v45, 1  ;;  %v2364_v36 = vrot.slane %v2316_v14, 1  ;;  %v1539_v11 = vadd.f32 %v1515_v39, %v1462_v63  ;;  %v1098_v14 = vld [vmem:[#allocation2 + $0x90] sm:$0xfe] }
 0x342   : > { %v1540_v16 = vadd.f32 %v1516_v15, %v1463_v0  ;;  %v1584_v54 = vmul.f32 %v9258_v17, %v1562_v62  ;;  %v1632_v37 = vrot.slane %v1582_v53, 1  ;;  %v1738_v2 = vmul.f32 %v10338_v43, %v1717_v32 }
 0x343   : > { %v2365_v52 = vsel %vm1236_vm8, %v2363_v7, %v2364_v36  ;;  %v2367_v10 = vsel %vm1236_vm8, %v2364_v36, %v2366_v1  ;;  %v1633_v19 = vrot.slane %v1583_v18, 1  ;;  %v1739_v38 = vmul.f32 %v9263_v3, %v10338_v43  ;;  %v1100_v7 = vld [vmem:[#allocation2 + $0xb0] sm:$0x1]  ;;  %v1172_v36 = vld [vmem:[#allocation2 + $0x90] sm:$0xfc] }
 0x344   : > { %v2419_v57 = vpack.c.bf16 %v2367_v10, %v2365_v52  ;;  %v1635_v9 = vrot.slane %v1584_v54, 1  ;;  %v1740_v30 = vmul.f32 %v10338_v43, %v1718_v5  ;;  %v1788_v34 = vrot.slane %v1738_v2, 2  ;;  %v1173_v52 = vld [vmem:[#allocation2 + $0xb0] sm:$0x3]  ;;  %v1329_v10 = vld [vmem:[#allocation2 + $0x90] sm:$0xf8] }
 0x345   : > { %v1634_v27 = vsel %vm1236_vm8, %v1632_v37, %v1633_v19  ;;  %v1789_v25 = vrot.slane %v1739_v38, 2  ;;  %v1903_v33 = vmul.f32 %v10339_v21, %v1875_v12  ;;  %v1904_v28 = vmul.f32 %v10339_v21, %v9324_v4 }
 0x346   : > { %6197 = vmatprep.mubr.bf16.mxu1 %v2419_v57  ;;  %v1636_v22 = vsel %vm1236_vm8, %v1633_v19, %v1635_v9  ;;  %v1694_v24 = vadd.f32 %v1634_v27, %v1538_v47  ;;  %v1696_v44 = vadd.f32 %v1635_v9, %v1540_v16  ;;  %v1791_v58 = vrot.slane %v1740_v30, 2  ;;  %v1330_v27 = vld [vmem:[#allocation2 + $0xb0] sm:$0x7] }
 0x347   : > { %v1695_v31 = vadd.f32 %v1636_v22, %v1539_v11  ;;  %v1790_v51 = vsel %vm1393_vm9, %v1788_v34, %v1789_v25  ;;  %v1905_v50 = vmul.f32 %v10339_v21, %v1877_v41  ;;  %v1971_v49 = vmul.f32 %v10340_v20, %v1950_v6 }
 0x348   : > { %v1792_v23 = vsel %vm1393_vm9, %v1789_v25, %v1791_v58  ;;  %v1850_v29 = vadd.f32 %v1790_v51, %v1694_v24  ;;  %v1852_v13 = vadd.f32 %v1791_v58, %v1696_v44  ;;  %v1972_v56 = vmul.f32 %v10340_v20, %v9324_v4 }
 0x349   : > { %v1851_v59 = vadd.f32 %v1792_v23, %v1695_v31  ;;  %v1973_v35 = vmul.f32 %v10340_v20, %v1951_v48  ;;  %v2021_v0 = vrot.slane %v1971_v49, 1  ;;  %v2127_v45 = vmul.f32 %v10341_v26, %v2106_v61 }
 0x34a   : > { %v1927_v63 = vadd.f32 %v1903_v33, %v1850_v29  ;;  %v1929_v39 = vadd.f32 %v1905_v50, %v1852_v13  ;;  %v2022_v62 = vrot.slane %v1972_v56, 1  ;;  %v2128_v32 = vmul.f32 %v10341_v26, %v9324_v4  ;;  %v1489_v56 = vld [vmem:[#allocation2 + $0xc0] sm:$0xfe] }
 0x34b   : > { %v1928_v1 = vadd.f32 %v1904_v28, %v1851_v59  ;;  %v2024_v15 = vrot.slane %v1973_v35, 1  ;;  %v2129_v47 = vmul.f32 %v10341_v26, %v2107_v40  ;;  %v2177_v53 = vrot.slane %v2127_v45, 2  ;;  %v1491_v45 = vld [vmem:[#allocation2 + $0xe0] sm:$0x1] }
 0x34c   : > { %v2023_v11 = vsel %vm1236_vm8, %v2021_v0, %v2022_v62  ;;  %v2178_v18 = vrot.slane %v2128_v32, 2  ;;  %v1126_v5 = vmul.f32 %v9227_v46, %v1098_v14  ;;  %v1127_v16 = vmul.f32 %v9263_v3, %v9227_v46 }
 0x34d   : > { %v2025_v54 = vsel %vm1236_vm8, %v2022_v62, %v2024_v15  ;;  %v2083_v37 = vadd.f32 %v2023_v11, %v1927_v63  ;;  %v2085_v2 = vadd.f32 %v2024_v15, %v1929_v39  ;;  %v2180_v12 = vrot.slane %v2129_v47, 2  ;;  %v1563_v47 = vld [vmem:[#allocation2 + $0xc0] sm:$0xfc] }
 0x34e   : > { %v2084_v19 = vadd.f32 %v2025_v54, %v1928_v1  ;;  %v2179_v38 = vsel %vm1393_vm9, %v2177_v53, %v2178_v18  ;;  %v1128_v57 = vmul.f32 %v9227_v46, %v1100_v7  ;;  %v1194_v9 = vmul.f32 %v10334_v42, %v1172_v36  ;;  %v1564_v53 = vld [vmem:[#allocation2 + $0xe0] sm:$0x3] }
 0x34f   : > { %v2181_v30 = vsel %vm1393_vm9, %v2178_v18, %v2180_v12  ;;  %v2239_v34 = vadd.f32 %v2179_v38, %v2083_v37  ;;  %v2241_v41 = vadd.f32 %v2180_v12, %v2085_v2  ;;  %v1195_v6 = vmul.f32 %v9263_v3, %v10334_v42  ;;  %v1720_v38 = vld [vmem:[#allocation2 + $0xe0] sm:$0x7] }
 0x350   : > { %v2240_v25 = vadd.f32 %v2181_v30, %v2084_v19  ;;  %v1196_v33 = vmul.f32 %v10334_v42, %v1173_v52  ;;  %v1247_v28 = vrot.slane %v1194_v9, 1  ;;  %v1351_v22 = vmul.f32 %v10335_v55, %v1329_v10 }
 0x351   : > { %v2270_v24 = vadd.f32 %v9297_v8, %v2239_v34  ;;  %v2272_v44 = vadd.f32 %v9297_v8, %v2241_v41  ;;  %v1248_v58 = vrot.slane %v1195_v6, 1  ;;  %v1352_v48 = vmul.f32 %v9263_v3, %v10335_v55  ;;  %v1878_v41 = vld [vmem:[#allocation2 + $0xf0] sm:$0xfe]  ;;  %v9381_v6 = vld [vmem:[#allocation2 + $0x100] sm:$0xff] }
 0x352   : > { %v2271_v61 = vadd.f32 %v9297_v8, %v2240_v25  ;;  %v1250_v31 = vrot.slane %v1196_v33, 1  ;;  %v1353_v51 = vmul.f32 %v10335_v55, %v1330_v27  ;;  %v1404_v50 = vrot.slane %v1351_v22, 2  ;;  %v1880_v27 = vld [vmem:[#allocation2 + $0x110] sm:$0x1] }
 0x353   : > { %v2294_v49 = vmax.f32 %v2270_v24, 0.0  ;;  %v2296_v23 = vmax.f32 %v2272_v44, 0.0  ;;  %v1249_v29 = vsel %vm1236_vm8, %v1247_v28, %v1248_v58  ;;  %v1405_v13 = vrot.slane %v1352_v48, 2 }
 0x354   : > { %v2295_v40 = vmax.f32 %v2271_v61, 0.0  ;;  %v1251_v59 = vsel %vm1236_vm8, %v1248_v58, %v1250_v31  ;;  %v1307_v35 = vadd.f32 %v1249_v29, %v1126_v5  ;;  %v1309_v0 = vadd.f32 %v1250_v31, %v1128_v57  ;;  %v1719_v5 = vld [vmem:[#allocation2 + $0xc0] sm:$0xf8]  ;;  %v1952_v61 = vld [vmem:[#allocation2 + $0xf0] sm:$0xfc] }
 0x355   : > { %v2318_v14 = vmin.f32 %v2294_v49, 6.0  ;;  %v2320_v3 = vmin.f32 %v2296_v23, 6.0  ;;  %v1308_v63 = vadd.f32 %v1251_v59, %v1127_v16  ;;  %v1406_v39 = vsel %vm1393_vm9, %v1404_v50, %v1405_v13  ;;  %v1953_v23 = vld [vmem:[#allocation2 + $0x110] sm:$0x3]  ;;  %v2108_v29 = vld [vmem:[#allocation2 + $0xf0] sm:$0xf8] }
 0x356   : > { %v2319_v62 = vmin.f32 %v2295_v40, 6.0  ;;  %v1407_v32 = vrot.slane %v1353_v51, 2  ;;  %v1464_v1 = vadd.f32 %v1406_v39, %v1307_v35  ;;  %v1517_v15 = vmul.f32 %v10336_v60, %v1489_v56 }
 0x357   : > { %v2368_v7 = vrot.slane %v2318_v14, 1  ;;  %v2371_v36 = vrot.slane %v2320_v3, 1  ;;  %v1518_v11 = vmul.f32 %v9324_v4, %v10336_v60  ;;  %v1519_v18 = vmul.f32 %v10336_v60, %v1491_v45  ;;  %v2109_v3 = vld [vmem:[#allocation2 + $0x110] sm:$0x7] }
 0x358   : > { %v2369_v54 = vrot.slane %v2319_v62, 1  ;;  %v1408_v16 = vsel %vm1393_vm9, %v1405_v13, %v1407_v32  ;;  %v1466_v37 = vadd.f32 %v1407_v32, %v1309_v0  ;;  %v1541_v2 = vadd.f32 %v1517_v15, %v1464_v1 }
 0x359   : > { %v1465_v12 = vadd.f32 %v1408_v16, %v1308_v63  ;;  %v1585_v52 = vmul.f32 %v9258_v17, %v1563_v47  ;;  %v1586_v10 = vmul.f32 %v9324_v4, %v9258_v17  ;;  %v1587_v19 = vmul.f32 %v9258_v17, %v1564_v53 }
 0x35a   : > { %v2370_v57 = vsel %vm1236_vm8, %v2368_v7, %v2369_v54  ;;  %v2372_v9 = vsel %vm1236_vm8, %v2369_v54, %v2371_v36  ;;  %v1543_v30 = vadd.f32 %v1519_v18, %v1466_v37  ;;  %v1741_v34 = vmul.f32 %v10338_v43, %v1719_v5  ;;  %v1101_v5 = vld [vmem:[#allocation2 + $0xc0] sm:$0xfe] }
 0x35b   : > { %v2420_v25 = vpack.c.bf16 %v2372_v9, %v2370_v57  ;;  %v1542_v33 = vadd.f32 %v1518_v11, %v1465_v12  ;;  %v1637_v28 = vrot.slane %v1585_v52, 1  ;;  %v1638_v22 = vrot.slane %v1586_v10, 1  ;;  %v1103_v12 = vld [vmem:[#allocation2 + $0xe0] sm:$0x1]  ;;  %v1174_v57 = vld [vmem:[#allocation2 + $0xc0] sm:$0xfc] }
 0x35c   : > { %v1640_v24 = vrot.slane %v1587_v19, 1  ;;  %v1742_v44 = vmul.f32 %v9324_v4, %v10338_v43  ;;  %v1743_v58 = vmul.f32 %v10338_v43, %v1720_v38  ;;  %v1793_v48 = vrot.slane %v1741_v34, 2 }
 0x35d   : > { %6198 = vmatmul.mubr.bf16.vlgmr.msra.gmra.mrb[0].mxu1 %v2420_v25  ;;  %v1639_v31 = vsel %vm1236_vm8, %v1637_v28, %v1638_v22  ;;  %v1906_v51 = vmul.f32 %v10339_v21, %v1878_v41  ;;  %v1907_v50 = vmul.f32 %v10339_v21, %v9381_v6  ;;  %v1908_v49 = vmul.f32 %v10339_v21, %v1880_v27  ;;  %v1175_v27 = vld [vmem:[#allocation2 + $0xe0] sm:$0x3]  ;;  %v1331_v25 = vld [vmem:[#allocation2 + $0xc0] sm:$0xf8] }
 0x35e   : > { %v1641_v13 = vsel %vm1236_vm8, %v1638_v22, %v1640_v24  ;;  %v1697_v56 = vadd.f32 %v1639_v31, %v1541_v2  ;;  %v1699_v40 = vadd.f32 %v1640_v24, %v1543_v30  ;;  %v1794_v59 = vrot.slane %v1742_v44, 2  ;;  %v1332_v31 = vld [vmem:[#allocation2 + $0xe0] sm:$0x7] }
 0x35f   : > { %v1698_v35 = vadd.f32 %v1641_v13, %v1542_v33  ;;  %v1796_v0 = vrot.slane %v1743_v58, 2  ;;  %v1974_v45 = vmul.f32 %v10340_v20, %v1952_v61  ;;  %v1975_v14 = vmul.f32 %v10340_v20, %v9381_v6 }
 0x360   : > { %v1795_v63 = vsel %vm1393_vm9, %v1793_v48, %v1794_v59  ;;  %v1976_v39 = vmul.f32 %v10340_v20, %v1953_v23  ;;  %v2130_v62 = vmul.f32 %v10341_v26, %v2108_v29  ;;  %v2131_v32 = vmul.f32 %v10341_v26, %v9381_v6 }
 0x361   : > { %v1797_v1 = vsel %vm1393_vm9, %v1794_v59, %v1796_v0  ;;  %v1853_v15 = vadd.f32 %v1795_v63, %v1697_v56  ;;  %v1855_v47 = vadd.f32 %v1796_v0, %v1699_v40  ;;  %v2026_v53 = vrot.slane %v1974_v45, 1 }
 0x362   : > { %v1854_v7 = vadd.f32 %v1797_v1, %v1698_v35  ;;  %v2027_v36 = vrot.slane %v1975_v14, 1  ;;  %v2029_v11 = vrot.slane %v1976_v39, 1  ;;  %v2132_v18 = vmul.f32 %v10341_v26, %v2109_v3 }
 0x363   : > { %v1930_v54 = vadd.f32 %v1906_v51, %v1853_v15  ;;  %v1932_v16 = vadd.f32 %v1908_v49, %v1855_v47  ;;  %v2182_v37 = vrot.slane %v2130_v62, 2  ;;  %v2183_v2 = vrot.slane %v2131_v32, 2  ;;  %v1492_v62 = vld [vmem:[#allocation2 + $0xf0] sm:$0xfe]  ;;  %v1494_v47 = vld [vmem:[#allocation2 + $0x110] sm:$0x1] }
 0x364   : > { %v1931_v52 = vadd.f32 %v1907_v50, %v1854_v7  ;;  %v2028_v10 = vsel %vm1236_vm8, %v2026_v53, %v2027_v36  ;;  %v2030_v19 = vsel %vm1236_vm8, %v2027_v36, %v2029_v11  ;;  %v2185_v38 = vrot.slane %v2132_v18, 2 }
 0x365   : > { %v2086_v9 = vadd.f32 %v2028_v10, %v1930_v54  ;;  %v2088_v30 = vadd.f32 %v2029_v11, %v1932_v16  ;;  %v2184_v34 = vsel %vm1393_vm9, %v2182_v37, %v2183_v2  ;;  %v1129_v41 = vmul.f32 %v9227_v46, %v1101_v5  ;;  %v1565_v37 = vld [vmem:[#allocation2 + $0xf0] sm:$0xfc] }
 0x366   : > { %v2087_v33 = vadd.f32 %v2030_v19, %v1931_v52  ;;  %v2186_v28 = vsel %vm1393_vm9, %v2183_v2, %v2185_v38  ;;  %v1130_v22 = vmul.f32 %v9324_v4, %v9227_v46  ;;  %v1131_v24 = vmul.f32 %v9227_v46, %v1103_v12  ;;  %v1566_v2 = vld [vmem:[#allocation2 + $0x110] sm:$0x3] }
 0x367   : > { %v2242_v44 = vadd.f32 %v2184_v34, %v2086_v9  ;;  %v2244_v58 = vadd.f32 %v2185_v38, %v2088_v30  ;;  %v1197_v48 = vmul.f32 %v10334_v42, %v1174_v57  ;;  %v1198_v61 = vmul.f32 %v9324_v4, %v10334_v42  ;;  %v1721_v38 = vld [vmem:[#allocation2 + $0xf0] sm:$0xf8] }
 0x368   : > { %v2243_v51 = vadd.f32 %v2186_v28, %v2087_v33  ;;  %v1199_v50 = vmul.f32 %v10334_v42, %v1175_v27  ;;  %v1354_v49 = vmul.f32 %v10335_v55, %v1331_v25  ;;  %v1355_v23 = vmul.f32 %v9324_v4, %v10335_v55  ;;  %v1722_v28 = vld [vmem:[#allocation2 + $0x110] sm:$0x7] }
 0x369   : > { %v2273_v29 = vadd.f32 %v9297_v8, %v2242_v44  ;;  %v2275_v13 = vadd.f32 %v9297_v8, %v2244_v58  ;;  %v1252_v56 = vrot.slane %v1197_v48, 1  ;;  %v1253_v40 = vrot.slane %v1198_v61, 1  ;;  %v1881_v48 = vld [vmem:[#allocation2 + $0x120] sm:$0xfe]  ;;  %v9436_v61 = vld [vmem:[#allocation2 + $0x130] sm:$0xff] }
 0x36a   : > { %v2274_v59 = vadd.f32 %v9297_v8, %v2243_v51  ;;  %v1255_v35 = vrot.slane %v1199_v50, 1  ;;  %v1356_v0 = vmul.f32 %v10335_v55, %v1332_v31  ;;  %v1409_v45 = vrot.slane %v1354_v49, 2  ;;  %v1883_v31 = vld [vmem:[#allocation2 + $0x140] sm:$0x1] }
 0x36b   : > { %v2297_v14 = vmax.f32 %v2273_v29, 0.0  ;;  %v2299_v3 = vmax.f32 %v2275_v13, 0.0  ;;  %v1254_v63 = vsel %vm1236_vm8, %v1252_v56, %v1253_v40  ;;  %v1410_v39 = vrot.slane %v1355_v23, 2 }
 0x36c   : > { %v2298_v32 = vmax.f32 %v2274_v59, 0.0  ;;  %v1256_v4 = vsel %vm1236_vm8, %v1253_v40, %v1255_v35  ;;  %v1310_v1 = vadd.f32 %v1254_v63, %v1129_v41  ;;  %v1312_v15 = vadd.f32 %v1255_v35, %v1131_v24  ;;  %v1954_v59 = vld [vmem:[#allocation2 + $0x120] sm:$0xfc] }
 0x36d   : > { %v2321_v53 = vmin.f32 %v2297_v14, 6.0  ;;  %v2323_v7 = vmin.f32 %v2299_v3, 6.0  ;;  %v1311_v36 = vadd.f32 %v1256_v4, %v1130_v22  ;;  %v1411_v11 = vsel %vm1393_vm9, %v1409_v45, %v1410_v39  ;;  %v1955_v3 = vld [vmem:[#allocation2 + $0x140] sm:$0x3]  ;;  %v2110_v63 = vld [vmem:[#allocation2 + $0x120] sm:$0xf8] }
 0x36e   : > { %v2322_v18 = vmin.f32 %v2298_v32, 6.0  ;;  %v1412_v5 = vrot.slane %v1356_v0, 2  ;;  %v1467_v54 = vadd.f32 %v1411_v11, %v1310_v1  ;;  %v1520_v16 = vmul.f32 %v10336_v60, %v1492_v62 }
 0x36f   : > { %v2373_v12 = vrot.slane %v2321_v53, 1  ;;  %v2376_v52 = vrot.slane %v2323_v7, 1  ;;  %v1521_v10 = vmul.f32 %v9381_v6, %v10336_v60  ;;  %v1522_v19 = vmul.f32 %v10336_v60, %v1494_v47  ;;  %v2111_v7 = vld [vmem:[#allocation2 + $0x140] sm:$0x7] }
 0x370   : > { %v2374_v57 = vrot.slane %v2322_v18, 1  ;;  %v1413_v9 = vsel %vm1393_vm9, %v1410_v39, %v1412_v5  ;;  %v1469_v30 = vadd.f32 %v1412_v5, %v1312_v15  ;;  %v1544_v34 = vadd.f32 %v1520_v16, %v1467_v54 }
 0x371   : > { %v1468_v41 = vadd.f32 %v1413_v9, %v1311_v36  ;;  %v1588_v27 = vmul.f32 %v9258_v17, %v1565_v37  ;;  %v1589_v25 = vmul.f32 %v9381_v6, %v9258_v17  ;;  %v1590_v33 = vmul.f32 %v9258_v17, %v1566_v2 }
 0x372   : > { %v2375_v22 = vsel %vm1236_vm8, %v2373_v12, %v2374_v57  ;;  %v2377_v24 = vsel %vm1236_vm8, %v2374_v57, %v2376_v52  ;;  %v1546_v44 = vadd.f32 %v1522_v19, %v1469_v30  ;;  %v1744_v58 = vmul.f32 %v10338_v43, %v1721_v38  ;;  %v1104_v38 = vld [vmem:[#allocation2 + $0xf0] sm:$0xfe] }
 0x373   : > { %v2421_v51 = vpack.c.bf16 %v2377_v24, %v2375_v22  ;;  %v1545_v50 = vadd.f32 %v1521_v10, %v1468_v41  ;;  %v1642_v49 = vrot.slane %v1588_v27, 1  ;;  %v1643_v23 = vrot.slane %v1589_v25, 1  ;;  %v1106_v41 = vld [vmem:[#allocation2 + $0x110] sm:$0x1]  ;;  %v1176_v22 = vld [vmem:[#allocation2 + $0xf0] sm:$0xfc] }
 0x374   : > { %v1645_v29 = vrot.slane %v1590_v33, 1  ;;  %v1745_v13 = vmul.f32 %v9381_v6, %v10338_v43  ;;  %v1746_v56 = vmul.f32 %v10338_v43, %v1722_v28  ;;  %v1798_v40 = vrot.slane %v1744_v58, 2 }
 0x375   : > { %6201 = vmatprep.mubr.bf16.mxu1 %v2421_v51  ;;  %v1644_v35 = vsel %vm1236_vm8, %v1642_v49, %v1643_v23  ;;  %v1909_v0 = vmul.f32 %v10339_v21, %v1881_v48  ;;  %v1910_v45 = vmul.f32 %v10339_v21, %v9436_v61  ;;  %v1911_v14 = vmul.f32 %v10339_v21, %v1883_v31  ;;  %v1177_v31 = vld [vmem:[#allocation2 + $0x110] sm:$0x3]  ;;  %v1333_v51 = vld [vmem:[#allocation2 + $0xf0] sm:$0xf8] }
 0x376   : > { %v1646_v39 = vsel %vm1236_vm8, %v1643_v23, %v1645_v29  ;;  %v1700_v62 = vadd.f32 %v1644_v35, %v1544_v34  ;;  %v1702_v32 = vadd.f32 %v1645_v29, %v1546_v44  ;;  %v1799_v4 = vrot.slane %v1745_v13, 2  ;;  %v1334_v35 = vld [vmem:[#allocation2 + $0x110] sm:$0x7] }
 0x377   : > { %v1701_v1 = vadd.f32 %v1646_v39, %v1545_v50  ;;  %v1801_v15 = vrot.slane %v1746_v56, 2  ;;  %v1977_v47 = vmul.f32 %v10340_v20, %v1954_v59  ;;  %v1978_v53 = vmul.f32 %v10340_v20, %v9436_v61 }
 0x378   : > { %v1800_v36 = vsel %vm1393_vm9, %v1798_v40, %v1799_v4  ;;  %v1979_v11 = vmul.f32 %v10340_v20, %v1955_v3  ;;  %v2133_v18 = vmul.f32 %v10341_v26, %v2110_v63  ;;  %v2134_v5 = vmul.f32 %v10341_v26, %v9436_v61 }
 0x379   : > { %v1802_v54 = vsel %vm1393_vm9, %v1799_v4, %v1801_v15  ;;  %v1856_v16 = vadd.f32 %v1800_v36, %v1700_v62  ;;  %v1858_v37 = vadd.f32 %v1801_v15, %v1702_v32  ;;  %v2031_v2 = vrot.slane %v1977_v47, 1 }
 0x37a   : > { %v1857_v12 = vadd.f32 %v1802_v54, %v1701_v1  ;;  %v2032_v52 = vrot.slane %v1978_v53, 1  ;;  %v2034_v10 = vrot.slane %v1979_v11, 1  ;;  %v2135_v19 = vmul.f32 %v10341_v26, %v2111_v7 }
 0x37b   : > { %v1933_v57 = vadd.f32 %v1909_v0, %v1856_v16  ;;  %v1935_v9 = vadd.f32 %v1911_v14, %v1858_v37  ;;  %v2187_v30 = vrot.slane %v2133_v18, 2  ;;  %v2188_v34 = vrot.slane %v2134_v5, 2  ;;  %v1495_v18 = vld [vmem:[#allocation2 + $0x120] sm:$0xfe]  ;;  %v1497_v37 = vld [vmem:[#allocation2 + $0x140] sm:$0x1] }
 0x37c   : > { %v1934_v27 = vadd.f32 %v1910_v45, %v1857_v12  ;;  %v2033_v25 = vsel %vm1236_vm8, %v2031_v2, %v2032_v52  ;;  %v2035_v33 = vsel %vm1236_vm8, %v2032_v52, %v2034_v10  ;;  %v2190_v28 = vrot.slane %v2135_v19, 2 }
 0x37d   : > { %v2089_v24 = vadd.f32 %v2033_v25, %v1933_v57  ;;  %v2091_v44 = vadd.f32 %v2034_v10, %v1935_v9  ;;  %v2189_v58 = vsel %vm1393_vm9, %v2187_v30, %v2188_v34  ;;  %v1132_v48 = vmul.f32 %v9227_v46, %v1104_v38  ;;  %v1567_v30 = vld [vmem:[#allocation2 + $0x120] sm:$0xfc] }
 0x37e   : > { %v2090_v50 = vadd.f32 %v2035_v33, %v1934_v27  ;;  %v2191_v49 = vsel %vm1393_vm9, %v2188_v34, %v2190_v28  ;;  %v1133_v23 = vmul.f32 %v9381_v6, %v9227_v46  ;;  %v1134_v29 = vmul.f32 %v9227_v46, %v1106_v41  ;;  %v1568_v34 = vld [vmem:[#allocation2 + $0x140] sm:$0x3] }
 0x37f   : > { %v2245_v13 = vadd.f32 %v2189_v58, %v2089_v24  ;;  %v2247_v56 = vadd.f32 %v2190_v28, %v2091_v44  ;;  %v1200_v40 = vmul.f32 %v10334_v42, %v1176_v22  ;;  %v1201_v59 = vmul.f32 %v9381_v6, %v10334_v42  ;;  %v1723_v28 = vld [vmem:[#allocation2 + $0x120] sm:$0xf8] }
 0x380   : > { %v2246_v0 = vadd.f32 %v2191_v49, %v2090_v50  ;;  %v1202_v45 = vmul.f32 %v10334_v42, %v1177_v31  ;;  %v1357_v14 = vmul.f32 %v10335_v55, %v1333_v51  ;;  %v1358_v3 = vmul.f32 %v9381_v6, %v10335_v55  ;;  %v1724_v49 = vld [vmem:[#allocation2 + $0x140] sm:$0x7] }
 0x381   : > { %v2276_v63 = vadd.f32 %v9297_v8, %v2245_v13  ;;  %v2278_v39 = vadd.f32 %v9297_v8, %v2247_v56  ;;  %v1257_v62 = vrot.slane %v1200_v40, 1  ;;  %v1258_v32 = vrot.slane %v1201_v59, 1  ;;  %v1884_v40 = vld [vmem:[#allocation2 + $0x150] sm:$0xfe]  ;;  %v9491_v59 = vld [vmem:[#allocation2 + $0x160] sm:$0xff] }
 0x382   : > { %v2277_v4 = vadd.f32 %v9297_v8, %v2246_v0  ;;  %v1260_v1 = vrot.slane %v1202_v45, 1  ;;  %v1359_v15 = vmul.f32 %v10335_v55, %v1334_v35  ;;  %v1414_v47 = vrot.slane %v1357_v14, 2  ;;  %v1886_v35 = vld [vmem:[#allocation2 + $0x170] sm:$0x1] }
 0x383   : > { %v2300_v53 = vmax.f32 %v2276_v63, 0.0  ;;  %v2302_v7 = vmax.f32 %v2278_v39, 0.0  ;;  %v1259_v36 = vsel %vm1236_vm8, %v1257_v62, %v1258_v32  ;;  %v1415_v11 = vrot.slane %v1358_v3, 2 }
 0x384   : > { %v2301_v5 = vmax.f32 %v2277_v4, 0.0  ;;  %v1261_v6 = vsel %vm1236_vm8, %v1258_v32, %v1260_v1  ;;  %v1313_v54 = vadd.f32 %v1259_v36, %v1132_v48  ;;  %v1315_v16 = vadd.f32 %v1260_v1, %v1134_v29  ;;  %v1956_v4 = vld [vmem:[#allocation2 + $0x150] sm:$0xfc] }
 0x385   : > { %v2324_v2 = vmin.f32 %v2300_v53, 6.0  ;;  %v2326_v12 = vmin.f32 %v2302_v7, 6.0  ;;  %v1314_v52 = vadd.f32 %v1261_v6, %v1133_v23  ;;  %v1416_v10 = vsel %vm1393_vm9, %v1414_v47, %v1415_v11  ;;  %v1957_v7 = vld [vmem:[#allocation2 + $0x170] sm:$0x3]  ;;  %v2112_v36 = vld [vmem:[#allocation2 + $0x150] sm:$0xf8] }
 0x386   : > { %v2325_v19 = vmin.f32 %v2301_v5, 6.0  ;;  %v1417_v38 = vrot.slane %v1359_v15, 2  ;;  %v1470_v57 = vadd.f32 %v1416_v10, %v1313_v54  ;;  %v1523_v9 = vmul.f32 %v10336_v60, %v1495_v18 }
 0x387   : > { %v2378_v41 = vrot.slane %v2324_v2, 1  ;;  %v2381_v27 = vrot.slane %v2326_v12, 1  ;;  %v1524_v25 = vmul.f32 %v9436_v61, %v10336_v60  ;;  %v1525_v33 = vmul.f32 %v10336_v60, %v1497_v37  ;;  %v2113_v12 = vld [vmem:[#allocation2 + $0x170] sm:$0x7] }
 0x388   : > { %v2379_v22 = vrot.slane %v2325_v19, 1  ;;  %v1418_v24 = vsel %vm1393_vm9, %v1415_v11, %v1417_v38  ;;  %v1472_v44 = vadd.f32 %v1417_v38, %v1315_v16  ;;  %v1547_v58 = vadd.f32 %v1523_v9, %v1470_v57 }
 0x389   : > { %v1471_v48 = vadd.f32 %v1418_v24, %v1314_v52  ;;  %v1591_v31 = vmul.f32 %v9258_v17, %v1567_v30  ;;  %v1592_v51 = vmul.f32 %v9436_v61, %v9258_v17  ;;  %v1593_v50 = vmul.f32 %v9258_v17, %v1568_v34 }
 0x38a   : > { %v2380_v23 = vsel %vm1236_vm8, %v2378_v41, %v2379_v22  ;;  %v2382_v29 = vsel %vm1236_vm8, %v2379_v22, %v2381_v27  ;;  %v1549_v13 = vadd.f32 %v1525_v33, %v1472_v44  ;;  %v1747_v56 = vmul.f32 %v10338_v43, %v1723_v28  ;;  %v1107_v28 = vld [vmem:[#allocation2 + $0x120] sm:$0xfe] }
 0x38b   : > { %v2422_v0 = vpack.c.bf16 %v2382_v29, %v2380_v23  ;;  %v1548_v45 = vadd.f32 %v1524_v25, %v1471_v48  ;;  %v1647_v14 = vrot.slane %v1591_v31, 1  ;;  %v1648_v3 = vrot.slane %v1592_v51, 1  ;;  %v1109_v48 = vld [vmem:[#allocation2 + $0x140] sm:$0x1]  ;;  %v1178_v23 = vld [vmem:[#allocation2 + $0x120] sm:$0xfc] }
 0x38c   : > { %v1650_v63 = vrot.slane %v1593_v50, 1  ;;  %v1748_v39 = vmul.f32 %v9436_v61, %v10338_v43  ;;  %v1749_v62 = vmul.f32 %v10338_v43, %v1724_v49  ;;  %v1803_v32 = vrot.slane %v1747_v56, 2 }
 0x38d   : > { %6202 = vmatmul.mubr.bf16.gmra.mrb[4].mxu1 %v2422_v0  ;;  %v1649_v1 = vsel %vm1236_vm8, %v1647_v14, %v1648_v3  ;;  %v1912_v15 = vmul.f32 %v10339_v21, %v1884_v40  ;;  %v1913_v47 = vmul.f32 %v10339_v21, %v9491_v59  ;;  %v1914_v53 = vmul.f32 %v10339_v21, %v1886_v35  ;;  %v1179_v35 = vld [vmem:[#allocation2 + $0x140] sm:$0x3]  ;;  %v1335_v0 = vld [vmem:[#allocation2 + $0x120] sm:$0xf8] }
 0x38e   : > { %v1651_v11 = vsel %vm1236_vm8, %v1648_v3, %v1650_v63  ;;  %v1703_v18 = vadd.f32 %v1649_v1, %v1547_v58  ;;  %v1705_v5 = vadd.f32 %v1650_v63, %v1549_v13  ;;  %v1804_v6 = vrot.slane %v1748_v39, 2  ;;  %v1336_v1 = vld [vmem:[#allocation2 + $0x140] sm:$0x7] }
 0x38f   : > { %v1704_v54 = vadd.f32 %v1651_v11, %v1548_v45  ;;  %v1806_v16 = vrot.slane %v1749_v62, 2  ;;  %v1980_v37 = vmul.f32 %v10340_v20, %v1956_v4  ;;  %v1981_v2 = vmul.f32 %v10340_v20, %v9491_v59 }
 0x390   : > { %v1805_v52 = vsel %vm1393_vm9, %v1803_v32, %v1804_v6  ;;  %v1982_v10 = vmul.f32 %v10340_v20, %v1957_v7  ;;  %v2136_v19 = vmul.f32 %v10341_v26, %v2112_v36  ;;  %v2137_v38 = vmul.f32 %v10341_v26, %v9491_v59 }
 0x391   : > { %v1807_v57 = vsel %vm1393_vm9, %v1804_v6, %v1806_v16  ;;  %v1859_v9 = vadd.f32 %v1805_v52, %v1703_v18  ;;  %v1861_v30 = vadd.f32 %v1806_v16, %v1705_v5  ;;  %v2036_v34 = vrot.slane %v1980_v37, 1 }
 0x392   : > { %v1860_v41 = vadd.f32 %v1807_v57, %v1704_v54  ;;  %v2037_v27 = vrot.slane %v1981_v2, 1  ;;  %v2039_v25 = vrot.slane %v1982_v10, 1  ;;  %v2138_v33 = vmul.f32 %v10341_v26, %v2113_v12 }
 0x393   : > { %v1936_v22 = vadd.f32 %v1912_v15, %v1859_v9  ;;  %v1938_v24 = vadd.f32 %v1914_v53, %v1861_v30  ;;  %v2192_v44 = vrot.slane %v2136_v19, 2  ;;  %v2193_v58 = vrot.slane %v2137_v38, 2  ;;  %v1498_v19 = vld [vmem:[#allocation2 + $0x150] sm:$0xfe]  ;;  %v1500_v30 = vld [vmem:[#allocation2 + $0x170] sm:$0x1] }
 0x394   : > { %v1937_v31 = vadd.f32 %v1913_v47, %v1860_v41  ;;  %v2038_v51 = vsel %vm1236_vm8, %v2036_v34, %v2037_v27  ;;  %v2040_v50 = vsel %vm1236_vm8, %v2037_v27, %v2039_v25  ;;  %v2195_v49 = vrot.slane %v2138_v33, 2 }
 0x395   : > { %v2092_v29 = vadd.f32 %v2038_v51, %v1936_v22  ;;  %v2094_v13 = vadd.f32 %v2039_v25, %v1938_v24  ;;  %v2194_v56 = vsel %vm1393_vm9, %v2192_v44, %v2193_v58  ;;  %v1135_v40 = vmul.f32 %v9227_v46, %v1107_v28  ;;  %v1569_v24 = vld [vmem:[#allocation2 + $0x150] sm:$0xfc]  ;;  %v1570_v44 = vld [vmem:[#allocation2 + $0x170] sm:$0x3] }
 0x396   : > { %v2093_v45 = vadd.f32 %v2040_v50, %v1937_v31  ;;  %v2196_v14 = vsel %vm1393_vm9, %v2193_v58, %v2195_v49  ;;  %v1136_v3 = vmul.f32 %v9436_v61, %v9227_v46  ;;  %v1137_v63 = vmul.f32 %v9227_v46, %v1109_v48  ;;  %v1725_v50 = vld [vmem:[#allocation2 + $0x150] sm:$0xf8] }
 0x397   : > { %v2248_v39 = vadd.f32 %v2194_v56, %v2092_v29  ;;  %v2250_v62 = vadd.f32 %v2195_v49, %v2094_v13  ;;  %v1203_v32 = vmul.f32 %v10334_v42, %v1178_v23  ;;  %v1204_v4 = vmul.f32 %v9436_v61, %v10334_v42 }
 0x398   : > { %v2249_v15 = vadd.f32 %v2196_v14, %v2093_v45  ;;  %v1205_v47 = vmul.f32 %v10334_v42, %v1179_v35  ;;  %v1360_v53 = vmul.f32 %v10335_v55, %v1335_v0  ;;  %v1361_v7 = vmul.f32 %v9436_v61, %v10335_v55  ;;  %v1726_v45 = vld [vmem:[#allocation2 + $0x170] sm:$0x7] }
 0x399   : > { %v2279_v36 = vadd.f32 %v9297_v8, %v2248_v39  ;;  %v2281_v11 = vadd.f32 %v9297_v8, %v2250_v62  ;;  %v1262_v18 = vrot.slane %v1203_v32, 1  ;;  %v1263_v5 = vrot.slane %v1204_v4, 1  ;;  %v1887_v62 = vld [vmem:[#allocation2 + $0x180] sm:$0xfe]  ;;  %v9546_v32 = vld [vmem:[#allocation2 + $0x190] sm:$0xff] }
 0x39a   : > { %v2280_v6 = vadd.f32 %v9297_v8, %v2249_v15  ;;  %v1265_v54 = vrot.slane %v1205_v47, 1  ;;  %v1362_v16 = vmul.f32 %v10335_v55, %v1336_v1  ;;  %v1419_v37 = vrot.slane %v1360_v53, 2  ;;  %v1889_v4 = vld [vmem:[#allocation2 + $0x1a0] sm:$0x1] }
 0x39b   : > { %v2303_v2 = vmax.f32 %v2279_v36, 0.0  ;;  %v2305_v12 = vmax.f32 %v2281_v11, 0.0  ;;  %v1264_v52 = vsel %vm1236_vm8, %v1262_v18, %v1263_v5  ;;  %v1420_v10 = vrot.slane %v1361_v7, 2 }
 0x39c   : > { %v2304_v38 = vmax.f32 %v2280_v6, 0.0  ;;  %v1266_v61 = vsel %vm1236_vm8, %v1263_v5, %v1265_v54  ;;  %v1316_v57 = vadd.f32 %v1264_v52, %v1135_v40  ;;  %v1318_v9 = vadd.f32 %v1265_v54, %v1137_v63  ;;  %v1958_v5 = vld [vmem:[#allocation2 + $0x180] sm:$0xfc] }
 0x39d   : > { %v2327_v34 = vmin.f32 %v2303_v2, 6.0  ;;  %v2329_v41 = vmin.f32 %v2305_v12, 6.0  ;;  %v1317_v27 = vadd.f32 %v1266_v61, %v1136_v3  ;;  %v1421_v8 = vsel %vm1393_vm9, %v1419_v37, %v1420_v10  ;;  %v1959_v2 = vld [vmem:[#allocation2 + $0x1a0] sm:$0x3]  ;;  %v2114_v12 = vld [vmem:[#allocation2 + $0x180] sm:$0xf8] }
 0x39e   : > { %v2328_v25 = vmin.f32 %v2304_v38, 6.0  ;;  %v1422_v33 = vrot.slane %v1362_v16, 2  ;;  %v1473_v28 = vadd.f32 %v1421_v8, %v1316_v57  ;;  %v1526_v22 = vmul.f32 %v10336_v60, %v1498_v19 }
 0x39f   : > { %v2383_v58 = vrot.slane %v2327_v34, 1  ;;  %v2386_v48 = vrot.slane %v2329_v41, 1  ;;  %v1527_v31 = vmul.f32 %v9491_v59, %v10336_v60  ;;  %v1528_v51 = vmul.f32 %v10336_v60, %v1500_v30  ;;  %v2115_v34 = vld [vmem:[#allocation2 + $0x1a0] sm:$0x7] }
 0x3a0   : > { %v2384_v49 = vrot.slane %v2328_v25, 1  ;;  %v1423_v23 = vsel %vm1393_vm9, %v1420_v10, %v1422_v33  ;;  %v1475_v29 = vadd.f32 %v1422_v33, %v1318_v9  ;;  %v1550_v13 = vadd.f32 %v1526_v22, %v1473_v28 }
 0x3a1   : > { %v1474_v56 = vadd.f32 %v1423_v23, %v1317_v27  ;;  %v1594_v40 = vmul.f32 %v9258_v17, %v1569_v24  ;;  %v1595_v35 = vmul.f32 %v9491_v59, %v9258_v17  ;;  %v1596_v0 = vmul.f32 %v9258_v17, %v1570_v44 }
 0x3a2   : > { %v2385_v14 = vsel %vm1236_vm8, %v2383_v58, %v2384_v49  ;;  %v2387_v3 = vsel %vm1236_vm8, %v2384_v49, %v2386_v48  ;;  %v1552_v63 = vadd.f32 %v1528_v51, %v1475_v29  ;;  %v1750_v39 = vmul.f32 %v10338_v43, %v1725_v50  ;;  %v1110_v51 = vld [vmem:[#allocation2 + $0x150] sm:$0xfe] }
 0x3a3   : > { %v2423_v1 = vpack.c.bf16 %v2387_v3, %v2385_v14  ;;  %v1551_v15 = vadd.f32 %v1527_v31, %v1474_v56  ;;  %v1652_v47 = vrot.slane %v1594_v40, 1  ;;  %v1653_v53 = vrot.slane %v1595_v35, 1 }
 0x3a4   : > { %v1655_v7 = vrot.slane %v1596_v0, 1  ;;  %v1751_v36 = vmul.f32 %v9491_v59, %v10338_v43  ;;  %v1752_v11 = vmul.f32 %v10338_v43, %v1726_v45  ;;  %v1808_v18 = vrot.slane %v1750_v39, 2  ;;  %v1180_v45 = vld [vmem:[#allocation2 + $0x150] sm:$0xfc] }
 0x3a5   : > { %6205 = vmatprep.mubr.bf16.mxu1 %v2423_v1  ;;  %v1654_v6 = vsel %vm1236_vm8, %v1652_v47, %v1653_v53  ;;  %v1915_v54 = vmul.f32 %v10339_v21, %v1887_v62  ;;  %v1916_v16 = vmul.f32 %v10339_v21, %v9546_v32  ;;  %v1917_v37 = vmul.f32 %v10339_v21, %v1889_v4  ;;  %v1181_v62 = vld [vmem:[#allocation2 + $0x170] sm:$0x3]  ;;  %v1337_v4 = vld [vmem:[#allocation2 + $0x150] sm:$0xf8] }
 0x3a6   : > { %v1656_v52 = vsel %vm1236_vm8, %v1653_v53, %v1655_v7  ;;  %v1706_v10 = vadd.f32 %v1654_v6, %v1550_v13  ;;  %v1708_v19 = vadd.f32 %v1655_v7, %v1552_v63  ;;  %v1809_v38 = vrot.slane %v1751_v36, 2  ;;  %v1112_v13 = vld [vmem:[#allocation2 + $0x170] sm:$0x1] }
 0x3a7   : > { %v1707_v61 = vadd.f32 %v1656_v52, %v1551_v15  ;;  %v1811_v57 = vrot.slane %v1752_v11, 2  ;;  %v1983_v9 = vmul.f32 %v10340_v20, %v1958_v5  ;;  %v1984_v30 = vmul.f32 %v10340_v20, %v9546_v32  ;;  %v1338_v5 = vld [vmem:[#allocation2 + $0x170] sm:$0x7] }
 0x3a8   : > { %v1810_v41 = vsel %vm1393_vm9, %v1808_v18, %v1809_v38  ;;  %v1985_v27 = vmul.f32 %v10340_v20, %v1959_v2  ;;  %v2139_v8 = vmul.f32 %v10341_v26, %v2114_v12  ;;  %v2140_v25 = vmul.f32 %v10341_v26, %v9546_v32  ;;  %v9585_v2 = vld [vmem:[%s9782_s4] ss:$0 sm:$0xff] }
 0x3a9   : > { %v1812_v33 = vsel %vm1393_vm9, %v1809_v38, %v1811_v57  ;;  %v1862_v28 = vadd.f32 %v1810_v41, %v1706_v10  ;;  %v1864_v22 = vadd.f32 %v1811_v57, %v1708_v19  ;;  %v2041_v24 = vrot.slane %v1983_v9, 1 }
 0x3aa   : > { %v1863_v44 = vadd.f32 %v1812_v33, %v1707_v61  ;;  %v2042_v58 = vrot.slane %v1984_v30, 1  ;;  %v2044_v48 = vrot.slane %v1985_v27, 1  ;;  %v2141_v31 = vmul.f32 %v10341_v26, %v2115_v34  ;;  %v1501_v27 = vld [vmem:[#allocation2 + $0x180] sm:$0xfe] }
 0x3ab   : > { %v1939_v50 = vadd.f32 %v1915_v54, %v1862_v28  ;;  %v1941_v49 = vadd.f32 %v1917_v37, %v1864_v22  ;;  %v2197_v23 = vrot.slane %v2139_v8, 2  ;;  %v2198_v29 = vrot.slane %v2140_v25, 2  ;;  %v1503_v22 = vld [vmem:[#allocation2 + $0x1a0] sm:$0x1] }
 0x3ac   : > { %v1940_v56 = vadd.f32 %v1916_v16, %v1863_v44  ;;  %v2043_v40 = vsel %vm1236_vm8, %v2041_v24, %v2042_v58  ;;  %v2045_v35 = vsel %vm1236_vm8, %v2042_v58, %v2044_v48  ;;  %v2200_v0 = vrot.slane %v2141_v31, 2 }
 0x3ad   : > { %v2095_v14 = vadd.f32 %v2043_v40, %v1939_v50  ;;  %v2097_v3 = vadd.f32 %v2044_v48, %v1941_v49  ;;  %v2199_v63 = vsel %vm1393_vm9, %v2197_v23, %v2198_v29  ;;  %v1138_v39 = vmul.f32 %v9227_v46, %v1110_v51  ;;  %v1571_v23 = vld [vmem:[#allocation2 + $0x180] sm:$0xfc] }
 0x3ae   : > { %v2096_v1 = vadd.f32 %v2045_v35, %v1940_v56  ;;  %v2201_v15 = vsel %vm1393_vm9, %v2198_v29, %v2200_v0  ;;  %v1139_v47 = vmul.f32 %v9491_v59, %v9227_v46  ;;  %v1140_v53 = vmul.f32 %v9227_v46, %v1112_v13  ;;  %v1572_v29 = vld [vmem:[#allocation2 + $0x1a0] sm:$0x3] }
 0x3af   : > { %v2251_v7 = vadd.f32 %v2199_v63, %v2095_v14  ;;  %v2253_v36 = vadd.f32 %v2200_v0, %v2097_v3  ;;  %v1206_v11 = vmul.f32 %v10334_v42, %v1180_v45  ;;  %v1207_v18 = vmul.f32 %v9491_v59, %v10334_v42  ;;  %v1727_v0 = vld [vmem:[#allocation2 + $0x180] sm:$0xf8] }
 0x3b0   : > { %v2252_v6 = vadd.f32 %v2201_v15, %v2096_v1  ;;  %v1208_v54 = vmul.f32 %v10334_v42, %v1181_v62  ;;  %v1363_v16 = vmul.f32 %v10335_v55, %v1337_v4  ;;  %v1364_v37 = vmul.f32 %v9491_v59, %v10335_v55  ;;  %v1728_v15 = vld [vmem:[#allocation2 + $0x1a0] sm:$0x7] }
 0x3b1   : > { %v2282_v12 = vadd.f32 %v9585_v2, %v2251_v7  ;;  %v2284_v52 = vadd.f32 %v9585_v2, %v2253_v36  ;;  %v1267_v10 = vrot.slane %v1206_v11, 1  ;;  %v1268_v19 = vrot.slane %v1207_v18, 1  ;;  %v1890_v11 = vld [vmem:[#allocation2 + $0x1b0] sm:$0xfe]  ;;  %v9606_v18 = vld [vmem:[#allocation2 + $0x1c0] sm:$0xff] }
 0x3b2   : > { %v2283_v38 = vadd.f32 %v9585_v2, %v2252_v6  ;;  %v1270_v61 = vrot.slane %v1208_v54, 1  ;;  %v1365_v57 = vmul.f32 %v10335_v55, %v1338_v5  ;;  %v1424_v9 = vrot.slane %v1363_v16, 2  ;;  %v1892_v5 = vld [vmem:[#allocation2 + $0x1d0] sm:$0x1] }
 0x3b3   : > { %v2306_v30 = vmax.f32 %v2282_v12, 0.0  ;;  %v2308_v34 = vmax.f32 %v2284_v52, 0.0  ;;  %v1269_v59 = vsel %vm1236_vm8, %v1267_v10, %v1268_v19  ;;  %v1425_v41 = vrot.slane %v1364_v37, 2 }
 0x3b4   : > { %v2307_v8 = vmax.f32 %v2283_v38, 0.0  ;;  %v1271_v25 = vsel %vm1236_vm8, %v1268_v19, %v1270_v61  ;;  %v1319_v33 = vadd.f32 %v1269_v59, %v1138_v39  ;;  %v1321_v28 = vadd.f32 %v1270_v61, %v1140_v53  ;;  %v1960_v38 = vld [vmem:[#allocation2 + $0x1b0] sm:$0xfc] }
 0x3b5   : > { %v2330_v24 = vmin.f32 %v2306_v30, 6.0  ;;  %v2332_v44 = vmin.f32 %v2308_v34, 6.0  ;;  %v1320_v58 = vadd.f32 %v1271_v25, %v1139_v47  ;;  %v1426_v48 = vsel %vm1393_vm9, %v1424_v9, %v1425_v41  ;;  %v1961_v34 = vld [vmem:[#allocation2 + $0x1d0] sm:$0x3]  ;;  %v2116_v59 = vld [vmem:[#allocation2 + $0x1b0] sm:$0xf8] }
 0x3b6   : > { %v2331_v31 = vmin.f32 %v2307_v8, 6.0  ;;  %v1427_v51 = vrot.slane %v1365_v57, 2  ;;  %v1476_v50 = vadd.f32 %v1426_v48, %v1319_v33  ;;  %v1529_v49 = vmul.f32 %v10336_v60, %v1501_v27 }
 0x3b7   : > { %v2388_v13 = vrot.slane %v2330_v24, 1  ;;  %v2391_v56 = vrot.slane %v2332_v44, 1  ;;  %v1530_v40 = vmul.f32 %v9546_v32, %v10336_v60  ;;  %v1531_v35 = vmul.f32 %v10336_v60, %v1503_v22  ;;  %v2117_v44 = vld [vmem:[#allocation2 + $0x1d0] sm:$0x7] }
 0x3b8   : > { %v2389_v45 = vrot.slane %v2331_v31, 1  ;;  %v1428_v14 = vsel %vm1393_vm9, %v1425_v41, %v1427_v51  ;;  %v1478_v3 = vadd.f32 %v1427_v51, %v1321_v28  ;;  %v1553_v63 = vadd.f32 %v1529_v49, %v1476_v50 }
 0x3b9   : > { %v1477_v39 = vadd.f32 %v1428_v14, %v1320_v58  ;;  %v1597_v62 = vmul.f32 %v9258_v17, %v1571_v23  ;;  %v1598_v4 = vmul.f32 %v9546_v32, %v9258_v17  ;;  %v1599_v1 = vmul.f32 %v9258_v17, %v1572_v29 }
 0x3ba   : > { %v2390_v47 = vsel %vm1236_vm8, %v2388_v13, %v2389_v45  ;;  %v2392_v53 = vsel %vm1236_vm8, %v2389_v45, %v2391_v56  ;;  %v1555_v7 = vadd.f32 %v1531_v35, %v1478_v3  ;;  %v1753_v36 = vmul.f32 %v10338_v43, %v1727_v0  ;;  %v1113_v0 = vld [vmem:[#allocation2 + $0x180] sm:$0xfe] }
 0x3bb   : > { %v2424_v6 = vpack.c.bf16 %v2392_v53, %v2390_v47  ;;  %v1554_v54 = vadd.f32 %v1530_v40, %v1477_v39  ;;  %v1657_v16 = vrot.slane %v1597_v62, 1  ;;  %v1658_v37 = vrot.slane %v1598_v4, 1  ;;  %v1115_v39 = vld [vmem:[#allocation2 + $0x1a0] sm:$0x1]  ;;  %v1182_v47 = vld [vmem:[#allocation2 + $0x180] sm:$0xfc] }
 0x3bc   : > { %v1660_v12 = vrot.slane %v1599_v1, 1  ;;  %v1754_v52 = vmul.f32 %v9546_v32, %v10338_v43  ;;  %v1755_v10 = vmul.f32 %v10338_v43, %v1728_v15  ;;  %v1813_v19 = vrot.slane %v1753_v36, 2 }
 0x3bd   : > { %6206 = vmatmul.mubr.bf16.gmra.mrb[8].mxu1 %v2424_v6  ;;  %v1659_v61 = vsel %vm1236_vm8, %v1657_v16, %v1658_v37  ;;  %v1918_v57 = vmul.f32 %v10339_v21, %v1890_v11  ;;  %v1919_v9 = vmul.f32 %v10339_v21, %v9606_v18  ;;  %v1920_v30 = vmul.f32 %v10339_v21, %v1892_v5  ;;  %v1183_v5 = vld [vmem:[#allocation2 + $0x1a0] sm:$0x3]  ;;  %v1339_v6 = vld [vmem:[#allocation2 + $0x180] sm:$0xf8] }
 0x3be   : > { %v1661_v41 = vsel %vm1236_vm8, %v1658_v37, %v1660_v12  ;;  %v1709_v27 = vadd.f32 %v1659_v61, %v1553_v63  ;;  %v1711_v8 = vadd.f32 %v1660_v12, %v1555_v7  ;;  %v1814_v25 = vrot.slane %v1754_v52, 2  ;;  %v1340_v61 = vld [vmem:[#allocation2 + $0x1a0] sm:$0x7] }
 0x3bf   : > { %v1710_v33 = vadd.f32 %v1661_v41, %v1554_v54  ;;  %v1816_v28 = vrot.slane %v1755_v10, 2  ;;  %v1986_v22 = vmul.f32 %v10340_v20, %v1960_v38  ;;  %v1987_v24 = vmul.f32 %v10340_v20, %v9606_v18 }
 0x3c0   : > { %v1815_v58 = vsel %vm1393_vm9, %v1813_v19, %v1814_v25  ;;  %v1988_v48 = vmul.f32 %v10340_v20, %v1961_v34  ;;  %v2142_v31 = vmul.f32 %v10341_v26, %v2116_v59  ;;  %v2143_v51 = vmul.f32 %v10341_v26, %v9606_v18 }
 0x3c1   : > { %v1817_v50 = vsel %vm1393_vm9, %v1814_v25, %v1816_v28  ;;  %v1865_v49 = vadd.f32 %v1815_v58, %v1709_v27  ;;  %v1867_v23 = vadd.f32 %v1816_v28, %v1711_v8  ;;  %v2046_v29 = vrot.slane %v1986_v22, 1  ;;  %v1504_v58 = vld [vmem:[#allocation2 + $0x1b0] sm:$0xfe] }
 0x3c2   : > { %v1866_v13 = vadd.f32 %v1817_v50, %v1710_v33  ;;  %v2047_v56 = vrot.slane %v1987_v24, 1  ;;  %v2049_v40 = vrot.slane %v1988_v48, 1  ;;  %v2144_v35 = vmul.f32 %v10341_v26, %v2117_v44  ;;  %v1506_v50 = vld [vmem:[#allocation2 + $0x1d0] sm:$0x1] }
 0x3c3   : > { %v1942_v45 = vadd.f32 %v1918_v57, %v1865_v49  ;;  %v1944_v14 = vadd.f32 %v1920_v30, %v1867_v23  ;;  %v2202_v3 = vrot.slane %v2142_v31, 2  ;;  %v2203_v63 = vrot.slane %v2143_v51, 2 }
 0x3c4   : > { %v1943_v62 = vadd.f32 %v1919_v9, %v1866_v13  ;;  %v2048_v4 = vsel %vm1236_vm8, %v2046_v29, %v2047_v56  ;;  %v2050_v1 = vsel %vm1236_vm8, %v2047_v56, %v2049_v40  ;;  %v2205_v15 = vrot.slane %v2144_v35, 2 }
 0x3c5   : > { %v2098_v53 = vadd.f32 %v2048_v4, %v1942_v45  ;;  %v2100_v7 = vadd.f32 %v2049_v40, %v1944_v14  ;;  %v2204_v36 = vsel %vm1393_vm9, %v2202_v3, %v2203_v63  ;;  %v1141_v11 = vmul.f32 %v9227_v46, %v1113_v0  ;;  %v1573_v0 = vld [vmem:[#allocation2 + $0x1b0] sm:$0xfc]  ;;  %v1574_v45 = vld [vmem:[#allocation2 + $0x1d0] sm:$0x3] }
 0x3c6   : > { %v2099_v54 = vadd.f32 %v2050_v1, %v1943_v62  ;;  %v2206_v16 = vsel %vm1393_vm9, %v2203_v63, %v2205_v15  ;;  %v1142_v37 = vmul.f32 %v9546_v32, %v9227_v46  ;;  %v1143_v12 = vmul.f32 %v9227_v46, %v1115_v39  ;;  %v1729_v62 = vld [vmem:[#allocation2 + $0x1b0] sm:$0xf8] }
 0x3c7   : > { %v2254_v52 = vadd.f32 %v2204_v36, %v2098_v53  ;;  %v2256_v10 = vadd.f32 %v2205_v15, %v2100_v7  ;;  %v1209_v19 = vmul.f32 %v10334_v42, %v1182_v47  ;;  %v1210_v38 = vmul.f32 %v9546_v32, %v10334_v42 }
 0x3c8   : > { %v2255_v57 = vadd.f32 %v2206_v16, %v2099_v54  ;;  %v1211_v9 = vmul.f32 %v10334_v42, %v1183_v5  ;;  %v1366_v30 = vmul.f32 %v10335_v55, %v1339_v6  ;;  %v1367_v34 = vmul.f32 %v9546_v32, %v10335_v55  ;;  %v1730_v5 = vld [vmem:[#allocation2 + $0x1d0] sm:$0x7] }
 0x3c9   : > { %v2285_v59 = vadd.f32 %v9585_v2, %v2254_v52  ;;  %v2287_v46 = vadd.f32 %v9585_v2, %v2256_v10  ;;  %v1272_v41 = vrot.slane %v1209_v19, 1  ;;  %v1273_v27 = vrot.slane %v1210_v38, 1  ;;  %v1895_v52 = vld [vmem:[#allocation2 + $0x200] sm:$0x1] }
 0x3ca   : > { %v2286_v8 = vadd.f32 %v9585_v2, %v2255_v57  ;;  %v1275_v25 = vrot.slane %v1211_v9, 1  ;;  %v1368_v33 = vmul.f32 %v10335_v55, %v1340_v61  ;;  %v1429_v28 = vrot.slane %v1366_v30, 2 }
 0x3cb   : > { %v2309_v22 = vmax.f32 %v2285_v59, 0.0  ;;  %v2311_v24 = vmax.f32 %v2287_v46, 0.0  ;;  %v1274_v42 = vsel %vm1236_vm8, %v1272_v41, %v1273_v27  ;;  %v1430_v44 = vrot.slane %v1367_v34, 2  ;;  %v1962_v34 = vld [vmem:[#allocation2 + $0x1e0] sm:$0xfc] }
 0x3cc   : > { %v2310_v48 = vmax.f32 %v2286_v8, 0.0  ;;  %v1276_v32 = vsel %vm1236_vm8, %v1273_v27, %v1275_v25  ;;  %v1322_v31 = vadd.f32 %v1274_v42, %v1141_v11  ;;  %v1324_v51 = vadd.f32 %v1275_v25, %v1143_v12  ;;  %v1894_v12 = vld [vmem:[#allocation2 + $0x1f0] sm:$0xff]  ;;  %v1963_v8 = vld [vmem:[#allocation2 + $0x200] sm:$0x3]  ;;  %v2118_v25 = vld [vmem:[#allocation2 + $0x1e0] sm:$0xf8] }
 0x3cd   : > { %v2333_v49 = vmin.f32 %v2309_v22, 6.0  ;;  %v2335_v23 = vmin.f32 %v2311_v24, 6.0  ;;  %v1323_v29 = vadd.f32 %v1276_v32, %v1142_v37  ;;  %v1431_v13 = vsel %vm1393_vm9, %v1429_v28, %v1430_v44  ;;  %v1893_v37 = vld [vmem:[#allocation2 + $0x1e0] sm:$0xfe] }
 0x3ce   : > { %v2334_v56 = vmin.f32 %v2310_v48, 6.0  ;;  %v1432_v55 = vrot.slane %v1368_v33, 2  ;;  %v1479_v40 = vadd.f32 %v1431_v13, %v1322_v31  ;;  %v1532_v35 = vmul.f32 %v10336_v60, %v1504_v58  ;;  %v2119_v58 = vld [vmem:[#allocation2 + $0x200] sm:$0x7] }
 0x3cf   : > { %v2393_v14 = vrot.slane %v2333_v49, 1  ;;  %v2396_v3 = vrot.slane %v2335_v23, 1  ;;  %v1533_v63 = vmul.f32 %v9606_v18, %v10336_v60  ;;  %v1534_v39 = vmul.f32 %v10336_v60, %v1506_v50 }
 0x3d0   : > { %v2394_v4 = vrot.slane %v2334_v56, 1  ;;  %v1433_v1 = vsel %vm1393_vm9, %v1430_v44, %v1432_v55  ;;  %v1481_v15 = vadd.f32 %v1432_v55, %v1324_v51  ;;  %v1556_v47 = vadd.f32 %v1532_v35, %v1479_v40 }
 0x3d1   : > { %v1480_v53 = vadd.f32 %v1433_v1, %v1323_v29  ;;  %v1600_v7 = vmul.f32 %v9258_v17, %v1573_v0  ;;  %v1601_v36 = vmul.f32 %v9606_v18, %v9258_v17  ;;  %v1602_v11 = vmul.f32 %v9258_v17, %v1574_v45 }
 0x3d2   : > { %v2395_v6 = vsel %vm1236_vm8, %v2393_v14, %v2394_v4  ;;  %v2397_v54 = vsel %vm1236_vm8, %v2394_v4, %v2396_v3  ;;  %v1558_v60 = vadd.f32 %v1534_v39, %v1481_v15  ;;  %v1756_v16 = vmul.f32 %v10338_v43, %v1729_v62 }
 0x3d3   : > { %v2425_v10 = vpack.c.bf16 %v2397_v54, %v2395_v6  ;;  %v1557_v19 = vadd.f32 %v1533_v63, %v1480_v53  ;;  %v1662_v38 = vrot.slane %v1600_v7, 1  ;;  %v1663_v61 = vrot.slane %v1601_v36, 1 }
 0x3d4   : > { %v1665_v57 = vrot.slane %v1602_v11, 1  ;;  %v1757_v9 = vmul.f32 %v9606_v18, %v10338_v43  ;;  %v1758_v17 = vmul.f32 %v10338_v43, %v1730_v5  ;;  %v1818_v30 = vrot.slane %v1756_v16, 2 }
 0x3d5   : > { %6209 = vmatprep.mubr.bf16.mxu1 %v2425_v10  ;;  %v1664_v59 = vsel %vm1236_vm8, %v1662_v38, %v1663_v61  ;;  %v1921_v46 = vmul.f32 %v10339_v21, %v1893_v37  ;;  %v1922_v41 = vmul.f32 %v10339_v21, %v1894_v12  ;;  %v1923_v27 = vmul.f32 %v10339_v21, %v1895_v52 }
 0x3d6   : > { %v1666_v33 = vsel %vm1236_vm8, %v1663_v61, %v1665_v57  ;;  %v1712_v28 = vadd.f32 %v1664_v59, %v1556_v47  ;;  %v1714_v22 = vadd.f32 %v1665_v57, %v1558_v60  ;;  %v1819_v18 = vrot.slane %v1757_v9, 2  ;;  %v6099_v9 = vld [vmem:[%s6434_s15 + $0x30] sm:$0xff] }
 0x3d7   : > { %v1713_v24 = vadd.f32 %v1666_v33, %v1557_v19  ;;  %v1821_v43 = vrot.slane %v1758_v17, 2  ;;  %v1989_v42 = vmul.f32 %v10340_v20, %v1962_v34  ;;  %v1990_v44 = vmul.f32 %v10340_v20, %v1894_v12  ;;  %v6097_v34 = vld [vmem:[%s6434_s15 + $0x20] sm:$0xff]  ;;  %v6098_v33 = vld [vmem:[%s6434_s15 + $0x28] sm:$0xff] }
 0x3d8   : > { %v1820_v48 = vsel %vm1393_vm9, %v1818_v30, %v1819_v18  ;;  %v1991_v32 = vmul.f32 %v10340_v20, %v1963_v8  ;;  %v2145_v21 = vmul.f32 %v10341_v26, %v2118_v25  ;;  %v2146_v31 = vmul.f32 %v10341_v26, %v1894_v12 }
 0x3d9   : > { %v1822_v51 = vsel %vm1393_vm9, %v1819_v18, %v1821_v43  ;;  %v1868_v50 = vadd.f32 %v1820_v48, %v1712_v28  ;;  %v1870_v49 = vadd.f32 %v1821_v43, %v1714_v22  ;;  %v2051_v23 = vrot.slane %v1989_v42, 1  ;;  %v6103_v42 = vld [vmem:[%s6434_s15 + $0x50] sm:$0xff]  ;;  %v6101_v48 = vld [vmem:[%s6434_s15 + $0x40] sm:$0xff] }
 0x3da   : > { %v1869_v29 = vadd.f32 %v1822_v51, %v1713_v24  ;;  %v2052_v13 = vrot.slane %v1990_v44, 1  ;;  %v2054_v56 = vrot.slane %v1991_v32, 1  ;;  %v2147_v55 = vmul.f32 %v10341_v26, %v2119_v58 }
 0x3db   : > { %v1945_v40 = vadd.f32 %v1921_v46, %v1868_v50  ;;  %v1947_v35 = vadd.f32 %v1923_v27, %v1870_v49  ;;  %v2207_v0 = vrot.slane %v2145_v21, 2  ;;  %v2208_v45 = vrot.slane %v2146_v31, 2  ;;  %v6104_v31 = vld [vmem:[%s6434_s15 + $0x58] sm:$0xff] }
 0x3dc   : > { %v1946_v14 = vadd.f32 %v1922_v41, %v1869_v29  ;;  %v2053_v20 = vsel %vm1236_vm8, %v2051_v23, %v2052_v13  ;;  %v2055_v3 = vsel %vm1236_vm8, %v2052_v13, %v2054_v56  ;;  %v2210_v63 = vrot.slane %v2147_v55, 2  ;;  %v6100_v41 = vld [vmem:[%s6434_s15 + $0x38] sm:$0xff]  ;;  %v6102_v23 = vld [vmem:[%s6434_s15 + $0x48] sm:$0xff] }
 0x3dd   : > { %v2101_v39 = vadd.f32 %v2053_v20, %v1945_v40  ;;  %v2103_v62 = vadd.f32 %v2054_v56, %v1947_v35  ;;  %v2209_v4 = vsel %vm1393_vm9, %v2207_v0, %v2208_v45  ;;  %v6107_v35 = vld [vmem:[%s6434_s15 + $0x70] sm:$0xff] }
 0x3de   : > { %v2102_v1 = vadd.f32 %v2055_v3, %v1946_v14  ;;  %v2211_v15 = vsel %vm1393_vm9, %v2208_v45, %v2210_v63  ;;  %v6105_v14 = vld [vmem:[%s6434_s15 + $0x60] sm:$0xff] }
 0x3df   : > { %v2257_v47 = vadd.f32 %v2209_v4, %v2101_v39  ;;  %v2259_v53 = vadd.f32 %v2210_v63, %v2103_v62  ;;  %v6108_v63 = vld [vmem:[%s6434_s15 + $0x78] sm:$0xff] }
 0x3e0   : > { %v2258_v26 = vadd.f32 %v2211_v15, %v2102_v1  ;;  %v6106_v1 = vld [vmem:[%s6434_s15 + $0x68] sm:$0xff] }
 0x3e1   : > { %v2288_v7 = vadd.f32 %v9585_v2, %v2257_v47  ;;  %v2290_v36 = vadd.f32 %v9585_v2, %v2259_v53 }
 0x3e2   : > { %v2289_v11 = vadd.f32 %v9585_v2, %v2258_v26  ;;  %v9692_v2 = vld [vmem:[%s9784_s6] ss:$0 sm:$0xff] }
 0x3e3   : > { %v2312_v5 = vmax.f32 %v2288_v7, 0.0  ;;  %v2314_v6 = vmax.f32 %v2290_v36, 0.0  ;;  %v6111_v36 = vld [vmem:[%s6434_s15 + $0x90] sm:$0xff] }
 0x3e4   : > { %v2313_v54 = vmax.f32 %v2289_v11, 0.0 }
 0x3e5   : > { %v2336_v60 = vmin.f32 %v2312_v5, 6.0  ;;  %v2338_v16 = vmin.f32 %v2314_v6, 6.0  ;;  %v6109_v6 = vld [vmem:[%s6434_s15 + $0x80] sm:$0xff] }
 0x3e6   : > { %v2337_v37 = vmin.f32 %v2313_v54, 6.0 }
 0x3e7   : > { %v2398_v12 = vrot.slane %v2336_v60, 1  ;;  %v2401_v10 = vrot.slane %v2338_v16, 1  ;;  %v6112_v16 = vld [vmem:[%s6434_s15 + $0x98] sm:$0xff] }
 0x3e8   : > { %v2399_v52 = vrot.slane %v2337_v37, 1 }
 0x3ea   : > { %v2400_v19 = vsel %vm1236_vm8, %v2398_v12, %v2399_v52  ;;  %v2402_v38 = vsel %vm1236_vm8, %v2399_v52, %v2401_v10  ;;  %v6110_v10 = vld [vmem:[%s6434_s15 + $0x88] sm:$0xff] }
 0x3eb   : > { %v2426_v61 = vpack.c.bf16 %v2402_v38, %v2400_v19 }
 0x3ed   : > { %6210 = vmatmul.mubr.bf16.gmra.mrb[12].mxu1 %v2426_v61 }
 0x430   : > { %v6199_v57 = vpop.f32.mrb[0].mxu1 }
 0x431   : > { %v5887_v17 = vadd.f32 %v6199_v57, %v9692_v2  ;;  %v5815_v30 = vpop.f32.mrb[1].mxu1 }
 0x432   : > { %v5885_v59 = vadd.f32 %v9692_v2, %v5815_v30  ;;  %v6200_v46 = vpop.f32.mrb[2].mxu1 }
 0x433   : > { %v5922_v27 = vadd.f32 %v6099_v9, %v5887_v17  ;;  %v5888_v8 = vadd.f32 %v6200_v46, %v9692_v2  ;;  %v5818_v25 = vpop.f32.mrb[3].mxu1 }
 0x434   : > { %v5920_v28 = vadd.f32 %v6097_v34, %v5885_v59  ;;  %v5886_v22 = vadd.f32 %v9692_v2, %v5818_v25 }
 0x435   : > { %5938 = vst.msk [vmem:[%s9700_s18 + $0x10] sm:$0xff] %vm362_vm1, %v5922_v27  ;;  %v5923_v18 = vadd.f32 %v6100_v41, %v5888_v8 }
 0x436   : > { %5936 = vst.msk [vmem:[%s9700_s18] sm:$0xff] %vm362_vm1, %v5920_v28  ;;  %v5921_v24 = vadd.f32 %v6098_v33, %v5886_v22 }
 0x437   : > { %5939 = vst.msk [vmem:[%s9700_s18 + $0x18] sm:$0xff] %vm362_vm1, %v5923_v18 }
 0x438   : > { %5937 = vst.msk [vmem:[%s9700_s18 + $0x8] sm:$0xff] %vm362_vm1, %v5921_v24 }
 0x460   : > { %v6203_v43 = vpop.f32.mrb[4].mxu1 }
 0x461   : > { %v5891_v44 = vadd.f32 %v6203_v43, %v9692_v2  ;;  %v5831_v58 = vpop.f32.mrb[5].mxu1 }
 0x462   : > { %v5889_v32 = vadd.f32 %v9692_v2, %v5831_v58  ;;  %v6204_v21 = vpop.f32.mrb[6].mxu1 }
 0x463   : > { %v5926_v51 = vadd.f32 %v6103_v42, %v5891_v44  ;;  %v5892_v50 = vadd.f32 %v6204_v21, %v9692_v2  ;;  %v5834_v49 = vpop.f32.mrb[7].mxu1 }
 0x464   : > { %v5924_v29 = vadd.f32 %v6101_v48, %v5889_v32  ;;  %v5890_v13 = vadd.f32 %v9692_v2, %v5834_v49 }
 0x465   : > { %5942 = vst.msk [vmem:[%s9700_s18 + $0x30] sm:$0xff] %vm362_vm1, %v5926_v51  ;;  %v5927_v56 = vadd.f32 %v6104_v31, %v5892_v50 }
 0x466   : > { %5940 = vst.msk [vmem:[%s9700_s18 + $0x20] sm:$0xff] %vm362_vm1, %v5924_v29  ;;  %v5925_v55 = vadd.f32 %v6102_v23, %v5890_v13 }
 0x467   : > { %5943 = vst.msk [vmem:[%s9700_s18 + $0x38] sm:$0xff] %vm362_vm1, %v5927_v56 }
 0x468   : > { %5941 = vst.msk [vmem:[%s9700_s18 + $0x28] sm:$0xff] %vm362_vm1, %v5925_v55 }
 0x490   : > { %v6207_v40 = vpop.f32.mrb[8].mxu1 }
 0x491   : > { %v5895_v0 = vadd.f32 %v6207_v40, %v9692_v2  ;;  %v5847_v45 = vpop.f32.mrb[9].mxu1 }
 0x492   : > { %v5893_v20 = vadd.f32 %v9692_v2, %v5847_v45  ;;  %v6208_v3 = vpop.f32.mrb[10].mxu1 }
 0x493   : > { %v5930_v39 = vadd.f32 %v6107_v35, %v5895_v0  ;;  %v5896_v62 = vadd.f32 %v6208_v3, %v9692_v2  ;;  %v5850_v4 = vpop.f32.mrb[11].mxu1 }
 0x494   : > { %v5928_v15 = vadd.f32 %v6105_v14, %v5893_v20  ;;  %v5894_v47 = vadd.f32 %v9692_v2, %v5850_v4 }
 0x495   : > { %5946 = vst.msk [vmem:[%s9700_s18 + $0x50] sm:$0xff] %vm362_vm1, %v5930_v39  ;;  %v5931_v53 = vadd.f32 %v6108_v63, %v5896_v62 }
 0x496   : > { %5944 = vst.msk [vmem:[%s9700_s18 + $0x40] sm:$0xff] %vm362_vm1, %v5928_v15  ;;  %v5929_v26 = vadd.f32 %v6106_v1, %v5894_v47 }
 0x497   : > { %5947 = vst.msk [vmem:[%s9700_s18 + $0x58] sm:$0xff] %vm362_vm1, %v5931_v53 }
 0x498   : > { %5945 = vst.msk [vmem:[%s9700_s18 + $0x48] sm:$0xff] %vm362_vm1, %v5929_v26 }
 0x4c0   : > { %v6211_v7 = vpop.f32.mrb[12].mxu1 }
 0x4c1   : > { %v5899_v11 = vadd.f32 %v6211_v7, %v9692_v2  ;;  %v5863_v5 = vpop.f32.mrb[13].mxu1 }
 0x4c2   : > { %v5897_v54 = vadd.f32 %v9692_v2, %v5863_v5  ;;  %v6212_v60 = vpop.f32.mrb[14].mxu1 }
 0x4c3   : > { %v5934_v37 = vadd.f32 %v6111_v36, %v5899_v11  ;;  %v5900_v12 = vadd.f32 %v6212_v60, %v9692_v2  ;;  %v5866_v52 = vpop.f32.mrb[15].mxu1 }
 0x4c4   : > { %v5932_v19 = vadd.f32 %v6109_v6, %v5897_v54  ;;  %v5898_v38 = vadd.f32 %v9692_v2, %v5866_v52 }
 0x4c5   : > { %5950 = vst.msk [vmem:[%s9700_s18 + $0x70] sm:$0xff] %vm362_vm1, %v5934_v37  ;;  %v5935_v61 = vadd.f32 %v6112_v16, %v5900_v12 }
 0x4c6   : > { %5948 = vst.msk [vmem:[%s9700_s18 + $0x60] sm:$0xff] %vm362_vm1, %v5932_v19  ;;  %v5933_v57 = vadd.f32 %v6110_v10, %v5898_v38 }
 0x4c7   : > { %5951 = vst.msk [vmem:[%s9700_s18 + $0x78] sm:$0xff] %vm362_vm1, %v5935_v61 }
 0x4c8   : > { %5949 = vst.msk [vmem:[%s9700_s18 + $0x68] sm:$0xff] %vm362_vm1, %v5933_v57 }
 0x4c9 PF: > { %s17_s28 = sadd.s32 1, %s6345_s28   ;;  %s10345_s24 = smov %s6337_s26 }
 0x4ca   : > { %p14_p7 = scmp.ge.s32.totalorder %s17_s28, 6   ;;  %s10346_s25 = smov %s6341_s27 }
 0x4cb   : > { %s10347_s26 = smov %s10350_s29  ;;  %s10348_s27 = smov %s10354_s30 }
 0x4cc   :  { %16 = sbr.rel (!%p14_p7) target bundleno = 3 (0x3), region = 84 }

</bundles_post_ra>
